<compile_context>
chip_gen: v6e
topology: v6e:2x2x1
jax: 0.10.0
libtpu: 0.0.40
codegen_flags: <defaults>
</compile_context>

<pallas_src>
import functools

import jax
import jax.numpy as jnp
from jax import lax
from jax.experimental import pallas as pl
from jax.experimental.pallas import tpu as pltpu

# ----------------------------- configuration ---------------------------------
BATCH      = 4        # small demo batch
BLOCK_B    = 2        # batch rows per grid step (grid = (BATCH//BLOCK_B,) = (2,))
GENES      = 256      # small stand-in for genes_nums (real model: 697/4079/18498)
IN_CHANNEL = 3        # args.omic = 'exp,mut,cn'
FEAT_DIM   = 64       # CellCNN feat_dim

# (Cin, Cout, kernel_size, max_pool) — CellCNN config for in_channel == 3
CONV_CFG = [
    (3,  8,  16, 2),
    (8,  16, 16, 2),
    (16, 32, 16, 6),
]


def _round_up(n, m):
    return ((n + m - 1) // m) * m


def _layer_dims():
    dims, L = [], GENES
    for cin, cout, ksz, pool in CONV_CFG:
        Lout = L - ksz + 1          # 'valid' conv
        Lp = Lout // pool           # MaxPool1d floor semantics
        dims.append((L, Lout, Lp, cin, cout, ksz, pool))
        L = Lp
    return tuple(dims)


LAYER_DIMS = _layer_dims()          # (256->241->120), (120->105->52), (52->37->6)
L_FINAL = LAYER_DIMS[-1][2]         # 6
LOUT1   = LAYER_DIMS[0][1]          # 241
KC1     = CONV_CFG[0][0] * CONV_CFG[0][2]   # 48 = K*Cin of layer 1


# --------------------------- fused CellCNN kernel ----------------------------
def _cellcnn_kernel(cols1_ref,
                    w1_ref, b1_ref, w2_ref, b2_ref, w3_ref, b3_ref,
                    wl_ref, bl_ref,
                    out_ref,
                    s1, s2, s3,
                    *, block_b):
    """One grid step pushes `block_b` batch rows through the whole CellCNN chain."""
    # hoist weight/bias loads out of the per-row loop
    conv_w = (w1_ref[...], w2_ref[...], w3_ref[...])     # bf16 (K*Cin, Cout)
    conv_b = (b1_ref[...], b2_ref[...], b3_ref[...])     # f32  (1, Cout)
    conv_s = (s1, s2, s3)
    wl = wl_ref[...]                                     # bf16 (32, FEAT_DIM)
    bl = bl_ref[...]                                     # f32  (1, FEAT_DIM)

    for r in range(block_b):
        h = None
        for li, (_, Lout, Lp, _cin, _cout, ksz, pool) in enumerate(LAYER_DIMS):
            if li == 0:
                # layer-1 im2col precomputed in the wrapper (unaligned Cin=3 lane
                # concat removed from the kernel); column order k*Cin + ci.
                cols = cols1_ref[r]                                    # (241, 48) bf16
            else:
                # in-kernel im2col: lane concat at Cin=8/16 offsets, one MXU matmul
                # per conv (contraction depth 128 / 256).
                cols = jnp.concatenate(
                    [h[k:k + Lout, :] for k in range(ksz)], axis=1
                ).astype(jnp.bfloat16)                                 # (Lout, K*Cin)
            # Conv1d as a single MXU matmul: bf16 operands, f32 accumulation.
            y = jnp.dot(cols, conv_w[li], preferred_element_type=jnp.float32)
            # bias + ReLU in f32 (Dropout is identity in eval mode).
            y = jnp.maximum(y + conv_b[li], 0.0)                       # (Lout, Cout)

            # MaxPool1d(pool): running max of `pool` shifted copies in registers,
            # then a single stride-`pool` downsample read through VMEM scratch.
            n_keep = (Lp - 1) * pool + 1
            m = y[0:n_keep, :]
            for p in range(1, pool):
                m = jnp.maximum(m, y[p:p + n_keep, :])
            s = conv_s[li]
            s[pl.ds(0, n_keep), :] = m
            h = s[pl.ds(0, Lp, stride=pool), :]                        # (Lp, Cout) f32

        # cell_linear: (Lp3, 32) @ (32, FEAT_DIM) + bias
        out_ref[r] = (jnp.dot(h.astype(jnp.bfloat16), wl,
                              preferred_element_type=jnp.float32) + bl)


def cell_cnn_forward(x, params, *, block_b=BLOCK_B):
    B = x.shape[0]
    assert B % block_b == 0, "block_b must divide the batch"

    # Hoist layer-1 im2col to plain XLA: (B, Lout1, K*Cin) bf16, column order
    # k*Cin + ci (matches the host-side (ksz*cin, cout) weight flattening).
    ksz1 = CONV_CFG[0][2]
    cols1 = jnp.concatenate([x[:, k:k + LOUT1, :] for k in range(ksz1)],
                            axis=2).astype(jnp.bfloat16)

    args = [cols1]
    in_specs = [pl.BlockSpec((block_b, LOUT1, KC1), lambda b: (b, 0, 0))]
    for w_flat, bias in params["convs"]:
        args += [w_flat, bias]
        in_specs += [pl.BlockSpec(w_flat.shape, lambda b: (0, 0)),
                     pl.BlockSpec(bias.shape, lambda b: (0, 0))]
    args += [params["lin_w"], params["lin_b"]]
    in_specs += [pl.BlockSpec(params["lin_w"].shape, lambda b: (0, 0)),
                 pl.BlockSpec(params["lin_b"].shape, lambda b: (0, 0))]

    # per-layer pooling scratch: only (Lp-1)*pool+1 rows, sublanes padded to 8
    scratch_shapes = [
        pltpu.VMEM((_round_up((Lp - 1) * pool + 1, 8), cout), jnp.float32)
        for (_, _, Lp, _, cout, _, pool) in LAYER_DIMS
    ]

    # advisory cost hint for XLA scheduling of this small custom call
    flops_row = sum(2 * Lout * (ksz * cin) * cout
                    for (_, Lout, _, cin, cout, ksz, _) in LAYER_DIMS)
    flops_row += 2 * L_FINAL * CONV_CFG[-1][1] * FEAT_DIM
    bytes_accessed = (cols1.size * 2
                      + sum(w.size * 2 + b.size * 4 for w, b in params["convs"])
                      + params["lin_w"].size * 2 + params["lin_b"].size * 4
                      + B * L_FINAL * FEAT_DIM * 4)

    return pl.pallas_call(
        functools.partial(_cellcnn_kernel, block_b=block_b),
        out_shape=jax.ShapeDtypeStruct((B, L_FINAL, FEAT_DIM), jnp.float32),
        grid=(B // block_b,),
        in_specs=in_specs,
        out_specs=pl.BlockSpec((block_b, L_FINAL, FEAT_DIM), lambda b: (b, 0, 0)),
        scratch_shapes=scratch_shapes,
        compiler_params=pltpu.CompilerParams(
            dimension_semantics=("parallel",),
            vmem_limit_bytes=32 * 1024 * 1024),
        cost_estimate=pl.CostEstimate(flops=int(B * flops_row),
                                      transcendentals=0,
                                      bytes_accessed=int(bytes_accessed)),
    )(*args)


# ------------------------------ params / reference ---------------------------
def init_params(key):
    ks = jax.random.split(key, 8)
    convs, convs_full = [], []
    for i, (cin, cout, ksz, _pool) in enumerate(CONV_CFG):
        std = (2.0 / (cin * ksz + cout)) ** 0.5           # xavier_normal
        w = std * jax.random.normal(ks[i], (ksz, cin, cout), jnp.float32)
        b = 0.01 * jax.random.normal(ks[3 + i], (1, cout), jnp.float32)
        w_bf16 = w.astype(jnp.bfloat16)
        convs.append((w_bf16.reshape(ksz * cin, cout), b))   # kernel layout (k*Cin+ci, co)
        convs_full.append((w_bf16, b))                        # reference layout 'WIO'
    cout_last = CONV_CFG[-1][1]
    std = (2.0 / (cout_last + FEAT_DIM)) ** 0.5
    lin_w = (std * jax.random.normal(ks[6], (cout_last, FEAT_DIM), jnp.float32)
             ).astype(jnp.bfloat16)
    lin_b = 0.01 * jax.random.normal(ks[7], (1, FEAT_DIM), jnp.float32)
    return {"convs": convs, "convs_full": convs_full, "lin_w": lin_w, "lin_b": lin_b}


def cell_cnn_reference(x, params):
    """Plain-JAX reference with the same bf16-operand / f32-accumulate precision."""
    h = x
    for (_, Lout, Lp, cin, cout, ksz, pool), (w_bf16, bias) in zip(
            LAYER_DIMS, params["convs_full"]):
        hb = h.astype(jnp.bfloat16).astype(jnp.float32)
        y = lax.conv_general_dilated(hb, w_bf16.astype(jnp.float32),
                                     window_strides=(1,), padding="VALID",
                                     dimension_numbers=("NWC", "WIO", "NWC"))
        y = jnp.maximum(y + bias, 0.0)
        h = jnp.max(y[:, :Lp * pool, :].reshape(h.shape[0], Lp, pool, cout), axis=2)
    hb = h.astype(jnp.bfloat16).astype(jnp.float32)
    return hb @ params["lin_w"].astype(jnp.float32) + params["lin_b"]


if __name__ == "__main__":
    key = jax.random.PRNGKey(0)
    kp, kx = jax.random.split(key)
    params = init_params(kp)
    # module input: [B, genes, omic_channels] (the forward's x before transpose(1, 2))
    x = jax.random.normal(kx, (BATCH, GENES, IN_CHANNEL), jnp.float32)

    out = cell_cnn_forward(x, params)
    jax.block_until_ready(out)
    assert out.shape == (BATCH, L_FINAL, FEAT_DIM)        # (4, 6, 64)

    ref = cell_cnn_reference(x, params)
    max_err = float(jnp.max(jnp.abs(out - ref)))
    assert jnp.allclose(out, ref, rtol=2e-2, atol=2e-2), f"max abs err {max_err}"
    print("KERNEL_OK")
</pallas_src>

<mosaic_0001>
module attributes {stable_mosaic.version = 11 : i64} {
  func.func @_cellcnn_kernel(%arg0: i32, %arg1: memref<2x241x48xbf16, #tpu.memory_space<vmem>>, %arg2: memref<48x8xbf16, #tpu.memory_space<vmem>>, %arg3: memref<1x8xf32, #tpu.memory_space<vmem>>, %arg4: memref<128x16xbf16, #tpu.memory_space<vmem>>, %arg5: memref<1x16xf32, #tpu.memory_space<vmem>>, %arg6: memref<256x32xbf16, #tpu.memory_space<vmem>>, %arg7: memref<1x32xf32, #tpu.memory_space<vmem>>, %arg8: memref<32x64xbf16, #tpu.memory_space<vmem>>, %arg9: memref<1x64xf32, #tpu.memory_space<vmem>>, %arg10: memref<2x6x64xf32, #tpu.memory_space<vmem>>, %arg11: memref<240x8xf32, #tpu.memory_space<vmem>>, %arg12: memref<104x16xf32, #tpu.memory_space<vmem>>, %arg13: memref<32x32xf32, #tpu.memory_space<vmem>>) attributes {dimension_semantics = [#tpu.dimension_semantics<parallel>], iteration_bounds = array<i64: 2>, scalar_prefetch = 0 : i64, scratch_operands = 3 : i64, tpu.core_type = #tpu.core_type<tc>, window_params = [{transform_indices = @transform_0, window_bounds = array<i64: 2, 241, 48>}, {pipeline_mode = #tpu.pipeline_mode<synchronous>, transform_indices = @transform_1, window_bounds = array<i64: 48, 8>}, {pipeline_mode = #tpu.pipeline_mode<synchronous>, transform_indices = @transform_2, window_bounds = array<i64: 1, 8>}, {pipeline_mode = #tpu.pipeline_mode<synchronous>, transform_indices = @transform_3, window_bounds = array<i64: 128, 16>}, {pipeline_mode = #tpu.pipeline_mode<synchronous>, transform_indices = @transform_4, window_bounds = array<i64: 1, 16>}, {pipeline_mode = #tpu.pipeline_mode<synchronous>, transform_indices = @transform_5, window_bounds = array<i64: 256, 32>}, {pipeline_mode = #tpu.pipeline_mode<synchronous>, transform_indices = @transform_6, window_bounds = array<i64: 1, 32>}, {pipeline_mode = #tpu.pipeline_mode<synchronous>, transform_indices = @transform_7, window_bounds = array<i64: 32, 64>}, {pipeline_mode = #tpu.pipeline_mode<synchronous>, transform_indices = @transform_8, window_bounds = array<i64: 1, 64>}, {transform_indices = @transform_9, window_bounds = array<i64: 2, 6, 64>}]} {
    %c0 = arith.constant 0 : index
    %c0_0 = arith.constant 0 : index
    %0 = vector.load %arg2[%c0, %c0_0] : memref<48x8xbf16, #tpu.memory_space<vmem>>, vector<48x8xbf16>
    %c0_1 = arith.constant 0 : index
    %c0_2 = arith.constant 0 : index
    %1 = vector.load %arg4[%c0_1, %c0_2] : memref<128x16xbf16, #tpu.memory_space<vmem>>, vector<128x16xbf16>
    %c0_3 = arith.constant 0 : index
    %c0_4 = arith.constant 0 : index
    %2 = vector.load %arg6[%c0_3, %c0_4] : memref<256x32xbf16, #tpu.memory_space<vmem>>, vector<256x32xbf16>
    %c0_5 = arith.constant 0 : index
    %c0_6 = arith.constant 0 : index
    %3 = vector.load %arg3[%c0_5, %c0_6] : memref<1x8xf32, #tpu.memory_space<vmem>>, vector<1x8xf32>
    %c0_7 = arith.constant 0 : index
    %c0_8 = arith.constant 0 : index
    %4 = vector.load %arg5[%c0_7, %c0_8] : memref<1x16xf32, #tpu.memory_space<vmem>>, vector<1x16xf32>
    %c0_9 = arith.constant 0 : index
    %c0_10 = arith.constant 0 : index
    %5 = vector.load %arg7[%c0_9, %c0_10] : memref<1x32xf32, #tpu.memory_space<vmem>>, vector<1x32xf32>
    %c0_11 = arith.constant 0 : index
    %c0_12 = arith.constant 0 : index
    %6 = vector.load %arg8[%c0_11, %c0_12] : memref<32x64xbf16, #tpu.memory_space<vmem>>, vector<32x64xbf16>
    %c0_13 = arith.constant 0 : index
    %c0_14 = arith.constant 0 : index
    %7 = vector.load %arg9[%c0_13, %c0_14] : memref<1x64xf32, #tpu.memory_space<vmem>>, vector<1x64xf32>
    %c0_15 = arith.constant 0 : index
    %c0_16 = arith.constant 0 : index
    %c0_17 = arith.constant 0 : index
    %8 = vector.load %arg1[%c0_15, %c0_16, %c0_17] : memref<2x241x48xbf16, #tpu.memory_space<vmem>>, vector<1x241x48xbf16>
    %9 = vector.shape_cast %8 : vector<1x241x48xbf16> to vector<241x48xbf16>
    %cst = arith.constant dense<0.000000e+00> : vector<241x8xf32>
    %10 = tpu.matmul %9, %0, %cst {dimension_numbers = #tpu.dot_dimension_numbers<[1], [0], [0], [1], [0, 0, 1, 1], [], []>} : vector<241x48xbf16>, vector<48x8xbf16>, vector<241x8xf32> -> vector<241x8xf32>
    %11 = vector.broadcast %3 : vector<1x8xf32> to vector<241x8xf32>
    %12 = arith.addf %10, %11 : vector<241x8xf32>
    %cst_18 = arith.constant 0.000000e+00 : f32
    %13 = vector.broadcast %cst_18 : f32 to vector<241x8xf32>
    %14 = arith.maximumf %12, %13 : vector<241x8xf32>
    %15 = vector.extract_strided_slice %14 {offsets = [0, 0], sizes = [239, 8], strides = [1, 1]} : vector<241x8xf32> to vector<239x8xf32>
    %16 = vector.extract_strided_slice %14 {offsets = [1, 0], sizes = [239, 8], strides = [1, 1]} : vector<241x8xf32> to vector<239x8xf32>
    %17 = arith.maximumf %15, %16 : vector<239x8xf32>
    %c0_19 = arith.constant 0 : index
    %c0_20 = arith.constant 0 : index
    %18 = vector.load %arg11[%c0_19, %c0_20] : memref<240x8xf32, #tpu.memory_space<vmem>>, vector<239x8xf32>
    tpu.vector_store %arg11[%c0_19, %c0_20], %17 {strides = array<i32>} : memref<240x8xf32, #tpu.memory_space<vmem>>, vector<239x8xf32>,
    %c0_21 = arith.constant 0 : index
    %c0_22 = arith.constant 0 : index
    %19 = tpu.strided_load %arg11[%c0_21, %c0_22] {strides = array<i32: 2, 1>} : memref<240x8xf32, #tpu.memory_space<vmem>>, vector<120x8xf32>
    %20 = vector.extract_strided_slice %19 {offsets = [0, 0], sizes = [105, 8], strides = [1, 1]} : vector<120x8xf32> to vector<105x8xf32>
    %21 = vector.extract_strided_slice %19 {offsets = [1, 0], sizes = [105, 8], strides = [1, 1]} : vector<120x8xf32> to vector<105x8xf32>
    %22 = vector.extract_strided_slice %19 {offsets = [2, 0], sizes = [105, 8], strides = [1, 1]} : vector<120x8xf32> to vector<105x8xf32>
    %23 = vector.extract_strided_slice %19 {offsets = [3, 0], sizes = [105, 8], strides = [1, 1]} : vector<120x8xf32> to vector<105x8xf32>
    %24 = vector.extract_strided_slice %19 {offsets = [4, 0], sizes = [105, 8], strides = [1, 1]} : vector<120x8xf32> to vector<105x8xf32>
    %25 = vector.extract_strided_slice %19 {offsets = [5, 0], sizes = [105, 8], strides = [1, 1]} : vector<120x8xf32> to vector<105x8xf32>
    %26 = vector.extract_strided_slice %19 {offsets = [6, 0], sizes = [105, 8], strides = [1, 1]} : vector<120x8xf32> to vector<105x8xf32>
    %27 = vector.extract_strided_slice %19 {offsets = [7, 0], sizes = [105, 8], strides = [1, 1]} : vector<120x8xf32> to vector<105x8xf32>
    %28 = vector.extract_strided_slice %19 {offsets = [8, 0], sizes = [105, 8], strides = [1, 1]} : vector<120x8xf32> to vector<105x8xf32>
    %29 = vector.extract_strided_slice %19 {offsets = [9, 0], sizes = [105, 8], strides = [1, 1]} : vector<120x8xf32> to vector<105x8xf32>
    %30 = vector.extract_strided_slice %19 {offsets = [10, 0], sizes = [105, 8], strides = [1, 1]} : vector<120x8xf32> to vector<105x8xf32>
    %31 = vector.extract_strided_slice %19 {offsets = [11, 0], sizes = [105, 8], strides = [1, 1]} : vector<120x8xf32> to vector<105x8xf32>
    %32 = vector.extract_strided_slice %19 {offsets = [12, 0], sizes = [105, 8], strides = [1, 1]} : vector<120x8xf32> to vector<105x8xf32>
    %33 = vector.extract_strided_slice %19 {offsets = [13, 0], sizes = [105, 8], strides = [1, 1]} : vector<120x8xf32> to vector<105x8xf32>
    %34 = vector.extract_strided_slice %19 {offsets = [14, 0], sizes = [105, 8], strides = [1, 1]} : vector<120x8xf32> to vector<105x8xf32>
    %35 = vector.extract_strided_slice %19 {offsets = [15, 0], sizes = [105, 8], strides = [1, 1]} : vector<120x8xf32> to vector<105x8xf32>
    %36 = tpu.concatenate %20, %21, %22, %23, %24, %25, %26, %27, %28, %29, %30, %31, %32, %33, %34, %35 in 1 : vector<105x8xf32>, vector<105x8xf32>, vector<105x8xf32>, vector<105x8xf32>, vector<105x8xf32>, vector<105x8xf32>, vector<105x8xf32>, vector<105x8xf32>, vector<105x8xf32>, vector<105x8xf32>, vector<105x8xf32>, vector<105x8xf32>, vector<105x8xf32>, vector<105x8xf32>, vector<105x8xf32>, vector<105x8xf32> -> vector<105x128xf32>
    %37 = arith.truncf %36 : vector<105x128xf32> to vector<105x128xbf16>
    %cst_23 = arith.constant dense<0.000000e+00> : vector<105x16xf32>
    %38 = tpu.matmul %37, %1, %cst_23 {dimension_numbers = #tpu.dot_dimension_numbers<[1], [0], [0], [1], [0, 0, 1, 1], [], []>} : vector<105x128xbf16>, vector<128x16xbf16>, vector<105x16xf32> -> vector<105x16xf32>
    %39 = vector.broadcast %4 : vector<1x16xf32> to vector<105x16xf32>
    %40 = arith.addf %38, %39 : vector<105x16xf32>
    %cst_24 = arith.constant 0.000000e+00 : f32
    %41 = vector.broadcast %cst_24 : f32 to vector<105x16xf32>
    %42 = arith.maximumf %40, %41 : vector<105x16xf32>
    %43 = vector.extract_strided_slice %42 {offsets = [0, 0], sizes = [103, 16], strides = [1, 1]} : vector<105x16xf32> to vector<103x16xf32>
    %44 = vector.extract_strided_slice %42 {offsets = [1, 0], sizes = [103, 16], strides = [1, 1]} : vector<105x16xf32> to vector<103x16xf32>
    %45 = arith.maximumf %43, %44 : vector<103x16xf32>
    %c0_25 = arith.constant 0 : index
    %c0_26 = arith.constant 0 : index
    %46 = vector.load %arg12[%c0_25, %c0_26] : memref<104x16xf32, #tpu.memory_space<vmem>>, vector<103x16xf32>
    tpu.vector_store %arg12[%c0_25, %c0_26], %45 {strides = array<i32>} : memref<104x16xf32, #tpu.memory_space<vmem>>, vector<103x16xf32>,
    %c0_27 = arith.constant 0 : index
    %c0_28 = arith.constant 0 : index
    %47 = tpu.strided_load %arg12[%c0_27, %c0_28] {strides = array<i32: 2, 1>} : memref<104x16xf32, #tpu.memory_space<vmem>>, vector<52x16xf32>
    %48 = vector.extract_strided_slice %47 {offsets = [0, 0], sizes = [37, 16], strides = [1, 1]} : vector<52x16xf32> to vector<37x16xf32>
    %49 = vector.extract_strided_slice %47 {offsets = [1, 0], sizes = [37, 16], strides = [1, 1]} : vector<52x16xf32> to vector<37x16xf32>
    %50 = vector.extract_strided_slice %47 {offsets = [2, 0], sizes = [37, 16], strides = [1, 1]} : vector<52x16xf32> to vector<37x16xf32>
    %51 = vector.extract_strided_slice %47 {offsets = [3, 0], sizes = [37, 16], strides = [1, 1]} : vector<52x16xf32> to vector<37x16xf32>
    %52 = vector.extract_strided_slice %47 {offsets = [4, 0], sizes = [37, 16], strides = [1, 1]} : vector<52x16xf32> to vector<37x16xf32>
    %53 = vector.extract_strided_slice %47 {offsets = [5, 0], sizes = [37, 16], strides = [1, 1]} : vector<52x16xf32> to vector<37x16xf32>
    %54 = vector.extract_strided_slice %47 {offsets = [6, 0], sizes = [37, 16], strides = [1, 1]} : vector<52x16xf32> to vector<37x16xf32>
    %55 = vector.extract_strided_slice %47 {offsets = [7, 0], sizes = [37, 16], strides = [1, 1]} : vector<52x16xf32> to vector<37x16xf32>
    %56 = vector.extract_strided_slice %47 {offsets = [8, 0], sizes = [37, 16], strides = [1, 1]} : vector<52x16xf32> to vector<37x16xf32>
    %57 = vector.extract_strided_slice %47 {offsets = [9, 0], sizes = [37, 16], strides = [1, 1]} : vector<52x16xf32> to vector<37x16xf32>
    %58 = vector.extract_strided_slice %47 {offsets = [10, 0], sizes = [37, 16], strides = [1, 1]} : vector<52x16xf32> to vector<37x16xf32>
    %59 = vector.extract_strided_slice %47 {offsets = [11, 0], sizes = [37, 16], strides = [1, 1]} : vector<52x16xf32> to vector<37x16xf32>
    %60 = vector.extract_strided_slice %47 {offsets = [12, 0], sizes = [37, 16], strides = [1, 1]} : vector<52x16xf32> to vector<37x16xf32>
    %61 = vector.extract_strided_slice %47 {offsets = [13, 0], sizes = [37, 16], strides = [1, 1]} : vector<52x16xf32> to vector<37x16xf32>
    %62 = vector.extract_strided_slice %47 {offsets = [14, 0], sizes = [37, 16], strides = [1, 1]} : vector<52x16xf32> to vector<37x16xf32>
    %63 = vector.extract_strided_slice %47 {offsets = [15, 0], sizes = [37, 16], strides = [1, 1]} : vector<52x16xf32> to vector<37x16xf32>
    %64 = tpu.concatenate %48, %49, %50, %51, %52, %53, %54, %55, %56, %57, %58, %59, %60, %61, %62, %63 in 1 : vector<37x16xf32>, vector<37x16xf32>, vector<37x16xf32>, vector<37x16xf32>, vector<37x16xf32>, vector<37x16xf32>, vector<37x16xf32>, vector<37x16xf32>, vector<37x16xf32>, vector<37x16xf32>, vector<37x16xf32>, vector<37x16xf32>, vector<37x16xf32>, vector<37x16xf32>, vector<37x16xf32>, vector<37x16xf32> -> vector<37x256xf32>
    %65 = arith.truncf %64 : vector<37x256xf32> to vector<37x256xbf16>
    %cst_29 = arith.constant dense<0.000000e+00> : vector<37x32xf32>
    %66 = tpu.matmul %65, %2, %cst_29 {dimension_numbers = #tpu.dot_dimension_numbers<[1], [0], [0], [1], [0, 0, 1, 1], [], []>} : vector<37x256xbf16>, vector<256x32xbf16>, vector<37x32xf32> -> vector<37x32xf32>
    %67 = vector.broadcast %5 : vector<1x32xf32> to vector<37x32xf32>
    %68 = arith.addf %66, %67 : vector<37x32xf32>
    %cst_30 = arith.constant 0.000000e+00 : f32
    %69 = vector.broadcast %cst_30 : f32 to vector<37x32xf32>
    %70 = arith.maximumf %68, %69 : vector<37x32xf32>
    %71 = vector.extract_strided_slice %70 {offsets = [0, 0], sizes = [31, 32], strides = [1, 1]} : vector<37x32xf32> to vector<31x32xf32>
    %72 = vector.extract_strided_slice %70 {offsets = [1, 0], sizes = [31, 32], strides = [1, 1]} : vector<37x32xf32> to vector<31x32xf32>
    %73 = arith.maximumf %71, %72 : vector<31x32xf32>
    %74 = vector.extract_strided_slice %70 {offsets = [2, 0], sizes = [31, 32], strides = [1, 1]} : vector<37x32xf32> to vector<31x32xf32>
    %75 = arith.maximumf %73, %74 : vector<31x32xf32>
    %76 = vector.extract_strided_slice %70 {offsets = [3, 0], sizes = [31, 32], strides = [1, 1]} : vector<37x32xf32> to vector<31x32xf32>
    %77 = arith.maximumf %75, %76 : vector<31x32xf32>
    %78 = vector.extract_strided_slice %70 {offsets = [4, 0], sizes = [31, 32], strides = [1, 1]} : vector<37x32xf32> to vector<31x32xf32>
    %79 = arith.maximumf %77, %78 : vector<31x32xf32>
    %80 = vector.extract_strided_slice %70 {offsets = [5, 0], sizes = [31, 32], strides = [1, 1]} : vector<37x32xf32> to vector<31x32xf32>
    %81 = arith.maximumf %79, %80 : vector<31x32xf32>
    %c0_31 = arith.constant 0 : index
    %c0_32 = arith.constant 0 : index
    %82 = vector.load %arg13[%c0_31, %c0_32] : memref<32x32xf32, #tpu.memory_space<vmem>>, vector<31x32xf32>
    tpu.vector_store %arg13[%c0_31, %c0_32], %81 {strides = array<i32>} : memref<32x32xf32, #tpu.memory_space<vmem>>, vector<31x32xf32>,
    %c0_33 = arith.constant 0 : index
    %c0_34 = arith.constant 0 : index
    %83 = tpu.strided_load %arg13[%c0_33, %c0_34] {strides = array<i32: 6, 1>} : memref<32x32xf32, #tpu.memory_space<vmem>>, vector<6x32xf32>
    %84 = arith.truncf %83 : vector<6x32xf32> to vector<6x32xbf16>
    %cst_35 = arith.constant dense<0.000000e+00> : vector<6x64xf32>
    %85 = tpu.matmul %84, %6, %cst_35 {dimension_numbers = #tpu.dot_dimension_numbers<[1], [0], [0], [1], [0, 0, 1, 1], [], []>} : vector<6x32xbf16>, vector<32x64xbf16>, vector<6x64xf32> -> vector<6x64xf32>
    %86 = vector.broadcast %7 : vector<1x64xf32> to vector<6x64xf32>
    %87 = arith.addf %85, %86 : vector<6x64xf32>
    %c0_36 = arith.constant 0 : index
    %c0_37 = arith.constant 0 : index
    %c0_38 = arith.constant 0 : index
    %88 = vector.load %arg10[%c0_36, %c0_37, %c0_38] : memref<2x6x64xf32, #tpu.memory_space<vmem>>, vector<1x6x64xf32>
    %89 = vector.shape_cast %88 : vector<1x6x64xf32> to vector<6x64xf32>
    %90 = vector.shape_cast %87 : vector<6x64xf32> to vector<1x6x64xf32>
    tpu.vector_store %arg10[%c0_36, %c0_37, %c0_38], %90 {strides = array<i32>} : memref<2x6x64xf32, #tpu.memory_space<vmem>>, vector<1x6x64xf32>,
    %c1 = arith.constant 1 : index
    %c0_39 = arith.constant 0 : index
    %c0_40 = arith.constant 0 : index
    %91 = vector.load %arg1[%c1, %c0_39, %c0_40] : memref<2x241x48xbf16, #tpu.memory_space<vmem>>, vector<1x241x48xbf16>
    %92 = vector.shape_cast %91 : vector<1x241x48xbf16> to vector<241x48xbf16>
    %cst_41 = arith.constant dense<0.000000e+00> : vector<241x8xf32>
    %93 = tpu.matmul %92, %0, %cst_41 {dimension_numbers = #tpu.dot_dimension_numbers<[1], [0], [0], [1], [0, 0, 1, 1], [], []>} : vector<241x48xbf16>, vector<48x8xbf16>, vector<241x8xf32> -> vector<241x8xf32>
    %94 = vector.broadcast %3 : vector<1x8xf32> to vector<241x8xf32>
    %95 = arith.addf %93, %94 : vector<241x8xf32>
    %cst_42 = arith.constant 0.000000e+00 : f32
    %96 = vector.broadcast %cst_42 : f32 to vector<241x8xf32>
    %97 = arith.maximumf %95, %96 : vector<241x8xf32>
    %98 = vector.extract_strided_slice %97 {offsets = [0, 0], sizes = [239, 8], strides = [1, 1]} : vector<241x8xf32> to vector<239x8xf32>
    %99 = vector.extract_strided_slice %97 {offsets = [1, 0], sizes = [239, 8], strides = [1, 1]} : vector<241x8xf32> to vector<239x8xf32>
    %100 = arith.maximumf %98, %99 : vector<239x8xf32>
    %c0_43 = arith.constant 0 : index
    %c0_44 = arith.constant 0 : index
    %101 = vector.load %arg11[%c0_43, %c0_44] : memref<240x8xf32, #tpu.memory_space<vmem>>, vector<239x8xf32>
    tpu.vector_store %arg11[%c0_43, %c0_44], %100 {strides = array<i32>} : memref<240x8xf32, #tpu.memory_space<vmem>>, vector<239x8xf32>,
    %c0_45 = arith.constant 0 : index
    %c0_46 = arith.constant 0 : index
    %102 = tpu.strided_load %arg11[%c0_45, %c0_46] {strides = array<i32: 2, 1>} : memref<240x8xf32, #tpu.memory_space<vmem>>, vector<120x8xf32>
    %103 = vector.extract_strided_slice %102 {offsets = [0, 0], sizes = [105, 8], strides = [1, 1]} : vector<120x8xf32> to vector<105x8xf32>
    %104 = vector.extract_strided_slice %102 {offsets = [1, 0], sizes = [105, 8], strides = [1, 1]} : vector<120x8xf32> to vector<105x8xf32>
    %105 = vector.extract_strided_slice %102 {offsets = [2, 0], sizes = [105, 8], strides = [1, 1]} : vector<120x8xf32> to vector<105x8xf32>
    %106 = vector.extract_strided_slice %102 {offsets = [3, 0], sizes = [105, 8], strides = [1, 1]} : vector<120x8xf32> to vector<105x8xf32>
    %107 = vector.extract_strided_slice %102 {offsets = [4, 0], sizes = [105, 8], strides = [1, 1]} : vector<120x8xf32> to vector<105x8xf32>
    %108 = vector.extract_strided_slice %102 {offsets = [5, 0], sizes = [105, 8], strides = [1, 1]} : vector<120x8xf32> to vector<105x8xf32>
    %109 = vector.extract_strided_slice %102 {offsets = [6, 0], sizes = [105, 8], strides = [1, 1]} : vector<120x8xf32> to vector<105x8xf32>
    %110 = vector.extract_strided_slice %102 {offsets = [7, 0], sizes = [105, 8], strides = [1, 1]} : vector<120x8xf32> to vector<105x8xf32>
    %111 = vector.extract_strided_slice %102 {offsets = [8, 0], sizes = [105, 8], strides = [1, 1]} : vector<120x8xf32> to vector<105x8xf32>
    %112 = vector.extract_strided_slice %102 {offsets = [9, 0], sizes = [105, 8], strides = [1, 1]} : vector<120x8xf32> to vector<105x8xf32>
    %113 = vector.extract_strided_slice %102 {offsets = [10, 0], sizes = [105, 8], strides = [1, 1]} : vector<120x8xf32> to vector<105x8xf32>
    %114 = vector.extract_strided_slice %102 {offsets = [11, 0], sizes = [105, 8], strides = [1, 1]} : vector<120x8xf32> to vector<105x8xf32>
    %115 = vector.extract_strided_slice %102 {offsets = [12, 0], sizes = [105, 8], strides = [1, 1]} : vector<120x8xf32> to vector<105x8xf32>
    %116 = vector.extract_strided_slice %102 {offsets = [13, 0], sizes = [105, 8], strides = [1, 1]} : vector<120x8xf32> to vector<105x8xf32>
    %117 = vector.extract_strided_slice %102 {offsets = [14, 0], sizes = [105, 8], strides = [1, 1]} : vector<120x8xf32> to vector<105x8xf32>
    %118 = vector.extract_strided_slice %102 {offsets = [15, 0], sizes = [105, 8], strides = [1, 1]} : vector<120x8xf32> to vector<105x8xf32>
    %119 = tpu.concatenate %103, %104, %105, %106, %107, %108, %109, %110, %111, %112, %113, %114, %115, %116, %117, %118 in 1 : vector<105x8xf32>, vector<105x8xf32>, vector<105x8xf32>, vector<105x8xf32>, vector<105x8xf32>, vector<105x8xf32>, vector<105x8xf32>, vector<105x8xf32>, vector<105x8xf32>, vector<105x8xf32>, vector<105x8xf32>, vector<105x8xf32>, vector<105x8xf32>, vector<105x8xf32>, vector<105x8xf32>, vector<105x8xf32> -> vector<105x128xf32>
    %120 = arith.truncf %119 : vector<105x128xf32> to vector<105x128xbf16>
    %cst_47 = arith.constant dense<0.000000e+00> : vector<105x16xf32>
    %121 = tpu.matmul %120, %1, %cst_47 {dimension_numbers = #tpu.dot_dimension_numbers<[1], [0], [0], [1], [0, 0, 1, 1], [], []>} : vector<105x128xbf16>, vector<128x16xbf16>, vector<105x16xf32> -> vector<105x16xf32>
    %122 = vector.broadcast %4 : vector<1x16xf32> to vector<105x16xf32>
    %123 = arith.addf %121, %122 : vector<105x16xf32>
    %cst_48 = arith.constant 0.000000e+00 : f32
    %124 = vector.broadcast %cst_48 : f32 to vector<105x16xf32>
    %125 = arith.maximumf %123, %124 : vector<105x16xf32>
    %126 = vector.extract_strided_slice %125 {offsets = [0, 0], sizes = [103, 16], strides = [1, 1]} : vector<105x16xf32> to vector<103x16xf32>
    %127 = vector.extract_strided_slice %125 {offsets = [1, 0], sizes = [103, 16], strides = [1, 1]} : vector<105x16xf32> to vector<103x16xf32>
    %128 = arith.maximumf %126, %127 : vector<103x16xf32>
    %c0_49 = arith.constant 0 : index
    %c0_50 = arith.constant 0 : index
    %129 = vector.load %arg12[%c0_49, %c0_50] : memref<104x16xf32, #tpu.memory_space<vmem>>, vector<103x16xf32>
    tpu.vector_store %arg12[%c0_49, %c0_50], %128 {strides = array<i32>} : memref<104x16xf32, #tpu.memory_space<vmem>>, vector<103x16xf32>,
    %c0_51 = arith.constant 0 : index
    %c0_52 = arith.constant 0 : index
    %130 = tpu.strided_load %arg12[%c0_51, %c0_52] {strides = array<i32: 2, 1>} : memref<104x16xf32, #tpu.memory_space<vmem>>, vector<52x16xf32>
    %131 = vector.extract_strided_slice %130 {offsets = [0, 0], sizes = [37, 16], strides = [1, 1]} : vector<52x16xf32> to vector<37x16xf32>
    %132 = vector.extract_strided_slice %130 {offsets = [1, 0], sizes = [37, 16], strides = [1, 1]} : vector<52x16xf32> to vector<37x16xf32>
    %133 = vector.extract_strided_slice %130 {offsets = [2, 0], sizes = [37, 16], strides = [1, 1]} : vector<52x16xf32> to vector<37x16xf32>
    %134 = vector.extract_strided_slice %130 {offsets = [3, 0], sizes = [37, 16], strides = [1, 1]} : vector<52x16xf32> to vector<37x16xf32>
    %135 = vector.extract_strided_slice %130 {offsets = [4, 0], sizes = [37, 16], strides = [1, 1]} : vector<52x16xf32> to vector<37x16xf32>
    %136 = vector.extract_strided_slice %130 {offsets = [5, 0], sizes = [37, 16], strides = [1, 1]} : vector<52x16xf32> to vector<37x16xf32>
    %137 = vector.extract_strided_slice %130 {offsets = [6, 0], sizes = [37, 16], strides = [1, 1]} : vector<52x16xf32> to vector<37x16xf32>
    %138 = vector.extract_strided_slice %130 {offsets = [7, 0], sizes = [37, 16], strides = [1, 1]} : vector<52x16xf32> to vector<37x16xf32>
    %139 = vector.extract_strided_slice %130 {offsets = [8, 0], sizes = [37, 16], strides = [1, 1]} : vector<52x16xf32> to vector<37x16xf32>
    %140 = vector.extract_strided_slice %130 {offsets = [9, 0], sizes = [37, 16], strides = [1, 1]} : vector<52x16xf32> to vector<37x16xf32>
    %141 = vector.extract_strided_slice %130 {offsets = [10, 0], sizes = [37, 16], strides = [1, 1]} : vector<52x16xf32> to vector<37x16xf32>
    %142 = vector.extract_strided_slice %130 {offsets = [11, 0], sizes = [37, 16], strides = [1, 1]} : vector<52x16xf32> to vector<37x16xf32>
    %143 = vector.extract_strided_slice %130 {offsets = [12, 0], sizes = [37, 16], strides = [1, 1]} : vector<52x16xf32> to vector<37x16xf32>
    %144 = vector.extract_strided_slice %130 {offsets = [13, 0], sizes = [37, 16], strides = [1, 1]} : vector<52x16xf32> to vector<37x16xf32>
    %145 = vector.extract_strided_slice %130 {offsets = [14, 0], sizes = [37, 16], strides = [1, 1]} : vector<52x16xf32> to vector<37x16xf32>
    %146 = vector.extract_strided_slice %130 {offsets = [15, 0], sizes = [37, 16], strides = [1, 1]} : vector<52x16xf32> to vector<37x16xf32>
    %147 = tpu.concatenate %131, %132, %133, %134, %135, %136, %137, %138, %139, %140, %141, %142, %143, %144, %145, %146 in 1 : vector<37x16xf32>, vector<37x16xf32>, vector<37x16xf32>, vector<37x16xf32>, vector<37x16xf32>, vector<37x16xf32>, vector<37x16xf32>, vector<37x16xf32>, vector<37x16xf32>, vector<37x16xf32>, vector<37x16xf32>, vector<37x16xf32>, vector<37x16xf32>, vector<37x16xf32>, vector<37x16xf32>, vector<37x16xf32> -> vector<37x256xf32>
    %148 = arith.truncf %147 : vector<37x256xf32> to vector<37x256xbf16>
    %cst_53 = arith.constant dense<0.000000e+00> : vector<37x32xf32>
    %149 = tpu.matmul %148, %2, %cst_53 {dimension_numbers = #tpu.dot_dimension_numbers<[1], [0], [0], [1], [0, 0, 1, 1], [], []>} : vector<37x256xbf16>, vector<256x32xbf16>, vector<37x32xf32> -> vector<37x32xf32>
    %150 = vector.broadcast %5 : vector<1x32xf32> to vector<37x32xf32>
    %151 = arith.addf %149, %150 : vector<37x32xf32>
    %cst_54 = arith.constant 0.000000e+00 : f32
    %152 = vector.broadcast %cst_54 : f32 to vector<37x32xf32>
    %153 = arith.maximumf %151, %152 : vector<37x32xf32>
    %154 = vector.extract_strided_slice %153 {offsets = [0, 0], sizes = [31, 32], strides = [1, 1]} : vector<37x32xf32> to vector<31x32xf32>
    %155 = vector.extract_strided_slice %153 {offsets = [1, 0], sizes = [31, 32], strides = [1, 1]} : vector<37x32xf32> to vector<31x32xf32>
    %156 = arith.maximumf %154, %155 : vector<31x32xf32>
    %157 = vector.extract_strided_slice %153 {offsets = [2, 0], sizes = [31, 32], strides = [1, 1]} : vector<37x32xf32> to vector<31x32xf32>
    %158 = arith.maximumf %156, %157 : vector<31x32xf32>
    %159 = vector.extract_strided_slice %153 {offsets = [3, 0], sizes = [31, 32], strides = [1, 1]} : vector<37x32xf32> to vector<31x32xf32>
    %160 = arith.maximumf %158, %159 : vector<31x32xf32>
    %161 = vector.extract_strided_slice %153 {offsets = [4, 0], sizes = [31, 32], strides = [1, 1]} : vector<37x32xf32> to vector<31x32xf32>
    %162 = arith.maximumf %160, %161 : vector<31x32xf32>
    %163 = vector.extract_strided_slice %153 {offsets = [5, 0], sizes = [31, 32], strides = [1, 1]} : vector<37x32xf32> to vector<31x32xf32>
    %164 = arith.maximumf %162, %163 : vector<31x32xf32>
    %c0_55 = arith.constant 0 : index
    %c0_56 = arith.constant 0 : index
    %165 = vector.load %arg13[%c0_55, %c0_56] : memref<32x32xf32, #tpu.memory_space<vmem>>, vector<31x32xf32>
    tpu.vector_store %arg13[%c0_55, %c0_56], %164 {strides = array<i32>} : memref<32x32xf32, #tpu.memory_space<vmem>>, vector<31x32xf32>,
    %c0_57 = arith.constant 0 : index
    %c0_58 = arith.constant 0 : index
    %166 = tpu.strided_load %arg13[%c0_57, %c0_58] {strides = array<i32: 6, 1>} : memref<32x32xf32, #tpu.memory_space<vmem>>, vector<6x32xf32>
    %167 = arith.truncf %166 : vector<6x32xf32> to vector<6x32xbf16>
    %cst_59 = arith.constant dense<0.000000e+00> : vector<6x64xf32>
    %168 = tpu.matmul %167, %6, %cst_59 {dimension_numbers = #tpu.dot_dimension_numbers<[1], [0], [0], [1], [0, 0, 1, 1], [], []>} : vector<6x32xbf16>, vector<32x64xbf16>, vector<6x64xf32> -> vector<6x64xf32>
    %169 = vector.broadcast %7 : vector<1x64xf32> to vector<6x64xf32>
    %170 = arith.addf %168, %169 : vector<6x64xf32>
    %c1_60 = arith.constant 1 : index
    %c0_61 = arith.constant 0 : index
    %c0_62 = arith.constant 0 : index
    %171 = vector.load %arg10[%c1_60, %c0_61, %c0_62] : memref<2x6x64xf32, #tpu.memory_space<vmem>>, vector<1x6x64xf32>
    %172 = vector.shape_cast %171 : vector<1x6x64xf32> to vector<6x64xf32>
    %173 = vector.shape_cast %170 : vector<6x64xf32> to vector<1x6x64xf32>
    tpu.vector_store %arg10[%c1_60, %c0_61, %c0_62], %173 {strides = array<i32>} : memref<2x6x64xf32, #tpu.memory_space<vmem>>, vector<1x6x64xf32>,
    return
  }
  func.func @transform_0(%arg0: i32) -> (i32, i32, i32) {
    %c0_i32 = arith.constant 0 : i32
    %c0_i32_0 = arith.constant 0 : i32
    %c0_i32_1 = arith.constant 0 : i32
    return %arg0, %c0_i32, %c0_i32_0 : i32, i32, i32
  }
  func.func @transform_1(%arg0: i32) -> (i32, i32) {
    %c0_i32 = arith.constant 0 : i32
    %c0_i32_0 = arith.constant 0 : i32
    %c0_i32_1 = arith.constant 0 : i32
    return %c0_i32, %c0_i32_0 : i32, i32
  }
  func.func @transform_2(%arg0: i32) -> (i32, i32) {
    %c0_i32 = arith.constant 0 : i32
    %c0_i32_0 = arith.constant 0 : i32
    %c0_i32_1 = arith.constant 0 : i32
    return %c0_i32, %c0_i32_0 : i32, i32
  }
  func.func @transform_3(%arg0: i32) -> (i32, i32) {
    %c0_i32 = arith.constant 0 : i32
    %c0_i32_0 = arith.constant 0 : i32
    %c0_i32_1 = arith.constant 0 : i32
    return %c0_i32, %c0_i32_0 : i32, i32
  }
  func.func @transform_4(%arg0: i32) -> (i32, i32) {
    %c0_i32 = arith.constant 0 : i32
    %c0_i32_0 = arith.constant 0 : i32
    %c0_i32_1 = arith.constant 0 : i32
    return %c0_i32, %c0_i32_0 : i32, i32
  }
  func.func @transform_5(%arg0: i32) -> (i32, i32) {
    %c0_i32 = arith.constant 0 : i32
    %c0_i32_0 = arith.constant 0 : i32
    %c0_i32_1 = arith.constant 0 : i32
    return %c0_i32, %c0_i32_0 : i32, i32
  }
  func.func @transform_6(%arg0: i32) -> (i32, i32) {
    %c0_i32 = arith.constant 0 : i32
    %c0_i32_0 = arith.constant 0 : i32
    %c0_i32_1 = arith.constant 0 : i32
    return %c0_i32, %c0_i32_0 : i32, i32
  }
  func.func @transform_7(%arg0: i32) -> (i32, i32) {
    %c0_i32 = arith.constant 0 : i32
    %c0_i32_0 = arith.constant 0 : i32
    %c0_i32_1 = arith.constant 0 : i32
    return %c0_i32, %c0_i32_0 : i32, i32
  }
  func.func @transform_8(%arg0: i32) -> (i32, i32) {
    %c0_i32 = arith.constant 0 : i32
    %c0_i32_0 = arith.constant 0 : i32
    %c0_i32_1 = arith.constant 0 : i32
    return %c0_i32, %c0_i32_0 : i32, i32
  }
  func.func @transform_9(%arg0: i32) -> (i32, i32, i32) {
    %c0_i32 = arith.constant 0 : i32
    %c0_i32_0 = arith.constant 0 : i32
    %c0_i32_1 = arith.constant 0 : i32
    return %arg0, %c0_i32, %c0_i32_0 : i32, i32, i32
  }
}

</mosaic_0001>

<bundles_post_ra>
// kernel: tpu_custom_call.1
= control target key start
LH: loop header
LB: loop body
LE: loop exit
PB: predicated region body
PF: predicated region fallthrough
CT: control target
= control target key end

     0   :  { %s7151_s30 = smov 0   ;;  %s10842_s0 = inlined_call_operand.vmem [shape: bf16[4,241,48], index: 0, kind: input, shape index: {}]   ;;  %s10843_s1 = inlined_call_operand.vmem [shape: bf16[48,8], index: 1, kind: input, shape index: {}]   ;;  %s10844_s2 = inlined_call_operand.vmem [shape: f32[1,8], index: 2, kind: input, shape index: {}]   ;;  %s10845_s3 = inlined_call_operand.vmem [shape: bf16[128,16], index: 3, kind: input, shape index: {}]   ;;  %s10846_s4 = inlined_call_operand.vmem [shape: f32[1,16], index: 4, kind: input, shape index: {}]   ;;  %s10847_s5 = inlined_call_operand.vmem [shape: bf16[256,32], index: 5, kind: input, shape index: {}]   ;;  %s10848_s6 = inlined_call_operand.vmem [shape: f32[1,32], index: 6, kind: input, shape index: {}]   ;;  %s10849_s7 = inlined_call_operand.vmem [shape: bf16[32,64], index: 7, kind: input, shape index: {}]   ;;  %s10850_s8 = inlined_call_operand.vmem [shape: f32[1,64], index: 8, kind: input, shape index: {}]   ;;  %s10851_s9 = inlined_call_operand.vmem [shape: f32[4,6,64], index: 9, kind: output, shape index: {}]  }
   0x1 LB: > { %s5246_s10 = sadd.s32 4294967295, %s7082_s30   ;;  %p5250_p0 = scmp.ge.s32.totalorder %s7082_s30, 1  ;;  %s7082_s30 = sphi %s7151_s30, %s19_s30  }
   0x2   : > { %p289_p1 = scmp.lt.s32.totalorder %s7082_s30, 3 }
   0x4   : > { %p290_p2 = pnand %p5250_p0, %p289_p1 }
   0x5   : > { %s5251_s13 = sshll.u32 (!%p290_p2), %s5246_s10, 1  ;;  %s7084_s24 = smov (!%p290_p2), 64  }
   0x6   : > { %293 = sbr.rel (%p290_p2) target bundleno = 2302 (0x8fe), region = 56  ;;  %p327_p3 = scmp.lt.s32.totalorder (!%p290_p2), %s5251_s13, 3 }
   0x7   : > { %s7085_s25 = smov (!%p290_p2), 8   ;;  %s7086_s26 = smov (!%p290_p2), 24  }
   0x8   : > { %s7087_s27 = smov (!%p290_p2), 16   ;;  %s7088_s28 = smov (!%p290_p2), 32  }
   0x9   : > { %s7089_s29 = smov (!%p290_p2), 40   ;;  %s7090_s10 = smov (!%p290_p2), 48  }
   0xa   : > { %s7091_s11 = smov (!%p290_p2), 56   ;;  %s7092_s12 = smov (!%p290_p2), 72  }
   0xb   : > { %v6976_v0 = vld [vmem:[%s10843_s1 + $0x10] sm:$0xff]   ;;  %v6977_v1 = vld [vmem:[%s10843_s1 + $0x8] sm:$0xff]   ;;  %v6978_v2 = vld [vmem:[%s10843_s1] sm:$0xff]   ;;  %s11440_s13 = smov (!%p327_p3, %s5251_s13), 3  ;;  %vm535_vm0 = vcmask 392192   ;;  %vm10864_vm1 = vcmask 1046528  }
   0xc   : > { %5530 = vmatprep.subr.bf16.mxu0 %v6976_v0  ;;  %s5710_s18 = smul.u32 124, %s11440_s13  ;;  %v7211_v19 = vld [vmem:[%s10844_s2] ss:$0 sm:$0xff]  ;;  %vm10857_vm2 = vcmask 64512   ;;  %vm10860_vm3 = vcmask 1044480   ;;  %vm10866_vm4 = vcmask 1045504  }
   0xd   : > { %5531 = vmatpush3.bf16.msra.mxu0 %v6976_v0  ;;  %vm10861_vm5 = vcmask 1043456   ;;  %vm10865_vm6 = vcmask 1042432   ;;  %vm10868_vm7 = vcmask 1041408   ;;  %vm10867_vm8 = vcmask 1040384   ;;  %s7093_s14 = smov 80   ;;  %s7094_s15 = smov 88  }
   0xe   : > { %5532 = vmatprep.subr.bf16.mxu0 %v6977_v1  ;;  %s7174_s21 = scalar_lea.vmem %s10842_s0, %s5710_s18  ;;  %s7095_s16 = smov 96   ;;  %vm10852_vm9 = vcmask 63488   ;;  %vm10862_vm10 = vmmov 0   ;;  %vm10856_vm11 = vcmask 130048   ;;  %vm10855_vm12 = vcmask 195584  }
   0xf   : > { %v6979_v3 = vld [vmem:[%s7174_s21] sm:$0xff]   ;;  %v6980_v4 = vld [vmem:[%s7174_s21 + $0x8] sm:$0xff]   ;;  %v6981_v5 = vld [vmem:[%s7174_s21 + $0x10] sm:$0xff]   ;;  %s7096_s17 = smov 104   ;;  %s10872_s18 = smov 112   ;;  %vm10853_vm13 = vcmask 261120  }
  0x10   : > { %5536 = vmatprep.mubr.msk.bf16.mxu0 %vm535_vm0, %v6979_v3  ;;  %v6982_v6 = vld [vmem:[%s7174_s21 + $0x18] sm:$0xff]   ;;  %v6983_v7 = vld [vmem:[%s7174_s21 + $0x20] sm:$0xff]   ;;  %v6984_v8 = vld [vmem:[%s7174_s21 + $0x28] sm:$0xff]   ;;  %s10870_s19 = smov 120   ;;  %vm10854_vm14 = vcmask 326656   ;;  %vm1926_vm15 = vcmask 457728  }
  0x11   : > { %5533 = vmatpush3.bf16.msra.mxu0 %v6977_v1  ;;  %v6985_v9 = vld [vmem:[%s7174_s21 + $0x30] sm:$0xff]   ;;  %v6986_v10 = vld [vmem:[%s7174_s21 + $0x38] sm:$0xff]   ;;  %v6987_v11 = vld [vmem:[%s7174_s21 + $0x40] sm:$0xff]   ;;  %s11141_s22 = smov 120  }
  0x12   : > { %5534 = vmatprep.subr.bf16.mxu0 %v6978_v2  ;;  %v6988_v12 = vld [vmem:[%s7174_s21 + $0x48] sm:$0xff]   ;;  %v6989_v13 = vld [vmem:[%s7174_s21 + $0x50] sm:$0xff]   ;;  %v6990_v14 = vld [vmem:[%s7174_s21 + $0x58] sm:$0xff]  }
  0x13   : > { %v6991_v15 = vld [vmem:[%s7174_s21 + $0x60] sm:$0xff]   ;;  %v6992_v16 = vld [vmem:[%s7174_s21 + $0x68] sm:$0xff]   ;;  %v6993_v17 = vld [vmem:[%s7174_s21 + $0x70] sm:$0xff]  }
  0x14   : > { %v6994_v18 = vld [vmem:[%s7174_s21 + $0x78] ss:$0 sps:$4 sm:$0x11]  }
  0x15   : > { %5535 = vmatpush3.bf16.msra.mxu0 %v6978_v2 }
  0x18   : > { %5537 = vmatmul.mubr.msk.bf16.vlgmr.msra.gmra.mxu0 %vm535_vm0, %v6980_v4 }
  0x19   : > { %5540 = vmatprep.mubr.msk.bf16.mxu0 %vm535_vm0, %v6981_v5 }
  0x20   : > { %5541 = vmatmul.mubr.msk.bf16.gmra.mxu0 %vm535_vm0, %v6982_v6 }
  0x21   : > { %5544 = vmatprep.mubr.msk.bf16.mxu0 %vm535_vm0, %v6983_v7 }
  0x28   : > { %5545 = vmatmul.mubr.msk.bf16.gmra.mxu0 %vm535_vm0, %v6984_v8 }
  0x29   : > { %5548 = vmatprep.mubr.msk.bf16.mxu0 %vm535_vm0, %v6985_v9 }
  0x30   : > { %5549 = vmatmul.mubr.msk.bf16.gmra.mxu0 %vm535_vm0, %v6986_v10 }
  0x31   : > { %5552 = vmatprep.mubr.msk.bf16.mxu0 %vm535_vm0, %v6987_v11 }
  0x38   : > { %5553 = vmatmul.mubr.msk.bf16.gmra.mxu0 %vm535_vm0, %v6988_v12 }
  0x39   : > { %5556 = vmatprep.mubr.msk.bf16.mxu0 %vm535_vm0, %v6989_v13 }
  0x40   : > { %5557 = vmatmul.mubr.msk.bf16.gmra.mxu0 %vm535_vm0, %v6990_v14 }
  0x41   : > { %5560 = vmatprep.mubr.msk.bf16.mxu0 %vm535_vm0, %v6991_v15 }
  0x48   : > { %5561 = vmatmul.mubr.msk.bf16.gmra.mxu0 %vm535_vm0, %v6992_v16 }
  0x49   : > { %5564 = vmatprep.mubr.msk.bf16.mxu0 %vm535_vm0, %v6993_v17 }
  0x50   : > { %5565 = vmatmul.mubr.msk.bf16.gmra.mxu0 %vm535_vm0, %v6994_v18 }
  0xd8   : > { %v5538_v20 = vpop.f32.mrf.mxu0 }
  0xd9   : > { %v627_v21 = vadd.f32 %v5538_v20, %v7211_v19 }
  0xda   : > { %v618_v22 = vpop.f32.mrf.mxu0 }
  0xdb   : > { %v619_v23 = vadd.f32 %v7211_v19, %v618_v22  ;;  %v745_v25 = vmax.f32 %v627_v21, 0.0 }
  0xdc   : > { %v5539_v24 = vpop.f32.mrf.mxu0 }
  0xdd   : > { %v630_v26 = vadd.f32 %v5539_v24, %v7211_v19  ;;  %v743_v28 = vmax.f32 %v619_v23, 0.0  ;;  %v807_v32 = vrot.slane %v745_v25, 1 }
  0xde   : > { %v621_v27 = vpop.f32.mrf.mxu0 }
  0xdf   : > { %v746_v29 = vmax.f32 %v630_v26, 0.0  ;;  %v622_v30 = vadd.f32 %v7211_v19, %v621_v27  ;;  %v804_v37 = vrot.slane %v743_v28, 1 }
  0xe0   : > { %v5542_v31 = vpop.f32.mrf.mxu0 }
  0xe1   : > { %v809_v33 = vrot.slane %v746_v29, 1  ;;  %v744_v34 = vmax.f32 %v622_v30, 0.0  ;;  %v643_v35 = vadd.f32 %v5542_v31, %v7211_v19 }
  0xe2   : > { %v634_v36 = vpop.f32.mrf.mxu0 }
  0xe3   : > { %v810_v38 = vsel %vm10864_vm1, %v807_v32, %v809_v33  ;;  %v805_v39 = vrot.slane %v744_v34, 1  ;;  %v635_v40 = vadd.f32 %v7211_v19, %v634_v36  ;;  %v749_v48 = vmax.f32 %v643_v35, 0.0 }
  0xe4   : > { %v895_v41 = vmax.f32 %v745_v25, %v810_v38  ;;  %v5543_v42 = vpop.f32.mrf.mxu0 }
  0xe5   : > { %v806_v43 = vsel %vm10864_vm1, %v804_v37, %v805_v39  ;;  %v808_v44 = vsel %vm10864_vm1, %v805_v39, %v807_v32  ;;  %v747_v45 = vmax.f32 %v635_v40, 0.0  ;;  %v646_v49 = vadd.f32 %v5543_v42, %v7211_v19 }
  0xe6   : > { %926 = vst.msk [vmem:[#allocation2 + $0x10] sm:$0xff] %vm10857_vm2, %v895_v41  ;;  %v893_v46 = vmax.f32 %v743_v28, %v806_v43  ;;  %v894_v47 = vmax.f32 %v744_v34, %v808_v44  ;;  %v637_v50 = vpop.f32.mrf.mxu0  ;;  %v815_v58 = vrot.slane %v749_v48, 1 }
  0xe7   : > { %v811_v51 = vrot.slane %v747_v45, 1  ;;  %v638_v52 = vadd.f32 %v7211_v19, %v637_v50  ;;  %v750_v53 = vmax.f32 %v646_v49, 0.0 }
  0xe8   : > { %924 = vst.msk [vmem:[#allocation2] sm:$0xff] %vm10857_vm2, %v893_v46  ;;  %925 = vst.msk [vmem:[#allocation2 + $0x8] sm:$0xff] %vm10857_vm2, %v894_v47  ;;  %v5546_v54 = vpop.f32.mrf.mxu0 }
  0xe9   : > { %v812_v55 = vsel %vm10864_vm1, %v809_v33, %v811_v51  ;;  %v748_v56 = vmax.f32 %v638_v52, 0.0  ;;  %v659_v57 = vadd.f32 %v5546_v54, %v7211_v19  ;;  %v817_v60 = vrot.slane %v750_v53, 1 }
  0xea   : > { %v896_v59 = vmax.f32 %v746_v29, %v812_v55  ;;  %v650_v61 = vpop.f32.mrf.mxu0 }
  0xeb   : > { %v813_v62 = vrot.slane %v748_v56, 1  ;;  %v651_v63 = vadd.f32 %v7211_v19, %v650_v61  ;;  %v818_v0 = vsel %vm10864_vm1, %v815_v58, %v817_v60  ;;  %v753_v5 = vmax.f32 %v659_v57, 0.0 }
  0xec   : > { %927 = vst.msk [vmem:[#allocation2 + $0x18] sm:$0xff] %vm10857_vm2, %v896_v59  ;;  %v5547_v1 = vpop.f32.mrf.mxu0  ;;  %v899_v2 = vmax.f32 %v749_v48, %v818_v0 }
  0xed   : > { %v814_v3 = vsel %vm10864_vm1, %v811_v51, %v813_v62  ;;  %v816_v4 = vsel %vm10864_vm1, %v813_v62, %v815_v58  ;;  %v751_v8 = vmax.f32 %v651_v63, 0.0  ;;  %v7235_v9 = vadd.f32 %v5547_v1, %v7211_v19 }
  0xee   : > { %v897_v6 = vmax.f32 %v747_v45, %v814_v3  ;;  %v898_v7 = vmax.f32 %v748_v56, %v816_v4  ;;  %v653_v10 = vpop.f32.mrf.mxu0  ;;  %930 = vst.msk [vmem:[#allocation2 + $0x30] sm:$0xff] %vm10857_vm2, %v899_v2  ;;  %v823_v16 = vrot.slane %v753_v5, 1 }
  0xef   : > { %v654_v11 = vadd.f32 %v7211_v19, %v653_v10  ;;  %v7239_v12 = vld [vmem:[#allocation2] ss:$2 sm:$0xff]  ;;  %v819_v13 = vrot.slane %v751_v8, 1  ;;  %v754_v14 = vmax.f32 %v7235_v9, 0.0 }
  0xf0   : > { %928 = vst.msk [vmem:[#allocation2 + $0x20] sm:$0xff] %vm10857_vm2, %v897_v6  ;;  %929 = vst.msk [vmem:[#allocation2 + $0x28] sm:$0xff] %vm10857_vm2, %v898_v7  ;;  %v5550_v15 = vpop.f32.mrf.mxu0  ;;  %v998_v23 = vrot.slane %v7239_v12, 1  ;;  %v1138_v28 = vrot.slane %v7239_v12, 3  ;;  %v1068_v32 = vrot.slane %v7239_v12, 2  ;;  %v1208_v33 = vrot.slane %v7239_v12, 4 }
  0xf1   : > { %v752_v17 = vmax.f32 %v654_v11, 0.0  ;;  %v7245_v18 = vadd.f32 %v5550_v15, %v7211_v19  ;;  %v820_v20 = vsel %vm10864_vm1, %v817_v60, %v819_v13  ;;  %v825_v21 = vrot.slane %v754_v14, 1 }
  0xf2   : > { %v666_v22 = vpop.f32.mrf.mxu0  ;;  %v900_v24 = vmax.f32 %v750_v53, %v820_v20  ;;  %v1278_v47 = vrot.slane %v7239_v12, 5 }
  0xf3   : > { %v821_v25 = vrot.slane %v752_v17, 1  ;;  %v667_v26 = vadd.f32 %v7211_v19, %v666_v22  ;;  %v7250_v27 = vld [vmem:[#allocation2 + $0x10] ss:$2 sm:$0xff]  ;;  %v826_v29 = vsel %vm10864_vm1, %v823_v16, %v825_v21  ;;  %v757_v30 = vmax.f32 %v7245_v18, 0.0 }
  0xf4   : > { %v5551_v31 = vpop.f32.mrf.mxu0  ;;  %931 = vst.msk [vmem:[#allocation2 + $0x38] sm:$0xff] %vm10857_vm2, %v900_v24  ;;  %v903_v34 = vmax.f32 %v753_v5, %v826_v29  ;;  %v999_v37 = vrot.slane %v7250_v27, 1  ;;  %v1139_v45 = vrot.slane %v7250_v27, 3  ;;  %v1069_v46 = vrot.slane %v7250_v27, 2 }
  0xf5   : > { %v822_v35 = vsel %vm10864_vm1, %v819_v13, %v821_v25  ;;  %v824_v36 = vsel %vm10864_vm1, %v821_v25, %v823_v16  ;;  %v755_v40 = vmax.f32 %v667_v26, 0.0  ;;  %v7262_v41 = vadd.f32 %v5551_v31, %v7211_v19 }
  0xf6   : > { %v901_v38 = vmax.f32 %v751_v8, %v822_v35  ;;  %v902_v39 = vmax.f32 %v752_v17, %v824_v36  ;;  %v669_v42 = vpop.f32.mrf.mxu0  ;;  %934 = vst.msk [vmem:[#allocation2 + $0x50] sm:$0xff] %vm10857_vm2, %v903_v34  ;;  %v831_v53 = vrot.slane %v757_v30, 1  ;;  %v1000_v61 = vsel %vm10864_vm1, %v998_v23, %v999_v37 }
  0xf7   : > { %v670_v43 = vadd.f32 %v7211_v19, %v669_v42  ;;  %v7266_v44 = vld [vmem:[#allocation2 + $0x20] ss:$2 sm:$0xff]  ;;  %v827_v48 = vrot.slane %v755_v40, 1  ;;  %v758_v49 = vmax.f32 %v7262_v41, 0.0  ;;  %v1140_v4 = vsel %vm10860_vm3, %v1138_v28, %v1139_v45 }
  0xf8   : > { %932 = vst.msk [vmem:[#allocation2 + $0x40] sm:$0xff] %vm10857_vm2, %v901_v38  ;;  %933 = vst.msk [vmem:[#allocation2 + $0x48] sm:$0xff] %vm10857_vm2, %v902_v39  ;;  %v5554_v50 = vpop.f32.mrf.mxu0  ;;  %v5736_v51 = vpack.i.bf16 %v7266_v44, %v7250_v27  ;;  %v1001_v52 = vrot.slane %v7266_v44, 1  ;;  %v1141_v55 = vrot.slane %v7266_v44, 3  ;;  %v1071_v56 = vrot.slane %v7266_v44, 2 }
  0xf9   : > { %v756_v54 = vmax.f32 %v670_v43, 0.0  ;;  %v828_v57 = vsel %vm10864_vm1, %v825_v21, %v827_v48  ;;  %v833_v58 = vrot.slane %v758_v49, 1  ;;  %v7290_v0 = vadd.f32 %v5554_v50, %v7211_v19 }
  0xfa   : > { %v682_v59 = vpop.f32.mrf.mxu0  ;;  %5737 = vrot.lane.b32.xlu1 %v5736_v51, %s7084_s24  ;;  %v7286_v60 = vsel %vm10864_vm1, %v999_v37, %v1001_v52  ;;  %v904_v62 = vmax.f32 %v754_v14, %v828_v57  ;;  %v7301_v5 = vsel %vm10860_vm3, %v1139_v45, %v1141_v55  ;;  %v7309_v10 = vsel %vm10866_vm4, %v1069_v46, %v1071_v56 }
  0xfb   : > { %v829_v63 = vrot.slane %v756_v54, 1  ;;  %v7293_v1 = vadd.f32 %v7211_v19, %v682_v59  ;;  %v834_v2 = vsel %vm10864_vm1, %v831_v53, %v833_v58  ;;  %v5741_v3 = vpack.i.bf16 %v7286_v60, %v1000_v61  ;;  %v7312_v15 = vld [vmem:[#allocation2 + $0x30] ss:$2 sm:$0xff] }
  0xfc   : > { %v5555_v6 = vpop.f32.mrf.mxu0  ;;  %935 = vst.msk [vmem:[#allocation2 + $0x58] sm:$0xff] %vm10857_vm2, %v904_v62  ;;  %v907_v7 = vmax.f32 %v757_v30, %v834_v2  ;;  %v1209_v16 = vrot.slane %v7250_v27, 4  ;;  %v761_v18 = vmax.f32 %v7290_v0, 0.0  ;;  %v5751_v20 = vpack.i.bf16 %v7301_v5, %v1140_v4 }
  0xfd   : > { %v830_v8 = vsel %vm10864_vm1, %v827_v48, %v829_v63  ;;  %v832_v9 = vsel %vm10864_vm1, %v829_v63, %v831_v53  ;;  %v759_v14 = vmax.f32 %v7293_v1, 0.0  ;;  %5742 = vrot.lane.b32.xlu0 %v5741_v3, %s7085_s25  ;;  %v1070_v21 = vsel %vm10866_vm4, %v1068_v32, %v1069_v46 }
  0xfe   : > { %v905_v11 = vmax.f32 %v755_v40, %v830_v8  ;;  %v906_v13 = vmax.f32 %v756_v54, %v832_v9  ;;  %v685_v17 = vpop.f32.mrf.mxu0  ;;  %938 = vst.msk [vmem:[#allocation2 + $0x70] sm:$0xff] %vm10857_vm2, %v907_v7  ;;  %v1211_v22 = vrot.slane %v7266_v44, 4  ;;  %v5746_v24 = vpack.i.bf16 %v7309_v10, %v1070_v21  ;;  %5752 = vrot.lane.b32.xlu1 %v5751_v20, %s7086_s26 }
  0xff   : > { %v7327_v23 = vrot.slane %v759_v14, 1  ;;  %v1279_v25 = vrot.slane %v7250_v27, 5  ;;  %v1281_v26 = vrot.slane %v7266_v44, 5  ;;  %v1003_v29 = vrot.slane %v7312_v15, 1 }
 0x100   : > { %936 = vst.msk [vmem:[#allocation2 + $0x60] sm:$0xff] %vm10857_vm2, %v905_v11  ;;  %937 = vst.msk [vmem:[#allocation2 + $0x68] sm:$0xff] %vm10857_vm2, %v906_v13  ;;  %v5558_v28 = vpop.f32.mrf.mxu0  ;;  %v7337_v30 = vsel %vm10861_vm5, %v1209_v16, %v1211_v22  ;;  %v1348_v31 = vrot.slane %v7239_v12, 6  ;;  %v1351_v32 = vrot.slane %v7266_v44, 6  ;;  %v1210_v35 = vsel %vm10861_vm5, %v1208_v33, %v1209_v16 }
 0x101   : > { %v836_v34 = vsel %vm10864_vm1, %v833_v58, %v7327_v23  ;;  %5747 = vrot.lane.b32.xlu0 %v5746_v24, %s7087_s27  ;;  %v7350_v36 = vsel %vm10865_vm6, %v1279_v25, %v1281_v26  ;;  %v1349_v37 = vrot.slane %v7250_v27, 6  ;;  %v839_v39 = vrot.slane %v761_v18, 1 }
 0x102   : > { %v698_v38 = vpop.f32.mrf.mxu0  ;;  %v908_v40 = vmax.f32 %v758_v49, %v836_v34  ;;  %v5756_v42 = vpack.i.bf16 %v7337_v30, %v1210_v35  ;;  %v1280_v33 = vsel %vm10865_vm6, %v1278_v47, %v1279_v25  ;;  %v1419_v46 = vrot.slane %v7250_v27, 7 }
 0x103   : > { %v5761_v43 = vpack.i.bf16 %v7350_v36, %v1280_v33  ;;  %v7365_v45 = vsel %vm10868_vm7, %v1349_v37, %v1351_v32  ;;  %v1421_v48 = vrot.slane %v7266_v44, 7  ;;  %v7375_v41 = vsel %vm10864_vm1, %v1001_v52, %v1003_v29  ;;  %v7388_v52 = vld [vmem:[#allocation2 + $0x40] ss:$2 sm:$0xff] }
 0x104   : > { %v5559_v50 = vpop.f32.mrf.mxu0  ;;  %939 = vst.msk [vmem:[#allocation2 + $0x78] sm:$0xff] %vm10857_vm2, %v908_v40  ;;  %5757 = vrot.lane.b32.xlu1 %v5756_v42, %s7088_s28  ;;  %v1418_v47 = vrot.slane %v7239_v12, 7  ;;  %v694_v49 = vadd.f32 %v5555_v6, %v7211_v19  ;;  %v686_v51 = vadd.f32 %v7211_v19, %v685_v17  ;;  %v1350_v53 = vsel %vm10868_vm7, %v1348_v31, %v1349_v37 }
 0x105   : > { %5762 = vrot.lane.b32.xlu0 %v5761_v43, %s7089_s29  ;;  %v7386_v54 = vsel %vm10867_vm8, %v1419_v46, %v1421_v48  ;;  %v1073_v57 = vrot.slane %v7312_v15, 2  ;;  %v7392_v58 = vadd.f32 %v7211_v19, %v698_v38  ;;  %v5766_v61 = vpack.i.bf16 %v7365_v45, %v1350_v53 }
 0x106   : > { %v701_v59 = vpop.f32.mrf.mxu0  ;;  %v1420_v62 = vsel %vm10867_vm8, %v1418_v47, %v1419_v46  ;;  %v762_v63 = vmax.f32 %v694_v49, 0.0  ;;  %v760_v2 = vmax.f32 %v686_v51, 0.0  ;;  %v5776_v7 = vpack.i.bf16 %v7375_v41, %v7286_v60 }
 0x107   : > { %v5771_v3 = vpack.i.bf16 %v7386_v54, %v1420_v62  ;;  %v763_v4 = vmax.f32 %v7392_v58, 0.0  ;;  %v1005_v11 = vrot.slane %v7388_v52, 1  ;;  %v5811_v13 = vpack.i.bf16 %v7388_v52, %v7312_v15 }
 0x108   : > { %v7398_v6 = vpop.f32.mrf.mxu0  ;;  %5767 = vrot.lane.b32.xlu1 %v5766_v61, %s7090_s10  ;;  %v841_v8 = vrot.slane %v762_v63, 1  ;;  %v837_v9 = vrot.slane %v760_v2, 1  ;;  %v1074_v16 = vsel %vm10866_vm4, %v1071_v56, %v1073_v57  ;;  %v707_v17 = vadd.f32 %v5558_v28, %v7211_v19 }
 0x109   : > { %5772 = vrot.lane.b32.xlu0 %v5771_v3, %s7091_s11  ;;  %v7413_v60 = vrot.slane %v763_v4, 1  ;;  %v1143_v31 = vrot.slane %v7312_v15, 3  ;;  %v7434_v0 = vsel %vm10864_vm1, %v1003_v29, %v1005_v11  ;;  %v1075_v1 = vrot.slane %v7388_v52, 2 }
 0x10a   : > { %v714_v20 = vpop.f32.mrf.mxu0  ;;  %v842_v21 = vsel %vm10864_vm1, %v839_v39, %v841_v8  ;;  %v838_v24 = vsel %vm10864_vm1, %v7327_v23, %v837_v9  ;;  %v840_v25 = vsel %vm10864_vm1, %v837_v9, %v839_v39  ;;  %v765_v38 = vmax.f32 %v707_v17, 0.0 }
 0x10b   : > { %v911_v34 = vmax.f32 %v761_v18, %v842_v21  ;;  %v909_v56 = vmax.f32 %v759_v14, %v838_v24  ;;  %v910_v28 = vmax.f32 %v760_v2, %v840_v25  ;;  %v844_v35 = vsel %vm10864_vm1, %v841_v8, %v7413_v60 }
 0x10c   : > { %v7426_v37 = vpop.f32.mrf.mxu0  ;;  %5777 = vrot.lane.b32.xlu1 %v5776_v7, %s7092_s12  ;;  %v912_v23 = vmax.f32 %v762_v63, %v844_v35  ;;  %v5781_v18 = vpack.i.bf16 %v1074_v16, %v7309_v10  ;;  %v5816_v29 = vpack.i.bf16 %v7434_v0, %v7375_v41  ;;  %v1144_v39 = vsel %vm10860_vm3, %v1141_v55, %v1143_v31 }
 0x10d   : > { %942 = vst.msk [vmem:[#allocation2 + $0x90] sm:$0xff] %vm10857_vm2, %v911_v34  ;;  %940 = vst.msk [vmem:[#allocation2 + $0x80] sm:$0xff] %vm10857_vm2, %v909_v56  ;;  %5812 = vrot.lane.b32.xlu0 %v5811_v13, %s7084_s24  ;;  %v1213_v40 = vrot.slane %v7312_v15, 4  ;;  %v710_v42 = vadd.f32 %v5559_v50, %v7211_v19  ;;  %v7456_v10 = vsel %vm10866_vm4, %v1073_v57, %v1075_v1  ;;  %v1145_v43 = vrot.slane %v7388_v52, 3 }
 0x10e   : > { %941 = vst.msk [vmem:[#allocation2 + $0x88] sm:$0xff] %vm10857_vm2, %v910_v28  ;;  %v7441_v14 = vpop.f32.mrf.mxu0  ;;  %943 = vst.msk [vmem:[#allocation2 + $0x98] sm:$0xff] %vm10857_vm2, %v912_v23  ;;  %v847_v55 = vrot.slane %v765_v38, 1  ;;  %v5786_v41 = vpack.i.bf16 %v1144_v39, %v7301_v5  ;;  %v5821_v50 = vpack.i.bf16 %v7456_v10, %v1074_v16  ;;  %v1283_v51 = vrot.slane %v7312_v15, 5 }
 0x10f   : > { %v766_v47 = vmax.f32 %v710_v42, 0.0  ;;  %v1214_v49 = vsel %vm10861_vm5, %v1211_v22, %v1213_v40  ;;  %v702_v53 = vadd.f32 %v7211_v19, %v701_v59  ;;  %v7473_v61 = vsel %vm10860_vm3, %v1143_v31, %v1145_v43 }
 0x110   : > { %v5566_v33 = vpop.f32.mrf.mxu0  ;;  %5782 = vrot.lane.b32.xlu1 %v5781_v18, %s7093_s14  ;;  %v1215_v5 = vrot.slane %v7388_v52, 4  ;;  %v7478_v22 = vadd.f32 %v7211_v19, %v714_v20  ;;  %v5791_v59 = vpack.i.bf16 %v1214_v49, %v7337_v30  ;;  %v1353_v2 = vrot.slane %v7312_v15, 6  ;;  %v7528_v18 = vld [vmem:[#allocation2 + $0x60] ss:$2 sm:$0xff] }
 0x111   : > { %5817 = vrot.lane.b32.xlu0 %v5816_v29, %s7085_s25  ;;  %v849_v62 = vrot.slane %v766_v47, 1  ;;  %v764_v63 = vmax.f32 %v702_v53, 0.0  ;;  %v5826_v7 = vpack.i.bf16 %v7473_v61, %v1144_v39  ;;  %v1284_v8 = vsel %vm10865_vm6, %v1281_v26, %v1283_v51 }
 0x112   : > { %v7460_v46 = vpop.f32.mrf.mxu0  ;;  %v7491_v16 = vsel %vm10861_vm5, %v1213_v40, %v1215_v5  ;;  %v1285_v30 = vrot.slane %v7388_v52, 5  ;;  %v767_v17 = vmax.f32 %v7478_v22, 0.0  ;;  %v5796_v21 = vpack.i.bf16 %v1284_v8, %v7350_v36 }
 0x113   : > { %v850_v3 = vsel %vm10864_vm1, %v847_v55, %v849_v62  ;;  %v845_v13 = vrot.slane %v764_v63, 1  ;;  %v5831_v34 = vpack.i.bf16 %v7491_v16, %v1214_v49  ;;  %v1354_v56 = vsel %vm10868_vm7, %v1351_v32, %v1353_v2 }
 0x114   : > { %v5567_v57 = vpop.f32.mrf.mxu0  ;;  %5787 = vrot.lane.b32.xlu1 %v5786_v41, %s7094_s15  ;;  %v915_v9 = vmax.f32 %v765_v38, %v850_v3  ;;  %v851_v31 = vrot.slane %v767_v17, 1  ;;  %v1423_v28 = vrot.slane %v7312_v15, 7  ;;  %v7514_v36 = vsel %vm10865_vm6, %v1283_v51, %v1285_v30  ;;  %v7537_v38 = vld [vmem:[#allocation2 + $0x50] ss:$2 sm:$0xff] }
 0x115   : > { %5822 = vrot.lane.b32.xlu0 %v5821_v50, %s7087_s27  ;;  %v846_v26 = vsel %vm10864_vm1, %v7413_v60, %v845_v13  ;;  %v848_v20 = vsel %vm10864_vm1, %v845_v13, %v847_v55  ;;  %v1355_v58 = vrot.slane %v7388_v52, 6  ;;  %v5801_v60 = vpack.i.bf16 %v1354_v56, %v7365_v45 }
 0x116   : > { %946 = vst.msk [vmem:[#allocation2 + $0xb0] sm:$0xff] %vm10857_vm2, %v915_v9  ;;  %v913_v24 = vmax.f32 %v763_v4, %v846_v26  ;;  %v914_v25 = vmax.f32 %v764_v63, %v848_v20  ;;  %v723_v4 = vadd.f32 %v7398_v6, %v7211_v19  ;;  %v852_v32 = vsel %vm10864_vm1, %v849_v62, %v851_v31 }
 0x117   : > { %v916_v15 = vmax.f32 %v766_v47, %v852_v32  ;;  %v5836_v35 = vpack.i.bf16 %v7514_v36, %v1284_v8  ;;  %v1424_v23 = vsel %vm10867_vm8, %v1421_v48, %v1423_v28  ;;  %v7535_v6 = vsel %vm10868_vm7, %v1353_v2, %v1355_v58 }
 0x118   : > { %5792 = vrot.lane.b32.xlu1 %v5791_v59, %s7095_s16  ;;  %944 = vst.msk [vmem:[#allocation2 + $0xa0] sm:$0xff] %vm10857_vm2, %v913_v24  ;;  %945 = vst.msk [vmem:[#allocation2 + $0xa8] sm:$0xff] %vm10857_vm2, %v914_v25  ;;  %v1425_v45 = vrot.slane %v7388_v52, 7  ;;  %v769_v29 = vmax.f32 %v723_v4, 0.0  ;;  %v726_v44 = vadd.f32 %v7426_v37, %v7211_v19  ;;  %v5806_v48 = vpack.i.bf16 %v1424_v23, %v7386_v54 }
 0x119   : > { %5827 = vrot.lane.b32.xlu0 %v5826_v7, %s7086_s26  ;;  %947 = vst.msk [vmem:[#allocation2 + $0xb8] sm:$0xff] %vm10857_vm2, %v916_v15  ;;  %v1009_v39 = vrot.slane %v7528_v18, 1  ;;  %v5841_v40 = vpack.i.bf16 %v7535_v6, %v1354_v56  ;;  %v1007_v42 = vrot.slane %v7537_v38, 1  ;;  %v718_v37 = vadd.f32 %v7211_v19, %v7441_v14  ;;  %v733_v56 = vpop.f32.mrf.mxu0 }
 0x11a   : > { %v7551_v33 = vsel %vm10867_vm8, %v1423_v28, %v1425_v45  ;;  %v855_v55 = vrot.slane %v769_v29, 1  ;;  %v770_v41 = vmax.f32 %v726_v44, 0.0  ;;  %v5886_v54 = vpack.i.bf16 %v7528_v18, %v7537_v38 }
 0x11b   : > { %v7560_v47 = vadd.f32 %v7211_v19, %v7460_v46  ;;  %v7565_v50 = vsel %vm10864_vm1, %v1007_v42, %v1009_v39  ;;  %v1079_v49 = vrot.slane %v7528_v18, 2  ;;  %v768_v53 = vmax.f32 %v718_v37, 0.0  ;;  %v6995_v37 = vld [vmem:[%s10845_s3 + $0x38] sm:$0xff]  }
 0x11c   : > { %5797 = vrot.lane.b32.xlu1 %v5796_v21, %s7096_s17  ;;  %v857_v51 = vrot.slane %v770_v41, 1  ;;  %v5846_v14 = vpack.i.bf16 %v7551_v33, %v1424_v23  ;;  %v1008_v57 = vsel %vm10864_vm1, %v1005_v11, %v1007_v42  ;;  %v1077_v46 = vrot.slane %v7537_v38, 2 }
 0x11d   : > { %5832 = vrot.lane.b32.xlu0 %v5831_v34, %s7088_s28  ;;  %v771_v62 = vmax.f32 %v7560_v47, 0.0  ;;  %v853_v59 = vrot.slane %v768_v53, 1  ;;  %v5891_v2 = vpack.i.bf16 %v7565_v50, %v1008_v57  ;;  %v5851_v8 = vpack.i.bf16 %v1008_v57, %v7434_v0  ;;  %v7662_v57 = vld [vmem:[#allocation2 + $0x70] ss:$2 sm:$0xff] }
 0x11e   : > { %v858_v63 = vsel %vm10864_vm1, %v855_v55, %v857_v51  ;;  %v7582_v11 = vsel %vm10866_vm4, %v1077_v46, %v1079_v49  ;;  %v1149_v26 = vrot.slane %v7528_v18, 3  ;;  %v1078_v0 = vsel %vm10866_vm4, %v1075_v1, %v1077_v46 }
 0x11f   : > { %v919_v3 = vmax.f32 %v769_v29, %v858_v63  ;;  %v859_v7 = vrot.slane %v771_v62, 1  ;;  %v854_v9 = vsel %vm10864_vm1, %v851_v31, %v853_v59  ;;  %v856_v13 = vsel %vm10864_vm1, %v853_v59, %v855_v55 }
 0x120   : > { %5802 = vrot.lane.b32.xlu1 %v5801_v60, %s10872_s18  ;;  %v917_v20 = vmax.f32 %v767_v17, %v854_v9  ;;  %v918_v21 = vmax.f32 %v768_v53, %v856_v13  ;;  %v1147_v25 = vrot.slane %v7537_v38, 3  ;;  %v5896_v22 = vpack.i.bf16 %v7582_v11, %v1078_v0  ;;  %v6998_v9 = vld [vmem:[%s10845_s3 + $0x20] sm:$0xff]  }
 0x121   : > { %5837 = vrot.lane.b32.xlu0 %v5836_v35, %s7089_s29  ;;  %950 = vst.msk [vmem:[#allocation2 + $0xd0] sm:$0xff] %vm10857_vm2, %v919_v3  ;;  %v860_v24 = vsel %vm10864_vm1, %v857_v51, %v859_v7  ;;  %v5856_v17 = vpack.i.bf16 %v1078_v0, %v7456_v10  ;;  %v1219_v1 = vrot.slane %v7528_v18, 4  ;;  %v1217_v4 = vrot.slane %v7537_v38, 4 }
 0x122   : > { %v920_v31 = vmax.f32 %v770_v41, %v860_v24  ;;  %948 = vst.msk [vmem:[#allocation2 + $0xc0] sm:$0xff] %vm10857_vm2, %v917_v20  ;;  %949 = vst.msk [vmem:[#allocation2 + $0xc8] sm:$0xff] %vm10857_vm2, %v918_v21  ;;  %v7605_v34 = vsel %vm10860_vm3, %v1147_v25, %v1149_v26  ;;  %v1148_v28 = vsel %vm10860_vm3, %v1145_v43, %v1147_v25  ;;  %v1289_v35 = vrot.slane %v7528_v18, 5 }
 0x123   : > { %v5901_v10 = vpack.i.bf16 %v7605_v34, %v1148_v28  ;;  %v734_v32 = vadd.f32 %v7211_v19, %v733_v56  ;;  %v5861_v15 = vpack.i.bf16 %v1148_v28, %v7473_v61  ;;  %v7620_v60 = vsel %vm10861_vm5, %v1217_v4, %v1219_v1 }
 0x124   : > { %5807 = vrot.lane.b32.xlu1 %v5806_v48, %s10870_s19  ;;  %951 = vst.msk [vmem:[#allocation2 + $0xd8] sm:$0xff] %vm10857_vm2, %v920_v31  ;;  %v1218_v43 = vsel %vm10861_vm5, %v1215_v5, %v1217_v4  ;;  %v1287_v23 = vrot.slane %v7537_v38, 5  ;;  %v1357_v42 = vrot.slane %v7537_v38, 6  ;;  %v1429_v51 = vrot.slane %v7528_v18, 7 }
 0x125   : > { %5842 = vrot.lane.b32.xlu0 %v5841_v40, %s7090_s10  ;;  %v772_v29 = vmax.f32 %v734_v32, 0.0  ;;  %v5906_v19 = vpack.i.bf16 %v7620_v60, %v1218_v43  ;;  %v5866_v44 = vpack.i.bf16 %v1218_v43, %v7491_v16  ;;  %v1359_v40 = vrot.slane %v7528_v18, 6 }
 0x126   : > { %v7634_v48 = vsel %vm10865_vm6, %v1287_v23, %v1289_v35  ;;  %v1288_v5 = vsel %vm10865_vm6, %v1285_v30, %v1287_v23  ;;  %v1358_v53 = vsel %vm10868_vm7, %v1355_v58, %v1357_v42  ;;  %v1011_v63 = vrot.slane %v7662_v57, 1 }
 0x127   : > { %v861_v61 = vrot.slane %v772_v29, 1  ;;  %v5871_v47 = vpack.i.bf16 %v1288_v5, %v7514_v36  ;;  %v7653_v30 = vsel %vm10868_vm7, %v1357_v42, %v1359_v40  ;;  %v7099_v36 = vmov 0.0  }
 0x128   : > { %5887 = vrot.lane.b32.xlu1 %v5886_v54, %s7084_s24  ;;  %v5911_v54 = vpack.i.bf16 %v7634_v48, %v1288_v5  ;;  %5568 = vmatprep.subr.bf16.mxu1 %v7099_v36  ;;  %v5916_v46 = vpack.i.bf16 %v7653_v30, %v1358_v53  ;;  %v5876_v58 = vpack.i.bf16 %v1358_v53, %v7535_v6  ;;  %v6997_v6 = vld [vmem:[%s10845_s3 + $0x28] sm:$0xff]   ;;  %v1151_v20 = vrot.slane %v7662_v57, 3 }
 0x129   : > { %5847 = vrot.lane.b32.xlu0 %v5846_v14, %s7091_s11  ;;  %v862_v55 = vsel %vm10864_vm1, %v859_v7, %v861_v61  ;;  %v922_v41 = vmax.f32 %v772_v29, %v861_v61  ;;  %v1427_v14 = vrot.slane %v7537_v38, 7  ;;  %5569 = vmatpush3.bf16.msra.mxu1 %v6995_v37  ;;  %v1012_v52 = vsel %vm10864_vm1, %v1009_v39, %v1011_v63  ;;  %v7803_v37 = vld [vmem:[#allocation2 + $0xa0] ss:$2 sm:$0xff] }
 0x12a   : > { %v921_v16 = vmax.f32 %v771_v62, %v862_v55  ;;  %v6996_v62 = vld [vmem:[%s10845_s3 + $0x30] sm:$0xff]   ;;  %5570 = vmatprep.subr.bf16.mxu1 %v7099_v36  ;;  %v5926_v13 = vpack.i.bf16 %v1012_v52, %v7565_v50  ;;  %5584 = vmatprep.mubr.msk.bf16.mxu1 %vm10862_vm10, %v7099_v36  ;;  %v1152_v25 = vsel %vm10860_vm3, %v1149_v26, %v1151_v20  ;;  %v1221_v31 = vrot.slane %v7662_v57, 4 }
 0x12b   : > { %954 = vst.msk [vmem:[#allocation2 + $0xe8] sm:$0x7f] %vm10852_vm9, %v922_v41  ;;  %v7675_v38 = vsel %vm10867_vm8, %v1427_v14, %v1429_v51  ;;  %v1428_v59 = vsel %vm10867_vm8, %v1425_v45, %v1427_v14  ;;  %v1081_v45 = vrot.slane %v7662_v57, 2  ;;  %v5936_v26 = vpack.i.bf16 %v1152_v25, %v7605_v34  ;;  %v7001_v34 = vld [vmem:[%s10845_s3 + $0x8] sm:$0xff]  }
 0x12c   : > { %5892 = vrot.lane.b32.xlu1 %v5891_v2, %s7085_s25  ;;  %952 = vst.msk [vmem:[#allocation2 + $0xe0] sm:$0xff] %vm10857_vm2, %v921_v16  ;;  %v7683_v2 = vld [vmem:[#allocation2 + $0x80] ss:$2 sm:$0xff]  ;;  %v5921_v3 = vpack.i.bf16 %v7675_v38, %v1428_v59  ;;  %v5881_v7 = vpack.i.bf16 %v1428_v59, %v7551_v33  ;;  %v1222_v28 = vsel %vm10861_vm5, %v1219_v1, %v1221_v31  ;;  %v1291_v4 = vrot.slane %v7662_v57, 5 }
 0x12d   : > { %5852 = vrot.lane.b32.xlu0 %v5851_v8, %s7092_s12  ;;  %5571 = vmatpush3.bf16.msra.mxu1 %v6996_v62  ;;  %v1013_v8 = vrot.slane %v7683_v2, 1  ;;  %v5961_v39 = vpack.i.bf16 %v7683_v2, %v7662_v57  ;;  %v1082_v33 = vsel %vm10866_vm4, %v1079_v49, %v1081_v45  ;;  %v1083_v50 = vrot.slane %v7683_v2, 2  ;;  %v6999_v49 = vld [vmem:[%s10845_s3 + $0x18] sm:$0xff]  }
 0x12e   : > { %5572 = vmatprep.subr.bf16.mxu1 %v7099_v36  ;;  %v5931_v24 = vpack.i.bf16 %v1082_v33, %v7582_v11  ;;  %v7000_v11 = vld [vmem:[%s10845_s3 + $0x10] sm:$0xff]   ;;  %v1223_v32 = vrot.slane %v7683_v2, 4  ;;  %v5941_v1 = vpack.i.bf16 %v1222_v28, %v7620_v60  ;;  %v1292_v43 = vsel %vm10865_vm6, %v1289_v35, %v1291_v4  ;;  %v7002_v60 = vld [vmem:[%s10845_s3] sm:$0xff]  }
 0x12f   : > { %v7713_v21 = vsel %vm10864_vm1, %v1011_v63, %v1013_v8  ;;  %v1361_v23 = vrot.slane %v7662_v57, 6  ;;  %v5946_v35 = vpack.i.bf16 %v1292_v43, %v7634_v48  ;;  %v1431_v5 = vrot.slane %v7662_v57, 7 }
 0x130   : > { %5897 = vrot.lane.b32.xlu1 %v5896_v22, %s7087_s27  ;;  %v5966_v0 = vpack.i.bf16 %v7713_v21, %v1012_v52  ;;  %v7733_v22 = vsel %vm10866_vm4, %v1081_v45, %v1083_v50  ;;  %v7769_v29 = vsel %vm10861_vm5, %v1221_v31, %v1223_v32  ;;  %v1363_v55 = vrot.slane %v7683_v2, 6 }
 0x131   : > { %5857 = vrot.lane.b32.xlu0 %v5856_v17, %s7093_s14  ;;  %5573 = vmatpush3.bf16.msra.mxu1 %v6997_v6  ;;  %v1153_v17 = vrot.slane %v7683_v2, 3  ;;  %v5971_v56 = vpack.i.bf16 %v7733_v22, %v1082_v33  ;;  %v5981_v61 = vpack.i.bf16 %v7769_v29, %v1222_v28  ;;  %v1432_v41 = vsel %vm10867_vm8, %v1429_v51, %v1431_v5 }
 0x132   : > { %5574 = vmatprep.subr.bf16.mxu1 %v7099_v36  ;;  %v7801_v16 = vsel %vm10868_vm7, %v1361_v23, %v1363_v55  ;;  %v1017_v51 = vrot.slane %v7803_v37, 1  ;;  %vm10858_vm9 = vcmask 523264  }
 0x134   : > { %5902 = vrot.lane.b32.xlu1 %v5901_v10, %s7086_s26  ;;  %v7751_v10 = vsel %vm10860_vm3, %v1151_v20, %v1153_v17 }
 0x135   : > { %5862 = vrot.lane.b32.xlu0 %v5861_v15, %s7094_s15  ;;  %5575 = vmatpush3.bf16.msra.mxu1 %v6998_v9  ;;  %v5976_v15 = vpack.i.bf16 %v7751_v10, %v1152_v25  ;;  %v1297_v25 = vrot.slane %v7803_v37, 5 }
 0x136   : > { %5576 = vmatprep.subr.bf16.mxu1 %v7099_v36 }
 0x138   : > { %5907 = vrot.lane.b32.xlu1 %v5906_v19, %s7088_s28  ;;  %v1293_v19 = vrot.slane %v7683_v2, 5 }
 0x139   : > { %5867 = vrot.lane.b32.xlu0 %v5866_v44, %s7095_s16  ;;  %5577 = vmatpush3.bf16.msra.mxu1 %v6999_v49  ;;  %v1362_v44 = vsel %vm10868_vm7, %v1359_v40, %v1361_v23 }
 0x13a   : > { %5578 = vmatprep.subr.bf16.mxu1 %v7099_v36  ;;  %v7787_v42 = vsel %vm10865_vm6, %v1291_v4, %v1293_v19  ;;  %v5951_v48 = vpack.i.bf16 %v1362_v44, %v7653_v30  ;;  %v5956_v30 = vpack.i.bf16 %v1432_v41, %v7675_v38  ;;  %v5991_v18 = vpack.i.bf16 %v7801_v16, %v1362_v44 }
 0x13b   : > { %v5986_v40 = vpack.i.bf16 %v7787_v42, %v1292_v43 }
 0x13c   : > { %5912 = vrot.lane.b32.xlu1 %v5911_v54, %s7089_s29  ;;  %v1433_v54 = vrot.slane %v7683_v2, 7 }
 0x13d   : > { %5872 = vrot.lane.b32.xlu0 %v5871_v47, %s7096_s17  ;;  %5579 = vmatpush3.bf16.msra.mxu1 %v7000_v11  ;;  %v7807_v47 = vld [vmem:[#allocation2 + $0x90] ss:$2 sm:$0xff] }
 0x13e   : > { %5580 = vmatprep.subr.bf16.mxu1 %v7099_v36  ;;  %v7816_v53 = vsel %vm10867_vm8, %v1431_v5, %v1433_v54  ;;  %v1015_v14 = vrot.slane %v7807_v47, 1  ;;  %v6036_v57 = vpack.i.bf16 %v7803_v37, %v7807_v47  ;;  %v1085_v63 = vrot.slane %v7807_v47, 2 }
 0x13f   : > { %v5996_v62 = vpack.i.bf16 %v7816_v53, %v1432_v41  ;;  %v1155_v45 = vrot.slane %v7807_v47, 3  ;;  %v1365_v4 = vrot.slane %v7807_v47, 6 }
 0x140   : > { %5917 = vrot.lane.b32.xlu1 %v5916_v46, %s7090_s10  ;;  %v7826_v46 = vsel %vm10864_vm1, %v1015_v14, %v1017_v51  ;;  %v1016_v38 = vsel %vm10864_vm1, %v1013_v8, %v1015_v14  ;;  %v1086_v52 = vsel %vm10866_vm4, %v1083_v50, %v1085_v63 }
 0x141   : > { %5877 = vrot.lane.b32.xlu0 %v5876_v58, %s10872_s18  ;;  %5581 = vmatpush3.bf16.msra.mxu1 %v7001_v34  ;;  %v1087_v58 = vrot.slane %v7803_v37, 2  ;;  %v6041_v59 = vpack.i.bf16 %v7826_v46, %v1016_v38  ;;  %v6001_v6 = vpack.i.bf16 %v1016_v38, %v7713_v21  ;;  %v6006_v9 = vpack.i.bf16 %v1086_v52, %v7733_v22 }
 0x142   : > { %5582 = vmatprep.subr.bf16.mxu1 %v7099_v36  ;;  %v1156_v20 = vsel %vm10860_vm3, %v1153_v17, %v1155_v45  ;;  %v1225_v21 = vrot.slane %v7807_v47, 4  ;;  %v1295_v22 = vrot.slane %v7807_v47, 5  ;;  %v1366_v23 = vsel %vm10868_vm7, %v1363_v55, %v1365_v4 }
 0x143   : > { %v6026_v5 = vpack.i.bf16 %v1366_v23, %v7801_v16  ;;  %v7930_v16 = vld [vmem:[#allocation2 + $0xc0] ss:$2 sm:$0xff] }
 0x144   : > { %5922 = vrot.lane.b32.xlu1 %v5921_v3, %s7091_s11  ;;  %v7840_v3 = vsel %vm10866_vm4, %v1085_v63, %v1087_v58  ;;  %v1226_v31 = vsel %vm10861_vm5, %v1223_v32, %v1225_v21  ;;  %v7884_v28 = vsel %vm10865_vm6, %v1295_v22, %v1297_v25  ;;  %v1296_v32 = vsel %vm10865_vm6, %v1293_v19, %v1295_v22 }
 0x145   : > { %5882 = vrot.lane.b32.xlu0 %v5881_v7, %s10870_s19  ;;  %5583 = vmatpush3.bf16.msra.mxu1 %v7002_v60  ;;  %v1157_v7 = vrot.slane %v7803_v37, 3  ;;  %v6046_v8 = vpack.i.bf16 %v7840_v3, %v1086_v52  ;;  %v6021_v43 = vpack.i.bf16 %v1296_v32, %v7787_v42  ;;  %v1437_v19 = vrot.slane %v7803_v37, 7 }
 0x146   : > { %5612 = vmatprep.subr.bf16.mxu1 %v7099_v36  ;;  %v1435_v60 = vrot.slane %v7807_v47, 7  ;;  %v1091_v22 = vrot.slane %v7930_v16, 2 }
 0x148   : > { %5927 = vrot.lane.b32.xlu1 %v5926_v13, %s7092_s12  ;;  %v7854_v13 = vsel %vm10860_vm3, %v1155_v45, %v1157_v7 }
 0x149   : > { %5962 = vrot.lane.b32.xlu0 %v5961_v39, %s7084_s24  ;;  %v1227_v39 = vrot.slane %v7803_v37, 4  ;;  %v6051_v50 = vpack.i.bf16 %v7854_v13, %v1156_v20 }
 0x14c   : > { %5932 = vrot.lane.b32.xlu1 %v5931_v24, %s7093_s14  ;;  %v6011_v24 = vpack.i.bf16 %v1156_v20, %v7751_v10  ;;  %v1367_v10 = vrot.slane %v7803_v37, 6 }
 0x14d   : > { %5967 = vrot.lane.b32.xlu0 %v5966_v0, %s7085_s25  ;;  %v7870_v0 = vsel %vm10861_vm5, %v1225_v21, %v1227_v39 }
 0x14e   : > { %v6056_v11 = vpack.i.bf16 %v7870_v0, %v1226_v31 }
 0x150   : > { %5937 = vrot.lane.b32.xlu1 %v5936_v26, %s7094_s15 }
 0x151   : > { %5972 = vrot.lane.b32.xlu0 %v5971_v56, %s7087_s27  ;;  %v6016_v56 = vpack.i.bf16 %v1226_v31, %v7769_v29  ;;  %v7905_v29 = vsel %vm10868_vm7, %v1365_v4, %v1367_v10 }
 0x152   : > { %v6066_v44 = vpack.i.bf16 %v7905_v29, %v1366_v23 }
 0x154   : > { %5942 = vrot.lane.b32.xlu1 %v5941_v1, %s7095_s16  ;;  %v6061_v1 = vpack.i.bf16 %v7884_v28, %v1296_v32 }
 0x155   : > { %5977 = vrot.lane.b32.xlu0 %v5976_v15, %s7086_s26 }
 0x158   : > { %5947 = vrot.lane.b32.xlu1 %v5946_v35, %s7096_s17  ;;  %v7910_v35 = vld [vmem:[#allocation2 + $0xb0] ss:$2 sm:$0xff] }
 0x159   : > { %5982 = vrot.lane.b32.xlu0 %v5981_v61, %s7088_s28  ;;  %v1019_v41 = vrot.slane %v7910_v35, 1  ;;  %v1159_v31 = vrot.slane %v7910_v35, 3  ;;  %v1229_v32 = vrot.slane %v7910_v35, 4 }
 0x15c   : > { %5952 = vrot.lane.b32.xlu1 %v5951_v48, %s10872_s18 }
 0x15d   : > { %5987 = vrot.lane.b32.xlu0 %v5986_v40, %s7089_s29  ;;  %v7922_v40 = vsel %vm10867_vm8, %v1435_v60, %v1437_v19 }
 0x160   : > { %5957 = vrot.lane.b32.xlu1 %v5956_v30, %s10870_s19 }
 0x161   : > { %5992 = vrot.lane.b32.xlu0 %v5991_v18, %s7090_s10  ;;  %v1436_v18 = vsel %vm10867_vm8, %v1433_v54, %v1435_v60 }
 0x162   : > { %v6031_v54 = vpack.i.bf16 %v1436_v18, %v7816_v53 }
 0x164   : > { %6037 = vrot.lane.b32.xlu1 %v6036_v57, %s7084_s24  ;;  %v6071_v57 = vpack.i.bf16 %v7922_v40, %v1436_v18 }
 0x165   : > { %5997 = vrot.lane.b32.xlu0 %v5996_v62, %s7091_s11  ;;  %v1089_v62 = vrot.slane %v7910_v35, 2 }
 0x167   : > { %v1090_v21 = vsel %vm10866_vm4, %v1087_v58, %v1089_v62 }
 0x168   : > { %6042 = vrot.lane.b32.xlu1 %v6041_v59, %s7085_s25  ;;  %v1020_v59 = vsel %vm10864_vm1, %v1017_v51, %v1019_v41 }
 0x169   : > { %6002 = vrot.lane.b32.xlu0 %v6001_v6, %s7092_s12  ;;  %v6076_v20 = vpack.i.bf16 %v1020_v59, %v7826_v46 }
 0x16c   : > { %6047 = vrot.lane.b32.xlu1 %v6046_v8, %s7087_s27  ;;  %v7858_v33 = vpop.permute.xlu1 %5737 }
 0x16d   : > { %6007 = vrot.lane.b32.xlu0 %v6006_v9, %s7093_s14 }
 0x16f   : > { %v5743_v49 = vpop.permute.xlu0 %5742 }
 0x170   : > { %6052 = vrot.lane.b32.xlu1 %v6051_v50, %s7086_s26  ;;  %v5753_v17 = vpop.permute.xlu1 %5752  ;;  %v5745_v42 = vunpack.i.h.bf16 %v5743_v49  ;;  %v5744_v55 = vunpack.i.l.bf16 %v5743_v49 }
 0x171   : > { %6012 = vrot.lane.b32.xlu0 %v6011_v24, %s7094_s15  ;;  %v5755_v45 = vunpack.i.h.bf16 %v5753_v17  ;;  %v5754_v8 = vunpack.i.l.bf16 %v5753_v17 }
 0x172   : > { %v1839_v38 = vsel %vm10857_vm2, %v7250_v27, %v5745_v42  ;;  %v1838_v63 = vsel %vm10857_vm2, %v7239_v12, %v5744_v55  ;;  %v1021_v27 = vrot.slane %v7930_v16, 1  ;;  %v6111_v12 = vpack.i.bf16 %v7930_v16, %v7910_v35 }
 0x173   : > { %v5748_v26 = vpop.permute.xlu0 %5747  ;;  %vm2016_vm2 = vcmask 850944  }
 0x174   : > { %6057 = vrot.lane.b32.xlu1 %v6056_v11, %s7088_s28  ;;  %v5750_v47 = vunpack.i.h.bf16 %v5748_v26  ;;  %v5749_v30 = vunpack.i.l.bf16 %v5748_v26  ;;  %v7971_v46 = vsel %vm10864_vm1, %v1019_v41, %v1021_v27  ;;  %v6081_v11 = vpack.i.bf16 %v1090_v21, %v7840_v3 }
 0x175   : > { %6017 = vrot.lane.b32.xlu0 %v6016_v56, %s7095_s16  ;;  %v7992_v3 = vsel %vm10866_vm4, %v1089_v62, %v1091_v22 }
 0x176   : > { %v7893_v34 = vpop.permute.xlu1 %5757  ;;  %v1853_v6 = vsel %vm10856_vm11, %v1838_v63, %v5749_v30  ;;  %v1854_v52 = vsel %vm10856_vm11, %v1839_v38, %v5750_v47  ;;  %v1230_v30 = vsel %vm10861_vm5, %v1227_v39, %v1229_v32  ;;  %vm2001_vm11 = vcmask 785408  }
 0x177   : > { %v7896_v15 = vpop.permute.xlu0 %5762  ;;  %v5760_v53 = vunpack.i.h.bf16 %v7893_v34  ;;  %v5759_v51 = vunpack.i.l.bf16 %v7893_v34  ;;  %v1868_v50 = vsel %vm10855_vm12, %v1853_v6, %v5754_v8  ;;  %v1869_v49 = vsel %vm10855_vm12, %v1854_v52, %v5755_v45 }
 0x178   : > { %6062 = vrot.lane.b32.xlu1 %v6061_v1, %s7089_s29  ;;  %v5765_v58 = vunpack.i.h.bf16 %v7896_v15  ;;  %v5764_v17 = vunpack.i.l.bf16 %v7896_v15  ;;  %v1161_v34 = vrot.slane %v7930_v16, 3  ;;  %v6116_v15 = vpack.i.bf16 %v7971_v46, %v1020_v59 }
 0x179   : > { %6022 = vrot.lane.b32.xlu0 %v6021_v43, %s7096_s17  ;;  %v1883_v26 = vsel %vm10853_vm13, %v1868_v50, %v5759_v51  ;;  %v1884_v56 = vsel %vm10853_vm13, %v1869_v49, %v5760_v53  ;;  %v1160_v43 = vsel %vm10860_vm3, %v1157_v7, %v1159_v31  ;;  %vm10859_vm13 = vcmask 588800  }
 0x17a   : > { %v7913_v61 = vpop.permute.xlu1 %5767  ;;  %v1898_v42 = vsel %vm10854_vm14, %v1883_v26, %v5764_v17  ;;  %v1899_v7 = vsel %vm10854_vm14, %v1884_v56, %v5765_v58  ;;  %v8013_v18 = vsel %vm10860_vm3, %v1159_v31, %v1161_v34  ;;  %vm1971_vm14 = vcmask 654336  }
 0x17b   : > { %v7917_v48 = vpop.permute.xlu0 %5772  ;;  %v5770_v23 = vunpack.i.h.bf16 %v7913_v61  ;;  %v5769_v60 = vunpack.i.l.bf16 %v7913_v61  ;;  %v6086_v61 = vpack.i.bf16 %v1160_v43, %v7854_v13  ;;  %vm1986_vm12 = vcmask 719872  }
 0x17c   : > { %6067 = vrot.lane.b32.xlu1 %v6066_v44, %s7090_s10  ;;  %v1299_v44 = vrot.slane %v7910_v35, 5  ;;  %v5775_v55 = vunpack.i.h.bf16 %v7917_v48  ;;  %v5774_v41 = vunpack.i.l.bf16 %v7917_v48  ;;  %v6121_v62 = vpack.i.bf16 %v7992_v3, %v1090_v21 }
 0x17d   : > { %6027 = vrot.lane.b32.xlu0 %v6026_v5, %s10872_s18  ;;  %v1231_v5 = vrot.slane %v7930_v16, 4  ;;  %v1912_v13 = vsel %vm535_vm0, %v1898_v42, %v5769_v60  ;;  %v1913_v38 = vsel %vm535_vm0, %v1899_v7, %v5770_v23  ;;  %v6091_v6 = vpack.i.bf16 %v1230_v30, %v7870_v0 }
 0x17e   : > { %v7932_v14 = vpop.permute.xlu1 %5777  ;;  %v8025_v39 = vsel %vm10865_vm6, %v1297_v25, %v1299_v44  ;;  %v1928_v59 = vsel %vm1926_vm15, %v1913_v38, %v5775_v55  ;;  %v6126_v52 = vpack.i.bf16 %v8013_v18, %v1160_v43  ;;  %v5740_v45 = vunpack.i.h.bf16 %v7858_v33  ;;  %v8090_v38 = vld [vmem:[#allocation2 + $0xd0] ss:$2 sm:$0xff] }
 0x17f   : > { %v7940_v2 = vpop.permute.xlu0 %5812  ;;  %v8030_v63 = vsel %vm10861_vm5, %v1229_v32, %v1231_v5  ;;  %v5739_v25 = vunpack.i.l.bf16 %v7858_v33  ;;  %v1301_v53 = vrot.slane %v7930_v16, 5  ;;  %v5780_v51 = vunpack.i.h.bf16 %v7932_v14 }
 0x180   : > { %6072 = vrot.lane.b32.xlu1 %v6071_v57, %s7091_s11  ;;  %v1369_v57 = vrot.slane %v7910_v35, 6  ;;  %v5779_v0 = vunpack.i.l.bf16 %v7932_v14  ;;  %v6096_v21 = vpack.i.bf16 %v8025_v39, %v7884_v28  ;;  %v6131_v33 = vpack.i.bf16 %v8030_v63, %v1230_v30 }
 0x181   : > { %6032 = vrot.lane.b32.xlu0 %v6031_v54, %s10870_s19  ;;  %v1927_v54 = vsel %vm1926_vm15, %v1912_v13, %v5774_v41  ;;  %v1943_v49 = vsel %vm10858_vm9, %v1928_v59, %v5740_v45  ;;  %v1439_v17 = vrot.slane %v7910_v35, 7  ;;  %v1371_v32 = vrot.slane %v7930_v16, 6 }
 0x182   : > { %v7955_v9 = vpop.permute.xlu1 %5782  ;;  %v1942_v50 = vsel %vm10858_vm9, %v1927_v54, %v5739_v25  ;;  %vm2031_vm9 = vcmask 916480  }
 0x183   : > { %v7963_v24 = vpop.permute.xlu0 %5817  ;;  %v5784_v31 = vunpack.i.l.bf16 %v7955_v9  ;;  %v1440_v13 = vsel %vm10867_vm8, %v1437_v19, %v1439_v17  ;;  %v8104_v37 = vsel %vm10868_vm7, %v1369_v57, %v1371_v32  ;;  %v1441_v19 = vrot.slane %v7930_v16, 7 }
 0x184   : > { %6077 = vrot.lane.b32.xlu1 %v6076_v20, %s7092_s12 }
 0x185   : > { %6112 = vrot.lane.b32.xlu0 %v6111_v12, %s7084_s24  ;;  %v8044_v12 = vsel %vm10868_vm7, %v1367_v10, %v1369_v57  ;;  %v5785_v10 = vunpack.i.h.bf16 %v7955_v9  ;;  %v8070_v9 = vsel %vm10865_vm6, %v1299_v44, %v1301_v53 }
 0x186   : > { %v7979_v4 = vpop.permute.xlu1 %5787  ;;  %v6101_v28 = vpack.i.bf16 %v8044_v12, %v7905_v29  ;;  %v6141_v57 = vpack.i.bf16 %v8104_v37, %v8044_v12 }
 0x187   : > { %v7983_v1 = vpop.permute.xlu0 %5822  ;;  %v5790_v58 = vunpack.i.h.bf16 %v7979_v4  ;;  %v5789_v14 = vunpack.i.l.bf16 %v7979_v4  ;;  %v1957_v4 = vsel %vm10859_vm13, %v1942_v50, %v5779_v0  ;;  %v8111_v0 = vrot.slane %v8090_v38, 1 }
 0x188   : > { %6082 = vrot.lane.b32.xlu1 %v6081_v11, %s7093_s14  ;;  %v1972_v60 = vsel %vm1971_vm14, %v1957_v4, %v5784_v31  ;;  %v8158_v4 = vrot.slane %v8090_v38, 4 }
 0x189   : > { %6117 = vrot.lane.b32.xlu0 %v6116_v15, %s7085_s25  ;;  %v1958_v15 = vsel %vm10859_vm13, %v1943_v49, %v5780_v51  ;;  %v1987_v44 = vsel %vm1986_vm12, %v1972_v60, %v5789_v14  ;;  %vm10869_vm13 = vcmask 982016   ;;  %v8124_v49 = vsel %vm10867_vm8, %v1439_v17, %v1441_v19 }
 0x18a   : > { %v8004_v47 = vpop.permute.xlu1 %5792  ;;  %v1973_v42 = vsel %vm1971_vm14, %v1958_v15, %v5785_v10  ;;  %v8132_v10 = vrot.slane %v8090_v38, 2  ;;  %v6146_v14 = vpack.i.bf16 %v8124_v49, %v1440_v13  ;;  %v8167_v15 = vrot.slane %v8090_v38, 5 }
 0x18b   : > { %v8016_v48 = vpop.permute.xlu0 %5827  ;;  %v5795_v11 = vunpack.i.h.bf16 %v8004_v47  ;;  %v5794_v26 = vunpack.i.l.bf16 %v8004_v47  ;;  %v1988_v41 = vsel %vm1986_vm12, %v1973_v42, %v5790_v58  ;;  %v5825_v42 = vunpack.i.h.bf16 %v7983_v1 }
 0x18c   : > { %6087 = vrot.lane.b32.xlu1 %v6086_v61, %s7094_s15 }
 0x18d   : > { %6122 = vrot.lane.b32.xlu0 %v6121_v62, %s7087_s27  ;;  %v2002_v47 = vsel %vm2001_vm11, %v1987_v44, %v5794_v26  ;;  %v2003_v61 = vsel %vm2001_vm11, %v1988_v41, %v5795_v11  ;;  %v6136_v62 = vpack.i.bf16 %v8070_v9, %v8025_v39  ;;  %v5830_v41 = vunpack.i.h.bf16 %v8016_v48 }
 0x18e   : > { %v5798_v8 = vpop.permute.xlu1 %5797 }
 0x18f   : > { %v8049_v20 = vpop.permute.xlu0 %5832  ;;  %v5800_v43 = vunpack.i.h.bf16 %v5798_v8  ;;  %v5799_v29 = vunpack.i.l.bf16 %v5798_v8 }
 0x190   : > { %6092 = vrot.lane.b32.xlu1 %v6091_v6, %s7095_s16 }
 0x191   : > { %6127 = vrot.lane.b32.xlu0 %v6126_v52, %s7086_s26  ;;  %v2017_v54 = vsel %vm2016_vm2, %v2002_v47, %v5799_v29  ;;  %v2018_v59 = vsel %vm2016_vm2, %v2003_v61, %v5800_v43  ;;  %v5820_v43 = vunpack.i.h.bf16 %v7963_v24  ;;  %v5819_v29 = vunpack.i.l.bf16 %v7963_v24 }
 0x192   : > { %v5803_v56 = vpop.permute.xlu1 %5802  ;;  %v5829_v24 = vunpack.i.l.bf16 %v8016_v48  ;;  %v7037_v48 = vld [vmem:[#allocation2 + $0x30] ss:$2 sm:$0xff] }
 0x193   : > { %v8075_v23 = vpop.permute.xlu0 %5837  ;;  %v5805_v7 = vunpack.i.h.bf16 %v5803_v56  ;;  %v5804_v55 = vunpack.i.l.bf16 %v5803_v56 }
 0x194   : > { %6097 = vrot.lane.b32.xlu1 %v6096_v21, %s7096_s17 }
 0x195   : > { %6132 = vrot.lane.b32.xlu0 %v6131_v33, %s7088_s28  ;;  %v2032_v25 = vsel %vm2031_vm9, %v2017_v54, %v5804_v55  ;;  %v2033_v39 = vsel %vm2031_vm9, %v2018_v59, %v5805_v7  ;;  %v6106_v33 = vpack.i.bf16 %v1440_v13, %v7922_v40  ;;  %v1024_v40 = vsel %vm10864_vm1, %v1021_v27, %v8111_v0  ;;  %v7038_v13 = vld [vmem:[#allocation2 + $0x20] ss:$2 sm:$0xff] }
 0x196   : > { %v5808_v30 = vpop.permute.xlu1 %5807  ;;  %v6151_v31 = vpack.i.bf16 %v8111_v0, %v1024_v40  ;;  %v1094_v27 = vsel %vm10866_vm4, %v1091_v22, %v8132_v10  ;;  %v6156_v56 = vpack.i.bf16 %v1024_v40, %v7971_v46  ;;  %v5824_v7 = vunpack.i.l.bf16 %v7983_v1 }
 0x197   : > { %v5810_v6 = vunpack.i.h.bf16 %v5808_v30  ;;  %v5809_v52 = vunpack.i.l.bf16 %v5808_v30  ;;  %v8094_v45 = vpop.permute.xlu0 %5842  ;;  %v6161_v11 = vpack.i.bf16 %v8132_v10, %v1094_v27  ;;  %v6166_v44 = vpack.i.bf16 %v1094_v27, %v7992_v3 }
 0x198   : > { %6102 = vrot.lane.b32.xlu1 %v6101_v28, %s10872_s18  ;;  %v8149_v28 = vrot.slane %v8090_v38, 3  ;;  %v5835_v1 = vunpack.i.h.bf16 %v8049_v20  ;;  %v5834_v30 = vunpack.i.l.bf16 %v8049_v20  ;;  %v8195_v3 = vsel %vm10865_vm6, %v1301_v53, %v8167_v15 }
 0x199   : > { %6137 = vrot.lane.b32.xlu0 %v6136_v62, %s7089_s29  ;;  %v2047_v8 = vsel %vm10869_vm13, %v2032_v25, %v5809_v52  ;;  %v2048_v51 = vsel %vm10869_vm13, %v2033_v39, %v5810_v6  ;;  %v5840_v54 = vunpack.i.h.bf16 %v8075_v23  ;;  %v5839_v20 = vunpack.i.l.bf16 %v8075_v23 }
 0x19a   : > { %v8113_v21 = vpop.permute.xlu1 %5887  ;;  %v2061_v50 = vpack.c.bf16 %v2048_v51, %v2047_v8  ;;  %v1164_v22 = vsel %vm10860_vm3, %v1161_v34, %v8149_v28  ;;  %v1234_v34 = vsel %vm10861_vm5, %v1231_v5, %v8158_v4  ;;  %v8198_v5 = vrot.slane %v8090_v38, 6 }
 0x19b   : > { %v8116_v35 = vpop.permute.xlu0 %5847  ;;  %v6171_v60 = vpack.i.bf16 %v8149_v28, %v1164_v22  ;;  %v6181_v47 = vpack.i.bf16 %v8158_v4, %v1234_v34  ;;  %v6176_v61 = vpack.i.bf16 %v1164_v22, %v8013_v18  ;;  %vm10877_vm3 = vcmask 64512  }
 0x19c   : > { %6107 = vrot.lane.b32.xlu1 %v6106_v33, %s10870_s19  ;;  %5585 = vmatmul.mubr.bf16.vlgmr.msra.gmra.mxu1 %v2061_v50  ;;  %v1841_v62 = vsel %vm10877_vm3, %v7037_v48, %v5820_v43  ;;  %vm10878_vm5 = vmmov %vm10877_vm3  ;;  %v5845_v52 = vunpack.i.h.bf16 %v8094_v45  ;;  %v5844_v25 = vunpack.i.l.bf16 %v8094_v45  ;;  %vm10881_vm6 = vcmask 195584   ;;  %v8257_v48 = vld [vmem:[#allocation2 + $0xe0] ss:$2 sm:$0xff] }
 0x19d   : > { %6142 = vrot.lane.b32.xlu0 %v6141_v57, %s7090_s10  ;;  %5588 = vmatprep.mubr.msk.bf16.mxu1 %vm10862_vm10, %v7099_v36  ;;  %v1840_v18 = vsel %vm10878_vm5, %v7038_v13, %v5819_v29  ;;  %vm10879_vm10 = vcmask 130048   ;;  %vm10882_vm3 = vmmov %vm10881_vm6  ;;  %v5850_v33 = vunpack.i.h.bf16 %v8116_v35  ;;  %v5849_v50 = vunpack.i.l.bf16 %v8116_v35 }
 0x19e   : > { %v8136_v12 = vpop.permute.xlu1 %5892  ;;  %v1855_v6 = vsel %vm10879_vm10, %v1840_v18, %v5824_v7  ;;  %vm10880_vm1 = vmmov %vm10879_vm10  ;;  %vm10883_vm5 = vcmask 261120   ;;  %v6186_v40 = vpack.i.bf16 %v1234_v34, %v8030_v63  ;;  %v6191_v27 = vpack.i.bf16 %v8167_v15, %v8195_v3 }
 0x19f   : > { %v8139_v58 = vpop.permute.xlu0 %5852  ;;  %v1856_v53 = vsel %vm10880_vm1, %v1841_v62, %v5825_v42  ;;  %v1870_v8 = vsel %vm10881_vm6, %v1855_v6, %v5829_v24  ;;  %vm10884_vm10 = vmmov %vm10883_vm5  ;;  %vm10885_vm1 = vcmask 326656   ;;  %v8226_v35 = vrot.slane %v8090_v38, 7 }
 0x1a0   : > { %6152 = vrot.lane.b32.xlu1 %v6151_v31, %s7085_s25  ;;  %v1871_v51 = vsel %vm10882_vm3, %v1856_v53, %v5830_v41  ;;  %v1885_v23 = vsel %vm10883_vm5, %v1870_v8, %v5834_v30  ;;  %vm10886_vm4 = vmmov %vm10885_vm1  ;;  %v1374_v63 = vsel %vm10868_vm7, %v1371_v32, %v8198_v5  ;;  %v6196_v43 = vpack.i.bf16 %v8195_v3, %v8070_v9 }
 0x1a1   : > { %6147 = vrot.lane.b32.xlu0 %v6146_v14, %s7091_s11  ;;  %v1886_v57 = vsel %vm10884_vm10, %v1871_v51, %v5835_v1  ;;  %v1900_v45 = vsel %vm10885_vm1, %v1885_v23, %v5839_v20  ;;  %v5855_v42 = vunpack.i.h.bf16 %v8139_v58  ;;  %v5854_v7 = vunpack.i.l.bf16 %v8139_v58 }
 0x1a2   : > { %v8151_v17 = vpop.permute.xlu1 %5897  ;;  %v1901_v31 = vsel %vm10886_vm4, %v1886_v57, %v5840_v54  ;;  %v5814_v34 = vunpack.i.l.bf16 %v7940_v2  ;;  %v6201_v58 = vpack.i.bf16 %v8198_v5, %v1374_v63  ;;  %vm10887_vm4 = vcmask 523264  }
 0x1a3   : > { %v8154_v26 = vpop.permute.xlu0 %5857  ;;  %vm10888_vm6 = vmmov %vm10887_vm4  ;;  %vm10889_vm3 = vcmask 588800   ;;  %v1530_v23 = vrot.slane %v8257_v48, 1  ;;  %vm10891_vm10 = vcmask 1045504   ;;  %vm10892_vm1 = vcmask 1046528  }
 0x1a4   : > { %6162 = vrot.lane.b32.xlu1 %v6161_v11, %s7087_s27  ;;  %v1914_v11 = vsel %vm535_vm0, %v1900_v45, %v5844_v25  ;;  %v5860_v41 = vunpack.i.h.bf16 %v8154_v26  ;;  %v5859_v32 = vunpack.i.l.bf16 %v8154_v26  ;;  %vm10890_vm5 = vmmov %vm10889_vm3 }
 0x1a5   : > { %6157 = vrot.lane.b32.xlu0 %v6156_v56, %s7092_s12  ;;  %v1915_v56 = vsel %vm535_vm0, %v1901_v31, %v5845_v52  ;;  %v1929_v29 = vsel %vm1926_vm15, %v1914_v11, %v5849_v50  ;;  %v6206_v50 = vpack.i.bf16 %v1374_v63, %v8104_v37  ;;  %v6221_v37 = vpack.i.bf16 %v8257_v48, %v8090_v38 }
 0x1a6   : > { %v8171_v46 = vpop.permute.xlu1 %5902 }
 0x1a7   : > { %v8176_v55 = vpop.permute.xlu0 %5862 }
 0x1a8   : > { %6172 = vrot.lane.b32.xlu1 %v6171_v60, %s7086_s26  ;;  %v1930_v60 = vsel %vm1926_vm15, %v1915_v56, %v5850_v33  ;;  %v5865_v9 = vunpack.i.h.bf16 %v8176_v55  ;;  %v5864_v24 = vunpack.i.l.bf16 %v8176_v55 }
 0x1a9   : > { %6167 = vrot.lane.b32.xlu0 %v6166_v44, %s7093_s14  ;;  %v5815_v44 = vunpack.i.h.bf16 %v7940_v2  ;;  %v1944_v2 = vsel %vm10887_vm4, %v1929_v29, %v5814_v34  ;;  %v1618_v34 = vrot.slane %v8257_v48, 3  ;;  %vm10893_vm4 = vmmov 0  }
 0x1aa   : > { %v8204_v59 = vpop.permute.xlu1 %5907  ;;  %v1959_v55 = vsel %vm10889_vm3, %v1944_v2, %v5854_v7  ;;  %v1662_v7 = vrot.slane %v8257_v48, 4  ;;  %vm10895_vm3 = vcmask 1044480   ;;  %v1794_v2 = vrot.slane %v8257_v48, 7 }
 0x1ab   : > { %v5868_v39 = vpop.permute.xlu0 %5867  ;;  %v1945_v1 = vsel %vm10888_vm6, %v1930_v60, %v5815_v44  ;;  %v1974_v16 = vsel %vm1971_vm14, %v1959_v55, %v5859_v32  ;;  %v1531_v44 = vsel %vm10892_vm1, %v8111_v0, %v1530_v23  ;;  %vm10894_vm6 = vcmask 1043456  }
 0x1ac   : > { %6182 = vrot.lane.b32.xlu1 %v6181_v47, %s7088_s28  ;;  %v5870_v26 = vunpack.i.h.bf16 %v5868_v39  ;;  %v5869_v30 = vunpack.i.l.bf16 %v5868_v39  ;;  %v1960_v62 = vsel %vm10890_vm5, %v1945_v1, %v5855_v42  ;;  %v1989_v6 = vsel %vm1986_vm12, %v1974_v16, %v5864_v24 }
 0x1ad   : > { %6177 = vrot.lane.b32.xlu0 %v6176_v61, %s7094_s15  ;;  %v1444_v61 = vsel %vm10867_vm8, %v1441_v19, %v8226_v35  ;;  %v1975_v19 = vsel %vm1971_vm14, %v1960_v62, %v5860_v41  ;;  %v1574_v39 = vrot.slane %v8257_v48, 2  ;;  %v1750_v41 = vrot.slane %v8257_v48, 6 }
 0x1ae   : > { %v8221_v14 = vpop.permute.xlu1 %5912  ;;  %v1990_v53 = vsel %vm1986_vm12, %v1975_v19, %v5865_v9  ;;  %v6211_v25 = vpack.i.bf16 %v8226_v35, %v1444_v61  ;;  %v2004_v8 = vsel %vm2001_vm11, %v1989_v6, %v5869_v30  ;;  %v6216_v29 = vpack.i.bf16 %v1444_v61, %v8124_v49  ;;  %v7039_v19 = vld [vmem:[#allocation2 + $0x50] ss:$2 sm:$0xff] }
 0x1af   : > { %v5873_v22 = vpop.permute.xlu0 %5872  ;;  %v2005_v51 = vsel %vm2001_vm11, %v1990_v53, %v5870_v26  ;;  %v1575_v42 = vsel %vm10891_vm10, %v8132_v10, %v1574_v39  ;;  %v1706_v49 = vrot.slane %v8257_v48, 5  ;;  %v6226_v24 = vpack.i.bf16 %v1530_v23, %v1531_v44 }
 0x1b0   : > { %6192 = vrot.lane.b32.xlu1 %v6191_v27, %s7089_s29  ;;  %v5875_v13 = vunpack.i.h.bf16 %v5873_v22  ;;  %v5874_v18 = vunpack.i.l.bf16 %v5873_v22  ;;  %v6231_v9 = vpack.i.bf16 %v1574_v39, %v1575_v42  ;;  %v1663_v0 = vsel %vm10894_vm6, %v8158_v4, %v1662_v7 }
 0x1b1   : > { %6187 = vrot.lane.b32.xlu0 %v6186_v40, %s7095_s16  ;;  %v1751_v61 = vsel %vm10868_vm7, %v8198_v5, %v1750_v41  ;;  %v5895_v1 = vunpack.i.h.bf16 %v8136_v12  ;;  %v5894_v26 = vunpack.i.l.bf16 %v8136_v12  ;;  %vm10896_vm5 = vcmask 1042432  }
 0x1b2   : > { %v8248_v47 = vpop.permute.xlu1 %5917  ;;  %v2019_v57 = vsel %vm2016_vm2, %v2004_v8, %v5874_v18  ;;  %v2020_v40 = vsel %vm2016_vm2, %v2005_v51, %v5875_v13  ;;  %v1707_v30 = vsel %vm10896_vm5, %v8167_v15, %v1706_v49  ;;  %v5900_v4 = vunpack.i.h.bf16 %v8151_v17 }
 0x1b3   : > { %v5878_v3 = vpop.permute.xlu0 %5877  ;;  %v5905_v5 = vunpack.i.h.bf16 %v8171_v46  ;;  %v5904_v48 = vunpack.i.l.bf16 %v8171_v46  ;;  %v6251_v12 = vpack.i.bf16 %v1750_v41, %v1751_v61  ;;  %v5910_v18 = vunpack.i.h.bf16 %v8204_v59 }
 0x1b4   : > { %6202 = vrot.lane.b32.xlu1 %v6201_v58, %s7090_s10  ;;  %v5880_v54 = vunpack.i.h.bf16 %v5878_v3  ;;  %v5879_v20 = vunpack.i.l.bf16 %v5878_v3  ;;  %v1619_v58 = vsel %vm10895_vm3, %v8149_v28, %v1618_v34  ;;  %v5899_v3 = vunpack.i.l.bf16 %v8151_v17 }
 0x1b5   : > { %6197 = vrot.lane.b32.xlu0 %v6196_v43, %s7096_s17  ;;  %v6241_v28 = vpack.i.bf16 %v1662_v7, %v1663_v0  ;;  %v6236_v13 = vpack.i.bf16 %v1618_v34, %v1619_v58  ;;  %v5909_v16 = vunpack.i.l.bf16 %v8204_v59  ;;  %v6246_v15 = vpack.i.bf16 %v1706_v49, %v1707_v30 }
 0x1b6   : > { %v8267_v52 = vpop.permute.xlu1 %5922  ;;  %v2034_v27 = vsel %vm2031_vm9, %v2019_v57, %v5879_v20  ;;  %v2035_v11 = vsel %vm2031_vm9, %v2020_v40, %v5880_v54  ;;  %v1795_v17 = vsel %vm10867_vm8, %v8226_v35, %v1794_v2  ;;  %vm10897_vm10 = vcmask 64512   ;;  %v7040_v20 = vld [vmem:[#allocation2 + $0x40] ss:$2 sm:$0xff] }
 0x1b7   : > { %v5883_v33 = vpop.permute.xlu0 %5882  ;;  %v1843_v54 = vsel %vm10897_vm10, %v7039_v19, %v5895_v1  ;;  %vm10898_vm1 = vmmov %vm10897_vm10  ;;  %v5915_v6 = vunpack.i.h.bf16 %v8221_v14  ;;  %v5914_v53 = vunpack.i.l.bf16 %v8221_v14  ;;  %vm10899_vm6 = vcmask 130048  }
 0x1b8   : > { %6212 = vrot.lane.b32.xlu1 %v6211_v25, %s7091_s11  ;;  %v5885_v45 = vunpack.i.h.bf16 %v5883_v33  ;;  %v5884_v31 = vunpack.i.l.bf16 %v5883_v33  ;;  %v1842_v46 = vsel %vm10898_vm1, %v7040_v20, %v5894_v26  ;;  %vm10900_vm3 = vmmov %vm10899_vm6  ;;  %v5920_v39 = vunpack.i.h.bf16 %v8248_v47 }
 0x1b9   : > { %6207 = vrot.lane.b32.xlu0 %v6206_v50, %s10872_s18  ;;  %v1857_v59 = vsel %vm10899_vm6, %v1842_v46, %v5899_v3  ;;  %v1858_v25 = vsel %vm10900_vm3, %v1843_v54, %v5900_v4  ;;  %v5919_v35 = vunpack.i.l.bf16 %v8248_v47  ;;  %vm10901_vm5 = vcmask 195584  }
 0x1ba   : > { %v8281_v56 = vpop.permute.xlu1 %5927  ;;  %v2049_v22 = vsel %vm10869_vm13, %v2034_v27, %v5884_v31  ;;  %v2050_v63 = vsel %vm10869_vm13, %v2035_v11, %v5885_v45  ;;  %v1872_v51 = vsel %vm10901_vm5, %v1857_v59, %v5904_v48  ;;  %vm10902_vm10 = vmmov %vm10901_vm5  ;;  %v5925_v50 = vunpack.i.h.bf16 %v8267_v52 }
 0x1bb   : > { %v8287_v43 = vpop.permute.xlu0 %5962  ;;  %v2062_v60 = vpack.c.bf16 %v2050_v63, %v2049_v22  ;;  %v1873_v33 = vsel %vm10902_vm10, %v1858_v25, %v5905_v5  ;;  %v5924_v23 = vunpack.i.l.bf16 %v8267_v52  ;;  %vm10903_vm1 = vcmask 261120  }
 0x1bc   : > { %6222 = vrot.lane.b32.xlu1 %v6221_v37, %s7084_s24  ;;  %v1887_v57 = vsel %vm10903_vm1, %v1872_v51, %v5909_v16  ;;  %vm10904_vm6 = vmmov %vm10903_vm1  ;;  %vm10905_vm3 = vcmask 326656   ;;  %v6256_v52 = vpack.i.bf16 %v1794_v2, %v1795_v17  ;;  %v5930_v63 = vunpack.i.h.bf16 %v8281_v56 }
 0x1bd   : > { %6217 = vrot.lane.b32.xlu0 %v6216_v29, %s10870_s19  ;;  %5589 = vmatmul.mubr.bf16.gmra.mxu1 %v2062_v60  ;;  %v1888_v40 = vsel %vm10904_vm6, %v1873_v33, %v5910_v18  ;;  %v1902_v45 = vsel %vm10905_vm3, %v1887_v57, %v5914_v53  ;;  %vm10906_vm8 = vmmov %vm10905_vm3  ;;  %v5929_v29 = vunpack.i.l.bf16 %v8281_v56  ;;  %v5890_v42 = vunpack.i.h.bf16 %v8113_v21 }
 0x1be   : > { %v8300_v32 = vpop.permute.xlu1 %5932  ;;  %5592 = vmatprep.mubr.msk.bf16.mxu1 %vm10893_vm4, %v7099_v36  ;;  %v1903_v47 = vsel %vm10906_vm8, %v1888_v40, %v5915_v6  ;;  %v1916_v31 = vsel %vm535_vm0, %v1902_v45, %v5919_v35  ;;  %v5889_v7 = vunpack.i.l.bf16 %v8113_v21  ;;  %vm10907_vm8 = vcmask 523264  }
 0x1bf   : > { %v8304_v10 = vpop.permute.xlu0 %5967  ;;  %v1917_v27 = vsel %vm535_vm0, %v1903_v47, %v5920_v39  ;;  %v1931_v37 = vsel %vm1926_vm15, %v1916_v31, %v5924_v23  ;;  %v5935_v44 = vunpack.i.h.bf16 %v8300_v32  ;;  %v5934_v34 = vunpack.i.l.bf16 %v8300_v32  ;;  %vm10908_vm5 = vmmov %vm10907_vm8 }
 0x1c0   : > { %6232 = vrot.lane.b32.xlu1 %v6231_v9, %s7093_s14  ;;  %v1932_v22 = vsel %vm1926_vm15, %v1917_v27, %v5925_v50  ;;  %v1946_v9 = vsel %vm10907_vm8, %v1931_v37, %v5889_v7  ;;  %vm10909_vm10 = vcmask 588800   ;;  %v5970_v51 = vunpack.i.h.bf16 %v8304_v10  ;;  %v7042_v37 = vld [vmem:[#allocation2 + $0x60] ss:$2 sm:$0xff] }
 0x1c1   : > { %6227 = vrot.lane.b32.xlu0 %v6226_v24, %s7092_s12  ;;  %v1947_v56 = vsel %vm10908_vm5, %v1932_v22, %v5890_v42  ;;  %v1961_v61 = vsel %vm10909_vm10, %v1946_v9, %v5929_v29  ;;  %vm10910_vm1 = vmmov %vm10909_vm10  ;;  %v5969_v33 = vunpack.i.l.bf16 %v8304_v10  ;;  %vm10911_vm6 = vcmask 64512  }
 0x1c2   : > { %v8321_v55 = vpop.permute.xlu1 %5937  ;;  %v1962_v21 = vsel %vm10910_vm1, %v1947_v56, %v5930_v63  ;;  %v1976_v26 = vsel %vm1971_vm14, %v1961_v61, %v5934_v34  ;;  %vm10912_vm3 = vmmov %vm10911_vm6  ;;  %vm10913_vm8 = vcmask 130048   ;;  %vm10915_vm10 = vcmask 195584  }
 0x1c3   : > { %v8325_v62 = vpop.permute.xlu0 %5972  ;;  %v5940_v41 = vunpack.i.h.bf16 %v8321_v55  ;;  %v5939_v49 = vunpack.i.l.bf16 %v8321_v55  ;;  %v1977_v30 = vsel %vm1971_vm14, %v1962_v21, %v5935_v44  ;;  %v1844_v10 = vsel %vm10912_vm3, %v7042_v37, %v5969_v33  ;;  %vm10914_vm5 = vmmov %vm10913_vm8 }
 0x1c4   : > { %6242 = vrot.lane.b32.xlu1 %v6241_v28, %s7095_s16  ;;  %v5975_v23 = vunpack.i.h.bf16 %v8325_v62  ;;  %v5974_v57 = vunpack.i.l.bf16 %v8325_v62  ;;  %vm10916_vm1 = vmmov %vm10915_vm10  ;;  %vm10919_vm7 = vcmask 326656  }
 0x1c5   : > { %6237 = vrot.lane.b32.xlu0 %v6236_v13, %s7094_s15  ;;  %v1991_v55 = vsel %vm1986_vm12, %v1976_v26, %v5939_v49  ;;  %v1992_v28 = vsel %vm1986_vm12, %v1977_v30, %v5940_v41 }
 0x1c6   : > { %v5943_v8 = vpop.permute.xlu1 %5942  ;;  %v1859_v62 = vsel %vm10913_vm8, %v1844_v10, %v5974_v57  ;;  %vm10923_vm8 = vcmask 588800  }
 0x1c7   : > { %v8345_v14 = vpop.permute.xlu0 %5977  ;;  %v5945_v24 = vunpack.i.h.bf16 %v5943_v8  ;;  %v5944_v0 = vunpack.i.l.bf16 %v5943_v8 }
 0x1c8   : > { %6252 = vrot.lane.b32.xlu1 %v6251_v12, %s10872_s18  ;;  %v5980_v45 = vunpack.i.h.bf16 %v8345_v14  ;;  %v5979_v47 = vunpack.i.l.bf16 %v8345_v14 }
 0x1c9   : > { %6247 = vrot.lane.b32.xlu0 %v6246_v15, %s7096_s17  ;;  %v2006_v5 = vsel %vm2001_vm11, %v1991_v55, %v5944_v0  ;;  %v2007_v48 = vsel %vm2001_vm11, %v1992_v28, %v5945_v24 }
 0x1ca   : > { %v5948_v11 = vpop.permute.xlu1 %5947  ;;  %v1874_v34 = vsel %vm10915_vm10, %v1859_v62, %v5979_v47  ;;  %vm10925_vm10 = vcmask 982016  }
 0x1cb   : > { %v8359_v60 = vpop.permute.xlu0 %5982  ;;  %v5950_v2 = vunpack.i.h.bf16 %v5948_v11  ;;  %v5949_v1 = vunpack.i.l.bf16 %v5948_v11  ;;  %v7041_v11 = vld [vmem:[#allocation2 + $0x70] ss:$2 sm:$0xff] }
 0x1cc   : > { %v5985_v31 = vunpack.i.h.bf16 %v8359_v60  ;;  %v5984_v27 = vunpack.i.l.bf16 %v8359_v60 }
 0x1cd   : > { %6257 = vrot.lane.b32.xlu0 %v6256_v52, %s10870_s19  ;;  %v2021_v12 = vsel %vm2016_vm2, %v2006_v5, %v5949_v1  ;;  %v2022_v18 = vsel %vm2016_vm2, %v2007_v48, %v5950_v2  ;;  %v1845_v52 = vsel %vm10911_vm6, %v7041_v11, %v5970_v51  ;;  %vm10917_vm6 = vcmask 261120  }
 0x1ce   : > { %v5953_v58 = vpop.permute.xlu1 %5952  ;;  %v1860_v42 = vsel %vm10914_vm5, %v1845_v52, %v5975_v23  ;;  %v1889_v9 = vsel %vm10917_vm6, %v1874_v34, %v5984_v27  ;;  %vm10918_vm3 = vmmov %vm10917_vm6  ;;  %vm10927_vm6 = vcmask 64512  }
 0x1cf   : > { %v5988_v32 = vpop.permute.xlu0 %5987  ;;  %v5955_v4 = vunpack.i.h.bf16 %v5953_v58  ;;  %v5954_v3 = vunpack.i.l.bf16 %v5953_v58  ;;  %v1875_v60 = vsel %vm10916_vm1, %v1860_v42, %v5980_v45  ;;  %vm10924_vm5 = vmmov %vm10923_vm8 }
 0x1d0   : > { %v5990_v22 = vunpack.i.h.bf16 %v5988_v32  ;;  %v5989_v63 = vunpack.i.l.bf16 %v5988_v32  ;;  %v1890_v56 = vsel %vm10918_vm3, %v1875_v60, %v5985_v31  ;;  %vm10926_vm1 = vmmov %vm10925_vm10 }
 0x1d1   : > { %v2036_v19 = vsel %vm2031_vm9, %v2021_v12, %v5954_v3  ;;  %v2037_v54 = vsel %vm2031_vm9, %v2022_v18, %v5955_v4  ;;  %v5965_v4 = vunpack.i.h.bf16 %v8287_v43  ;;  %v5964_v3 = vunpack.i.l.bf16 %v8287_v43  ;;  %vm10928_vm3 = vmmov %vm10927_vm6 }
 0x1d2   : > { %v5958_v13 = vpop.permute.xlu1 %5957  ;;  %v1904_v24 = vsel %vm10919_vm7, %v1889_v9, %v5989_v63 }
 0x1d3   : > { %v5960_v16 = vunpack.i.h.bf16 %v5958_v13  ;;  %v5959_v15 = vunpack.i.l.bf16 %v5958_v13  ;;  %v5993_v17 = vpop.permute.xlu0 %5992 }
 0x1d4   : > { %v5995_v7 = vunpack.i.h.bf16 %v5993_v17  ;;  %v5994_v14 = vunpack.i.l.bf16 %v5993_v17 }
 0x1d5   : > { %v2051_v20 = vsel %vm10869_vm13, %v2036_v19, %v5959_v15  ;;  %v2052_v46 = vsel %vm10869_vm13, %v2037_v54, %v5960_v16  ;;  %vm10920_vm13 = vmmov %vm10919_vm7  ;;  %vm10921_vm7 = vcmask 523264  }
 0x1d6   : > { %v8384_v6 = vpop.permute.xlu1 %6037  ;;  %v2063_v53 = vpack.c.bf16 %v2052_v46, %v2051_v20  ;;  %v1905_v0 = vsel %vm10920_vm13, %v1890_v56, %v5990_v22  ;;  %v1918_v61 = vsel %vm535_vm0, %v1904_v24, %v5994_v14  ;;  %vm10922_vm13 = vmmov %vm10921_vm7 }
 0x1d7   : > { %v5998_v59 = vpop.permute.xlu0 %5997  ;;  %v1919_v21 = vsel %vm535_vm0, %v1905_v0, %v5995_v7 }
 0x1d8   : > { %5593 = vmatmul.mubr.bf16.gmra.mxu1 %v2063_v53  ;;  %v6000_v41 = vunpack.i.h.bf16 %v5998_v59  ;;  %v5999_v49 = vunpack.i.l.bf16 %v5998_v59 }
 0x1d9   : > { %5596 = vmatprep.mubr.msk.bf16.mxu1 %vm10893_vm4, %v7099_v36 }
 0x1da   : > { %v8388_v25 = vpop.permute.xlu1 %6042  ;;  %v1933_v1 = vsel %vm1926_vm15, %v1918_v61, %v5999_v49  ;;  %v1934_v32 = vsel %vm1926_vm15, %v1919_v21, %v6000_v41  ;;  %v7043_v61 = vld [vmem:[#allocation2 + $0x90] ss:$2 sm:$0xff] }
 0x1db   : > { %v6003_v39 = vpop.permute.xlu0 %6002  ;;  %v1948_v12 = vsel %vm10921_vm7, %v1933_v1, %v5964_v3  ;;  %v1949_v18 = vsel %vm10922_vm13, %v1934_v32, %v5965_v4  ;;  %v6045_v14 = vunpack.i.h.bf16 %v8388_v25  ;;  %vm10929_vm7 = vcmask 130048  }
 0x1dc   : > { %v6005_v26 = vunpack.i.h.bf16 %v6003_v39  ;;  %v6004_v30 = vunpack.i.l.bf16 %v6003_v39  ;;  %vm10930_vm13 = vmmov %vm10929_vm7 }
 0x1dd   : > { %v1847_v21 = vsel %vm10927_vm6, %v7043_v61, %v6045_v14  ;;  %vm10935_vm6 = vcmask 326656  }
 0x1de   : > { %v8390_v35 = vpop.permute.xlu1 %6047  ;;  %v1963_v19 = vsel %vm10923_vm8, %v1948_v12, %v6004_v30  ;;  %v1964_v54 = vsel %vm10924_vm5, %v1949_v18, %v6005_v26  ;;  %vm10931_vm8 = vcmask 195584  }
 0x1df   : > { %v6008_v8 = vpop.permute.xlu0 %6007  ;;  %v6050_v34 = vunpack.i.h.bf16 %v8390_v35  ;;  %v6049_v60 = vunpack.i.l.bf16 %v8390_v35  ;;  %vm10932_vm5 = vmmov %vm10931_vm8 }
 0x1e0   : > { %v6010_v55 = vunpack.i.h.bf16 %v6008_v8  ;;  %v6009_v28 = vunpack.i.l.bf16 %v6008_v8 }
 0x1e2   : > { %v8394_v50 = vpop.permute.xlu1 %6052  ;;  %v1978_v43 = vsel %vm1971_vm14, %v1963_v19, %v6009_v28  ;;  %v1979_v53 = vsel %vm1971_vm14, %v1964_v54, %v6010_v55 }
 0x1e3   : > { %v6013_v40 = vpop.permute.xlu0 %6012  ;;  %v6055_v49 = vunpack.i.h.bf16 %v8394_v50  ;;  %v6054_v9 = vunpack.i.l.bf16 %v8394_v50  ;;  %v1862_v50 = vsel %vm10930_vm13, %v1847_v21, %v6050_v34 }
 0x1e4   : > { %v6015_v5 = vunpack.i.h.bf16 %v6013_v40  ;;  %v6014_v48 = vunpack.i.l.bf16 %v6013_v40 }
 0x1e5   : > { %v1877_v3 = vsel %vm10932_vm5, %v1862_v50, %v6055_v49 }
 0x1e6   : > { %v8404_v29 = vpop.permute.xlu1 %6057  ;;  %v1993_v8 = vsel %vm1986_vm12, %v1978_v43, %v6014_v48  ;;  %v1994_v51 = vsel %vm1986_vm12, %v1979_v53, %v6015_v5  ;;  %v6040_v43 = vunpack.i.h.bf16 %v8384_v6  ;;  %v6039_v53 = vunpack.i.l.bf16 %v8384_v6 }
 0x1e7   : > { %v6018_v44 = vpop.permute.xlu0 %6017  ;;  %v6060_v24 = vunpack.i.h.bf16 %v8404_v29  ;;  %v6059_v0 = vunpack.i.l.bf16 %v8404_v29 }
 0x1e8   : > { %v6020_v16 = vunpack.i.h.bf16 %v6018_v44  ;;  %v6019_v15 = vunpack.i.l.bf16 %v6018_v44  ;;  %v6044_v44 = vunpack.i.l.bf16 %v8388_v25 }
 0x1ea   : > { %v8414_v58 = vpop.permute.xlu1 %6062  ;;  %v2008_v23 = vsel %vm2001_vm11, %v1993_v8, %v6019_v15  ;;  %v2009_v57 = vsel %vm2001_vm11, %v1994_v51, %v6020_v16 }
 0x1eb   : > { %v6023_v2 = vpop.permute.xlu0 %6022  ;;  %v6065_v1 = vunpack.i.h.bf16 %v8414_v58  ;;  %v6064_v35 = vunpack.i.l.bf16 %v8414_v58 }
 0x1ec   : > { %v6025_v20 = vunpack.i.h.bf16 %v6023_v2  ;;  %v6024_v46 = vunpack.i.l.bf16 %v6023_v2  ;;  %v7044_v2 = vld [vmem:[#allocation2 + $0x80] ss:$2 sm:$0xff] }
 0x1ed   : > { %v1846_v25 = vsel %vm10928_vm3, %v7044_v2, %v6044_v44  ;;  %vm10936_vm3 = vmmov %vm10935_vm6 }
 0x1ee   : > { %v8422_v13 = vpop.permute.xlu1 %6067  ;;  %v2023_v45 = vsel %vm2016_vm2, %v2008_v23, %v6024_v46  ;;  %v2024_v47 = vsel %vm2016_vm2, %v2009_v57, %v6025_v20  ;;  %v1861_v32 = vsel %vm10929_vm7, %v1846_v25, %v6049_v60  ;;  %vm10937_vm7 = vcmask 523264  }
 0x1ef   : > { %v6028_v17 = vpop.permute.xlu0 %6027  ;;  %v6070_v26 = vunpack.i.h.bf16 %v8422_v13  ;;  %v6069_v30 = vunpack.i.l.bf16 %v8422_v13  ;;  %v1876_v29 = vsel %vm10931_vm8, %v1861_v32, %v6054_v9  ;;  %vm10938_vm13 = vmmov %vm10937_vm7  ;;  %vm10939_vm8 = vcmask 588800  }
 0x1f0   : > { %v6030_v59 = vunpack.i.h.bf16 %v6028_v17  ;;  %v6029_v39 = vunpack.i.l.bf16 %v6028_v17  ;;  %vm10940_vm5 = vmmov %vm10939_vm8 }
 0x1f2   : > { %v6073_v33 = vpop.permute.xlu1 %6072  ;;  %v2038_v11 = vsel %vm2031_vm9, %v2023_v45, %v6029_v39  ;;  %v2039_v52 = vsel %vm2031_vm9, %v2024_v47, %v6030_v59 }
 0x1f3   : > { %v6033_v40 = vpop.permute.xlu0 %6032  ;;  %v6075_v55 = vunpack.i.h.bf16 %v6073_v33  ;;  %v6074_v28 = vunpack.i.l.bf16 %v6073_v33 }
 0x1f4   : > { %v6035_v31 = vunpack.i.h.bf16 %v6033_v40  ;;  %v6034_v27 = vunpack.i.l.bf16 %v6033_v40 }
 0x1f6   : > { %v6078_v37 = vpop.permute.xlu1 %6077  ;;  %v2053_v10 = vsel %vm10925_vm10, %v2038_v11, %v6034_v27  ;;  %v2054_v22 = vsel %vm10926_vm1, %v2039_v52, %v6035_v31  ;;  %vm10933_vm10 = vcmask 261120  }
 0x1f7   : > { %v8440_v63 = vpop.permute.xlu0 %6112  ;;  %v2064_v62 = vpack.c.bf16 %v2054_v22, %v2053_v10  ;;  %v1891_v48 = vsel %vm10933_vm10, %v1876_v29, %v6059_v0  ;;  %vm10934_vm1 = vmmov %vm10933_vm10  ;;  %v6080_v54 = vunpack.i.h.bf16 %v6078_v37  ;;  %v6079_v20 = vunpack.i.l.bf16 %v6078_v37 }
 0x1f8   : > { %v1892_v58 = vsel %vm10934_vm1, %v1877_v3, %v6060_v24  ;;  %v1906_v12 = vsel %vm10935_vm6, %v1891_v48, %v6064_v35  ;;  %vm10941_vm10 = vcmask 982016   ;;  %vm10943_vm6 = vcmask 64512  }
 0x1f9   : > { %5597 = vmatmul.mubr.bf16.gmra.mxu1 %v2064_v62  ;;  %v1907_v18 = vsel %vm10936_vm3, %v1892_v58, %v6065_v1  ;;  %v1920_v16 = vsel %vm535_vm0, %v1906_v12, %v6069_v30  ;;  %vm10942_vm1 = vmmov %vm10941_vm10 }
 0x1fa   : > { %v6083_v42 = vpop.permute.xlu1 %6082  ;;  %5600 = vmatprep.mubr.msk.bf16.mxu1 %vm10893_vm4, %v7099_v36  ;;  %v1921_v13 = vsel %vm535_vm0, %v1907_v18, %v6070_v26  ;;  %v1935_v17 = vsel %vm1926_vm15, %v1920_v16, %v6074_v28  ;;  %v7045_v18 = vld [vmem:[#allocation2 + $0xb0] ss:$2 sm:$0xff]  ;;  %vm10944_vm3 = vmmov %vm10943_vm6 }
 0x1fb   : > { %v8444_v7 = vpop.permute.xlu0 %6117  ;;  %v1936_v19 = vsel %vm1926_vm15, %v1921_v13, %v6075_v55  ;;  %v6085_v59 = vunpack.i.h.bf16 %v6083_v42  ;;  %v6084_v39 = vunpack.i.l.bf16 %v6083_v42  ;;  %v1950_v33 = vsel %vm10937_vm7, %v1935_v17, %v6039_v53 }
 0x1fc   : > { %v1951_v23 = vsel %vm10938_vm13, %v1936_v19, %v6040_v43  ;;  %v1965_v47 = vsel %vm10939_vm8, %v1950_v33, %v6079_v20  ;;  %v6120_v26 = vunpack.i.h.bf16 %v8444_v7  ;;  %v6119_v30 = vunpack.i.l.bf16 %v8444_v7  ;;  %v7046_v7 = vld [vmem:[#allocation2 + $0xa0] ss:$2 sm:$0xff] }
 0x1fd   : > { %v1966_v31 = vsel %vm10940_vm5, %v1951_v23, %v6080_v54  ;;  %v1980_v6 = vsel %vm1971_vm14, %v1965_v47, %v6084_v39  ;;  %vm10945_vm7 = vcmask 130048   ;;  %vm10947_vm8 = vcmask 195584  }
 0x1fe   : > { %v6088_v41 = vpop.permute.xlu1 %6087  ;;  %v1981_v37 = vsel %vm1971_vm14, %v1966_v31, %v6085_v59  ;;  %v1849_v16 = vsel %vm10943_vm6, %v7045_v18, %v6120_v26  ;;  %v1848_v13 = vsel %vm10944_vm3, %v7046_v7, %v6119_v30  ;;  %vm10946_vm13 = vmmov %vm10945_vm7  ;;  %vm10951_vm6 = vcmask 326656  }
 0x1ff   : > { %v8452_v56 = vpop.permute.xlu0 %6122  ;;  %v6090_v8 = vunpack.i.h.bf16 %v6088_v41  ;;  %v6089_v51 = vunpack.i.l.bf16 %v6088_v41  ;;  %vm10948_vm5 = vmmov %vm10947_vm8 }
 0x200   : > { %v6125_v29 = vunpack.i.h.bf16 %v8452_v56  ;;  %v6124_v3 = vunpack.i.l.bf16 %v8452_v56  ;;  %vm10952_vm3 = vmmov %vm10951_vm6 }
 0x201   : > { %v1995_v62 = vsel %vm1986_vm12, %v1980_v6, %v6089_v51  ;;  %v1996_v42 = vsel %vm1986_vm12, %v1981_v37, %v6090_v8  ;;  %v6115_v6 = vunpack.i.h.bf16 %v8440_v63  ;;  %v6114_v37 = vunpack.i.l.bf16 %v8440_v63 }
 0x202   : > { %v6093_v4 = vpop.permute.xlu1 %6092  ;;  %v1863_v56 = vsel %vm10945_vm7, %v1848_v13, %v6124_v3  ;;  %v1864_v54 = vsel %vm10946_vm13, %v1849_v16, %v6125_v29  ;;  %vm10953_vm7 = vcmask 64512  }
 0x203   : > { %v8466_v5 = vpop.permute.xlu0 %6127  ;;  %v6095_v57 = vunpack.i.h.bf16 %v6093_v4  ;;  %v6094_v40 = vunpack.i.l.bf16 %v6093_v4  ;;  %vm10954_vm13 = vmmov %vm10953_vm7 }
 0x204   : > { %v6130_v28 = vunpack.i.h.bf16 %v8466_v5  ;;  %v6129_v48 = vunpack.i.l.bf16 %v8466_v5 }
 0x205   : > { %v2010_v14 = vsel %vm2001_vm11, %v1995_v62, %v6094_v40  ;;  %v2011_v44 = vsel %vm2001_vm11, %v1996_v42, %v6095_v57  ;;  %v7047_v42 = vld [vmem:[#allocation2 + $0xc0] ss:$2 sm:$0xff] }
 0x206   : > { %v6098_v15 = vpop.permute.xlu1 %6097  ;;  %v1878_v53 = vsel %vm10947_vm8, %v1863_v56, %v6129_v48  ;;  %vm10955_vm8 = vcmask 523264  }
 0x207   : > { %v8476_v46 = vpop.permute.xlu0 %6132  ;;  %v6100_v27 = vunpack.i.h.bf16 %v6098_v15  ;;  %v6099_v11 = vunpack.i.l.bf16 %v6098_v15 }
 0x208   : > { %v6135_v58 = vunpack.i.h.bf16 %v8476_v46  ;;  %v6134_v12 = vunpack.i.l.bf16 %v8476_v46  ;;  %v1879_v46 = vsel %vm10948_vm5, %v1864_v54, %v6130_v28  ;;  %vm10956_vm5 = vmmov %vm10955_vm8 }
 0x209   : > { %v2025_v60 = vsel %vm2016_vm2, %v2010_v14, %v6099_v11  ;;  %v2026_v41 = vsel %vm2016_vm2, %v2011_v44, %v6100_v27 }
 0x20a   : > { %v6103_v45 = vpop.permute.xlu1 %6102 }
 0x20b   : > { %v6138_v52 = vpop.permute.xlu0 %6137  ;;  %v6105_v10 = vunpack.i.h.bf16 %v6103_v45  ;;  %v6104_v22 = vunpack.i.l.bf16 %v6103_v45 }
 0x20c   : > { %v6140_v15 = vunpack.i.h.bf16 %v6138_v52  ;;  %v6139_v17 = vunpack.i.l.bf16 %v6138_v52 }
 0x20d   : > { %v2040_v0 = vsel %vm2031_vm9, %v2025_v60, %v6104_v22  ;;  %v2041_v61 = vsel %vm2031_vm9, %v2026_v41, %v6105_v10 }
 0x20e   : > { %v6108_v34 = vpop.permute.xlu1 %6107 }
 0x20f   : > { %v6110_v49 = vunpack.i.h.bf16 %v6108_v34  ;;  %v6109_v9 = vunpack.i.l.bf16 %v6108_v34  ;;  %v6143_v24 = vpop.permute.xlu0 %6142 }
 0x210   : > { %v6145_v20 = vunpack.i.h.bf16 %v6143_v24  ;;  %v6144_v43 = vunpack.i.l.bf16 %v6143_v24 }
 0x211   : > { %v2055_v21 = vsel %vm10941_vm10, %v2040_v0, %v6109_v9  ;;  %v2056_v2 = vsel %vm10942_vm1, %v2041_v61, %v6110_v49  ;;  %vm10949_vm10 = vcmask 261120  }
 0x212   : > { %v6153_v25 = vpop.permute.xlu1 %6152  ;;  %v2065_v1 = vpack.c.bf16 %v2056_v2, %v2055_v21  ;;  %v1893_v8 = vsel %vm10949_vm10, %v1878_v53, %v6134_v12  ;;  %vm10950_vm1 = vmmov %vm10949_vm10  ;;  %vm10957_vm10 = vcmask 130048  }
 0x213   : > { %v6148_v35 = vpop.permute.xlu0 %6147  ;;  %v1894_v51 = vsel %vm10950_vm1, %v1879_v46, %v6135_v58  ;;  %v1908_v33 = vsel %vm10951_vm6, %v1893_v8, %v6139_v17  ;;  %v6155_v57 = vunpack.i.h.bf16 %v6153_v25  ;;  %v6154_v40 = vunpack.i.l.bf16 %v6153_v25  ;;  %vm10958_vm1 = vmmov %vm10957_vm10 }
 0x214   : > { %5601 = vmatmul.mubr.bf16.gmra.mxu1 %v2065_v1  ;;  %v6150_v59 = vunpack.i.h.bf16 %v6148_v35  ;;  %v6149_v39 = vunpack.i.l.bf16 %v6148_v35  ;;  %v1909_v23 = vsel %vm10952_vm3, %v1894_v51, %v6140_v15  ;;  %v1922_v47 = vsel %vm535_vm0, %v1908_v33, %v6144_v43 }
 0x215   : > { %5604 = vmatprep.mubr.msk.bf16.mxu1 %vm10893_vm4, %v7099_v36  ;;  %v1923_v31 = vsel %vm535_vm0, %v1909_v23, %v6145_v20  ;;  %v1851_v62 = vsel %vm10953_vm7, %v8090_v38, %v6155_v57  ;;  %v1850_v14 = vsel %vm10954_vm13, %v7047_v42, %v6154_v40  ;;  %vm10959_vm6 = vcmask 588800  }
 0x216   : > { %v6163_v32 = vpop.permute.xlu1 %6162  ;;  %v1937_v11 = vsel %vm1926_vm15, %v1922_v47, %v6149_v39  ;;  %v1938_v52 = vsel %vm1926_vm15, %v1923_v31, %v6150_v59  ;;  %vm10960_vm3 = vmmov %vm10959_vm6  ;;  %vm10961_vm7 = vcmask 195584  }
 0x217   : > { %v8498_v50 = vpop.permute.xlu0 %6157  ;;  %v6165_v10 = vunpack.i.h.bf16 %v6163_v32  ;;  %v6164_v22 = vunpack.i.l.bf16 %v6163_v32  ;;  %v1952_v41 = vsel %vm10955_vm8, %v1937_v11, %v6114_v37  ;;  %v1953_v49 = vsel %vm10956_vm5, %v1938_v52, %v6115_v6  ;;  %vm10962_vm13 = vmmov %vm10961_vm7 }
 0x218   : > { %v6160_v44 = vunpack.i.h.bf16 %v8498_v50  ;;  %v6159_v34 = vunpack.i.l.bf16 %v8498_v50  ;;  %vm10963_vm8 = vcmask 261120  }
 0x219   : > { %v1865_v2 = vsel %vm10957_vm10, %v1850_v14, %v6164_v22  ;;  %v1866_v25 = vsel %vm10958_vm1, %v1851_v62, %v6165_v10  ;;  %vm10964_vm5 = vmmov %vm10963_vm8  ;;  %vm10965_vm10 = vcmask 326656  }
 0x21a   : > { %v8502_v4 = vpop.permute.xlu1 %6172  ;;  %v1967_v32 = vsel %vm10959_vm6, %v1952_v41, %v6159_v34  ;;  %v1968_v50 = vsel %vm10960_vm3, %v1953_v49, %v6160_v44  ;;  %vm10966_vm1 = vmmov %vm10965_vm10  ;;  %vm10967_vm6 = vcmask 982016  }
 0x21b   : > { %v8506_v55 = vpop.permute.xlu0 %6167  ;;  %v6175_v9 = vunpack.i.h.bf16 %v8502_v4  ;;  %v6174_v63 = vunpack.i.l.bf16 %v8502_v4  ;;  %vm10968_vm3 = vmmov %vm10967_vm6 }
 0x21c   : > { %v6170_v0 = vunpack.i.h.bf16 %v8506_v55  ;;  %v6169_v38 = vunpack.i.l.bf16 %v8506_v55 }
 0x21d   : > { %v1880_v29 = vsel %vm10961_vm7, %v1865_v2, %v6174_v63  ;;  %v1881_v3 = vsel %vm10962_vm13, %v1866_v25, %v6175_v9  ;;  %vm10969_vm7 = vcmask 523264  }
 0x21e   : > { %v6183_v19 = vpop.permute.xlu1 %6182  ;;  %v1982_v58 = vsel %vm1971_vm14, %v1967_v32, %v6169_v38  ;;  %v1983_v12 = vsel %vm1971_vm14, %v1968_v50, %v6170_v0  ;;  %vm10970_vm13 = vmmov %vm10969_vm7 }
 0x21f   : > { %v6178_v5 = vpop.permute.xlu0 %6177  ;;  %v6185_v61 = vunpack.i.h.bf16 %v6183_v19  ;;  %v6184_v21 = vunpack.i.l.bf16 %v6183_v19 }
 0x220   : > { %v6180_v1 = vunpack.i.h.bf16 %v6178_v5  ;;  %v6179_v35 = vunpack.i.l.bf16 %v6178_v5 }
 0x221   : > { %v1895_v18 = vsel %vm10963_vm8, %v1880_v29, %v6184_v21  ;;  %v1896_v16 = vsel %vm10964_vm5, %v1881_v3, %v6185_v61  ;;  %vm10971_vm8 = vcmask 588800  }
 0x222   : > { %v8522_v45 = vpop.permute.xlu1 %6192  ;;  %v1997_v7 = vsel %vm1986_vm12, %v1982_v58, %v6179_v35  ;;  %v1998_v13 = vsel %vm1986_vm12, %v1983_v12, %v6180_v1  ;;  %vm10972_vm5 = vmmov %vm10971_vm8 }
 0x223   : > { %v6188_v27 = vpop.permute.xlu0 %6187  ;;  %v6195_v19 = vunpack.i.h.bf16 %v8522_v45  ;;  %v6194_v56 = vunpack.i.l.bf16 %v8522_v45 }
 0x224   : > { %v6190_v26 = vunpack.i.h.bf16 %v6188_v27  ;;  %v6189_v30 = vunpack.i.l.bf16 %v6188_v27 }
 0x225   : > { %v1910_v31 = vsel %vm10965_vm10, %v1895_v18, %v6194_v56  ;;  %v1911_v27 = vsel %vm10966_vm1, %v1896_v16, %v6195_v19  ;;  %vm10973_vm10 = vmmov %vm10968_vm3 }
 0x226   : > { %v6203_v60 = vpop.permute.xlu1 %6202  ;;  %v2012_v54 = vsel %vm2001_vm11, %v1997_v7, %v6189_v30  ;;  %v2013_v20 = vsel %vm2001_vm11, %v1998_v13, %v6190_v26  ;;  %vm10974_vm1 = vmmov %vm10968_vm3 }
 0x227   : > { %v6198_v24 = vpop.permute.xlu0 %6197  ;;  %v6205_v5 = vunpack.i.h.bf16 %v6203_v60  ;;  %v6204_v53 = vunpack.i.l.bf16 %v6203_v60 }
 0x228   : > { %v6200_v55 = vunpack.i.h.bf16 %v6198_v24  ;;  %v6199_v28 = vunpack.i.l.bf16 %v6198_v24 }
 0x229   : > { %v1924_v37 = vsel %vm535_vm0, %v1910_v31, %v6204_v53  ;;  %v1925_v10 = vsel %vm535_vm0, %v1911_v27, %v6205_v5 }
 0x22a   : > { %v6213_v4 = vpop.permute.xlu1 %6212  ;;  %v2027_v46 = vsel %vm2016_vm2, %v2012_v54, %v6199_v28  ;;  %v2028_v59 = vsel %vm2016_vm2, %v2013_v20, %v6200_v55  ;;  %v8592_v54 = vld [vmem:[%s10846_s4] ss:$0 sm:$0xff] }
 0x22b   : > { %v6208_v48 = vpop.permute.xlu0 %6207  ;;  %v6215_v8 = vunpack.i.h.bf16 %v6213_v4  ;;  %v6214_v51 = vunpack.i.l.bf16 %v6213_v4 }
 0x22c   : > { %v6210_v15 = vunpack.i.h.bf16 %v6208_v48  ;;  %v6209_v17 = vunpack.i.l.bf16 %v6208_v48 }
 0x22d   : > { %v1939_v42 = vsel %vm1926_vm15, %v1924_v37, %v6214_v51  ;;  %v1940_v14 = vsel %vm1926_vm15, %v1925_v10, %v6215_v8 }
 0x22e   : > { %v6223_v43 = vpop.permute.xlu1 %6222  ;;  %v2042_v45 = vsel %vm2031_vm9, %v2027_v46, %v6209_v17  ;;  %v2043_v47 = vsel %vm2031_vm9, %v2028_v59, %v6210_v15 }
 0x22f   : > { %v6218_v39 = vpop.permute.xlu0 %6217  ;;  %v6225_v57 = vunpack.i.h.bf16 %v6223_v43  ;;  %v6224_v40 = vunpack.i.l.bf16 %v6223_v43 }
 0x230   : > { %v6220_v33 = vunpack.i.h.bf16 %v6218_v39  ;;  %v6219_v23 = vunpack.i.l.bf16 %v6218_v39 }
 0x231   : > { %v1954_v60 = vsel %vm10969_vm7, %v1939_v42, %v6224_v40  ;;  %v1955_v41 = vsel %vm10970_vm13, %v1940_v14, %v6225_v57 }
 0x232   : > { %v6233_v11 = vpop.permute.xlu1 %6232  ;;  %v2057_v52 = vsel %vm10967_vm6, %v2042_v45, %v6219_v23  ;;  %v2058_v6 = vsel %vm10968_vm3, %v2043_v47, %v6220_v33  ;;  %vm10975_vm6 = vcmask 1046528   ;;  %vm10976_vm3 = vcmask 130048  }
 0x233   : > { %v6228_v22 = vpop.permute.xlu0 %6227  ;;  %v2066_v62 = vpack.c.bf16 %v2058_v6, %v2057_v52  ;;  %v6235_v24 = vunpack.i.h.bf16 %v6233_v11  ;;  %v6234_v0 = vunpack.i.l.bf16 %v6233_v11  ;;  %vm10977_vm7 = vmmov %vm10975_vm6 }
 0x234   : > { %v6230_v44 = vunpack.i.h.bf16 %v6228_v22  ;;  %v6229_v34 = vunpack.i.l.bf16 %v6228_v22  ;;  %vm10978_vm13 = vmmov %vm10976_vm3 }
 0x235   : > { %5605 = vmatmul.mubr.bf16.gmra.mxu1 %v2066_v62 }
 0x236   : > { %v1970_v49 = vsel %vm10971_vm8, %v1955_v41, %v6230_v44  ;;  %v1969_v9 = vsel %vm10972_vm5, %v1954_v60, %v6229_v34  ;;  %v6243_v63 = vpop.permute.xlu1 %6242  ;;  %5608 = vmatprep.mubr.msk.bf16.mxu1 %vm10893_vm4, %v7099_v36  ;;  %vm10979_vm8 = vmmov %vm10975_vm6 }
 0x237   : > { %v6238_v38 = vpop.permute.xlu0 %6237  ;;  %v1984_v2 = vsel %vm1971_vm14, %v1969_v9, %v6234_v0  ;;  %v1985_v25 = vsel %vm1971_vm14, %v1970_v49, %v6235_v24  ;;  %v6245_v32 = vunpack.i.h.bf16 %v6243_v63  ;;  %v6244_v50 = vunpack.i.l.bf16 %v6243_v63  ;;  %vm10980_vm5 = vmmov %vm10976_vm3 }
 0x238   : > { %v6240_v61 = vunpack.i.h.bf16 %v6238_v38  ;;  %v6239_v21 = vunpack.i.l.bf16 %v6238_v38 }
 0x23a   : > { %v1999_v1 = vsel %vm1986_vm12, %v1984_v2, %v6239_v21  ;;  %v2000_v35 = vsel %vm1986_vm12, %v1985_v25, %v6240_v61  ;;  %v6253_v30 = vpop.permute.xlu1 %6252 }
 0x23b   : > { %v6248_v26 = vpop.permute.xlu0 %6247  ;;  %v2014_v3 = vsel %vm2001_vm11, %v1999_v1, %v6244_v50  ;;  %v2015_v55 = vsel %vm2001_vm11, %v2000_v35, %v6245_v32  ;;  %v6255_v58 = vunpack.i.h.bf16 %v6253_v30  ;;  %v6254_v12 = vunpack.i.l.bf16 %v6253_v30 }
 0x23c   : > { %v6250_v4 = vunpack.i.h.bf16 %v6248_v26  ;;  %v6249_v29 = vunpack.i.l.bf16 %v6248_v26 }
 0x23e   : > { %v2029_v28 = vsel %vm2016_vm2, %v2014_v3, %v6249_v29  ;;  %v2030_v48 = vsel %vm2016_vm2, %v2015_v55, %v6250_v4 }
 0x23f   : > { %v6258_v18 = vpop.permute.xlu0 %6257  ;;  %v2044_v13 = vsel %vm2031_vm9, %v2029_v28, %v6254_v12  ;;  %v2045_v15 = vsel %vm2031_vm9, %v2030_v48, %v6255_v58 }
 0x240   : > { %v6260_v16 = vunpack.i.h.bf16 %v6258_v18  ;;  %v6259_v7 = vunpack.i.l.bf16 %v6258_v18 }
 0x242   : > { %v2059_v17 = vsel %vm10973_vm10, %v2044_v13, %v6259_v7  ;;  %v2060_v19 = vsel %vm10974_vm1, %v2045_v15, %v6260_v16  ;;  %vm10981_vm10 = vmmov %vm10975_vm6 }
 0x243   : > { %v2067_v56 = vpack.c.bf16 %v2060_v19, %v2059_v17  ;;  %vm10982_vm1 = vmmov %vm10976_vm3 }
 0x245   : > { %5609 = vmatmul.mubr.bf16.gmra.mxu1 %v2067_v56 }
 0x246   : > { %5616 = vmatprep.mubr.msk.bf16.mxu1 %vm10893_vm4, %v7099_v36 }
 0x25c   : > { %v2156_v20 = vpop.f32.mrf.mxu1 }
 0x25d   : > { %v2157_v43 = vadd.f32 %v8592_v54, %v2156_v20 }
 0x25e   : > { %v5586_v5 = vpop.f32.mrf.mxu1 }
 0x25f   : > { %v2210_v46 = vmax.f32 %v2157_v43, 0.0 }
 0x260   : > { %v2159_v53 = vpop.f32.mrf.mxu1 }
 0x261   : > { %v2160_v59 = vadd.f32 %v8592_v54, %v2159_v53  ;;  %v2236_v51 = vrot.slane %v2210_v46, 1 }
 0x262   : > { %v5587_v39 = vpop.f32.mrf.mxu1 }
 0x263   : > { %v2211_v8 = vmax.f32 %v2160_v59, 0.0 }
 0x265   : > { %v2237_v33 = vrot.slane %v2211_v8, 1 }
 0x267   : > { %v2238_v23 = vsel %vm10975_vm6, %v2236_v51, %v2237_v33 }
 0x268   : > { %v2274_v57 = vmax.f32 %v2210_v46, %v2238_v23  ;;  %v8643_v23 = vld [vmem:[%s10847_s5 + $0x38] sm:$0xff]  }
 0x26a   : > { %2287 = vst.msk [vmem:[#allocation3] sm:$0xff] %vm10976_vm3, %v2274_v57  ;;  %vm10983_vm3 = vmmov %vm10982_vm1 }
 0x27d   : > { %v2164_v40 = vpop.f32.mrf.mxu1 }
 0x27e   : > { %v2165_v45 = vadd.f32 %v8592_v54, %v2164_v40 }
 0x27f   : > { %v5590_v47 = vpop.f32.mrf.mxu1 }
 0x280   : > { %v2212_v31 = vmax.f32 %v2165_v45, 0.0 }
 0x281   : > { %v2167_v27 = vpop.f32.mrf.mxu1 }
 0x282   : > { %v2239_v11 = vrot.slane %v2212_v31, 1  ;;  %v2168_v52 = vadd.f32 %v8592_v54, %v2167_v27 }
 0x283   : > { %v5591_v6 = vpop.f32.mrf.mxu1 }
 0x284   : > { %v2240_v37 = vsel %vm10977_vm7, %v2237_v33, %v2239_v11  ;;  %v2213_v10 = vmax.f32 %v2168_v52, 0.0  ;;  %vm10984_vm7 = vmmov %vm10975_vm6  ;;  %v8638_v33 = vld [vmem:[%s10847_s5 + $0x78] sm:$0xff]  }
 0x285   : > { %v2275_v22 = vmax.f32 %v2211_v8, %v2240_v37  ;;  %5422 = vmatprep.subr.bf16.mxu0 %v8638_v33 }
 0x286   : > { %v2241_v62 = vrot.slane %v2213_v10, 1  ;;  %5423 = vmatpush3.bf16.msra.mxu0 %v8643_v23 }
 0x287   : > { %2288 = vst.msk [vmem:[#allocation3 + $0x8] sm:$0xff] %vm10978_vm13, %v2275_v22  ;;  %vm10985_vm13 = vmmov %vm10982_vm1 }
 0x288   : > { %v2242_v42 = vsel %vm10979_vm8, %v2239_v11, %v2241_v62  ;;  %vm10986_vm8 = vmmov %vm10975_vm6 }
 0x289   : > { %v2276_v14 = vmax.f32 %v2212_v31, %v2242_v42  ;;  %v8672_v42 = vld [vmem:[%s10847_s5 + $0x70] sm:$0xff]  }
 0x28a   : > { %5424 = vmatprep.subr.bf16.mxu0 %v8672_v42 }
 0x28b   : > { %2289 = vst.msk [vmem:[#allocation3 + $0x10] sm:$0xff] %vm10980_vm5, %v2276_v14  ;;  %vm10987_vm5 = vmmov %vm10982_vm1  ;;  %v8677_v14 = vld [vmem:[%s10847_s5 + $0x30] sm:$0xff]  }
 0x28c   : > { %5425 = vmatpush3.bf16.msra.mxu0 %v8677_v14 }
 0x298   : > { %v2172_v44 = vpop.f32.mrf.mxu1 }
 0x299   : > { %v2173_v34 = vadd.f32 %v8592_v54, %v2172_v44 }
 0x29a   : > { %v5594_v60 = vpop.f32.mrf.mxu1 }
 0x29b   : > { %v2214_v41 = vmax.f32 %v2173_v34, 0.0 }
 0x29c   : > { %v2175_v49 = vpop.f32.mrf.mxu1 }
 0x29d   : > { %v2243_v9 = vrot.slane %v2214_v41, 1  ;;  %v2176_v63 = vadd.f32 %v8592_v54, %v2175_v49 }
 0x29e   : > { %v5595_v24 = vpop.f32.mrf.mxu1 }
 0x29f   : > { %v2244_v0 = vsel %vm10981_vm10, %v2241_v62, %v2243_v9  ;;  %v2215_v38 = vmax.f32 %v2176_v63, 0.0  ;;  %vm10988_vm10 = vmmov %vm10975_vm6 }
 0x2a0   : > { %v2277_v61 = vmax.f32 %v2213_v10, %v2244_v0 }
 0x2a1   : > { %v2245_v21 = vrot.slane %v2215_v38, 1 }
 0x2a2   : > { %2290 = vst.msk [vmem:[#allocation3 + $0x18] sm:$0xff] %vm10982_vm1, %v2277_v61  ;;  %v8699_v61 = vld [vmem:[%s10847_s5 + $0x68] sm:$0xff]  }
 0x2a3   : > { %v2246_v2 = vsel %vm10975_vm6, %v2243_v9, %v2245_v21  ;;  %5426 = vmatprep.subr.bf16.mxu0 %v8699_v61 }
 0x2a4   : > { %v2278_v25 = vmax.f32 %v2214_v41, %v2246_v2 }
 0x2a6   : > { %2291 = vst.msk [vmem:[#allocation3 + $0x20] sm:$0xff] %vm10983_vm3, %v2278_v25  ;;  %vm10989_vm3 = vmmov %vm10982_vm1 }
 0x2a9   : > { %v8632_v8 = vld [vmem:[#allocation3 + $0x10] ss:$2 sm:$0xff] }
 0x2aa   : > { %v2320_v40 = vrot.slane %v8632_v8, 1  ;;  %v2344_v6 = vrot.slane %v8632_v8, 2  ;;  %v2368_v34 = vrot.slane %v8632_v8, 3  ;;  %v2393_v24 = vrot.slane %v8632_v8, 4 }
 0x2b9   : > { %v2180_v1 = vpop.f32.mrf.mxu1 }
 0x2ba   : > { %v2181_v35 = vadd.f32 %v8592_v54, %v2180_v1 }
 0x2bb   : > { %v5598_v32 = vpop.f32.mrf.mxu1 }
 0x2bc   : > { %v2216_v50 = vmax.f32 %v2181_v35, 0.0 }
 0x2bd   : > { %v2183_v26 = vpop.f32.mrf.mxu1 }
 0x2be   : > { %v2247_v30 = vrot.slane %v2216_v50, 1  ;;  %v2184_v4 = vadd.f32 %v8592_v54, %v2183_v26 }
 0x2bf   : > { %v5599_v29 = vpop.f32.mrf.mxu1 }
 0x2c0   : > { %v2248_v3 = vsel %vm10984_vm7, %v2245_v21, %v2247_v30  ;;  %v2217_v55 = vmax.f32 %v2184_v4, 0.0  ;;  %vm10990_vm7 = vmmov %vm10975_vm6  ;;  %v8704_v21 = vld [vmem:[%s10847_s5 + $0x28] sm:$0xff]   ;;  %v8722_v4 = vld [vmem:[%s10847_s5 + $0x60] sm:$0xff]  }
 0x2c1   : > { %v2279_v28 = vmax.f32 %v2215_v38, %v2248_v3  ;;  %5427 = vmatpush3.bf16.msra.mxu0 %v8704_v21 }
 0x2c2   : > { %v2249_v48 = vrot.slane %v2217_v55, 1  ;;  %5428 = vmatprep.subr.bf16.mxu0 %v8722_v4 }
 0x2c3   : > { %2292 = vst.msk [vmem:[#allocation3 + $0x28] sm:$0xff] %vm10985_vm13, %v2279_v28  ;;  %vm10991_vm13 = vmmov %vm10975_vm6 }
 0x2c4   : > { %v2250_v58 = vsel %vm10986_vm8, %v2247_v30, %v2249_v48  ;;  %vm10992_vm8 = vcmask 1045504  }
 0x2c5   : > { %v2280_v12 = vmax.f32 %v2216_v50, %v2250_v58  ;;  %v2419_v50 = vrot.slane %v8632_v8, 5 }
 0x2c7   : > { %2293 = vst.msk [vmem:[#allocation3 + $0x30] sm:$0xff] %vm10987_vm5, %v2280_v12  ;;  %vm10993_vm5 = vmmov %vm10992_vm8  ;;  %v2445_v12 = vrot.slane %v8632_v8, 6 }
 0x2ca   : > { %v8629_v39 = vld [vmem:[#allocation3 + $0x20] ss:$2 sm:$0xff] }
 0x2cb   : > { %v2322_v51 = vrot.slane %v8629_v39, 1  ;;  %v2346_v11 = vrot.slane %v8629_v39, 2  ;;  %v2370_v62 = vrot.slane %v8629_v39, 3  ;;  %v2395_v9 = vrot.slane %v8629_v39, 4 }
 0x2cc   : > { %v2421_v25 = vrot.slane %v8629_v39, 5  ;;  %v2447_v28 = vrot.slane %v8629_v39, 6 }
 0x2cd   : > { %v2323_v31 = vsel %vm10990_vm7, %v2320_v40, %v2322_v51  ;;  %v2347_v22 = vsel %vm10993_vm5, %v2344_v6, %v2346_v11  ;;  %vm10998_vm7 = vcmask 1042432   ;;  %vm11001_vm5 = vcmask 1046528  }
 0x2d4   : > { %v2188_v18 = vpop.f32.mrf.mxu1 }
 0x2d5   : > { %v2189_v16 = vadd.f32 %v8592_v54, %v2188_v18 }
 0x2d6   : > { %v5602_v7 = vpop.f32.mrf.mxu1 }
 0x2d7   : > { %v2218_v13 = vmax.f32 %v2189_v16, 0.0 }
 0x2d8   : > { %v2191_v15 = vpop.f32.mrf.mxu1 }
 0x2d9   : > { %v2251_v17 = vrot.slane %v2218_v13, 1  ;;  %v8618_v19 = vadd.f32 %v8592_v54, %v2191_v15 }
 0x2da   : > { %v5603_v56 = vpop.f32.mrf.mxu1 }
 0x2db   : > { %v2252_v20 = vsel %vm10988_vm10, %v2249_v48, %v2251_v17  ;;  %v2219_v43 = vmax.f32 %v8618_v19, 0.0  ;;  %vm10994_vm10 = vcmask 1044480  }
 0x2dc   : > { %v2281_v5 = vmax.f32 %v2217_v55, %v2252_v20 }
 0x2dd   : > { %v8624_v53 = vrot.slane %v2219_v43, 1 }
 0x2de   : > { %2294 = vst.msk [vmem:[#allocation3 + $0x38] sm:$0xff] %vm10982_vm1, %v2281_v5  ;;  %vm10995_vm1 = vmmov %vm10994_vm10 }
 0x2df   : > { %v2254_v46 = vsel %vm10975_vm6, %v2251_v17, %v8624_v53  ;;  %v2371_v49 = vsel %vm10995_vm1, %v2368_v34, %v2370_v62  ;;  %vm10996_vm6 = vcmask 1043456   ;;  %v8740_v17 = vld [vmem:[%s10847_s5 + $0x20] sm:$0xff]   ;;  %vm11003_vm1 = vcmask 1040384  }
 0x2e0   : > { %v2282_v59 = vmax.f32 %v2218_v13, %v2254_v46  ;;  %v2473_v46 = vrot.slane %v8629_v39, 7  ;;  %5429 = vmatpush3.bf16.msra.mxu0 %v8740_v17 }
 0x2e2   : > { %2295 = vst.msk [vmem:[#allocation3 + $0x40] sm:$0xff] %vm10989_vm3, %v2282_v59  ;;  %vm10997_vm3 = vmmov %vm10996_vm6 }
 0x2e3   : > { %v2396_v2 = vsel %vm10997_vm3, %v2393_v24, %v2395_v9  ;;  %vm11005_vm3 = vmmov %vm11001_vm5 }
 0x2e5   : > { %v8645_v57 = vld [vmem:[#allocation3 + $0x30] ss:$2 sm:$0xff] }
 0x2e6   : > { %v2324_v45 = vrot.slane %v8645_v57, 1  ;;  %v2348_v47 = vrot.slane %v8645_v57, 2  ;;  %v2372_v10 = vrot.slane %v8645_v57, 3  ;;  %v2397_v41 = vrot.slane %v8645_v57, 4 }
 0x2e7   : > { %v2423_v38 = vrot.slane %v8645_v57, 5  ;;  %v2449_v30 = vrot.slane %v8645_v57, 6  ;;  %v2475_v13 = vrot.slane %v8645_v57, 7 }
 0x2e8   : > { %v2325_v27 = vsel %vm10991_vm13, %v2322_v51, %v2324_v45  ;;  %v2349_v37 = vsel %vm10992_vm8, %v2346_v11, %v2348_v47  ;;  %v2373_v60 = vsel %vm10994_vm10, %v2370_v62, %v2372_v10  ;;  %v2398_v0 = vsel %vm10996_vm6, %v2395_v9, %v2397_v41  ;;  %vm10999_vm13 = vmmov %vm10998_vm7  ;;  %v8774_v62 = vld [vmem:[#allocation3] ss:$2 sm:$0xff] }
 0x2e9   : > { %v6261_v52 = vpack.i.bf16 %v2325_v27, %v2323_v31  ;;  %v6266_v44 = vpack.i.bf16 %v2349_v37, %v2347_v22  ;;  %v6271_v63 = vpack.i.bf16 %v2373_v60, %v2371_v49  ;;  %v6276_v1 = vpack.i.bf16 %v2398_v0, %v2396_v2  ;;  %v8764_v37 = vld [vmem:[%s10847_s5 + $0x58] sm:$0xff]  }
 0x2ea   : > { %v2424_v26 = vsel %vm10998_vm7, %v2421_v25, %v2423_v38  ;;  %v2422_v55 = vsel %vm10999_vm13, %v2419_v50, %v2421_v25  ;;  %vm11000_vm8 = vcmask 1041408   ;;  %v2471_v27 = vrot.slane %v8632_v8, 7  ;;  %vm11006_vm7 = vmmov %vm11003_vm1  ;;  %v8769_v22 = vld [vmem:[%s10847_s5 + $0x18] sm:$0xff]   ;;  %5430 = vmatprep.subr.bf16.mxu0 %v8764_v37 }
 0x2eb   : > { %6262 = vrot.lane.b32.xlu1 %v6261_v52, %s7087_s27  ;;  %v6281_v48 = vpack.i.bf16 %v2424_v26, %v2422_v55  ;;  %v2450_v7 = vsel %vm11000_vm8, %v2447_v28, %v2449_v30  ;;  %vm11002_vm10 = vmmov %vm11000_vm8  ;;  %vm11004_vm6 = vcmask 130048   ;;  %5431 = vmatpush3.bf16.msra.mxu0 %v8769_v22  ;;  %v8802_v26 = vld [vmem:[%s10847_s5 + $0x10] sm:$0xff]  }
 0x2ec   : > { %v2448_v5 = vsel %vm11002_vm10, %v2445_v12, %v2447_v28  ;;  %v2474_v19 = vsel %vm11006_vm7, %v2471_v27, %v2473_v46  ;;  %vm11007_vm13 = vmmov %vm11004_vm6  ;;  %vm10876_vm10 = vcmask 129024  }
 0x2ed   : > { %v6286_v51 = vpack.i.bf16 %v2450_v7, %v2448_v5  ;;  %vm11008_vm8 = vmmov %vm11005_vm3  ;;  %v2367_v7 = vrot.slane %v8774_v62, 3  ;;  %v8839_v5 = vld [vmem:[%s10847_s5 + $0x8] sm:$0xff]  }
 0x2ee   : > { %vm11013_vm7 = vmmov %vm11007_vm13 }
 0x2ef   : > { %6267 = vrot.lane.b32.xlu1 %v6266_v44, %s7088_s28 }
 0x2f3   : > { %6272 = vrot.lane.b32.xlu1 %v6271_v63, %s7090_s10  ;;  %v2319_v63 = vrot.slane %v8774_v62, 1 }
 0x2f5   : > { %v2196_v35 = vpop.f32.mrf.mxu1 }
 0x2f6   : > { %v2197_v32 = vadd.f32 %v8592_v54, %v2196_v35  ;;  %v2321_v35 = vsel %vm11008_vm8, %v2319_v63, %v2320_v40  ;;  %v2343_v40 = vrot.slane %v8774_v62, 2 }
 0x2f7   : > { %6277 = vrot.lane.b32.xlu1 %v6276_v1, %s7084_s24  ;;  %v5606_v29 = vpop.f32.mrf.mxu1 }
 0x2f8   : > { %v2220_v3 = vmax.f32 %v2197_v32, 0.0  ;;  %v8797_v32 = vld [vmem:[%s10847_s5 + $0x50] sm:$0xff]  }
 0x2f9   : > { %v2199_v58 = vpop.f32.mrf.mxu1  ;;  %5432 = vmatprep.subr.bf16.mxu0 %v8797_v32 }
 0x2fa   : > { %v2255_v18 = vrot.slane %v2220_v3, 1  ;;  %v2200_v16 = vadd.f32 %v8592_v54, %v2199_v58  ;;  %5433 = vmatpush3.bf16.msra.mxu0 %v8802_v26 }
 0x2fb   : > { %6282 = vrot.lane.b32.xlu1 %v6281_v48, %s7093_s14  ;;  %v5607_v15 = vpop.f32.mrf.mxu1 }
 0x2fc   : > { %v2256_v56 = vsel %vm11001_vm5, %v8624_v53, %v2255_v18  ;;  %v2221_v20 = vmax.f32 %v2200_v16, 0.0  ;;  %v2476_v53 = vsel %vm11003_vm1, %v2473_v46, %v2475_v13  ;;  %vm11009_vm5 = vmmov %vm11005_vm3  ;;  %vm11010_vm1 = vcmask 1045504  }
 0x2fd   : > { %v2283_v59 = vmax.f32 %v2219_v43, %v2256_v56  ;;  %v6291_v52 = vpack.i.bf16 %v2476_v53, %v2474_v19  ;;  %v2418_v53 = vrot.slane %v8774_v62, 5 }
 0x2fe   : > { %v2257_v31 = vrot.slane %v2221_v20, 1 }
 0x2ff   : > { %2296 = vst.msk [vmem:[#allocation3 + $0x48] sm:$0xff] %vm11004_vm6, %v2283_v59  ;;  %6287 = vrot.lane.b32.xlu1 %v6286_v51, %s7095_s16  ;;  %vm11011_vm6 = vmmov %vm11005_vm3 }
 0x300   : > { %v2258_v11 = vsel %vm11005_vm3, %v2255_v18, %v2257_v31  ;;  %vm11012_vm3 = vmmov %vm11010_vm1 }
 0x301   : > { %v2284_v43 = vmax.f32 %v2220_v3, %v2258_v11  ;;  %v2345_v16 = vsel %vm11012_vm3, %v2343_v40, %v2344_v6  ;;  %v2470_v40 = vrot.slane %v8774_v62, 7 }
 0x303   : > { %2297 = vst.msk [vmem:[#allocation3 + $0x50] sm:$0xff] %vm11007_vm13, %v2284_v43  ;;  %6292 = vrot.lane.b32.xlu1 %v6291_v52, %s10872_s18  ;;  %vm11014_vm13 = vcmask 1044480  }
 0x304   : > { %vm11015_vm8 = vmmov %vm11014_vm13 }
 0x305   : > { %v2204_v44 = vpop.f32.mrf.mxu1  ;;  %v2369_v6 = vsel %vm11015_vm8, %v2367_v7, %v2368_v34  ;;  %v8905_v7 = vld [vmem:[%s10843_s1 + $0x10] sm:$0xff]  }
 0x306   : > { %v8777_v60 = vld [vmem:[#allocation3 + $0x40] ss:$2 sm:$0xff]  ;;  %v2205_v49 = vadd.f32 %v8592_v54, %v2204_v44 }
 0x307   : > { %v5610_v9 = vpop.f32.mrf.mxu1  ;;  %v8782_v0 = vrot.slane %v8777_v60, 1  ;;  %v8785_v2 = vrot.slane %v8777_v60, 2  ;;  %v8810_v28 = vrot.slane %v8777_v60, 3  ;;  %v2399_v56 = vrot.slane %v8777_v60, 4 }
 0x308   : > { %v2222_v25 = vmax.f32 %v2205_v49, 0.0  ;;  %v2425_v34 = vrot.slane %v8777_v60, 5  ;;  %v2451_v43 = vrot.slane %v8777_v60, 6 }
 0x309   : > { %v2207_v1 = vpop.f32.mrf.mxu1  ;;  %v2327_v54 = vsel %vm11009_vm5, %v2324_v45, %v8782_v0  ;;  %v2351_v45 = vsel %vm11010_vm1, %v2348_v47, %v8785_v2  ;;  %v2375_v15 = vsel %vm11014_vm13, %v2372_v10, %v8810_v28  ;;  %v2392_v10 = vrot.slane %v8774_v62, 4 }
 0x30a   : > { %v2259_v29 = vrot.slane %v2222_v25, 1  ;;  %v6296_v3 = vpack.i.bf16 %v2327_v54, %v2321_v35  ;;  %v6301_v47 = vpack.i.bf16 %v2351_v45, %v2345_v16  ;;  %v6306_v46 = vpack.i.bf16 %v2375_v15, %v2369_v6  ;;  %v8874_v1 = vld [vmem:[%s10847_s5 + $0x40] sm:$0xff]  }
 0x30b   : > { %v5611_v55 = vpop.f32.mrf.mxu1  ;;  %vm11016_vm5 = vcmask 1043456   ;;  %v8879_v35 = vld [vmem:[%s10847_s5] sm:$0xff]   ;;  %vm11021_vm13 = vcmask 1041408  }
 0x30c   : > { %v2260_v48 = vsel %vm11011_vm6, %v2257_v31, %v2259_v29  ;;  %v2286_v58 = vmax.f32 %v2222_v25, %v2259_v29  ;;  %6297 = vrot.lane.b32.xlu0 %v6296_v3, %s7087_s27  ;;  %v2400_v59 = vsel %vm11016_vm5, %v2397_v41, %v2399_v56  ;;  %vm11017_vm1 = vmmov %vm11016_vm5  ;;  %vm11018_vm6 = vcmask 1042432  }
 0x30d   : > { %v2285_v18 = vmax.f32 %v2221_v20, %v2260_v48  ;;  %v8834_v20 = vld [vmem:[%s10847_s5 + $0x48] sm:$0xff]   ;;  %v2394_v51 = vsel %vm11017_vm1, %v2392_v10, %v2393_v24  ;;  %v2426_v41 = vsel %vm11018_vm6, %v2423_v38, %v2425_v34  ;;  %vm11019_vm3 = vmmov %vm11018_vm6  ;;  %v2444_v38 = vrot.slane %v8774_v62, 6 }
 0x30e   : > { %2300 = vst.msk [vmem:[#allocation3 + $0x60] sm:$0x7f] %vm10876_vm10, %v2286_v58  ;;  %5434 = vmatprep.subr.bf16.mxu0 %v8834_v20  ;;  %v6311_v31 = vpack.i.bf16 %v2400_v59, %v2394_v51  ;;  %v2420_v24 = vsel %vm11019_vm3, %v2418_v53, %v2419_v50  ;;  %v2477_v25 = vrot.slane %v8777_v60, 7  ;;  %v2452_v50 = vsel %vm11021_vm13, %v2449_v30, %v2451_v43  ;;  %vm11022_vm5 = vmmov %vm11021_vm13 }
 0x30f   : > { %2298 = vst.msk [vmem:[#allocation3 + $0x58] sm:$0xff] %vm11013_vm7, %v2285_v18  ;;  %5435 = vmatpush3.bf16.msra.mxu0 %v8839_v5  ;;  %vm11020_vm7 = vcmask 1046528   ;;  %v6316_v9 = vpack.i.bf16 %v2426_v41, %v2420_v24  ;;  %v2446_v55 = vsel %vm11022_vm5, %v2444_v38, %v2445_v12  ;;  %vm11023_vm1 = vcmask 1040384   ;;  %vm11024_vm6 = vmmov %vm11019_vm3 }
 0x310   : > { %6302 = vrot.lane.b32.xlu0 %v6301_v47, %s7088_s28  ;;  %5436 = vmatprep.subr.bf16.mxu0 %v8874_v1  ;;  %v6321_v45 = vpack.i.bf16 %v2452_v50, %v2446_v55  ;;  %v2478_v48 = vsel %vm11023_vm1, %v2475_v13, %v2477_v25  ;;  %vm11026_vm13 = vcmask 1045504   ;;  %vm11028_vm5 = vmmov %vm11023_vm1 }
 0x313   : > { %5437 = vmatpush3.bf16.msra.mxu0 %v8879_v35 }
 0x314   : > { %6307 = vrot.lane.b32.xlu0 %v6306_v46, %s7090_s10  ;;  %5620 = vmatprep.subr.bf16.mxu0 %v8905_v7 }
 0x315   : > { %v2313_v44 = vld [vmem:[#allocation3 + $0x60] ss:$2 sm:$0xf] }
 0x316   : > { %v8855_v11 = vld [vmem:[#allocation3 + $0x50] ss:$2 sm:$0xff]  ;;  %v2526_v3 = vrot.slane %v2313_v44, 5  ;;  %v2536_v58 = vrot.slane %v2313_v44, 7  ;;  %v2521_v46 = vrot.slane %v2313_v44, 4 }
 0x317   : > { %v2496_v19 = vrot.slane %v8855_v11, 1  ;;  %v2512_v52 = vrot.slane %v8855_v11, 3  ;;  %v2427_v29 = vrot.slane %v8855_v11, 5  ;;  %v2504_v47 = vrot.slane %v8855_v11, 2 }
 0x318   : > { %6312 = vrot.lane.b32.xlu0 %v6311_v31, %s7084_s24  ;;  %v2479_v12 = vrot.slane %v8855_v11, 7  ;;  %v2401_v51 = vrot.slane %v8855_v11, 4 }
 0x319   : > { %v2497_v49 = vsel %vm11020_vm7, %v8782_v0, %v2496_v19  ;;  %v2513_v54 = vsel %vm11015_vm8, %v8810_v28, %v2512_v52  ;;  %v2428_v18 = vsel %vm11024_vm6, %v2425_v34, %v2427_v29  ;;  %v2527_v16 = vsel %vm11019_vm3, %v2427_v29, %v2526_v3  ;;  %vm11025_vm7 = vmmov %vm11023_vm1 }
 0x31a   : > { %v6331_v63 = vpack.i.bf16 %v2496_v19, %v2497_v49  ;;  %v6341_v30 = vpack.i.bf16 %v2512_v52, %v2513_v54  ;;  %v2472_v13 = vsel %vm11025_vm7, %v2470_v40, %v2471_v27  ;;  %v6351_v6 = vpack.i.bf16 %v2527_v16, %v2428_v18  ;;  %vm11027_vm8 = vmmov %vm11023_vm1 }
 0x31b   : > { %v6326_v15 = vpack.i.bf16 %v2478_v48, %v2472_v13  ;;  %v2505_v10 = vsel %vm11026_vm13, %v8785_v2, %v2504_v47  ;;  %v2480_v59 = vsel %vm11027_vm8, %v2477_v25, %v2479_v12  ;;  %v2537_v34 = vsel %vm11028_vm5, %v2479_v12, %v2536_v58 }
 0x31c   : > { %6317 = vrot.lane.b32.xlu0 %v6316_v9, %s7093_s14  ;;  %6332 = vrot.lane.b32.xlu1 %v6331_v63, %s7087_s27  ;;  %v6336_v31 = vpack.i.bf16 %v2504_v47, %v2505_v10  ;;  %v6361_v53 = vpack.i.bf16 %v2537_v34, %v2480_v59  ;;  %vm11029_vm1 = vcmask 1043456   ;;  %v2453_v19 = vrot.slane %v8855_v11, 6 }
 0x31d   : > { %v2402_v27 = vsel %vm11029_vm1, %v2399_v56, %v2401_v51  ;;  %vm11030_vm6 = vmmov %vm11029_vm1  ;;  %v2531_v52 = vrot.slane %v2313_v44, 6  ;;  %vm11031_vm3 = vcmask 1041408   ;;  %vm11033_vm13 = vcmask 130048  }
 0x31e   : > { %v2522_v41 = vsel %vm11030_vm6, %v2401_v51, %v2521_v46  ;;  %v2454_v49 = vsel %vm11031_vm3, %v2451_v43, %v2453_v19  ;;  %vm11032_vm7 = vmmov %vm11031_vm3  ;;  %vm11035_vm5 = vcmask 261120   ;;  %vm11037_vm6 = vcmask 523264  }
 0x31f   : > { %v6346_v24 = vpack.i.bf16 %v2522_v41, %v2402_v27  ;;  %v2532_v9 = vsel %vm11032_vm7, %v2453_v19, %v2531_v52  ;;  %vm11034_vm8 = vmmov %vm11033_vm13 }
 0x320   : > { %6322 = vrot.lane.b32.xlu0 %v6321_v45, %s7095_s16  ;;  %6342 = vrot.lane.b32.xlu1 %v6341_v30, %s7090_s10  ;;  %v6356_v56 = vpack.i.bf16 %v2532_v9, %v2454_v49  ;;  %vm11036_vm1 = vmmov %vm11035_vm5 }
 0x321   : > { %vm11038_vm3 = vmmov %vm11037_vm6 }
 0x322   : > { %vm11039_vm7 = vmmov %vm11034_vm8 }
 0x324   : > { %6327 = vrot.lane.b32.xlu0 %v6326_v15, %s10872_s18  ;;  %6352 = vrot.lane.b32.xlu1 %v6351_v6, %s7093_s14 }
 0x328   : > { %6337 = vrot.lane.b32.xlu0 %v6336_v31, %s7088_s28  ;;  %6362 = vrot.lane.b32.xlu1 %v6361_v53, %s10872_s18  ;;  %s11138_s18 = smov 112  }
 0x32c   : > { %2360 = vrot.lane.b32.xlu1 %v8785_v2, %s7088_s28  ;;  %6347 = vrot.lane.b32.xlu0 %v6346_v24, %s7084_s24 }
 0x330   : > { %6357 = vrot.lane.b32.xlu0 %v6356_v56, %s7095_s16 }
 0x334   : > { %2336 = vrot.lane.b32.xlu0 %v8782_v0, %s7087_s27 }
 0x338   : > { %2384 = vrot.lane.b32.xlu0 %v8810_v28, %s7090_s10 }
 0x35d   : > { %v6263_v44 = vpop.permute.xlu1 %6262 }
 0x35e   : > { %v6265_v50 = vunpack.i.h.bf16 %v6263_v44  ;;  %v6264_v54 = vunpack.i.l.bf16 %v6263_v44 }
 0x360   : > { %v2543_v0 = vsel %vm11033_vm13, %v8629_v39, %v6265_v50  ;;  %v2542_v28 = vsel %vm11034_vm8, %v8632_v8, %v6264_v54  ;;  %vm11040_vm13 = vmmov %vm11036_vm1 }
 0x361   : > { %v6268_v63 = vpop.permute.xlu1 %6267  ;;  %vm11041_vm8 = vmmov %vm11038_vm3 }
 0x362   : > { %v6270_v29 = vunpack.i.h.bf16 %v6268_v63  ;;  %v6269_v2 = vunpack.i.l.bf16 %v6268_v63 }
 0x364   : > { %v2547_v18 = vsel %vm11035_vm5, %v2542_v28, %v6269_v2  ;;  %v2548_v16 = vsel %vm11036_vm1, %v2543_v0, %v6270_v29  ;;  %vm11042_vm5 = vmmov %vm11039_vm7 }
 0x365   : > { %v6273_v38 = vpop.permute.xlu1 %6272  ;;  %vm11043_vm1 = vmmov %vm11042_vm5 }
 0x366   : > { %v6275_v3 = vunpack.i.h.bf16 %v6273_v38  ;;  %v6274_v55 = vunpack.i.l.bf16 %v6273_v38 }
 0x368   : > { %v2552_v13 = vsel %vm535_vm0, %v2547_v18, %v6274_v55  ;;  %v2553_v15 = vsel %vm535_vm0, %v2548_v16, %v6275_v3 }
 0x369   : > { %v6278_v43 = vpop.permute.xlu1 %6277 }
 0x36a   : > { %v6280_v40 = vunpack.i.h.bf16 %v6278_v43  ;;  %v6279_v45 = vunpack.i.l.bf16 %v6278_v43 }
 0x36c   : > { %v2557_v6 = vsel %vm11037_vm6, %v2552_v13, %v6279_v45  ;;  %v2558_v46 = vsel %vm11038_vm3, %v2553_v15, %v6280_v40  ;;  %vm11044_vm6 = vmmov %vm11040_vm13 }
 0x36d   : > { %v6283_v25 = vpop.permute.xlu1 %6282  ;;  %vm11045_vm3 = vmmov %vm11044_vm6 }
 0x36e   : > { %v6285_v48 = vunpack.i.h.bf16 %v6283_v25  ;;  %v6284_v58 = vunpack.i.l.bf16 %v6283_v25 }
 0x370   : > { %v2562_v10 = vsel %vm1971_vm14, %v2557_v6, %v6284_v58  ;;  %v2563_v8 = vsel %vm1971_vm14, %v2558_v46, %v6285_v48 }
 0x371   : > { %v6288_v30 = vpop.permute.xlu1 %6287 }
 0x372   : > { %v6290_v47 = vunpack.i.h.bf16 %v6288_v30  ;;  %v6289_v12 = vunpack.i.l.bf16 %v6288_v30 }
 0x374   : > { %v2567_v51 = vsel %vm2001_vm11, %v2562_v10, %v6289_v12  ;;  %v2568_v31 = vsel %vm2001_vm11, %v2563_v8, %v6290_v47 }
 0x375   : > { %v6293_v39 = vpop.permute.xlu1 %6292 }
 0x376   : > { %v6295_v59 = vunpack.i.h.bf16 %v6293_v39  ;;  %v6294_v34 = vunpack.i.l.bf16 %v6293_v39 }
 0x378   : > { %v2572_v53 = vsel %vm2031_vm9, %v2567_v51, %v6294_v34  ;;  %v8953_v27 = vsel %vm2031_vm9, %v2568_v31, %v6295_v59 }
 0x379   : > { %v2591_v41 = vpack.c.bf16 %v8953_v27, %v2572_v53 }
 0x37b   : > { %2730 = vmatprep.mubr.bf16.mxu0 %v2591_v41 }
 0x37e   : > { %v6298_v19 = vpop.permute.xlu0 %6297 }
 0x37f   : > { %v6299_v56 = vunpack.i.l.bf16 %v6298_v19 }
 0x381   : > { %v2541_v50 = vsel %vm11039_vm7, %v8774_v62, %v6299_v56  ;;  %v6300_v62 = vunpack.i.h.bf16 %v6298_v19  ;;  %vm11046_vm7 = vmmov %vm11043_vm1 }
 0x382   : > { %v6303_v52 = vpop.permute.xlu0 %6302 }
 0x383   : > { %v6304_v63 = vunpack.i.l.bf16 %v6303_v52  ;;  %v6305_v12 = vunpack.i.h.bf16 %v6303_v52  ;;  %v2544_v51 = vsel %vm11046_vm7, %v8645_v57, %v6300_v62 }
 0x385   : > { %v2546_v29 = vsel %vm11040_vm13, %v2541_v50, %v6304_v63  ;;  %vm11047_vm13 = vmmov %vm11045_vm3 }
 0x386   : > { %v6308_v24 = vpop.permute.xlu0 %6307  ;;  %v2549_v52 = vsel %vm11047_vm13, %v2544_v51, %v6305_v12  ;;  %v7019_v51 = vld [vmem:[%s7174_s21 + $0x7c] sm:$0xff]   ;;  %vm11052_vm13 = vcmask 1046528  }
 0x387   : > { %v6309_v38 = vunpack.i.l.bf16 %v6308_v24  ;;  %v6310_v46 = vunpack.i.h.bf16 %v6308_v24 }
 0x389   : > { %v2551_v3 = vsel %vm535_vm0, %v2546_v29, %v6309_v38 }
 0x38a   : > { %v6313_v49 = vpop.permute.xlu0 %6312 }
 0x38b   : > { %v6314_v43 = vunpack.i.l.bf16 %v6313_v49  ;;  %v6315_v8 = vunpack.i.h.bf16 %v6313_v49 }
 0x38d   : > { %v2556_v40 = vsel %vm11041_vm8, %v2551_v3, %v6314_v43  ;;  %v7050_v3 = vld [vmem:[%s10843_s1] sm:$0xff]  }
 0x38e   : > { %v6318_v9 = vpop.permute.xlu0 %6317  ;;  %v6333_v44 = vpop.permute.xlu1 %6332 }
 0x38f   : > { %v6319_v54 = vunpack.i.l.bf16 %v6318_v9  ;;  %v6335_v28 = vunpack.i.h.bf16 %v6333_v44  ;;  %v6334_v48 = vunpack.i.l.bf16 %v6333_v44  ;;  %v6320_v31 = vunpack.i.h.bf16 %v6318_v9 }
 0x390   : > { %v2554_v44 = vsel %vm535_vm0, %v2549_v52, %v6310_v46  ;;  %v7024_v52 = vld [vmem:[%s7174_s21 + $0xa4] sm:$0xff]  }
 0x391   : > { %v2561_v30 = vsel %vm1971_vm14, %v2556_v40, %v6319_v54  ;;  %v2577_v39 = vsel %vm11042_vm5, %v8855_v11, %v6335_v28  ;;  %v2576_v10 = vsel %vm11043_vm1, %v8777_v60, %v6334_v48  ;;  %v7049_v11 = vld [vmem:[%s10843_s1 + $0x8] sm:$0xff]   ;;  %v2559_v9 = vsel %vm11041_vm8, %v2554_v44, %v6315_v8  ;;  %vm11048_vm5 = vmmov %vm11041_vm8 }
 0x392   : > { %v6323_v25 = vpop.permute.xlu0 %6322  ;;  %v6343_v55 = vpop.permute.xlu1 %6342  ;;  %vm11049_vm1 = vmmov %vm11048_vm5  ;;  %v2564_v54 = vsel %vm1971_vm14, %v2559_v9, %v6320_v31  ;;  %vm11053_vm8 = vcmask 1045504  }
 0x393   : > { %v6324_v2 = vunpack.i.l.bf16 %v6323_v25  ;;  %v6344_v41 = vunpack.i.l.bf16 %v6343_v55  ;;  %v6325_v24 = vunpack.i.h.bf16 %v6323_v25 }
 0x395   : > { %v2566_v58 = vsel %vm2001_vm11, %v2561_v30, %v6324_v2 }
 0x396   : > { %v6328_v45 = vpop.permute.xlu0 %6327  ;;  %v8964_v13 = vpop.permute.xlu1 %6352 }
 0x397   : > { %v6329_v0 = vunpack.i.l.bf16 %v6328_v45  ;;  %v6330_v63 = vunpack.i.h.bf16 %v6328_v45  ;;  %v6355_v25 = vunpack.i.h.bf16 %v8964_v13  ;;  %v6354_v29 = vunpack.i.l.bf16 %v8964_v13 }
 0x398   : > { %v2569_v45 = vsel %vm2001_vm11, %v2564_v54, %v6325_v24 }
 0x399   : > { %v2571_v18 = vsel %vm2031_vm9, %v2566_v58, %v6329_v0  ;;  %v2574_v58 = vsel %vm2031_vm9, %v2569_v45, %v6330_v63 }
 0x39a   : > { %v2590_v16 = vpack.c.bf16 %v2572_v53, %v2571_v18  ;;  %v6338_v47 = vpop.permute.xlu0 %6337  ;;  %v6345_v53 = vunpack.i.h.bf16 %v6343_v55  ;;  %v6363_v38 = vpop.permute.xlu1 %6362 }
 0x39b   : > { %v6340_v15 = vunpack.i.h.bf16 %v6338_v47  ;;  %v6339_v6 = vunpack.i.l.bf16 %v6338_v47  ;;  %v6365_v30 = vunpack.i.h.bf16 %v6363_v38  ;;  %v6364_v0 = vunpack.i.l.bf16 %v6363_v38 }
 0x39c   : > { %2731 = vmatmul.mubr.bf16.vlgmr.msra.gmra.mxu0 %v2590_v16 }
 0x39d   : > { %v2578_v59 = vsel %vm11044_vm6, %v2576_v10, %v6339_v6  ;;  %v2579_v34 = vsel %vm11045_vm3, %v2577_v39, %v6340_v15  ;;  %5621 = vmatpush3.bf16.msra.mxu0 %v8905_v7  ;;  %vm11050_vm6 = vmmov %vm11046_vm7  ;;  %v2592_v6 = vpack.c.bf16 %v2574_v58, %v8953_v27 }
 0x39e   : > { %v6348_v19 = vpop.permute.xlu0 %6347  ;;  %5622 = vmatprep.subr.bf16.mxu0 %v7049_v11  ;;  %v2580_v7 = vsel %vm535_vm0, %v2578_v59, %v6344_v41  ;;  %v2581_v57 = vsel %vm535_vm0, %v2579_v34, %v6345_v53  ;;  %v2361_v46 = vpop.permute.xlu1 %2360  ;;  %vm11051_vm7 = vmmov %vm11049_vm1  ;;  %v7020_v53 = vld [vmem:[%s7174_s21 + $0x84] sm:$0xff]   ;;  %v7021_v41 = vld [vmem:[%s7174_s21 + $0x8c] sm:$0xff]  }
 0x39f   : > { %v6350_v49 = vunpack.i.h.bf16 %v6348_v19  ;;  %v6349_v56 = vunpack.i.l.bf16 %v6348_v19  ;;  %v7022_v19 = vld [vmem:[%s7174_s21 + $0x94] sm:$0xff]  }
 0x3a1   : > { %v2583_v43 = vsel %vm11048_vm5, %v2581_v57, %v6350_v49  ;;  %v2582_v50 = vsel %vm11049_vm1, %v2580_v7, %v6349_v56  ;;  %5623 = vmatpush3.bf16.msra.mxu0 %v7049_v11  ;;  %v7023_v11 = vld [vmem:[%s7174_s21 + $0x9c] sm:$0xff]   ;;  %vm11054_vm5 = vcmask 1044480   ;;  %vm11055_vm1 = vcmask 1043456  }
 0x3a2   : > { %v6358_v2 = vpop.permute.xlu0 %6357  ;;  %5624 = vmatprep.subr.bf16.mxu0 %v7050_v3  ;;  %v2584_v28 = vsel %vm1971_vm14, %v2582_v50, %v6354_v29  ;;  %v2585_v48 = vsel %vm1971_vm14, %v2583_v43, %v6355_v25 }
 0x3a3   : > { %v6360_v55 = vunpack.i.h.bf16 %v6358_v2  ;;  %v6359_v40 = vunpack.i.l.bf16 %v6358_v2 }
 0x3a5   : > { %v2586_v18 = vsel %vm2001_vm11, %v2584_v28, %v6359_v40  ;;  %v2587_v62 = vsel %vm2001_vm11, %v2585_v48, %v6360_v55  ;;  %5625 = vmatpush3.bf16.msra.mxu0 %v7050_v3 }
 0x3a6   : > { %v2337_v16 = vpop.permute.xlu0 %2336  ;;  %v2588_v47 = vsel %vm2031_vm9, %v2586_v18, %v6364_v0  ;;  %v2589_v12 = vsel %vm2031_vm9, %v2587_v62, %v6365_v30  ;;  %5493 = vmatprep.subr.bf16.mxu0 %v8638_v33 }
 0x3a7   : > { %v2545_v13 = vsel %vm11050_vm6, %v8777_v60, %v2337_v16  ;;  %v2593_v15 = vpack.c.bf16 %v2588_v47, %v2574_v58  ;;  %v2595_v39 = vpack.c.bf16 %v2589_v12, %v2589_v12  ;;  %vm11056_vm6 = vcmask 1042432  }
 0x3a8   : > { %v2550_v10 = vsel %vm11045_vm3, %v2545_v13, %v2361_v46  ;;  %vm11057_vm3 = vmmov %vm11052_vm13 }
 0x3a9   : > { %2738 = vmatprep.mubr.bf16.mxu0 %v2593_v15 }
 0x3aa   : > { %v2385_v8 = vpop.permute.xlu0 %2384  ;;  %2739 = vmatmul.mubr.bf16.gmra.mxu0 %v2592_v6 }
 0x3ab   : > { %v2555_v59 = vsel %vm535_vm0, %v2550_v10, %v2385_v8  ;;  %2746 = vmatprep.mubr.bf16.mxu0 %v2595_v39 }
 0x3ac   : > { %v2560_v33 = vsel %vm11051_vm7, %v2555_v59, %v6349_v56  ;;  %vm11058_vm7 = vcmask 261120  }
 0x3ad   : > { %v2565_v60 = vsel %vm1971_vm14, %v2560_v33, %v6354_v29 }
 0x3ae   : > { %v2570_v27 = vsel %vm2001_vm11, %v2565_v60, %v6359_v40 }
 0x3af   : > { %v2575_v34 = vsel %vm2031_vm9, %v2570_v27, %v6364_v0 }
 0x3b0   : > { %v2594_v31 = vpack.c.bf16 %v2575_v34, %v2575_v34 }
 0x3b2   : > { %2747 = vmatmul.mubr.bf16.gmra.mxu0 %v2594_v31 }
 0x3b3   : > { %5626 = vmatprep.mubr.msk.bf16.mxu0 %vm535_vm0, %v7019_v51 }
 0x3ba   : > { %5627 = vmatmul.mubr.msk.bf16.vlgmr.msra.gmra.mxu0 %vm535_vm0, %v7020_v53 }
 0x3bb   : > { %5630 = vmatprep.mubr.msk.bf16.mxu0 %vm535_vm0, %v7021_v41  ;;  %5494 = vmatpush3.bf16.msra.mxu0 %v8643_v23  ;;  %v7025_v23 = vld [vmem:[%s7174_s21 + $0xac] sm:$0xff]  }
 0x3bc   : > { %5495 = vmatprep.subr.bf16.mxu0 %v8672_v42  ;;  %v7026_v42 = vld [vmem:[%s7174_s21 + $0xb4] sm:$0xff]  }
 0x3bf   : > { %5496 = vmatpush3.bf16.msra.mxu0 %v8677_v14  ;;  %v7027_v14 = vld [vmem:[%s7174_s21 + $0xbc] sm:$0xff]  }
 0x3c0   : > { %5497 = vmatprep.subr.bf16.mxu0 %v8699_v61  ;;  %v7028_v61 = vld [vmem:[%s7174_s21 + $0xc4] sm:$0xff]  }
 0x3c2   : > { %5631 = vmatmul.mubr.msk.bf16.gmra.mxu0 %vm535_vm0, %v7022_v19 }
 0x3c3   : > { %5634 = vmatprep.mubr.msk.bf16.mxu0 %vm535_vm0, %v7023_v11  ;;  %5498 = vmatpush3.bf16.msra.mxu0 %v8704_v21  ;;  %v7029_v21 = vld [vmem:[%s7174_s21 + $0xcc] sm:$0xff]  }
 0x3c4   : > { %5499 = vmatprep.subr.bf16.mxu0 %v8722_v4  ;;  %v7030_v4 = vld [vmem:[%s7174_s21 + $0xd4] sm:$0xff]  }
 0x3c7   : > { %5500 = vmatpush3.bf16.msra.mxu0 %v8740_v17  ;;  %v7031_v17 = vld [vmem:[%s7174_s21 + $0xdc] sm:$0xff]  }
 0x3c8   : > { %5501 = vmatprep.subr.bf16.mxu0 %v8764_v37  ;;  %v7032_v37 = vld [vmem:[%s7174_s21 + $0xe4] sm:$0xff]  }
 0x3ca   : > { %5635 = vmatmul.mubr.msk.bf16.gmra.mxu0 %vm535_vm0, %v7024_v52 }
 0x3cb   : > { %5638 = vmatprep.mubr.msk.bf16.mxu0 %vm535_vm0, %v7025_v23  ;;  %5502 = vmatpush3.bf16.msra.mxu0 %v8769_v22  ;;  %v7033_v22 = vld [vmem:[%s7174_s21 + $0xec] sm:$0xff]  }
 0x3cc   : > { %5503 = vmatprep.subr.bf16.mxu0 %v8797_v32  ;;  %v7034_v32 = vld [vmem:[%s7174_s21 + $0xf4] ss:$0 sps:$4 sm:$0x11]  }
 0x3cf   : > { %5504 = vmatpush3.bf16.msra.mxu0 %v8802_v26  ;;  %v7035_v26 = vld [vmem:[%s10849_s7 + $0x8] sm:$0xff]  }
 0x3d0   : > { %5505 = vmatprep.subr.bf16.mxu0 %v8834_v20  ;;  %5613 = vmatpush3.bf16.msra.mxu1 %v7035_v26  ;;  %v7036_v20 = vld [vmem:[%s10849_s7] sm:$0xff]  }
 0x3d1   : > { %5614 = vmatprep.subr.bf16.mxu1 %v7099_v36 }
 0x3d2   : > { %5639 = vmatmul.mubr.msk.bf16.gmra.mxu0 %vm535_vm0, %v7026_v42 }
 0x3d3   : > { %5642 = vmatprep.mubr.msk.bf16.mxu0 %vm535_vm0, %v7027_v14  ;;  %5506 = vmatpush3.bf16.msra.mxu0 %v8839_v5 }
 0x3d4   : > { %5507 = vmatprep.subr.bf16.mxu0 %v8874_v1  ;;  %5615 = vmatpush3.bf16.msra.mxu1 %v7036_v20 }
 0x3d5   : > { %5658 = vmatprep.subr.bf16.mxu1 %v7099_v36 }
 0x3d7   : > { %5508 = vmatpush3.bf16.msra.mxu0 %v8879_v35  ;;  %v5300_v35 = vld [vmem:[%s10848_s6] ss:$0 sm:$0xff] }
 0x3da   : > { %5643 = vmatmul.mubr.msk.bf16.gmra.mxu0 %vm535_vm0, %v7028_v61 }
 0x3db   : > { %5646 = vmatprep.mubr.msk.bf16.mxu0 %vm535_vm0, %v7029_v21 }
 0x3e2   : > { %5647 = vmatmul.mubr.msk.bf16.gmra.mxu0 %vm535_vm0, %v7030_v4 }
 0x3e3   : > { %5650 = vmatprep.mubr.msk.bf16.mxu0 %vm535_vm0, %v7031_v17 }
 0x3ea   : > { %5651 = vmatmul.mubr.msk.bf16.gmra.mxu0 %vm535_vm0, %v7032_v37 }
 0x3eb   : > { %5654 = vmatprep.mubr.msk.bf16.mxu0 %vm535_vm0, %v7033_v22 }
 0x3f2   : > { %5655 = vmatmul.mubr.msk.bf16.gmra.mxu0 %vm535_vm0, %v7034_v32 }
 0x45c   : > { %v5438_v5 = vpop.f32.mrf.mxu0 }
 0x45e   : > { %v5439_v1 = vpop.f32.mrf.mxu0 }
 0x45f   : > { %v5440_v24 = vadd.f32 %v5439_v1, %v5438_v5 }
 0x460   : > { %v5441_v49 = vpop.f32.mrf.mxu0 }
 0x461   : > { %v2733_v56 = vadd.f32 %v5440_v24, %v5300_v35 }
 0x462   : > { %v5442_v44 = vpop.f32.mrf.mxu0 }
 0x463   : > { %v5443_v7 = vadd.f32 %v5442_v44, %v5441_v49  ;;  %v2754_v57 = vmax.f32 %v2733_v56, 0.0 }
 0x465   : > { %v2736_v9 = vadd.f32 %v5443_v7, %v5300_v35  ;;  %v2763_v38 = vrot.slane %v2754_v57, 1  ;;  %v2779_v25 = vrot.slane %v2754_v57, 2  ;;  %v2796_v45 = vrot.slane %v2754_v57, 3 }
 0x466   : > { %v2813_v18 = vrot.slane %v2754_v57, 4  ;;  %v2830_v6 = vrot.slane %v2754_v57, 5 }
 0x467   : > { %v2755_v63 = vmax.f32 %v2736_v9, 0.0 }
 0x469   : > { %v2764_v43 = vrot.slane %v2755_v63, 1  ;;  %v2780_v50 = vrot.slane %v2755_v63, 2  ;;  %v2797_v2 = vrot.slane %v2755_v63, 3  ;;  %v2814_v0 = vrot.slane %v2755_v63, 4 }
 0x46a   : > { %v5444_v54 = vpop.f32.mrf.mxu0  ;;  %v2831_v16 = vrot.slane %v2755_v63, 5 }
 0x46b   : > { %v2765_v29 = vsel %vm11052_vm13, %v2763_v38, %v2764_v43  ;;  %v2781_v30 = vsel %vm11053_vm8, %v2779_v25, %v2780_v50  ;;  %v2798_v62 = vsel %vm11054_vm5, %v2796_v45, %v2797_v2  ;;  %v2815_v46 = vsel %vm11055_vm1, %v2813_v18, %v2814_v0  ;;  %vm11059_vm13 = vmmov %vm11053_vm8 }
 0x46c   : > { %v5445_v3 = vpop.f32.mrf.mxu0  ;;  %v2774_v55 = vmax.f32 %v2754_v57, %v2765_v29  ;;  %v2832_v33 = vsel %vm11056_vm6, %v2830_v6, %v2831_v16  ;;  %vm11060_vm8 = vmmov %vm11054_vm5 }
 0x46d   : > { %v5446_v40 = vadd.f32 %v5445_v3, %v5444_v54  ;;  %vm11061_vm5 = vmmov %vm11057_vm3 }
 0x46e   : > { %v5447_v28 = vpop.f32.mrf.mxu0  ;;  %v2792_v48 = vmax.f32 %v2774_v55, %v2781_v30 }
 0x46f   : > { %v2741_v58 = vadd.f32 %v5446_v40, %v5300_v35 }
 0x470   : > { %v5448_v47 = vpop.f32.mrf.mxu0  ;;  %v2809_v12 = vmax.f32 %v2792_v48, %v2798_v62 }
 0x471   : > { %v9070_v13 = vmax.f32 %v2741_v58, 0.0  ;;  %v5449_v15 = vadd.f32 %v5448_v47, %v5447_v28 }
 0x472   : > { %v5450_v39 = vpop.f32.mrf.mxu0  ;;  %v2826_v10 = vmax.f32 %v2809_v12, %v2815_v46 }
 0x473   : > { %v2766_v8 = vrot.slane %v9070_v13, 1  ;;  %v2782_v59 = vrot.slane %v9070_v13, 2  ;;  %v2744_v60 = vadd.f32 %v5449_v15, %v5300_v35  ;;  %v2799_v31 = vrot.slane %v9070_v13, 3 }
 0x474   : > { %v5451_v27 = vpop.f32.mrf.mxu0  ;;  %v2843_v34 = vmax.f32 %v2826_v10, %v2832_v33  ;;  %v2816_v52 = vrot.slane %v9070_v13, 4  ;;  %v2833_v14 = vrot.slane %v9070_v13, 5 }
 0x475   : > { %v2767_v51 = vsel %vm11057_vm3, %v2764_v43, %v2766_v8  ;;  %v2757_v41 = vmax.f32 %v2744_v60, 0.0  ;;  %v2783_v11 = vsel %vm11059_vm13, %v2780_v50, %v2782_v59  ;;  %v5452_v23 = vadd.f32 %v5451_v27, %v5450_v39  ;;  %vm11062_vm3 = vmmov %vm11059_vm13 }
 0x476   : > { %v2775_v53 = vmax.f32 %v2755_v63, %v2767_v51  ;;  %v5453_v19 = vpop.f32.mrf.mxu0  ;;  %2847 = vst.msk [vmem:[#allocation4] sm:$0xff] %vm11058_vm7, %v2843_v34  ;;  %v2800_v17 = vsel %vm11060_vm8, %v2797_v2, %v2799_v31  ;;  %v2817_v5 = vsel %vm11055_vm1, %v2814_v0, %v2816_v52  ;;  %v2834_v44 = vsel %vm11056_vm6, %v2831_v16, %v2833_v14  ;;  %vm11063_vm7 = vmmov %vm11060_vm8 }
 0x477   : > { %v2768_v61 = vrot.slane %v2757_v41, 1  ;;  %v2784_v21 = vrot.slane %v2757_v41, 2  ;;  %v2749_v37 = vadd.f32 %v5452_v23, %v5300_v35  ;;  %v2801_v26 = vrot.slane %v2757_v41, 3  ;;  %v9091_v35 = vld [vmem:[%s10844_s2] ss:$0 sm:$0xff]  ;;  %vm11064_vm13 = vmmov %vm11062_vm3 }
 0x478   : > { %v2793_v42 = vmax.f32 %v2775_v53, %v2783_v11  ;;  %v5454_v4 = vpop.f32.mrf.mxu0  ;;  %v2818_v49 = vrot.slane %v2757_v41, 4  ;;  %v2835_v50 = vrot.slane %v2757_v41, 5  ;;  %vm11065_vm8 = vmmov %vm11055_vm1 }
 0x479   : > { %v2769_v32 = vsel %vm11061_vm5, %v2766_v8, %v2768_v61  ;;  %v2758_v1 = vmax.f32 %v2749_v37, 0.0  ;;  %v2785_v7 = vsel %vm11062_vm3, %v2782_v59, %v2784_v21  ;;  %v2777_v25 = vmax.f32 %v2757_v41, %v2768_v61  ;;  %vm11067_vm1 = vmmov %vm11063_vm7 }
 0x47a   : > { %v2810_v22 = vmax.f32 %v2793_v42, %v2800_v17  ;;  %v5628_v20 = vpop.f32.mrf.mxu0  ;;  %v2776_v24 = vmax.f32 %v9070_v13, %v2769_v32  ;;  %v2802_v29 = vsel %vm11063_vm7, %v2799_v31, %v2801_v26  ;;  %v2819_v45 = vsel %vm11065_vm8, %v2816_v52, %v2818_v49  ;;  %vm11068_vm7 = vmmov %vm11065_vm8 }
 0x47b   : > { %v3118_v57 = vadd.f32 %v9091_v35, %v5628_v20  ;;  %v2786_v63 = vrot.slane %v2758_v1, 2  ;;  %v2803_v43 = vrot.slane %v2758_v1, 3  ;;  %v2820_v30 = vrot.slane %v2758_v1, 4 }
 0x47c   : > { %v2827_v56 = vmax.f32 %v2810_v22, %v2817_v5  ;;  %v3109_v9 = vpop.f32.mrf.mxu0  ;;  %v2794_v38 = vmax.f32 %v2776_v24, %v2785_v7  ;;  %vm11066_vm5 = vcmask 261120   ;;  %v2837_v28 = vrot.slane %v2758_v1, 5 }
 0x47d   : > { %v3110_v2 = vadd.f32 %v9091_v35, %v3109_v9  ;;  %v2787_v55 = vsel %vm11064_vm13, %v2784_v21, %v2786_v63  ;;  %v3236_v48 = vmax.f32 %v3118_v57, 0.0  ;;  %v2804_v62 = vsel %vm11067_vm1, %v2801_v26, %v2803_v43  ;;  %vm11069_vm13 = vmmov %vm11056_vm6 }
 0x47e   : > { %v2844_v54 = vmax.f32 %v2827_v56, %v2834_v44  ;;  %v5629_v3 = vpop.f32.mrf.mxu0  ;;  %v2811_v40 = vmax.f32 %v2794_v38, %v2802_v29  ;;  %v2795_v0 = vmax.f32 %v2777_v25, %v2787_v55  ;;  %v2836_v15 = vsel %vm11056_vm6, %v2833_v14, %v2835_v50  ;;  %vm11070_vm8 = vmmov %vm11066_vm5 }
 0x47f   : > { %v3234_v58 = vmax.f32 %v3110_v2, 0.0  ;;  %v3121_v47 = vadd.f32 %v9091_v35, %v5629_v3  ;;  %vm10875_vm3 = vcmask 260096   ;;  %v2821_v46 = vsel %vm11068_vm7, %v2818_v49, %v2820_v30 }
 0x480   : > { %2848 = vst.msk [vmem:[#allocation4 + $0x8] sm:$0xff] %vm11066_vm5, %v2844_v54  ;;  %v3112_v18 = vpop.f32.mrf.mxu0  ;;  %v2828_v16 = vmax.f32 %v2811_v40, %v2819_v45  ;;  %v2812_v13 = vmax.f32 %v2795_v0, %v2804_v62  ;;  %v2838_v33 = vsel %vm11069_vm13, %v2835_v50, %v2837_v28  ;;  %v3297_v60 = vrot.slane %v3236_v48, 1 }
 0x481   : > { %v3113_v12 = vadd.f32 %v9091_v35, %v3112_v18  ;;  %v3237_v10 = vmax.f32 %v3121_v47, 0.0  ;;  %v3294_v27 = vrot.slane %v3234_v58, 1  ;;  %vm11071_vm5 = vcmask 1046528  }
 0x482   : > { %v5632_v6 = vpop.f32.mrf.mxu0  ;;  %v2845_v39 = vmax.f32 %v2828_v16, %v2836_v15  ;;  %v2829_v59 = vmax.f32 %v2812_v13, %v2821_v46  ;;  %vm11072_vm1 = vmmov %vm11071_vm5  ;;  %vm11074_vm7 = vcmask 64512  }
 0x483   : > { %v3235_v8 = vmax.f32 %v3113_v12, 0.0  ;;  %v3299_v51 = vrot.slane %v3237_v10, 1  ;;  %v3134_v53 = vadd.f32 %v9091_v35, %v5632_v6  ;;  %vm11073_vm6 = vmmov %vm11072_vm1  ;;  %v7052_v6 = vld [vmem:[%s10845_s3 + $0x38] sm:$0xff]  }
 0x484   : > { %v3125_v34 = vpop.f32.mrf.mxu0  ;;  %2849 = vst.msk [vmem:[#allocation4 + $0x10] sm:$0xff] %vm11070_vm8, %v2845_v39  ;;  %v2846_v19 = vmax.f32 %v2829_v59, %v2838_v33  ;;  %vm11075_vm13 = vmmov %vm11074_vm7 }
 0x485   : > { %v3295_v31 = vrot.slane %v3235_v8, 1  ;;  %v3126_v41 = vadd.f32 %v9091_v35, %v3125_v34  ;;  %v3300_v52 = vsel %vm11071_vm5, %v3297_v60, %v3299_v51  ;;  %v3240_v37 = vmax.f32 %v3134_v53, 0.0  ;;  %vm11076_vm8 = vmmov %vm11074_vm7 }
 0x486   : > { %v5633_v11 = vpop.f32.mrf.mxu0  ;;  %2851 = vst.msk [vmem:[#allocation4 + $0x18] sm:$0x7f] %vm10875_vm3, %v2846_v19  ;;  %v3385_v14 = vmax.f32 %v3236_v48, %v3300_v52  ;;  %vm11077_vm5 = vmmov %vm11072_vm1  ;;  %vm11278_vm3 = vcmask 326656  }
 0x487   : > { %v3296_v23 = vsel %vm11072_vm1, %v3294_v27, %v3295_v31  ;;  %v3298_v42 = vsel %vm11073_vm6, %v3295_v31, %v3297_v60  ;;  %v3238_v4 = vmax.f32 %v3126_v41, 0.0  ;;  %v3137_v22 = vadd.f32 %v9091_v35, %v5633_v11  ;;  %vm11078_vm1 = vmmov %vm11074_vm7 }
 0x488   : > { %v3383_v61 = vmax.f32 %v3234_v58, %v3296_v23  ;;  %v3384_v21 = vmax.f32 %v3235_v8, %v3298_v42  ;;  %v3128_v17 = vpop.f32.mrf.mxu0  ;;  %3415 = vst.msk [vmem:[#allocation2 + $0x10] sm:$0xff] %vm11074_vm7, %v3385_v14  ;;  %v3305_v44 = vrot.slane %v3240_v37, 1  ;;  %vm11079_vm6 = vmmov %vm11077_vm5 }
 0x489   : > { %v3129_v32 = vadd.f32 %v9091_v35, %v3128_v17  ;;  %v3301_v26 = vrot.slane %v3238_v4, 1  ;;  %v3241_v5 = vmax.f32 %v3137_v22, 0.0  ;;  %vm11080_vm7 = vmmov %vm11077_vm5 }
 0x48a   : > { %3413 = vst.msk [vmem:[#allocation2] sm:$0xff] %vm11075_vm13, %v3383_v61  ;;  %v5636_v20 = vpop.f32.mrf.mxu0  ;;  %vm11081_vm13 = vmmov %vm11077_vm5  ;;  %v7053_v61 = vld [vmem:[%s10845_s3 + $0x30] sm:$0xff]  }
 0x48b   : > { %3414 = vst.msk [vmem:[#allocation2 + $0x8] sm:$0xff] %vm11076_vm8, %v3384_v21  ;;  %v3239_v1 = vmax.f32 %v3129_v32, 0.0  ;;  %v3150_v24 = vadd.f32 %v9091_v35, %v5636_v20  ;;  %v3302_v49 = vsel %vm11077_vm5, %v3299_v51, %v3301_v26  ;;  %v3307_v57 = vrot.slane %v3241_v5, 1  ;;  %vm11082_vm8 = vmmov %vm11078_vm1 }
 0x48c   : > { %v3141_v56 = vpop.f32.mrf.mxu0  ;;  %v3386_v7 = vmax.f32 %v3237_v10, %v3302_v49  ;;  %vm11083_vm5 = vmmov %vm11078_vm1 }
 0x48d   : > { %v3303_v9 = vrot.slane %v3239_v1, 1  ;;  %v3142_v63 = vadd.f32 %v9091_v35, %v3141_v56  ;;  %v3308_v43 = vsel %vm11079_vm6, %v3305_v44, %v3307_v57  ;;  %v3244_v25 = vmax.f32 %v3150_v24, 0.0  ;;  %v2852_v29 = vld [vmem:[#allocation4] ss:$6 sm:$0x3f] }
 0x48e   : > { %v5637_v38 = vpop.f32.mrf.mxu0  ;;  %3416 = vst.msk [vmem:[#allocation2 + $0x18] sm:$0xff] %vm11078_vm1, %v3386_v7  ;;  %v3389_v2 = vmax.f32 %v3240_v37, %v3308_v43  ;;  %v2853_v0 = vpack.c.bf16 %v2852_v29, %v2852_v29  ;;  %vm11084_vm6 = vcmask 261120   ;;  %v7054_v29 = vld [vmem:[%s10845_s3 + $0x28] sm:$0xff]  }
 0x48f   : > { %v3304_v50 = vsel %vm11080_vm7, %v3301_v26, %v3303_v9  ;;  %v3306_v54 = vsel %vm11081_vm13, %v3303_v9, %v3305_v44  ;;  %v3242_v40 = vmax.f32 %v3142_v63, 0.0  ;;  %v9125_v30 = vadd.f32 %v9091_v35, %v5637_v38  ;;  %vm11085_vm13 = vmmov %vm11078_vm1 }
 0x490   : > { %v3387_v3 = vmax.f32 %v3238_v4, %v3304_v50  ;;  %v3388_v55 = vmax.f32 %v3239_v1, %v3306_v54  ;;  %v3144_v45 = vpop.f32.mrf.mxu0  ;;  %3419 = vst.msk [vmem:[#allocation2 + $0x30] sm:$0xff] %vm11082_vm8, %v3389_v2  ;;  %v3313_v62 = vrot.slane %v3244_v25, 1  ;;  %5617 = vmatmul.mubr.msk.bf16.vlgmr.msra.gmra.mxu1 %vm11084_vm6, %v2853_v0  ;;  %vm11086_vm8 = vmmov %vm11080_vm7 }
 0x491   : > { %v3145_v28 = vadd.f32 %v9091_v35, %v3144_v45  ;;  %v3309_v48 = vrot.slane %v3242_v40, 1  ;;  %v3245_v16 = vmax.f32 %v9125_v30, 0.0  ;;  %5659 = vmatpush3.bf16.msra.mxu1 %v7052_v6  ;;  %5674 = vmatprep.mubr.msk.bf16.mxu1 %vm10893_vm4, %v7099_v36  ;;  %vm11089_vm6 = vmmov %vm11085_vm13 }
 0x492   : > { %3417 = vst.msk [vmem:[#allocation2 + $0x20] sm:$0xff] %vm11083_vm5, %v3387_v3  ;;  %v5640_v58 = vpop.f32.mrf.mxu0  ;;  %v9131_v18 = vld [vmem:[#allocation2] ss:$2 sm:$0xff]  ;;  %5660 = vmatprep.subr.bf16.mxu1 %v7099_v36  ;;  %vm11087_vm5 = vmmov %vm11080_vm7 }
 0x493   : > { %3418 = vst.msk [vmem:[#allocation2 + $0x28] sm:$0xff] %vm11078_vm1, %v3388_v55  ;;  %v3243_v47 = vmax.f32 %v3145_v28, 0.0  ;;  %v9136_v12 = vadd.f32 %v9091_v35, %v5640_v58  ;;  %v3310_v13 = vsel %vm11080_vm7, %v3307_v57, %v3309_v48  ;;  %v3315_v39 = vrot.slane %v3245_v16, 1  ;;  %vm11088_vm1 = vmmov %vm11087_vm5 }
 0x494   : > { %v3157_v15 = vpop.f32.mrf.mxu0  ;;  %v3390_v46 = vmax.f32 %v3241_v5, %v3310_v13  ;;  %v3472_v8 = vrot.slane %v9131_v18, 1  ;;  %v3541_v27 = vrot.slane %v9131_v18, 2  ;;  %v3610_v34 = vrot.slane %v9131_v18, 3  ;;  %vm11090_vm7 = vmmov %vm11089_vm6 }
 0x495   : > { %v3311_v10 = vrot.slane %v3243_v47, 1  ;;  %v3158_v59 = vadd.f32 %v9091_v35, %v3157_v15  ;;  %v9147_v60 = vld [vmem:[#allocation2 + $0x10] ss:$2 sm:$0xff]  ;;  %v3679_v51 = vrot.slane %v9131_v18, 4  ;;  %v3316_v31 = vsel %vm11086_vm8, %v3313_v62, %v3315_v39  ;;  %5661 = vmatpush3.bf16.msra.mxu1 %v7053_v61  ;;  %vm11092_vm8 = vmmov %vm11088_vm1 }
 0x496   : > { %v5641_v33 = vpop.f32.mrf.mxu0  ;;  %3420 = vst.msk [vmem:[#allocation2 + $0x38] sm:$0xff] %vm11085_vm13, %v3390_v46  ;;  %v3248_v19 = vmax.f32 %v9136_v12, 0.0  ;;  %v3393_v11 = vmax.f32 %v3244_v25, %v3316_v31  ;;  %v3473_v37 = vrot.slane %v9147_v60, 1  ;;  %v3542_v22 = vrot.slane %v9147_v60, 2  ;;  %5662 = vmatprep.subr.bf16.mxu1 %v7099_v36  ;;  %vm11091_vm13 = vmmov %vm11089_vm6 }
 0x497   : > { %v3312_v53 = vsel %vm11087_vm5, %v3309_v48, %v3311_v10  ;;  %v3314_v41 = vsel %vm11088_vm1, %v3311_v10, %v3313_v62  ;;  %v3246_v42 = vmax.f32 %v3158_v59, 0.0  ;;  %v9161_v21 = vadd.f32 %v9091_v35, %v5641_v33  ;;  %vm11093_vm5 = vmmov %vm11088_vm1 }
 0x498   : > { %v3391_v52 = vmax.f32 %v3242_v40, %v3312_v53  ;;  %v3392_v23 = vmax.f32 %v3243_v47, %v3314_v41  ;;  %v3160_v14 = vpop.f32.mrf.mxu0  ;;  %3423 = vst.msk [vmem:[#allocation2 + $0x50] sm:$0xff] %vm11089_vm6, %v3393_v11  ;;  %v3321_v24 = vrot.slane %v3248_v19, 1  ;;  %v3748_v44 = vrot.slane %v9131_v18, 5 }
 0x499   : > { %v3161_v4 = vadd.f32 %v9091_v35, %v3160_v14  ;;  %v3317_v32 = vrot.slane %v3246_v42, 1  ;;  %v3249_v49 = vmax.f32 %v9161_v21, 0.0  ;;  %v3474_v9 = vsel %vm11093_vm5, %v3472_v8, %v3473_v37  ;;  %5663 = vmatpush3.bf16.msra.mxu1 %v7054_v29  ;;  %vm11097_vm5 = vmmov %vm11088_vm1 }
 0x49a   : > { %v9164_v17 = vld [vmem:[#allocation2 + $0x20] ss:$2 sm:$0xff]  ;;  %3421 = vst.msk [vmem:[#allocation2 + $0x40] sm:$0xff] %vm11090_vm7, %v3391_v52  ;;  %v5644_v26 = vpop.f32.mrf.mxu0  ;;  %vm11094_vm6 = vcmask 1045504   ;;  %v3611_v40 = vrot.slane %v9147_v60, 3  ;;  %5664 = vmatprep.subr.bf16.mxu1 %v7099_v36  ;;  %v3680_v6 = vrot.slane %v9147_v60, 4 }
 0x49b   : > { %3422 = vst.msk [vmem:[#allocation2 + $0x48] sm:$0xff] %vm11091_vm13, %v3392_v23  ;;  %v6366_v20 = vpack.i.bf16 %v9164_v17, %v9147_v60  ;;  %v3475_v5 = vrot.slane %v9164_v17, 1  ;;  %v3544_v1 = vrot.slane %v9164_v17, 2  ;;  %v3247_v56 = vmax.f32 %v3161_v4, 0.0  ;;  %vm11095_vm7 = vmmov %vm11094_vm6 }
 0x49c   : > { %v3318_v7 = vsel %vm11092_vm8, %v3315_v39, %v3317_v32  ;;  %v3173_v57 = vpop.f32.mrf.mxu0  ;;  %v3323_v50 = vrot.slane %v3249_v49, 1  ;;  %v3543_v25 = vsel %vm11095_vm7, %v3541_v27, %v3542_v22  ;;  %vm11096_vm8 = vmmov %vm11088_vm1  ;;  %v9207_v48 = vadd.f32 %v9091_v35, %v5644_v26  ;;  %v7055_v39 = vld [vmem:[%s10845_s3 + $0x20] sm:$0xff]  }
 0x49d   : > { %6367 = vrot.lane.b32.xlu0 %v6366_v20, %s7084_s24  ;;  %v9184_v63 = vsel %vm11088_vm1, %v3473_v37, %v3475_v5  ;;  %v9189_v38 = vsel %vm11094_vm6, %v3542_v22, %v3544_v1  ;;  %v3394_v43 = vmax.f32 %v3245_v16, %v3318_v7  ;;  %v3319_v54 = vrot.slane %v3247_v56, 1  ;;  %5665 = vmatpush3.bf16.msra.mxu1 %v7055_v39  ;;  %vm11099_vm7 = vmmov %vm11091_vm13  ;;  %v7056_v37 = vld [vmem:[%s10845_s3 + $0x18] sm:$0xff]  }
 0x49e   : > { %v9196_v2 = vadd.f32 %v9091_v35, %v3173_v57  ;;  %v6371_v3 = vpack.i.bf16 %v9184_v63, %v3474_v9  ;;  %v6376_v55 = vpack.i.bf16 %v9189_v38, %v3543_v25  ;;  %v5645_v45 = vpop.f32.mrf.mxu0  ;;  %v3324_v30 = vsel %vm11096_vm8, %v3321_v24, %v3323_v50  ;;  %vm11101_vm8 = vmmov %vm11099_vm7  ;;  %5666 = vmatprep.subr.bf16.mxu1 %v7099_v36 }
 0x49f   : > { %3424 = vst.msk [vmem:[#allocation2 + $0x58] sm:$0xff] %vm11091_vm13, %v3394_v43  ;;  %v3320_v0 = vsel %vm11097_vm5, %v3317_v32, %v3319_v54  ;;  %v3322_v28 = vsel %vm11088_vm1, %v3319_v54, %v3321_v24  ;;  %v3397_v58 = vmax.f32 %v3248_v19, %v3324_v30  ;;  %vm11098_vm6 = vcmask 1044480   ;;  %vm11100_vm13 = vmmov %vm11099_vm7 }
 0x4a0   : > { %v3395_v62 = vmax.f32 %v3246_v42, %v3320_v0  ;;  %v3396_v16 = vmax.f32 %v3247_v56, %v3322_v28  ;;  %v3250_v47 = vmax.f32 %v9196_v2, 0.0  ;;  %6372 = vrot.lane.b32.xlu1 %v6371_v3, %s7085_s25  ;;  %v3176_v12 = vpop.f32.mrf.mxu0  ;;  %v3612_v13 = vsel %vm11098_vm6, %v3610_v34, %v3611_v40  ;;  %vm11102_vm5 = vmmov %vm11098_vm6  ;;  %v9253_v42 = vld [vmem:[#allocation2 + $0x30] ss:$2 sm:$0xff] }
 0x4a1   : > { %6377 = vrot.lane.b32.xlu0 %v6376_v55, %s7087_s27  ;;  %v3613_v15 = vrot.slane %v9164_v17, 3  ;;  %v3682_v46 = vrot.slane %v9164_v17, 4  ;;  %3427 = vst.msk [vmem:[#allocation2 + $0x70] sm:$0xff] %vm11099_vm7, %v3397_v58  ;;  %v3749_v8 = vrot.slane %v9147_v60, 5  ;;  %v3751_v59 = vrot.slane %v9164_v17, 5  ;;  %5667 = vmatpush3.bf16.msra.mxu1 %v7056_v37 }
 0x4a2   : > { %3425 = vst.msk [vmem:[#allocation2 + $0x60] sm:$0xff] %vm11100_vm13, %v3395_v62  ;;  %v9226_v10 = vrot.slane %v3250_v47, 1  ;;  %v3818_v33 = vrot.slane %v9147_v60, 6  ;;  %v9231_v27 = vpop.f32.mrf.mxu0  ;;  %vm11103_vm1 = vcmask 1043456   ;;  %v3820_v41 = vrot.slane %v9164_v17, 6  ;;  %5668 = vmatprep.subr.bf16.mxu1 %v7099_v36 }
 0x4a3   : > { %3426 = vst.msk [vmem:[#allocation2 + $0x68] sm:$0xff] %vm11101_vm8, %v3396_v16  ;;  %v9237_v34 = vsel %vm11102_vm5, %v3611_v40, %v3613_v15  ;;  %v3681_v31 = vsel %vm11103_vm1, %v3679_v51, %v3680_v6  ;;  %vm11104_vm6 = vmmov %vm11103_vm1  ;;  %vm11105_vm7 = vcmask 1046528   ;;  %v3817_v23 = vrot.slane %v9131_v18, 6  ;;  %v9298_v40 = vld [vmem:[#allocation2 + $0x40] ss:$2 sm:$0xff] }
 0x4a4   : > { %v9245_v53 = vsel %vm11104_vm6, %v3680_v6, %v3682_v46  ;;  %v3326_v19 = vsel %vm11105_vm7, %v3323_v50, %v9226_v10  ;;  %v6381_v11 = vpack.i.bf16 %v9237_v34, %v3612_v13  ;;  %v3189_v14 = vpop.f32.mrf.mxu0  ;;  %v3252_v51 = vmax.f32 %v9207_v48, 0.0 }
 0x4a5   : > { %v6386_v52 = vpack.i.bf16 %v9245_v53, %v3681_v31  ;;  %v3398_v61 = vmax.f32 %v3249_v49, %v3326_v19  ;;  %vm11106_vm13 = vcmask 1042432   ;;  %vm11107_vm8 = vcmask 1041408   ;;  %v7058_v31 = vld [vmem:[%s10845_s3 + $0x8] sm:$0xff]  }
 0x4a6   : > { %v9259_v21 = vsel %vm11106_vm13, %v3749_v8, %v3751_v59  ;;  %v9264_v4 = vsel %vm11107_vm8, %v3818_v33, %v3820_v41  ;;  %6382 = vrot.lane.b32.xlu1 %v6381_v11, %s7086_s26  ;;  %vm11108_vm5 = vmmov %vm11106_vm13  ;;  %v3886_v32 = vrot.slane %v9131_v18, 7  ;;  %v3887_v26 = vrot.slane %v9147_v60, 7  ;;  %v9277_v24 = vpop.f32.mrf.mxu0 }
 0x4a7   : > { %6387 = vrot.lane.b32.xlu0 %v6386_v52, %s7088_s28  ;;  %v3750_v22 = vsel %vm11108_vm5, %v3748_v44, %v3749_v8  ;;  %v3889_v20 = vrot.slane %v9164_v17, 7  ;;  %vm11109_vm1 = vcmask 64512   ;;  %vm11110_vm6 = vmmov %vm11107_vm8  ;;  %v3477_v56 = vrot.slane %v9253_v42, 1  ;;  %v9456_v17 = vld [vmem:[#allocation2 + $0x50] ss:$2 sm:$0xff] }
 0x4a8   : > { %3428 = vst.msk [vmem:[#allocation2 + $0x78] sm:$0xff] %vm11109_vm1, %v3398_v61  ;;  %v3819_v49 = vsel %vm11110_vm6, %v3817_v23, %v3818_v33  ;;  %v3185_v7 = vadd.f32 %v9091_v35, %v5645_v45  ;;  %v3177_v57 = vadd.f32 %v9091_v35, %v3176_v12  ;;  %v6391_v44 = vpack.i.bf16 %v9259_v21, %v3750_v22  ;;  %v9293_v54 = vpop.f32.mrf.mxu0  ;;  %v7057_v45 = vld [vmem:[%s10845_s3 + $0x10] sm:$0xff]  }
 0x4a9   : > { %v6396_v9 = vpack.i.bf16 %v9264_v4, %v3819_v49  ;;  %vm11111_vm7 = vcmask 1040384   ;;  %v3546_v50 = vrot.slane %v9253_v42, 2  ;;  %v3329_v25 = vrot.slane %v3252_v51, 1  ;;  %5669 = vmatpush3.bf16.msra.mxu1 %v7057_v45 }
 0x4aa   : > { %v9290_v43 = vsel %vm11111_vm7, %v3887_v26, %v3889_v20  ;;  %vm11112_vm13 = vcmask 1046528   ;;  %v3253_v3 = vmax.f32 %v3185_v7, 0.0  ;;  %v3251_v55 = vmax.f32 %v3177_v57, 0.0  ;;  %6392 = vrot.lane.b32.xlu1 %v6391_v44, %s7089_s29  ;;  %vm11113_vm8 = vmmov %vm11111_vm7  ;;  %v9309_v28 = vpop.f32.mrf.mxu0  ;;  %5670 = vmatprep.subr.bf16.mxu1 %v7099_v36 }
 0x4ab   : > { %v3478_v29 = vsel %vm11112_vm13, %v3475_v5, %v3477_v56  ;;  %6397 = vrot.lane.b32.xlu0 %v6396_v9, %s7090_s10  ;;  %v3888_v30 = vsel %vm11113_vm8, %v3886_v32, %v3887_v26  ;;  %v9307_v0 = vadd.f32 %v9091_v35, %v3189_v14  ;;  %vm11114_vm5 = vcmask 1045504   ;;  %vm11115_vm1 = vmmov %vm11112_vm13 }
 0x4ac   : > { %v6401_v5 = vpack.i.bf16 %v9290_v43, %v3888_v30  ;;  %v3331_v48 = vrot.slane %v3253_v3, 1  ;;  %v3327_v58 = vrot.slane %v3251_v55, 1  ;;  %v6406_v62 = vpack.i.bf16 %v3478_v29, %v9184_v63  ;;  %v3205_v6 = vpop.f32.mrf.mxu0  ;;  %vm11116_vm6 = vmmov %vm11115_vm1 }
 0x4ad   : > { %v3547_v16 = vsel %vm11114_vm5, %v3544_v1, %v3546_v50  ;;  %v3254_v12 = vmax.f32 %v9307_v0, 0.0  ;;  %v3479_v13 = vrot.slane %v9298_v40, 1  ;;  %vm11117_vm7 = vmmov %vm11115_vm1  ;;  %v3615_v63 = vrot.slane %v9253_v42, 3  ;;  %5671 = vmatpush3.bf16.msra.mxu1 %v7058_v31 }
 0x4ae   : > { %v3332_v39 = vsel %vm11115_vm1, %v3329_v25, %v3331_v48  ;;  %v3328_v8 = vsel %vm11116_vm6, %v9226_v10, %v3327_v58  ;;  %v3330_v33 = vsel %vm11117_vm7, %v3327_v58, %v3329_v25  ;;  %6402 = vrot.lane.b32.xlu1 %v6401_v5, %s7091_s11  ;;  %v9335_v52 = vpop.f32.mrf.mxu0  ;;  %v3198_v23 = vadd.f32 %v9091_v35, %v9231_v27  ;;  %vm11121_vm6 = vmmov %vm11115_vm1 }
 0x4af   : > { %6407 = vrot.lane.b32.xlu0 %v6406_v62, %s7092_s12  ;;  %v3401_v1 = vmax.f32 %v3252_v51, %v3332_v39  ;;  %v3399_v19 = vmax.f32 %v3250_v47, %v3328_v8  ;;  %v3400_v11 = vmax.f32 %v3251_v55, %v3330_v33  ;;  %v3333_v10 = vrot.slane %v3254_v12, 1  ;;  %5672 = vmatprep.subr.bf16.mxu1 %v7099_v36 }
 0x4b0   : > { %vm11118_vm13 = vcmask 64512   ;;  %v6441_v2 = vpack.i.bf16 %v9298_v40, %v9253_v42  ;;  %v6411_v47 = vpack.i.bf16 %v3547_v16, %v9189_v38  ;;  %v3548_v51 = vrot.slane %v9298_v40, 2  ;;  %v9348_v61 = vpop.f32.mrf.mxu0  ;;  %v7059_v38 = vld [vmem:[%s10845_s3] sm:$0xff]  }
 0x4b1   : > { %3431 = vst.msk [vmem:[#allocation2 + $0x90] sm:$0xff] %vm11118_vm13, %v3401_v1  ;;  %vm11119_vm8 = vmmov %vm11118_vm13  ;;  %v3334_v14 = vsel %vm11115_vm1, %v3331_v48, %v3333_v10  ;;  %v9353_v37 = vsel %vm11121_vm6, %v3477_v56, %v3479_v13  ;;  %vm11122_vm7 = vcmask 1044480   ;;  %v3684_v32 = vrot.slane %v9253_v42, 4  ;;  %5673 = vmatpush3.bf16.msra.mxu1 %v7059_v38 }
 0x4b2   : > { %3429 = vst.msk [vmem:[#allocation2 + $0x80] sm:$0xff] %vm11119_vm8, %v3399_v19  ;;  %vm11120_vm5 = vmmov %vm11119_vm8  ;;  %v3402_v27 = vmax.f32 %v3253_v3, %v3334_v14  ;;  %v3616_v22 = vsel %vm11122_vm7, %v3613_v15, %v3615_v63  ;;  %6442 = vrot.lane.b32.xlu1 %v6441_v2, %s7084_s24  ;;  %v5656_v26 = vpop.f32.mrf.mxu0  ;;  %v3256_v49 = vmax.f32 %v3198_v23, 0.0  ;;  %5702 = vmatprep.subr.bf16.mxu1 %v7099_v36  ;;  %v3617_v7 = vrot.slane %v9298_v40, 3 }
 0x4b3   : > { %3430 = vst.msk [vmem:[#allocation2 + $0x88] sm:$0xff] %vm11120_vm5, %v3400_v11  ;;  %6412 = vrot.lane.b32.xlu0 %v6411_v47, %s7093_s14  ;;  %vm11123_vm13 = vmmov %vm11120_vm5  ;;  %v6446_v56 = vpack.i.bf16 %v9353_v37, %v3478_v29  ;;  %v6416_v15 = vpack.i.bf16 %v3616_v22, %v9237_v34  ;;  %vm11124_vm8 = vcmask 1045504   ;;  %vm11125_vm5 = vcmask 1043456  }
 0x4b4   : > { %3432 = vst.msk [vmem:[#allocation2 + $0x98] sm:$0xff] %vm11123_vm13, %v3402_v27  ;;  %v9369_v57 = vpop.f32.mrf.mxu0  ;;  %v9376_v44 = vsel %vm11124_vm8, %v3546_v50, %v3548_v51  ;;  %v3685_v9 = vsel %vm11125_vm5, %v3682_v46, %v3684_v32  ;;  %v3753_v25 = vrot.slane %v9253_v42, 5  ;;  %v3201_v34 = vadd.f32 %v9091_v35, %v9277_v24  ;;  %vm11126_vm1 = vmmov %vm11122_vm7 }
 0x4b5   : > { %v3337_v3 = vrot.slane %v3256_v49, 1  ;;  %v3686_v55 = vrot.slane %v9298_v40, 4  ;;  %v3193_v50 = vadd.f32 %v9091_v35, %v9293_v54  ;;  %v6451_v45 = vpack.i.bf16 %v9376_v44, %v3547_v16  ;;  %vm11128_vm7 = vmmov %vm11125_vm5 }
 0x4b6   : > { %6447 = vrot.lane.b32.xlu1 %v6446_v56, %s7085_s25  ;;  %v5657_v29 = vpop.f32.mrf.mxu0  ;;  %v6421_v46 = vpack.i.bf16 %v3685_v9, %v9245_v53  ;;  %v9394_v30 = vsel %vm11126_vm1, %v3615_v63, %v3617_v7  ;;  %v3257_v5 = vmax.f32 %v3201_v34, 0.0  ;;  %vm11127_vm6 = vcmask 1042432  }
 0x4b7   : > { %6417 = vrot.lane.b32.xlu0 %v6416_v15, %s7094_s15  ;;  %v3754_v24 = vsel %vm11127_vm6, %v3751_v59, %v3753_v25  ;;  %v3822_v48 = vrot.slane %v9253_v42, 6  ;;  %v3255_v58 = vmax.f32 %v3193_v50, 0.0  ;;  %v9403_v53 = vadd.f32 %v9091_v35, %v3205_v6 }
 0x4b8   : > { %v3339_v54 = vrot.slane %v3257_v5, 1  ;;  %v6456_v62 = vpack.i.bf16 %v9394_v30, %v3616_v22  ;;  %v9409_v16 = vsel %vm11128_vm7, %v3684_v32, %v3686_v55  ;;  %v3755_v59 = vrot.slane %v9298_v40, 5 }
 0x4b9   : > { %v3335_v39 = vrot.slane %v3255_v58, 1  ;;  %v6426_v8 = vpack.i.bf16 %v3754_v24, %v9259_v21  ;;  %v3891_v33 = vrot.slane %v9253_v42, 7  ;;  %vm11129_vm13 = vcmask 1046528  }
 0x4ba   : > { %6452 = vrot.lane.b32.xlu1 %v6451_v45, %s7087_s27  ;;  %v3340_v63 = vsel %vm11129_vm13, %v3337_v3, %v3339_v54  ;;  %v3258_v31 = vmax.f32 %v9403_v53, 0.0  ;;  %vm11130_vm8 = vcmask 1041408   ;;  %vm11131_vm5 = vmmov %vm11129_vm13  ;;  %v6461_v2 = vpack.i.bf16 %v9409_v16, %v3685_v9 }
 0x4bb   : > { %6422 = vrot.lane.b32.xlu0 %v6421_v46, %s7095_s16  ;;  %v3823_v6 = vsel %vm11130_vm8, %v3820_v41, %v3822_v48  ;;  %v3405_v1 = vmax.f32 %v3256_v49, %v3340_v63  ;;  %v3336_v19 = vsel %vm11131_vm5, %v3333_v10, %v3335_v39  ;;  %vm11132_vm1 = vmmov %vm11131_vm5  ;;  %v9431_v41 = vsel %vm11127_vm6, %v3753_v25, %v3755_v59 }
 0x4bc   : > { %v3338_v11 = vsel %vm11132_vm1, %v3335_v39, %v3337_v3  ;;  %v3403_v42 = vmax.f32 %v3254_v12, %v3336_v19  ;;  %v3341_v23 = vrot.slane %v3258_v31, 1  ;;  %vm11133_vm7 = vcmask 64512   ;;  %vm11136_vm5 = vmmov %vm11132_vm1 }
 0x4bd   : > { %v3404_v21 = vmax.f32 %v3255_v58, %v3338_v11  ;;  %3435 = vst.msk [vmem:[#allocation2 + $0xb0] sm:$0xff] %vm11133_vm7, %v3405_v1  ;;  %v6431_v10 = vpack.i.bf16 %v3823_v6, %v9264_v4  ;;  %v3824_v47 = vrot.slane %v9298_v40, 6  ;;  %vm11134_vm13 = vmmov %vm11133_vm7  ;;  %v3214_v0 = vadd.f32 %v9091_v35, %v9309_v28  ;;  %v9446_v4 = vld [vmem:[#allocation2 + $0x60] ss:$2 sm:$0xff] }
 0x4be   : > { %6457 = vrot.lane.b32.xlu1 %v6456_v62, %s7086_s26  ;;  %3433 = vst.msk [vmem:[#allocation2 + $0xa0] sm:$0xff] %vm11134_vm13, %v3403_v42  ;;  %vm11135_vm8 = vmmov %vm11133_vm7  ;;  %v3342_v12 = vsel %vm11136_vm5, %v3339_v54, %v3341_v23  ;;  %vm11137_vm1 = vcmask 1040384   ;;  %v6466_v22 = vpack.i.bf16 %v9431_v41, %v3754_v24  ;;  %v3483_v26 = vrot.slane %v9446_v4, 1 }
 0x4bf   : > { %6427 = vrot.lane.b32.xlu0 %v6426_v8, %s7096_s17  ;;  %3434 = vst.msk [vmem:[#allocation2 + $0xa8] sm:$0xff] %vm11135_vm8, %v3404_v21  ;;  %v3892_v14 = vsel %vm11137_vm1, %v3889_v20, %v3891_v33  ;;  %v3406_v27 = vmax.f32 %v3257_v5, %v3342_v12  ;;  %vm11139_vm6 = vmmov %vm11133_vm7  ;;  %vm11140_vm7 = vcmask 1041408   ;;  %v3893_v20 = vrot.slane %v9298_v40, 7  ;;  %v3224_v12 = vpop.f32.mrf.mxu0 }
 0x4c0   : > { %v6436_v32 = vpack.i.bf16 %v3892_v14, %v9290_v43  ;;  %v9454_v28 = vsel %vm11140_vm7, %v3822_v48, %v3824_v47  ;;  %v3260_v38 = vmax.f32 %v3214_v0, 0.0  ;;  %v3217_v49 = vadd.f32 %v9091_v35, %v9335_v52  ;;  %vm11142_vm13 = vmmov %vm11137_vm1 }
 0x4c1   : > { %3436 = vst.msk [vmem:[#allocation2 + $0xb8] sm:$0xff] %vm11139_vm6, %v3406_v27  ;;  %v3209_v43 = vadd.f32 %v9091_v35, %v9348_v61  ;;  %v6471_v56 = vpack.i.bf16 %v9454_v28, %v3823_v6  ;;  %v6516_v15 = vpack.i.bf16 %v9446_v4, %v9456_v17  ;;  %v3481_v9 = vrot.slane %v9456_v17, 1  ;;  %vm11143_vm8 = vmmov %vm11136_vm5 }
 0x4c2   : > { %6462 = vrot.lane.b32.xlu1 %v6461_v2, %s7088_s28  ;;  %v9473_v25 = vsel %vm11142_vm13, %v3891_v33, %v3893_v20  ;;  %v3345_v34 = vrot.slane %v3260_v38, 1  ;;  %v3552_v29 = vrot.slane %v9446_v4, 2  ;;  %v3261_v3 = vmax.f32 %v3217_v49, 0.0  ;;  %vm11145_vm6 = vmmov %vm11136_vm5 }
 0x4c3   : > { %6432 = vrot.lane.b32.xlu0 %v6431_v10, %s11138_s18  ;;  %v9479_v52 = vsel %vm11143_vm8, %v3481_v9, %v3483_v26  ;;  %v3259_v61 = vmax.f32 %v3209_v43, 0.0  ;;  %v9483_v50 = vadd.f32 %v9091_v35, %v9369_v57  ;;  %v3550_v45 = vrot.slane %v9456_v17, 2  ;;  %vm11146_vm7 = vmmov %vm11136_vm5 }
 0x4c4   : > { %v3347_v46 = vrot.slane %v3261_v3, 1  ;;  %v6476_v5 = vpack.i.bf16 %v9473_v25, %v3892_v14  ;;  %v3482_v24 = vsel %vm11136_vm5, %v3479_v13, %v3481_v9  ;;  %vm11144_vm1 = vcmask 1045504   ;;  %vm11147_vm13 = vmmov %vm11136_vm5 }
 0x4c5   : > { %v3343_v48 = vrot.slane %v3259_v61, 1  ;;  %v3262_v58 = vmax.f32 %v9483_v50, 0.0  ;;  %v6521_v54 = vpack.i.bf16 %v9479_v52, %v3482_v24  ;;  %v9497_v57 = vsel %vm11144_vm1, %v3550_v45, %v3552_v29  ;;  %vm11148_vm8 = vmmov %vm11144_vm1 }
 0x4c6   : > { %6467 = vrot.lane.b32.xlu1 %v6466_v22, %s7089_s29  ;;  %v3621_v62 = vrot.slane %v9446_v4, 3  ;;  %v3348_v39 = vsel %vm11145_vm6, %v3345_v34, %v3347_v46  ;;  %v3551_v19 = vsel %vm11148_vm8, %v3548_v51, %v3550_v45  ;;  %v3619_v11 = vrot.slane %v9456_v17, 3  ;;  %vm11150_vm1 = vmmov %vm11145_vm6 }
 0x4c7   : > { %6437 = vrot.lane.b32.xlu0 %v6436_v32, %s11141_s22  ;;  %v3409_v8 = vmax.f32 %v3260_v38, %v3348_v39  ;;  %v3344_v33 = vsel %vm11146_vm7, %v3341_v23, %v3343_v48  ;;  %v3346_v63 = vsel %vm11147_vm13, %v3343_v48, %v3345_v34  ;;  %v3349_v13 = vrot.slane %v3262_v58, 1 }
 0x4c8   : > { %v3407_v6 = vmax.f32 %v3258_v31, %v3344_v33  ;;  %v3408_v1 = vmax.f32 %v3259_v61, %v3346_v63  ;;  %vm11149_vm5 = vcmask 64512   ;;  %v6481_v21 = vpack.i.bf16 %v3482_v24, %v9353_v37 }
 0x4c9   : > { %3439 = vst.msk [vmem:[#allocation2 + $0xd0] sm:$0xff] %vm11149_vm5, %v3409_v8  ;;  %v3350_v42 = vsel %vm11150_vm1, %v3347_v46, %v3349_v13  ;;  %v6526_v23 = vpack.i.bf16 %v9497_v57, %v3551_v19  ;;  %vm11151_vm6 = vmmov %vm11149_vm5  ;;  %vm11153_vm13 = vcmask 1044480   ;;  %v3690_v51 = vrot.slane %v9446_v4, 4  ;;  %v9599_v8 = vld [vmem:[#allocation2 + $0x80] ss:$2 sm:$0xff] }
 0x4ca   : > { %6472 = vrot.lane.b32.xlu1 %v6471_v56, %s7090_s10  ;;  %3437 = vst.msk [vmem:[#allocation2 + $0xc0] sm:$0xff] %vm11151_vm6, %v3407_v6  ;;  %vm11152_vm7 = vmmov %vm11149_vm5  ;;  %v3410_v53 = vmax.f32 %v3261_v3, %v3350_v42  ;;  %v9520_v31 = vsel %vm11153_vm13, %v3619_v11, %v3621_v62  ;;  %v3688_v2 = vrot.slane %v9456_v17, 4  ;;  %v6486_v10 = vpack.i.bf16 %v3551_v19, %v9376_v44 }
 0x4cb   : > { %6517 = vrot.lane.b32.xlu0 %v6516_v15, %s7084_s24  ;;  %3438 = vst.msk [vmem:[#allocation2 + $0xc8] sm:$0xff] %vm11152_vm7, %v3408_v1  ;;  %vm11154_vm8 = vmmov %vm11149_vm5  ;;  %vm11156_vm1 = vcmask 1043456   ;;  %v3759_v27 = vrot.slane %v9446_v4, 5  ;;  %v3757_v44 = vrot.slane %v9456_v17, 5  ;;  %v3225_v22 = vadd.f32 %v9091_v35, %v3224_v12 }
 0x4cc   : > { %3440 = vst.msk [vmem:[#allocation2 + $0xd8] sm:$0xff] %vm11154_vm8, %v3410_v53  ;;  %vm11155_vm5 = vmmov %vm11153_vm13  ;;  %v9535_v14 = vsel %vm11156_vm1, %v3688_v2, %v3690_v51  ;;  %vm11158_vm7 = vcmask 1042432   ;;  %v3828_v43 = vrot.slane %v9446_v4, 6  ;;  %vm11160_vm8 = vcmask 1041408  }
 0x4cd   : > { %v3620_v37 = vsel %vm11155_vm5, %v3617_v7, %v3619_v11  ;;  %vm11157_vm6 = vmmov %vm11156_vm1  ;;  %v9550_v49 = vsel %vm11158_vm7, %v3757_v44, %v3759_v27  ;;  %v3263_v56 = vmax.f32 %v3225_v22, 0.0  ;;  %v3897_v3 = vrot.slane %v9446_v4, 7 }
 0x4ce   : > { %6477 = vrot.lane.b32.xlu1 %v6476_v5, %s7091_s11  ;;  %v6531_v0 = vpack.i.bf16 %v9520_v31, %v3620_v37  ;;  %v3689_v7 = vsel %vm11157_vm6, %v3686_v55, %v3688_v2  ;;  %v6491_v32 = vpack.i.bf16 %v3620_v37, %v9394_v30  ;;  %vm11159_vm13 = vmmov %vm11158_vm7  ;;  %v3826_v55 = vrot.slane %v9456_v17, 6 }
 0x4cf   : > { %6522 = vrot.lane.b32.xlu0 %v6521_v54, %s7085_s25  ;;  %v6536_v38 = vpack.i.bf16 %v9535_v14, %v3689_v7  ;;  %v3758_v35 = vsel %vm11159_vm13, %v3755_v59, %v3757_v44  ;;  %v3351_v30 = vrot.slane %v3263_v56, 1  ;;  %v6496_v15 = vpack.i.bf16 %v3689_v7, %v9409_v16  ;;  %v9570_v59 = vld [vmem:[#allocation2 + $0x70] ss:$2 sm:$0xff]  ;;  %vm11162_vm1 = vmmov %vm11160_vm8 }
 0x4d0   : > { %v6541_v9 = vpack.i.bf16 %v9550_v49, %v3758_v35  ;;  %v9564_v34 = vsel %vm11160_vm8, %v3826_v55, %v3828_v43  ;;  %vm11161_vm5 = vcmask 1046528   ;;  %v3827_v16 = vsel %vm11162_vm1, %v3824_v47, %v3826_v55 }
 0x4d1   : > { %v3352_v61 = vsel %vm11161_vm5, %v3349_v13, %v3351_v30  ;;  %v3412_v50 = vmax.f32 %v3263_v56, %v3351_v30  ;;  %v3895_v46 = vrot.slane %v9456_v17, 7  ;;  %vm11163_vm6 = vcmask 63488  }
 0x4d2   : > { %6482 = vrot.lane.b32.xlu1 %v6481_v21, %s7092_s12  ;;  %v3411_v45 = vmax.f32 %v3262_v58, %v3352_v61  ;;  %v6501_v5 = vpack.i.bf16 %v3758_v35, %v9431_v41  ;;  %v6546_v24 = vpack.i.bf16 %v9564_v34, %v3827_v16  ;;  %vm11164_vm7 = vcmask 64512   ;;  %v9678_v35 = vld [vmem:[#allocation2 + $0x90] ss:$2 sm:$0xff] }
 0x4d3   : > { %6527 = vrot.lane.b32.xlu0 %v6526_v23, %s7087_s27  ;;  %3442 = vst.msk [vmem:[#allocation2 + $0xe8] sm:$0x7f] %vm11163_vm6, %v3412_v50  ;;  %vm11165_vm13 = vcmask 1040384   ;;  %v3485_v58 = vrot.slane %v9570_v59, 1  ;;  %v6506_v41 = vpack.i.bf16 %v3827_v16, %v9454_v28  ;;  %v3554_v39 = vrot.slane %v9570_v59, 2  ;;  %vm11168_vm6 = vmmov %vm11161_vm5 }
 0x4d4   : > { %3441 = vst.msk [vmem:[#allocation2 + $0xe0] sm:$0xff] %vm11164_vm7, %v3411_v45  ;;  %v9583_v48 = vsel %vm11165_vm13, %v3895_v46, %v3897_v3  ;;  %vm11166_vm8 = vmmov %vm11165_vm13  ;;  %vm11167_vm1 = vcmask 1045504   ;;  %v3487_v33 = vrot.slane %v9599_v8, 1  ;;  %v6591_v63 = vpack.i.bf16 %v9599_v8, %v9570_v59 }
 0x4d5   : > { %v3896_v47 = vsel %vm11166_vm8, %v3893_v20, %v3895_v46  ;;  %v3486_v54 = vsel %vm11161_vm5, %v3483_v26, %v3485_v58  ;;  %v3555_v28 = vsel %vm11167_vm1, %v3552_v29, %v3554_v39  ;;  %v3623_v26 = vrot.slane %v9570_v59, 3  ;;  %vm11170_vm13 = vmmov %vm11167_vm1 }
 0x4d6   : > { %6487 = vrot.lane.b32.xlu1 %v6486_v10, %s7093_s14  ;;  %v6551_v17 = vpack.i.bf16 %v9583_v48, %v3896_v47  ;;  %v6511_v40 = vpack.i.bf16 %v3896_v47, %v9473_v25  ;;  %v6556_v20 = vpack.i.bf16 %v3486_v54, %v9479_v52  ;;  %v6561_v13 = vpack.i.bf16 %v3555_v28, %v9497_v57 }
 0x4d7   : > { %6532 = vrot.lane.b32.xlu0 %v6531_v0, %s7086_s26  ;;  %v9614_v25 = vsel %vm11168_vm6, %v3485_v58, %v3487_v33  ;;  %vm11169_vm7 = vcmask 1044480   ;;  %v3556_v52 = vrot.slane %v9599_v8, 2  ;;  %v3692_v6 = vrot.slane %v9570_v59, 4 }
 0x4d8   : > { %v3624_v29 = vsel %vm11169_vm7, %v3621_v62, %v3623_v26  ;;  %v6596_v1 = vpack.i.bf16 %v9614_v25, %v3486_v54  ;;  %vm11171_vm8 = vcmask 1043456   ;;  %v3625_v62 = vrot.slane %v9599_v8, 3  ;;  %vm11172_vm5 = vmmov %vm11169_vm7 }
 0x4d9   : > { %v6566_v19 = vpack.i.bf16 %v3624_v29, %v9520_v31  ;;  %v9626_v57 = vsel %vm11170_vm13, %v3554_v39, %v3556_v52  ;;  %v3693_v11 = vsel %vm11171_vm8, %v3690_v51, %v3692_v6  ;;  %v3761_v42 = vrot.slane %v9570_v59, 5  ;;  %vm11174_vm6 = vmmov %vm11171_vm8 }
 0x4da   : > { %6492 = vrot.lane.b32.xlu1 %v6491_v32, %s7094_s15  ;;  %v6601_v21 = vpack.i.bf16 %v9626_v57, %v3555_v28  ;;  %v6571_v23 = vpack.i.bf16 %v3693_v11, %v9535_v14  ;;  %v9638_v53 = vsel %vm11172_vm5, %v3623_v26, %v3625_v62  ;;  %vm11173_vm1 = vcmask 1042432  }
 0x4db   : > { %6537 = vrot.lane.b32.xlu0 %v6536_v38, %s7088_s28  ;;  %v3762_v31 = vsel %vm11173_vm1, %v3759_v27, %v3761_v42  ;;  %v3694_v51 = vrot.slane %v9599_v8, 4  ;;  %v3830_v37 = vrot.slane %v9570_v59, 6  ;;  %v6606_v2 = vpack.i.bf16 %v9638_v53, %v3624_v29  ;;  %vm11176_vm13 = vmmov %vm11173_vm1 }
 0x4dc   : > { %v6576_v10 = vpack.i.bf16 %v3762_v31, %v9550_v49  ;;  %vm11175_vm7 = vcmask 1041408   ;;  %v3763_v14 = vrot.slane %v9599_v8, 5  ;;  %v3899_v27 = vrot.slane %v9570_v59, 7  ;;  %v9674_v49 = vld [vmem:[#allocation2 + $0xa0] ss:$2 sm:$0xff] }
 0x4dd   : > { %v9652_v0 = vsel %vm11174_vm6, %v3692_v6, %v3694_v51  ;;  %v3831_v12 = vsel %vm11175_vm7, %v3828_v43, %v3830_v37  ;;  %vm11177_vm8 = vcmask 1040384   ;;  %v3832_v38 = vrot.slane %v9599_v8, 6  ;;  %vm11178_vm5 = vmmov %vm11175_vm7 }
 0x4de   : > { %6497 = vrot.lane.b32.xlu1 %v6496_v15, %s7095_s16  ;;  %v6611_v7 = vpack.i.bf16 %v9652_v0, %v3693_v11  ;;  %v6581_v44 = vpack.i.bf16 %v3831_v12, %v9564_v34  ;;  %v9666_v22 = vsel %vm11176_vm13, %v3761_v42, %v3763_v14  ;;  %v3900_v32 = vsel %vm11177_vm8, %v3897_v3, %v3899_v27  ;;  %vm11179_vm1 = vmmov %vm11177_vm8 }
 0x4df   : > { %6542 = vrot.lane.b32.xlu0 %v6541_v9, %s7089_s29  ;;  %v6616_v43 = vpack.i.bf16 %v9666_v22, %v3762_v31  ;;  %v6586_v56 = vpack.i.bf16 %v3900_v32, %v9583_v48  ;;  %v9683_v4 = vsel %vm11178_vm5, %v3830_v37, %v3832_v38  ;;  %v3901_v55 = vrot.slane %v9599_v8, 7  ;;  %v9774_v37 = vld [vmem:[#allocation2 + $0xb0] ss:$2 sm:$0xff]  ;;  %v9807_v8 = vld [vmem:[#allocation2 + $0xc0] ss:$2 sm:$0xff] }
 0x4e0   : > { %v3491_v30 = vrot.slane %v9674_v49, 1  ;;  %v3489_v15 = vrot.slane %v9678_v35, 1  ;;  %v6621_v9 = vpack.i.bf16 %v9683_v4, %v3831_v12  ;;  %v6666_v34 = vpack.i.bf16 %v9674_v49, %v9678_v35 }
 0x4e1   : > { %v9696_v3 = vsel %vm11179_vm1, %v3899_v27, %v3901_v55  ;;  %vm11180_vm6 = vcmask 1046528   ;;  %v3560_v50 = vrot.slane %v9674_v49, 2  ;;  %v3558_v45 = vrot.slane %v9678_v35, 2 }
 0x4e2   : > { %6502 = vrot.lane.b32.xlu1 %v6501_v5, %s7096_s17  ;;  %v9701_v61 = vsel %vm11180_vm6, %v3489_v15, %v3491_v30  ;;  %vm11181_vm7 = vmmov %vm11180_vm6  ;;  %v6626_v16 = vpack.i.bf16 %v9696_v3, %v3900_v32  ;;  %vm11182_vm13 = vcmask 1045504   ;;  %v3627_v58 = vrot.slane %v9678_v35, 3 }
 0x4e3   : > { %6547 = vrot.lane.b32.xlu0 %v6546_v24, %s7090_s10  ;;  %v3490_v59 = vsel %vm11181_vm7, %v3487_v33, %v3489_v15  ;;  %v9713_v5 = vsel %vm11182_vm13, %v3558_v45, %v3560_v50  ;;  %v3629_v24 = vrot.slane %v9674_v49, 3  ;;  %vm11183_vm8 = vmmov %vm11182_vm13  ;;  %vm11184_vm5 = vcmask 1044480  }
 0x4e4   : > { %v6671_v46 = vpack.i.bf16 %v9701_v61, %v3490_v59  ;;  %v3559_v48 = vsel %vm11183_vm8, %v3556_v52, %v3558_v45  ;;  %v6631_v47 = vpack.i.bf16 %v3490_v59, %v9614_v25  ;;  %v3698_v54 = vrot.slane %v9674_v49, 4  ;;  %vm11185_vm1 = vmmov %vm11184_vm5 }
 0x4e5   : > { %v6636_v28 = vpack.i.bf16 %v3559_v48, %v9626_v57  ;;  %vm11186_vm6 = vcmask 1043456   ;;  %v3765_v52 = vrot.slane %v9678_v35, 5  ;;  %vm11188_vm13 = vcmask 1042432  }
 0x4e6   : > { %6507 = vrot.lane.b32.xlu1 %v6506_v41, %s11138_s18  ;;  %v6676_v41 = vpack.i.bf16 %v9713_v5, %v3559_v48  ;;  %vm11187_vm7 = vmmov %vm11186_vm6  ;;  %v3836_v57 = vrot.slane %v9674_v49, 6 }
 0x4e7   : > { %6552 = vrot.lane.b32.xlu0 %v6551_v17, %s7091_s11  ;;  %v9725_v17 = vsel %vm11184_vm5, %v3627_v58, %v3629_v24  ;;  %vm11189_vm8 = vmmov %vm11188_vm13  ;;  %vm11190_vm5 = vcmask 1041408  }
 0x4e8   : > { %v3766_v11 = vsel %vm11189_vm8, %v3763_v14, %v3765_v52  ;;  %vm11195_vm8 = vcmask 64512  }
 0x4e9   : > { %v6651_v14 = vpack.i.bf16 %v3766_v11, %v9666_v22 }
 0x4ea   : > { %6512 = vrot.lane.b32.xlu1 %v6511_v40, %s11141_s22  ;;  %v3628_v40 = vsel %vm11185_vm1, %v3625_v62, %v3627_v58  ;;  %v3834_v62 = vrot.slane %v9678_v35, 6  ;;  %vm11191_vm1 = vmmov %vm11190_vm5 }
 0x4eb   : > { %6557 = vrot.lane.b32.xlu0 %v6556_v20, %s7092_s12  ;;  %v3696_v20 = vrot.slane %v9678_v35, 4  ;;  %v6681_v33 = vpack.i.bf16 %v9725_v17, %v3628_v40  ;;  %v6641_v6 = vpack.i.bf16 %v3628_v40, %v9638_v53  ;;  %v3631_v40 = vrot.slane %v9774_v37, 3 }
 0x4ec   : > { %v9769_v31 = vsel %vm11190_vm5, %v3834_v62, %v3836_v57  ;;  %vm11196_vm5 = vmmov %vm11195_vm8 }
 0x4ed   : > { %v9739_v26 = vsel %vm11186_vm6, %v3696_v20, %v3698_v54  ;;  %v3697_v29 = vsel %vm11187_vm7, %v3694_v51, %v3696_v20  ;;  %v3905_v51 = vrot.slane %v9674_v49, 7  ;;  %vm11192_vm6 = vcmask 1040384  }
 0x4ee   : > { %6592 = vrot.lane.b32.xlu1 %v6591_v63, %s7084_s24  ;;  %v3767_v63 = vrot.slane %v9674_v49, 5  ;;  %vm11193_vm7 = vmmov %vm11192_vm6 }
 0x4ef   : > { %6562 = vrot.lane.b32.xlu0 %v6561_v13, %s7093_s14 }
 0x4f2   : > { %6597 = vrot.lane.b32.xlu1 %v6596_v1, %s7085_s25  ;;  %v6686_v1 = vpack.i.bf16 %v9739_v26, %v3697_v29 }
 0x4f3   : > { %6567 = vrot.lane.b32.xlu0 %v6566_v19, %s7094_s15  ;;  %v9753_v19 = vsel %vm11188_vm13, %v3765_v52, %v3767_v63  ;;  %vm11194_vm13 = vcmask 1046528   ;;  %v6741_v52 = vpack.i.bf16 %v9807_v8, %v9774_v37 }
 0x4f4   : > { %v6691_v53 = vpack.i.bf16 %v9753_v19, %v3766_v11  ;;  %v3700_v11 = vrot.slane %v9774_v37, 4 }
 0x4f6   : > { %6602 = vrot.lane.b32.xlu1 %v6601_v21, %s7087_s27 }
 0x4f7   : > { %6572 = vrot.lane.b32.xlu0 %v6571_v23, %s7095_s16  ;;  %v6646_v23 = vpack.i.bf16 %v3697_v29, %v9652_v0 }
 0x4fa   : > { %6607 = vrot.lane.b32.xlu1 %v6606_v2, %s7086_s26  ;;  %v3835_v2 = vsel %vm11191_vm1, %v3832_v38, %v3834_v62  ;;  %vm11197_vm1 = vcmask 1045504  }
 0x4fb   : > { %6577 = vrot.lane.b32.xlu0 %v6576_v10, %s7096_s17  ;;  %v3903_v10 = vrot.slane %v9678_v35, 7  ;;  %v6696_v27 = vpack.i.bf16 %v9769_v31, %v3835_v2  ;;  %v6656_v35 = vpack.i.bf16 %v3835_v2, %v9683_v4 }
 0x4fe   : > { %6612 = vrot.lane.b32.xlu1 %v6611_v7, %s7088_s28  ;;  %v9787_v7 = vsel %vm11192_vm6, %v3903_v10, %v3905_v51  ;;  %vm11198_vm6 = vcmask 130048  }
 0x4ff   : > { %6582 = vrot.lane.b32.xlu0 %v6581_v44, %s11138_s18  ;;  %v3493_v44 = vrot.slane %v9774_v37, 1 }
 0x502   : > { %6617 = vrot.lane.b32.xlu1 %v6616_v43, %s7089_s29  ;;  %v3904_v43 = vsel %vm11193_vm7, %v3901_v55, %v3903_v10  ;;  %vm11199_vm7 = vmmov %vm11198_vm6 }
 0x503   : > { %6587 = vrot.lane.b32.xlu0 %v6586_v56, %s11141_s22  ;;  %v6701_v15 = vpack.i.bf16 %v9787_v7, %v3904_v43  ;;  %v6661_v58 = vpack.i.bf16 %v3904_v43, %v9696_v3 }
 0x506   : > { %6622 = vrot.lane.b32.xlu1 %v6621_v9, %s7090_s10  ;;  %v3494_v9 = vsel %vm11194_vm13, %v3491_v30, %v3493_v44  ;;  %vm11200_vm13 = vcmask 195584  }
 0x507   : > { %6667 = vrot.lane.b32.xlu0 %v6666_v34, %s7084_s24  ;;  %v3562_v34 = vrot.slane %v9774_v37, 2 }
 0x50a   : > { %6627 = vrot.lane.b32.xlu1 %v6626_v16, %s7091_s11 }
 0x50b   : > { %6672 = vrot.lane.b32.xlu0 %v6671_v46, %s7085_s25 }
 0x50e   : > { %6632 = vrot.lane.b32.xlu1 %v6631_v47, %s7092_s12  ;;  %v6706_v47 = vpack.i.bf16 %v3494_v9, %v9701_v61 }
 0x50f   : > { %6677 = vrot.lane.b32.xlu0 %v6676_v41, %s7087_s27  ;;  %v9730_v39 = vpop.permute.xlu0 %6367  ;;  %v9822_v41 = vsel %vm11197_vm1, %v3560_v50, %v3562_v34  ;;  %vm11203_vm1 = vcmask 1044480  }
 0x512   : > { %6637 = vrot.lane.b32.xlu1 %v6636_v28, %s7093_s14  ;;  %v6373_v13 = vpop.permute.xlu1 %6372 }
 0x513   : > { %6682 = vrot.lane.b32.xlu0 %v6681_v33, %s7086_s26  ;;  %v6378_v25 = vpop.permute.xlu0 %6377  ;;  %v6375_v32 = vunpack.i.h.bf16 %v6373_v13  ;;  %v6374_v38 = vunpack.i.l.bf16 %v6373_v13 }
 0x514   : > { %v6380_v59 = vunpack.i.h.bf16 %v6378_v25  ;;  %v6379_v45 = vunpack.i.l.bf16 %v6378_v25 }
 0x515   : > { %v4307_v55 = vsel %vm11195_vm8, %v9147_v60, %v6375_v32  ;;  %v4306_v4 = vsel %vm11196_vm5, %v9131_v18, %v6374_v38  ;;  %v3495_v60 = vrot.slane %v9807_v8, 1  ;;  %vm11201_vm8 = vmmov %vm11200_vm13  ;;  %vm11202_vm5 = vcmask 1046528  }
 0x516   : > { %6642 = vrot.lane.b32.xlu1 %v6641_v6, %s7094_s15  ;;  %v4320_v18 = vsel %vm11198_vm6, %v4306_v4, %v6379_v45  ;;  %v4321_v20 = vsel %vm11199_vm7, %v4307_v55, %v6380_v59  ;;  %v6711_v6 = vpack.i.bf16 %v9822_v41, %v9713_v5  ;;  %vm11204_vm6 = vcmask 261120  }
 0x517   : > { %6687 = vrot.lane.b32.xlu0 %v6686_v1, %s7088_s28  ;;  %v3564_v1 = vrot.slane %v9807_v8, 2  ;;  %v9847_v62 = vsel %vm11202_vm5, %v3493_v44, %v3495_v60  ;;  %vm11205_vm7 = vmmov %vm11204_vm6  ;;  %vm11208_vm5 = vcmask 1045504   ;;  %v6370_v4 = vunpack.i.h.bf16 %v9730_v39 }
 0x518   : > { %v6383_v42 = vpop.permute.xlu1 %6382  ;;  %v6746_v38 = vpack.i.bf16 %v9847_v62, %v3494_v9 }
 0x519   : > { %v9762_v21 = vpop.permute.xlu0 %6387  ;;  %v6385_v16 = vunpack.i.h.bf16 %v6383_v42  ;;  %v6384_v46 = vunpack.i.l.bf16 %v6383_v42  ;;  %v9852_v42 = vsel %vm11203_vm1, %v3629_v24, %v3631_v40  ;;  %v9874_v43 = vsel %vm11208_vm5, %v3562_v34, %v3564_v1 }
 0x51a   : > { %6647 = vrot.lane.b32.xlu1 %v6646_v23, %s7095_s16  ;;  %v6390_v28 = vunpack.i.h.bf16 %v9762_v21  ;;  %v6389_v33 = vunpack.i.l.bf16 %v9762_v21  ;;  %v3633_v21 = vrot.slane %v9807_v8, 3  ;;  %v3769_v23 = vrot.slane %v9774_v37, 5 }
 0x51b   : > { %6692 = vrot.lane.b32.xlu0 %v6691_v53, %s7089_s29  ;;  %v4334_v3 = vsel %vm11200_vm13, %v4320_v18, %v6384_v46  ;;  %v4335_v61 = vsel %vm11201_vm8, %v4321_v20, %v6385_v16  ;;  %vm11206_vm13 = vcmask 326656   ;;  %vm11209_vm1 = vcmask 1043456  }
 0x51c   : > { %v6393_v0 = vpop.permute.xlu1 %6392  ;;  %v4348_v5 = vsel %vm11204_vm6, %v4334_v3, %v6389_v33  ;;  %v4349_v53 = vsel %vm11205_vm7, %v4335_v61, %v6390_v28  ;;  %vm11207_vm8 = vmmov %vm11206_vm13  ;;  %vm11210_vm6 = vcmask 1044480   ;;  %vm11211_vm7 = vcmask 1042432  }
 0x51d   : > { %v9780_v12 = vpop.permute.xlu0 %6397  ;;  %v6395_v50 = vunpack.i.h.bf16 %v6393_v0  ;;  %v6394_v13 = vunpack.i.l.bf16 %v6393_v0  ;;  %v6751_v45 = vpack.i.bf16 %v9874_v43, %v9822_v41  ;;  %v6369_v16 = vunpack.i.l.bf16 %v9730_v39 }
 0x51e   : > { %6652 = vrot.lane.b32.xlu1 %v6651_v14, %s7096_s17  ;;  %v6400_v2 = vunpack.i.h.bf16 %v9780_v12  ;;  %v6399_v10 = vunpack.i.l.bf16 %v9780_v12  ;;  %v6716_v12 = vpack.i.bf16 %v9852_v42, %v9725_v17  ;;  %v3771_v3 = vrot.slane %v9807_v8, 5 }
 0x51f   : > { %6697 = vrot.lane.b32.xlu0 %v6696_v27, %s7090_s10  ;;  %v4362_v0 = vsel %vm11206_vm13, %v4348_v5, %v6394_v13  ;;  %v4363_v24 = vsel %vm11207_vm8, %v4349_v53, %v6395_v50  ;;  %vm11212_vm13 = vmmov %vm11209_vm1  ;;  %vm11213_vm8 = vcmask 523264   ;;  %v3907_v61 = vrot.slane %v9774_v37, 7 }
 0x520   : > { %v9795_v22 = vpop.permute.xlu1 %6402  ;;  %v4376_v9 = vsel %vm535_vm0, %v4362_v0, %v6399_v10  ;;  %v4377_v17 = vsel %vm535_vm0, %v4363_v24, %v6400_v2  ;;  %vm11214_vm5 = vmmov %vm11213_vm8 }
 0x521   : > { %v9797_v56 = vpop.permute.xlu0 %6407  ;;  %v6405_v14 = vunpack.i.h.bf16 %v9795_v22  ;;  %v6404_v27 = vunpack.i.l.bf16 %v9795_v22  ;;  %v9884_v22 = vsel %vm11210_vm6, %v3631_v40, %v3633_v21  ;;  %vm11216_vm6 = vcmask 588800  }
 0x522   : > { %6657 = vrot.lane.b32.xlu1 %v6656_v35, %s11138_s18  ;;  %v9879_v35 = vsel %vm11209_vm1, %v3698_v54, %v3700_v11  ;;  %v9896_v54 = vsel %vm11211_vm7, %v3767_v63, %v3769_v23  ;;  %v6756_v63 = vpack.i.bf16 %v9884_v22, %v9852_v42  ;;  %v6410_v40 = vunpack.i.h.bf16 %v9797_v56  ;;  %vm11217_vm7 = vmmov %vm11216_vm6 }
 0x523   : > { %6702 = vrot.lane.b32.xlu0 %v6701_v15, %s7091_s11  ;;  %v3702_v15 = vrot.slane %v9807_v8, 4  ;;  %v4390_v34 = vsel %vm1926_vm15, %v4376_v9, %v6404_v27  ;;  %v4391_v59 = vsel %vm1926_vm15, %v4377_v17, %v6405_v14  ;;  %v6721_v55 = vpack.i.bf16 %v9879_v35, %v9739_v26 }
 0x524   : > { %v9813_v48 = vpop.permute.xlu1 %6442  ;;  %v6409_v18 = vunpack.i.l.bf16 %v9797_v56  ;;  %v6726_v41 = vpack.i.bf16 %v9896_v54, %v9753_v19  ;;  %v4404_v39 = vsel %vm11213_vm8, %v4390_v34, %v6369_v16  ;;  %v4405_v20 = vsel %vm11214_vm5, %v4391_v59, %v6370_v4  ;;  %v9961_v34 = vld [vmem:[#allocation2 + $0xd0] ss:$2 sm:$0xff] }
 0x525   : > { %v9815_v30 = vpop.permute.xlu0 %6412  ;;  %v9918_v26 = vsel %vm11212_vm13, %v3700_v11, %v3702_v15  ;;  %vm11215_vm1 = vcmask 1041408   ;;  %vm11218_vm13 = vcmask 1042432   ;;  %vm11219_vm8 = vcmask 1040384  }
 0x526   : > { %6662 = vrot.lane.b32.xlu1 %v6661_v58, %s11141_s22  ;;  %v6415_v28 = vunpack.i.h.bf16 %v9815_v30  ;;  %v6414_v33 = vunpack.i.l.bf16 %v9815_v30  ;;  %v6761_v30 = vpack.i.bf16 %v9918_v26, %v9879_v35  ;;  %v4418_v42 = vsel %vm11216_vm6, %v4404_v39, %v6409_v18 }
 0x527   : > { %6707 = vrot.lane.b32.xlu0 %v6706_v47, %s7092_s12  ;;  %v3838_v47 = vrot.slane %v9774_v37, 6  ;;  %v9956_v17 = vsel %vm11218_vm13, %v3769_v23, %v3771_v3  ;;  %vm11220_vm5 = vcmask 982016   ;;  %v9972_v37 = vrot.slane %v9961_v34, 1  ;;  %vm11224_vm13 = vmmov %vm11219_vm8 }
 0x528   : > { %v9834_v25 = vpop.permute.xlu1 %6447  ;;  %v4432_v2 = vsel %vm1971_vm14, %v4418_v42, %v6414_v33  ;;  %vm11222_vm6 = vcmask 1041408   ;;  %v7061_v42 = vld [vmem:[%s10849_s7] sm:$0xff]  }
 0x529   : > { %v9836_v29 = vpop.permute.xlu0 %6417  ;;  %v3839_v11 = vsel %vm11215_vm1, %v3836_v57, %v3838_v47  ;;  %vm11221_vm1 = vmmov %vm11220_vm5 }
 0x52a   : > { %6742 = vrot.lane.b32.xlu1 %v6741_v52, %s7084_s24  ;;  %v6420_v56 = vunpack.i.h.bf16 %v9836_v29  ;;  %v6419_v19 = vunpack.i.l.bf16 %v9836_v29  ;;  %v4419_v29 = vsel %vm11217_vm7, %v4405_v20, %v6410_v40  ;;  %v6731_v27 = vpack.i.bf16 %v3839_v11, %v9769_v31 }
 0x52b   : > { %6712 = vrot.lane.b32.xlu0 %v6711_v6, %s7093_s14  ;;  %v4433_v10 = vsel %vm1971_vm14, %v4419_v29, %v6415_v28  ;;  %v3908_v31 = vsel %vm11219_vm8, %v3905_v51, %v3907_v61  ;;  %v6766_v40 = vpack.i.bf16 %v9956_v17, %v9896_v54  ;;  %v3909_v20 = vrot.slane %v9807_v8, 7 }
 0x52c   : > { %v9866_v44 = vpop.permute.xlu1 %6452  ;;  %v4446_v14 = vsel %vm1986_vm12, %v4432_v2, %v6419_v19  ;;  %v4447_v57 = vsel %vm1986_vm12, %v4433_v10, %v6420_v56  ;;  %v6736_v18 = vpack.i.bf16 %v3908_v31, %v9787_v7  ;;  %vm11223_vm7 = vcmask 1046528   ;;  %v7060_v19 = vld [vmem:[%s10849_s7 + $0x8] sm:$0xff]  }
 0x52d   : > { %v6423_v32 = vpop.permute.xlu0 %6422  ;;  %v3498_v54 = vsel %vm11223_vm7, %v3495_v60, %v9972_v37  ;;  %v9994_v7 = vrot.slane %v9961_v34, 2  ;;  %v10010_v60 = vsel %vm11224_vm13, %v3907_v61, %v3909_v20  ;;  %vm11225_vm8 = vcmask 1045504  }
 0x52e   : > { %6747 = vrot.lane.b32.xlu1 %v6746_v38, %s7085_s25  ;;  %v6425_v50 = vunpack.i.h.bf16 %v6423_v32  ;;  %v6424_v13 = vunpack.i.l.bf16 %v6423_v32  ;;  %v3840_v32 = vrot.slane %v9807_v8, 6  ;;  %v6781_v56 = vpack.i.bf16 %v9972_v37, %v3498_v54 }
 0x52f   : > { %6717 = vrot.lane.b32.xlu0 %v6716_v12, %s7094_s15  ;;  %v6776_v61 = vpack.i.bf16 %v10010_v60, %v3908_v31  ;;  %v10038_v29 = vrot.slane %v9961_v34, 4  ;;  %v6786_v2 = vpack.i.bf16 %v3498_v54, %v9847_v62  ;;  %vm11229_vm7 = vcmask 64512  }
 0x530   : > { %v9906_v46 = vpop.permute.xlu1 %6457  ;;  %v4460_v38 = vsel %vm2001_vm11, %v4446_v14, %v6424_v13  ;;  %v4461_v12 = vsel %vm2001_vm11, %v4447_v57, %v6425_v50  ;;  %v9984_v39 = vsel %vm11222_vm6, %v3838_v47, %v3840_v32  ;;  %v3567_v50 = vsel %vm11225_vm8, %v3564_v1, %v9994_v7  ;;  %vm11230_vm13 = vmmov %vm11229_vm7 }
 0x531   : > { %v6428_v58 = vpop.permute.xlu0 %6427  ;;  %v6771_v47 = vpack.i.bf16 %v9984_v39, %v3839_v11  ;;  %v10020_v13 = vrot.slane %v9961_v34, 3  ;;  %v6791_v11 = vpack.i.bf16 %v9994_v7, %v3567_v50  ;;  %v6449_v14 = vunpack.i.l.bf16 %v9834_v25 }
 0x532   : > { %6752 = vrot.lane.b32.xlu1 %v6751_v45, %s7087_s27  ;;  %v6430_v5 = vunpack.i.h.bf16 %v6428_v58  ;;  %v6429_v53 = vunpack.i.l.bf16 %v6428_v58  ;;  %v6796_v57 = vpack.i.bf16 %v3567_v50, %v9874_v43  ;;  %vm11228_vm6 = vcmask 1042432   ;;  %v5317_v50 = vld [vmem:[%s10850_s8] ss:$0 sm:$0xff] }
 0x533   : > { %6722 = vrot.lane.b32.xlu0 %v6721_v55, %s7095_s16  ;;  %v6460_v43 = vunpack.i.h.bf16 %v9906_v46  ;;  %vm11231_vm8 = vcmask 130048  }
 0x534   : > { %v9930_v52 = vpop.permute.xlu1 %6462  ;;  %v4474_v59 = vsel %vm2016_vm2, %v4460_v38, %v6429_v53  ;;  %v4475_v45 = vsel %vm2016_vm2, %v4461_v12, %v6430_v5  ;;  %v6454_v38 = vunpack.i.l.bf16 %v9866_v44 }
 0x535   : > { %v6433_v6 = vpop.permute.xlu0 %6432 }
 0x536   : > { %v6435_v0 = vunpack.i.h.bf16 %v6433_v6  ;;  %v6434_v24 = vunpack.i.l.bf16 %v6433_v6  ;;  %6757 = vrot.lane.b32.xlu1 %v6756_v63, %s7086_s26 }
 0x537   : > { %6727 = vrot.lane.b32.xlu0 %v6726_v41, %s7096_s17 }
 0x538   : > { %v9949_v35 = vpop.permute.xlu1 %6467  ;;  %v4488_v16 = vsel %vm2031_vm9, %v4474_v59, %v6434_v24  ;;  %v4489_v58 = vsel %vm2031_vm9, %v4475_v45, %v6435_v0  ;;  %v10047_v0 = vrot.slane %v9961_v34, 5  ;;  %v6450_v24 = vunpack.i.h.bf16 %v9834_v25 }
 0x539   : > { %v6438_v9 = vpop.permute.xlu0 %6437  ;;  %v6465_v45 = vunpack.i.h.bf16 %v9930_v52 }
 0x53a   : > { %v6440_v55 = vunpack.i.h.bf16 %v6438_v9  ;;  %v6439_v4 = vunpack.i.l.bf16 %v6438_v9  ;;  %6762 = vrot.lane.b32.xlu1 %v6761_v30, %s7088_s28  ;;  %v10075_v25 = vsel %vm11228_vm6, %v3771_v3, %v10047_v0 }
 0x53b   : > { %6732 = vrot.lane.b32.xlu0 %v6731_v27, %s11138_s18  ;;  %v6455_v27 = vunpack.i.h.bf16 %v9866_v44  ;;  %v6821_v44 = vpack.i.bf16 %v10047_v0, %v10075_v25 }
 0x53c   : > { %v4502_v49 = vsel %vm11220_vm5, %v4488_v16, %v6439_v4  ;;  %v4503_v51 = vsel %vm11221_vm1, %v4489_v58, %v6440_v55  ;;  %v9974_v23 = vpop.permute.xlu1 %6472  ;;  %vm11226_vm5 = vcmask 1044480   ;;  %vm11227_vm1 = vcmask 1043456   ;;  %v7063_v16 = vld [vmem:[#allocation2 + $0x20] ss:$2 sm:$0xff] }
 0x53d   : > { %v9976_v63 = vpop.permute.xlu0 %6517  ;;  %v4516_v41 = vpack.c.bf16 %v4503_v51, %v4502_v49  ;;  %v3636_v1 = vsel %vm11226_vm5, %v3633_v21, %v10020_v13  ;;  %v10052_v21 = vrot.slane %v9961_v34, 6  ;;  %v10061_v62 = vsel %vm11227_vm1, %v3702_v15, %v10038_v29  ;;  %vm11232_vm5 = vmmov %vm11231_vm8 }
 0x53e   : > { %6767 = vrot.lane.b32.xlu1 %v6766_v40, %s7089_s29  ;;  %v6801_v10 = vpack.i.bf16 %v10020_v13, %v3636_v1  ;;  %v6811_v31 = vpack.i.bf16 %v10038_v29, %v10061_v62  ;;  %v6459_v15 = vunpack.i.l.bf16 %v9906_v46  ;;  %v6806_v59 = vpack.i.bf16 %v3636_v1, %v9884_v22  ;;  %v7062_v46 = vld [vmem:[#allocation2 + $0x30] ss:$2 sm:$0xff] }
 0x53f   : > { %6737 = vrot.lane.b32.xlu0 %v6736_v18, %s11141_s22  ;;  %5675 = vmatmul.mubr.bf16.vlgmr.msra.gmra.mxu1 %v4516_v41  ;;  %v6464_v55 = vunpack.i.l.bf16 %v9930_v52  ;;  %v6816_v3 = vpack.i.bf16 %v10061_v62, %v9918_v26  ;;  %v10089_v4 = vrot.slane %v9961_v34, 7  ;;  %v4309_v22 = vsel %vm11229_vm7, %v7062_v46, %v6450_v24 }
 0x540   : > { %v9996_v28 = vpop.permute.xlu1 %6477  ;;  %5678 = vmatprep.mubr.msk.bf16.mxu1 %vm10893_vm4, %v7099_v36  ;;  %5703 = vmatpush3.bf16.msra.mxu1 %v7060_v19  ;;  %v4308_v58 = vsel %vm11230_vm13, %v7063_v16, %v6449_v14  ;;  %v6470_v49 = vunpack.i.h.bf16 %v9949_v35  ;;  %v6469_v52 = vunpack.i.l.bf16 %v9949_v35  ;;  %v4323_v40 = vsel %vm11232_vm5, %v4309_v22, %v6455_v27 }
 0x541   : > { %v9998_v33 = vpop.permute.xlu0 %6522  ;;  %5704 = vmatprep.subr.bf16.mxu1 %v7099_v36  ;;  %v4322_v51 = vsel %vm11231_vm8, %v4308_v58, %v6454_v38  ;;  %v6475_v18 = vunpack.i.h.bf16 %v9974_v23  ;;  %v6474_v26 = vunpack.i.l.bf16 %v9974_v23  ;;  %vm11233_vm1 = vcmask 195584   ;;  %v10139_v38 = vld [vmem:[#allocation2 + $0xe0] ss:$2 sm:$0xff] }
 0x542   : > { %6772 = vrot.lane.b32.xlu1 %v6771_v47, %s7090_s10  ;;  %v4336_v47 = vsel %vm11233_vm1, %v4322_v51, %v6459_v15  ;;  %vm11234_vm6 = vmmov %vm11233_vm1  ;;  %v6480_v19 = vunpack.i.h.bf16 %v9996_v28  ;;  %v6479_v35 = vunpack.i.l.bf16 %v9996_v28  ;;  %vm11235_vm7 = vcmask 261120  }
 0x543   : > { %6782 = vrot.lane.b32.xlu0 %v6781_v56, %s7085_s25  ;;  %s5254_s25 = sshll.u32 %s11440_s13, 3  ;;  %v4337_v56 = vsel %vm11234_vm6, %v4323_v40, %v6460_v43  ;;  %vm11236_vm13 = vmmov %vm11235_vm7  ;;  %vm10874_vm8 = vcmask 521216   ;;  %vm11237_vm5 = vcmask 1041408   ;;  %vm11238_vm1 = vcmask 326656  }
 0x544   : > { %v10022_v6 = vpop.permute.xlu1 %6482  ;;  %5705 = vmatpush3.bf16.msra.mxu1 %v7061_v42  ;;  %v4351_v23 = vsel %vm11236_vm13, %v4337_v56, %v6465_v45  ;;  %vm11239_vm6 = vmmov %vm11238_vm1  ;;  %s10124_s20 = scalar_lea.vmem %s10851_s9, %s5254_s25  ;;  %vm11241_vm13 = vcmask 523264  }
 0x545   : > { %v10024_v30 = vpop.permute.xlu0 %6527  ;;  %v4365_v42 = vsel %vm11239_vm6, %v4351_v23, %v6470_v49  ;;  %v6484_v43 = vunpack.i.l.bf16 %v10022_v6 }
 0x546   : > { %6777 = vrot.lane.b32.xlu1 %v6776_v61, %s7091_s11  ;;  %v4350_v61 = vsel %vm11235_vm7, %v4336_v47, %v6464_v55  ;;  %vm11240_vm7 = vcmask 1040384  }
 0x547   : > { %6792 = vrot.lane.b32.xlu0 %v6791_v11, %s7087_s27  ;;  %v3843_v11 = vsel %vm11237_vm5, %v3840_v32, %v10052_v21  ;;  %v4364_v28 = vsel %vm11238_vm1, %v4350_v61, %v6469_v52  ;;  %v4379_v32 = vsel %vm535_vm0, %v4365_v42, %v6475_v18  ;;  %v10137_v27 = vsel %vm11240_vm7, %v3909_v20, %v10089_v4  ;;  %vm11242_vm5 = vmmov %vm11241_vm13 }
 0x548   : > { %v10040_v5 = vpop.permute.xlu1 %6487  ;;  %v4378_v24 = vsel %vm535_vm0, %v4364_v28, %v6474_v26  ;;  %v6841_v46 = vpack.i.bf16 %v10089_v4, %v10137_v27  ;;  %vm11243_vm1 = vcmask 588800   ;;  %v6851_v61 = vpack.i.bf16 %v10139_v38, %v9961_v34 }
 0x549   : > { %v10042_v53 = vpop.permute.xlu0 %6532  ;;  %v6490_v8 = vunpack.i.h.bf16 %v10040_v5  ;;  %v6489_v20 = vunpack.i.l.bf16 %v10040_v5  ;;  %vm11244_vm6 = vmmov %vm11243_vm1  ;;  %vm11245_vm7 = vcmask 1045504  }
 0x54a   : > { %6787 = vrot.lane.b32.xlu1 %v6786_v2, %s7092_s12  ;;  %v6831_v2 = vpack.i.bf16 %v10052_v21, %v3843_v11 }
 0x54b   : > { %6802 = vrot.lane.b32.xlu0 %v6801_v10, %s7086_s26  ;;  %v6826_v10 = vpack.i.bf16 %v10075_v25, %v9956_v17  ;;  %v4393_v17 = vsel %vm1926_vm15, %v4379_v32, %v6480_v19  ;;  %v6485_v25 = vunpack.i.h.bf16 %v10022_v6 }
 0x54c   : > { %v10065_v12 = vpop.permute.xlu1 %6492 }
 0x54d   : > { %v10067_v9 = vpop.permute.xlu0 %6537  ;;  %v6495_v45 = vunpack.i.h.bf16 %v10065_v12  ;;  %v6494_v55 = vunpack.i.l.bf16 %v10065_v12 }
 0x54e   : > { %6797 = vrot.lane.b32.xlu1 %v6796_v57, %s7093_s14 }
 0x54f   : > { %6812 = vrot.lane.b32.xlu0 %v6811_v31, %s7088_s28  ;;  %v4392_v31 = vsel %vm1926_vm15, %v4378_v24, %v6479_v35 }
 0x550   : > { %v10099_v41 = vpop.permute.xlu1 %6497  ;;  %v2909_v1 = vpop.f32.mrf.mxu1 }
 0x551   : > { %v10101_v54 = vpop.permute.xlu0 %6542  ;;  %v2910_v14 = vadd.f32 %v5317_v50, %v2909_v1  ;;  %v6500_v16 = vunpack.i.h.bf16 %v10099_v41  ;;  %v6836_v50 = vpack.i.bf16 %v3843_v11, %v9984_v39 }
 0x552   : > { %6807 = vrot.lane.b32.xlu1 %v6806_v59, %s7094_s15  ;;  %v5618_v15 = vpop.f32.mrf.mxu1  ;;  %v6445_v59 = vunpack.i.h.bf16 %v9813_v48 }
 0x553   : > { %6822 = vrot.lane.b32.xlu0 %v6821_v44, %s7089_s29  ;;  %v6444_v44 = vunpack.i.l.bf16 %v9813_v48  ;;  %2916 = vst.msk [vmem:[%s10124_s20] sm:$0x3f] %vm10874_vm8, %v2910_v14  ;;  %v4042_v48 = vrot.slane %v10139_v38, 2  ;;  %v4218_v15 = vrot.slane %v10139_v38, 6 }
 0x554   : > { %v6503_v57 = vpop.permute.xlu1 %6502  ;;  %v2912_v6 = vpop.f32.mrf.mxu1  ;;  %v4407_v5 = vsel %vm11242_vm5, %v4393_v17, %v6445_v59  ;;  %v4086_v17 = vrot.slane %v10139_v38, 3 }
 0x555   : > { %v10131_v62 = vpop.permute.xlu0 %6547  ;;  %v4406_v22 = vsel %vm11241_vm13, %v4392_v31, %v6444_v44  ;;  %v4421_v12 = vsel %vm11244_vm6, %v4407_v5, %v6485_v25  ;;  %v6505_v51 = vunpack.i.h.bf16 %v6503_v57  ;;  %v6504_v40 = vunpack.i.l.bf16 %v6503_v57 }
 0x556   : > { %6817 = vrot.lane.b32.xlu1 %v6816_v3, %s7095_s16  ;;  %v6499_v3 = vunpack.i.l.bf16 %v10099_v41  ;;  %v4420_v52 = vsel %vm11243_vm1, %v4406_v22, %v6484_v43  ;;  %v5619_v18 = vpop.f32.mrf.mxu1  ;;  %v4435_v47 = vsel %vm1971_vm14, %v4421_v12, %v6490_v8  ;;  %v4043_v31 = vsel %vm11245_vm7, %v9994_v7, %v4042_v48 }
 0x557   : > { %6832 = vrot.lane.b32.xlu0 %v6831_v2, %s7090_s10  ;;  %v4434_v26 = vsel %vm1971_vm14, %v4420_v52, %v6489_v20  ;;  %v4449_v35 = vsel %vm1986_vm12, %v4435_v47, %v6495_v45  ;;  %v3998_v2 = vrot.slane %v10139_v38, 1  ;;  %vm11246_vm13 = vcmask 982016  }
 0x558   : > { %v6508_v58 = vpop.permute.xlu1 %6507  ;;  %v4448_v41 = vsel %vm1986_vm12, %v4434_v26, %v6494_v55  ;;  %v4463_v28 = vsel %vm2001_vm11, %v4449_v35, %v6500_v16  ;;  %vm11247_vm5 = vmmov %vm11246_vm13  ;;  %v6846_v8 = vpack.i.bf16 %v10137_v27, %v10010_v60  ;;  %v6861_v45 = vpack.i.bf16 %v4042_v48, %v4043_v31  ;;  %v7065_v26 = vld [vmem:[#allocation2 + $0x40] ss:$2 sm:$0xff] }
 0x559   : > { %v10162_v49 = vpop.permute.xlu0 %6552  ;;  %v6510_v56 = vunpack.i.h.bf16 %v6508_v58  ;;  %v6509_v19 = vunpack.i.l.bf16 %v6508_v58  ;;  %v4462_v23 = vsel %vm2001_vm11, %v4448_v41, %v6499_v3  ;;  %v4477_v32 = vsel %vm2016_vm2, %v4463_v28, %v6505_v51 }
 0x55a   : > { %6827 = vrot.lane.b32.xlu1 %v6826_v10, %s7096_s17  ;;  %v4130_v10 = vrot.slane %v10139_v38, 4  ;;  %v4476_v24 = vsel %vm2016_vm2, %v4462_v23, %v6504_v40  ;;  %vm11248_vm1 = vcmask 1046528   ;;  %vm11249_vm6 = vcmask 1043456   ;;  %v7064_v40 = vld [vmem:[#allocation2 + $0x50] ss:$2 sm:$0xff] }
 0x55b   : > { %6842 = vrot.lane.b32.xlu0 %v6841_v46, %s7091_s11  ;;  %v4490_v11 = vsel %vm2031_vm9, %v4476_v24, %v6509_v19  ;;  %v4491_v57 = vsel %vm2031_vm9, %v4477_v32, %v6510_v56  ;;  %v3999_v7 = vsel %vm11248_vm1, %v9972_v37, %v3998_v2  ;;  %v4174_v6 = vrot.slane %v10139_v38, 5 }
 0x55c   : > { %v6513_v42 = vpop.permute.xlu1 %6512  ;;  %v4131_v55 = vsel %vm11249_vm6, %v10038_v29, %v4130_v10  ;;  %vm11250_vm7 = vcmask 1044480   ;;  %v6525_v22 = vunpack.i.h.bf16 %v9998_v33  ;;  %v6524_v60 = vunpack.i.l.bf16 %v9998_v33 }
 0x55d   : > { %v10177_v1 = vpop.permute.xlu0 %6557  ;;  %v6515_v14 = vunpack.i.h.bf16 %v6513_v42  ;;  %v6514_v39 = vunpack.i.l.bf16 %v6513_v42  ;;  %v4087_v46 = vsel %vm11250_vm7, %v10020_v13, %v4086_v17  ;;  %v6530_v29 = vunpack.i.h.bf16 %v10024_v30 }
 0x55e   : > { %6837 = vrot.lane.b32.xlu1 %v6836_v50, %s11138_s18  ;;  %v6529_v27 = vunpack.i.l.bf16 %v10024_v30  ;;  %v6856_v13 = vpack.i.bf16 %v3998_v2, %v3999_v7  ;;  %v6871_v16 = vpack.i.bf16 %v4130_v10, %v4131_v55  ;;  %v6535_v33 = vunpack.i.h.bf16 %v10042_v53 }
 0x55f   : > { %6852 = vrot.lane.b32.xlu0 %v6851_v61, %s7084_s24  ;;  %v4504_v25 = vsel %vm11246_vm13, %v4490_v11, %v6514_v39  ;;  %v4505_v43 = vsel %vm11247_vm5, %v4491_v57, %v6515_v14  ;;  %vm11251_vm13 = vcmask 1041408   ;;  %v6534_v3 = vunpack.i.l.bf16 %v10042_v53 }
 0x560   : > { %v10193_v59 = vpop.permute.xlu1 %6592  ;;  %v4517_v20 = vpack.c.bf16 %v4505_v43, %v4504_v25  ;;  %v4219_v37 = vsel %vm11251_vm13, %v10052_v21, %v4218_v15  ;;  %v6866_v58 = vpack.i.bf16 %v4086_v17, %v4087_v46  ;;  %vm11252_vm5 = vcmask 1042432  }
 0x561   : > { %v10195_v44 = vpop.permute.xlu0 %6562  ;;  %v4175_v21 = vsel %vm11252_vm5, %v10047_v0, %v4174_v6  ;;  %v6540_v52 = vunpack.i.h.bf16 %v10067_v9  ;;  %v6539_v12 = vunpack.i.l.bf16 %v10067_v9  ;;  %v6881_v30 = vpack.i.bf16 %v4218_v15, %v4219_v37 }
 0x562   : > { %6847 = vrot.lane.b32.xlu1 %v6846_v8, %s11141_s22  ;;  %5679 = vmatmul.mubr.bf16.gmra.mxu1 %v4517_v20  ;;  %v4262_v51 = vrot.slane %v10139_v38, 7  ;;  %vm11253_vm1 = vcmask 64512   ;;  %v6545_v53 = vunpack.i.h.bf16 %v10101_v54  ;;  %v6544_v56 = vunpack.i.l.bf16 %v10101_v54 }
 0x563   : > { %6862 = vrot.lane.b32.xlu0 %v6861_v45, %s7093_s14  ;;  %5682 = vmatprep.mubr.msk.bf16.mxu1 %vm10893_vm4, %v7099_v36  ;;  %v4311_v18 = vsel %vm11253_vm1, %v7064_v40, %v6525_v22  ;;  %vm11254_vm6 = vmmov %vm11253_vm1  ;;  %vm11255_vm7 = vcmask 130048   ;;  %v6550_v19 = vunpack.i.h.bf16 %v10131_v62  ;;  %v6549_v38 = vunpack.i.l.bf16 %v10131_v62 }
 0x564   : > { %v10216_v48 = vpop.permute.xlu1 %6597  ;;  %v4310_v47 = vsel %vm11254_vm6, %v7065_v26, %v6524_v60  ;;  %vm11256_vm13 = vmmov %vm11255_vm7  ;;  %vm11257_vm5 = vcmask 195584   ;;  %v6555_v23 = vunpack.i.h.bf16 %v10162_v49  ;;  %v6554_v54 = vunpack.i.l.bf16 %v10162_v49 }
 0x565   : > { %v10218_v5 = vpop.permute.xlu0 %6567  ;;  %v4324_v0 = vsel %vm11255_vm7, %v4310_v47, %v6529_v27  ;;  %v4325_v9 = vsel %vm11256_vm13, %v4311_v18, %v6530_v29  ;;  %vm11258_vm1 = vmmov %vm11257_vm5  ;;  %vm11259_vm6 = vcmask 261120   ;;  %vm11261_vm13 = vcmask 326656  }
 0x566   : > { %6857 = vrot.lane.b32.xlu1 %v6856_v13, %s7092_s12  ;;  %v4338_v50 = vsel %vm11257_vm5, %v4324_v0, %v6534_v3  ;;  %v4339_v61 = vsel %vm11258_vm1, %v4325_v9, %v6535_v33  ;;  %vm11260_vm7 = vmmov %vm11259_vm6  ;;  %v6876_v49 = vpack.i.bf16 %v4174_v6, %v4175_v21  ;;  %vm11263_vm5 = vcmask 1040384  }
 0x567   : > { %6872 = vrot.lane.b32.xlu0 %v6871_v16, %s7095_s16  ;;  %v4352_v28 = vsel %vm11259_vm6, %v4338_v50, %v6539_v12  ;;  %v4353_v42 = vsel %vm11260_vm7, %v4339_v61, %v6540_v52  ;;  %vm11262_vm8 = vmmov %vm11261_vm13  ;;  %v4263_v39 = vsel %vm11263_vm5, %v10089_v4, %v4262_v51  ;;  %v6560_v31 = vunpack.i.h.bf16 %v10177_v1 }
 0x568   : > { %v10237_v41 = vpop.permute.xlu1 %6602  ;;  %v4366_v2 = vsel %vm11261_vm13, %v4352_v28, %v6544_v56  ;;  %v4367_v62 = vsel %vm11262_vm8, %v4353_v42, %v6545_v53  ;;  %v6559_v17 = vunpack.i.l.bf16 %v10177_v1  ;;  %v6520_v25 = vunpack.i.h.bf16 %v9976_v63 }
 0x569   : > { %v6573_v35 = vpop.permute.xlu0 %6572  ;;  %v4380_v10 = vsel %vm535_vm0, %v4366_v2, %v6549_v38  ;;  %v4381_v24 = vsel %vm535_vm0, %v4367_v62, %v6550_v19  ;;  %v6519_v43 = vunpack.i.l.bf16 %v9976_v63  ;;  %v6565_v15 = vunpack.i.h.bf16 %v10195_v44 }
 0x56a   : > { %6867 = vrot.lane.b32.xlu1 %v6866_v58, %s7094_s15  ;;  %v4394_v11 = vsel %vm1926_vm15, %v4380_v10, %v6554_v54  ;;  %v4395_v57 = vsel %vm1926_vm15, %v4381_v24, %v6555_v23  ;;  %v6564_v8 = vunpack.i.l.bf16 %v10195_v44  ;;  %v6570_v4 = vunpack.i.h.bf16 %v10218_v5 }
 0x56b   : > { %6882 = vrot.lane.b32.xlu0 %v6881_v30, %s11138_s18  ;;  %v6569_v20 = vunpack.i.l.bf16 %v10218_v5  ;;  %v6886_v45 = vpack.i.bf16 %v4262_v51, %v4263_v39  ;;  %vm11264_vm8 = vcmask 523264   ;;  %v6575_v1 = vunpack.i.h.bf16 %v6573_v35 }
 0x56c   : > { %v10251_v32 = vpop.permute.xlu1 %6607  ;;  %v4408_v7 = vsel %vm11264_vm8, %v4394_v11, %v6519_v43  ;;  %vm11265_vm1 = vmmov %vm11264_vm8  ;;  %v6574_v6 = vunpack.i.l.bf16 %v6573_v35  ;;  %vm11266_vm6 = vcmask 588800   ;;  %vm11268_vm13 = vcmask 982016   ;;  %v7066_v11 = vld [vmem:[#allocation2 + $0x70] ss:$2 sm:$0xff] }
 0x56d   : > { %v6578_v14 = vpop.permute.xlu0 %6577  ;;  %v4409_v55 = vsel %vm11265_vm1, %v4395_v57, %v6520_v25  ;;  %v4422_v22 = vsel %vm11266_vm6, %v4408_v7, %v6559_v17  ;;  %vm11267_vm7 = vmmov %vm11266_vm6  ;;  %v6600_v54 = vunpack.i.h.bf16 %v10216_v48  ;;  %v6599_v28 = vunpack.i.l.bf16 %v10216_v48 }
 0x56e   : > { %6877 = vrot.lane.b32.xlu1 %v6876_v49, %s7096_s17  ;;  %v4423_v44 = vsel %vm11267_vm7, %v4409_v55, %v6560_v31  ;;  %v6580_v60 = vunpack.i.h.bf16 %v6578_v14  ;;  %v6579_v37 = vunpack.i.l.bf16 %v6578_v14  ;;  %v4436_v29 = vsel %vm1971_vm14, %v4422_v22, %v6564_v8  ;;  %vm11269_vm5 = vmmov %vm11268_vm13  ;;  %v7067_v31 = vld [vmem:[#allocation2 + $0x60] ss:$2 sm:$0xff] }
 0x56f   : > { %v4437_v27 = vsel %vm1971_vm14, %v4423_v44, %v6565_v15  ;;  %v4450_v16 = vsel %vm1986_vm12, %v4436_v29, %v6569_v20  ;;  %v6605_v42 = vunpack.i.h.bf16 %v10237_v41  ;;  %v6604_v2 = vunpack.i.l.bf16 %v10237_v41 }
 0x570   : > { %v10268_v46 = vpop.permute.xlu1 %6612  ;;  %v4451_v33 = vsel %vm1986_vm12, %v4437_v27, %v6570_v4  ;;  %v4464_v3 = vsel %vm2001_vm11, %v4450_v16, %v6574_v6  ;;  %v6610_v24 = vunpack.i.h.bf16 %v10251_v32  ;;  %v6609_v14 = vunpack.i.l.bf16 %v10251_v32 }
 0x571   : > { %v6583_v63 = vpop.permute.xlu0 %6582  ;;  %v4465_v58 = vsel %vm2001_vm11, %v4451_v33, %v6575_v1  ;;  %v4478_v12 = vsel %vm2016_vm2, %v4464_v3, %v6579_v37  ;;  %v6615_v49 = vunpack.i.h.bf16 %v10268_v46  ;;  %v6614_v39 = vunpack.i.l.bf16 %v10268_v46 }
 0x572   : > { %v6585_v5 = vunpack.i.h.bf16 %v6583_v63  ;;  %v6584_v13 = vunpack.i.l.bf16 %v6583_v63  ;;  %6887 = vrot.lane.b32.xlu1 %v6886_v45, %s11141_s22  ;;  %v4479_v30 = vsel %vm2016_vm2, %v4465_v58, %v6580_v60  ;;  %vm11270_vm8 = vcmask 64512  }
 0x573   : > { %v4313_v57 = vsel %vm11270_vm8, %v7066_v11, %v6600_v54  ;;  %vm11271_vm1 = vmmov %vm11270_vm8  ;;  %vm11272_vm6 = vcmask 130048   ;;  %vm11276_vm8 = vcmask 261120   ;;  %v6595_v16 = vunpack.i.h.bf16 %v10193_v59 }
 0x574   : > { %v6618_v21 = vpop.permute.xlu1 %6617  ;;  %v4492_v18 = vsel %vm2031_vm9, %v4478_v12, %v6584_v13  ;;  %v4493_v26 = vsel %vm2031_vm9, %v4479_v30, %v6585_v5  ;;  %v4312_v48 = vsel %vm11271_vm1, %v7067_v31, %v6599_v28  ;;  %vm11273_vm7 = vmmov %vm11272_vm6  ;;  %v6594_v33 = vunpack.i.l.bf16 %v10193_v59 }
 0x575   : > { %v6588_v52 = vpop.permute.xlu0 %6587  ;;  %v6620_v17 = vunpack.i.h.bf16 %v6618_v21  ;;  %v6619_v25 = vunpack.i.l.bf16 %v6618_v21  ;;  %v4326_v41 = vsel %vm11272_vm6, %v4312_v48, %v6604_v2  ;;  %v4327_v43 = vsel %vm11273_vm7, %v4313_v57, %v6605_v42  ;;  %vm11277_vm1 = vmmov %vm11276_vm8 }
 0x576   : > { %v6590_v51 = vunpack.i.h.bf16 %v6588_v52  ;;  %v6589_v40 = vunpack.i.l.bf16 %v6588_v52  ;;  %vm11279_vm6 = vmmov %vm11278_vm3 }
 0x578   : > { %v4506_v47 = vsel %vm11268_vm13, %v4492_v18, %v6589_v40  ;;  %v4507_v53 = vsel %vm11269_vm5, %v4493_v26, %v6590_v51  ;;  %v6623_v56 = vpop.permute.xlu1 %6622  ;;  %vm11274_vm13 = vcmask 195584  }
 0x579   : > { %v10285_v0 = vpop.permute.xlu0 %6667  ;;  %v4518_v9 = vpack.c.bf16 %v4507_v53, %v4506_v47  ;;  %v6625_v15 = vunpack.i.h.bf16 %v6623_v56  ;;  %v6624_v8 = vunpack.i.l.bf16 %v6623_v56  ;;  %v4340_v20 = vsel %vm11274_vm13, %v4326_v41, %v6609_v14  ;;  %vm11275_vm5 = vmmov %vm11274_vm13 }
 0x57a   : > { %v4341_v45 = vsel %vm11275_vm5, %v4327_v43, %v6610_v24  ;;  %v4354_v1 = vsel %vm11276_vm8, %v4340_v20, %v6614_v39  ;;  %vm11282_vm13 = vcmask 588800   ;;  %vm11284_vm8 = vcmask 982016  }
 0x57b   : > { %5683 = vmatmul.mubr.bf16.gmra.mxu1 %v4518_v9  ;;  %v4355_v6 = vsel %vm11277_vm1, %v4341_v45, %v6615_v49  ;;  %v4368_v46 = vsel %vm11278_vm3, %v4354_v1, %v6619_v25  ;;  %vm11280_vm3 = vcmask 523264   ;;  %vm11283_vm5 = vmmov %vm11282_vm13 }
 0x57c   : > { %5686 = vmatprep.mubr.msk.bf16.mxu1 %vm10893_vm4, %v7099_v36  ;;  %v6628_v19 = vpop.permute.xlu1 %6627  ;;  %v4369_v63 = vsel %vm11279_vm6, %v4355_v6, %v6620_v17  ;;  %v4382_v22 = vsel %vm535_vm0, %v4368_v46, %v6624_v8  ;;  %vm11281_vm7 = vmmov %vm11280_vm3  ;;  %vm11286_vm6 = vcmask 64512  }
 0x57d   : > { %v10289_v38 = vpop.permute.xlu0 %6672  ;;  %v6630_v7 = vunpack.i.h.bf16 %v6628_v19  ;;  %v6629_v55 = vunpack.i.l.bf16 %v6628_v19  ;;  %v4383_v44 = vsel %vm535_vm0, %v4369_v63, %v6625_v15  ;;  %vm11285_vm1 = vmmov %vm11284_vm8  ;;  %v7068_v63 = vld [vmem:[#allocation2 + $0x90] ss:$2 sm:$0xff] }
 0x57e   : > { %v6675_v15 = vunpack.i.h.bf16 %v10289_v38  ;;  %v6674_v8 = vunpack.i.l.bf16 %v10289_v38 }
 0x57f   : > { %v4396_v29 = vsel %vm1926_vm15, %v4382_v22, %v6629_v55  ;;  %v4397_v27 = vsel %vm1926_vm15, %v4383_v44, %v6630_v7  ;;  %v7069_v22 = vld [vmem:[#allocation2 + $0x80] ss:$2 sm:$0xff] }
 0x580   : > { %v6633_v35 = vpop.permute.xlu1 %6632  ;;  %v4410_v12 = vsel %vm11280_vm3, %v4396_v29, %v6594_v33  ;;  %v4411_v30 = vsel %vm11281_vm7, %v4397_v27, %v6595_v16  ;;  %v4315_v38 = vsel %vm11286_vm6, %v7068_v63, %v6675_v15  ;;  %vm11287_vm3 = vmmov %vm11286_vm6  ;;  %vm11288_vm7 = vcmask 130048  }
 0x581   : > { %v10291_v50 = vpop.permute.xlu0 %6677  ;;  %v6635_v5 = vunpack.i.h.bf16 %v6633_v35  ;;  %v6634_v13 = vunpack.i.l.bf16 %v6633_v35  ;;  %v4314_v44 = vsel %vm11287_vm3, %v7069_v22, %v6674_v8  ;;  %vm11294_vm3 = vcmask 326656  }
 0x582   : > { %v6679_v20 = vunpack.i.l.bf16 %v10291_v50 }
 0x583   : > { %v4424_v47 = vsel %vm11282_vm13, %v4410_v12, %v6634_v13  ;;  %v4425_v53 = vsel %vm11283_vm5, %v4411_v30, %v6635_v5  ;;  %vm11289_vm13 = vmmov %vm11288_vm7  ;;  %vm11290_vm5 = vcmask 195584  }
 0x584   : > { %v6638_v61 = vpop.permute.xlu1 %6637  ;;  %v4328_v29 = vsel %vm11288_vm7, %v4314_v44, %v6679_v20  ;;  %vm11295_vm7 = vmmov %vm11294_vm3 }
 0x585   : > { %v10293_v23 = vpop.permute.xlu0 %6682  ;;  %v6640_v3 = vunpack.i.h.bf16 %v6638_v61  ;;  %v6639_v58 = vunpack.i.l.bf16 %v6638_v61 }
 0x586   : > { %v6685_v55 = vunpack.i.h.bf16 %v10293_v23  ;;  %v6684_v1 = vunpack.i.l.bf16 %v10293_v23 }
 0x587   : > { %v4438_v59 = vsel %vm1971_vm14, %v4424_v47, %v6639_v58  ;;  %v4439_v19 = vsel %vm1971_vm14, %v4425_v53, %v6640_v3 }
 0x588   : > { %v6643_v62 = vpop.permute.xlu1 %6642  ;;  %v4342_v16 = vsel %vm11290_vm5, %v4328_v29, %v6684_v1 }
 0x589   : > { %v10299_v10 = vpop.permute.xlu0 %6687  ;;  %v6645_v21 = vunpack.i.h.bf16 %v6643_v62  ;;  %v6644_v52 = vunpack.i.l.bf16 %v6643_v62 }
 0x58a   : > { %v6690_v6 = vunpack.i.h.bf16 %v10299_v10  ;;  %v6689_v46 = vunpack.i.l.bf16 %v10299_v10 }
 0x58b   : > { %v4452_v54 = vsel %vm1986_vm12, %v4438_v59, %v6644_v52  ;;  %v4453_v28 = vsel %vm1986_vm12, %v4439_v19, %v6645_v21 }
 0x58c   : > { %v6648_v4 = vpop.permute.xlu1 %6647 }
 0x58d   : > { %v10309_v32 = vpop.permute.xlu0 %6692  ;;  %v6650_v51 = vunpack.i.h.bf16 %v6648_v4  ;;  %v6649_v40 = vunpack.i.l.bf16 %v6648_v4  ;;  %v6680_v4 = vunpack.i.h.bf16 %v10291_v50 }
 0x58e   : > { %v6694_v50 = vunpack.i.l.bf16 %v10309_v32 }
 0x58f   : > { %v4466_v42 = vsel %vm2001_vm11, %v4452_v54, %v6649_v40  ;;  %v4467_v2 = vsel %vm2001_vm11, %v4453_v28, %v6650_v51  ;;  %v4329_v27 = vsel %vm11289_vm13, %v4315_v38, %v6680_v4  ;;  %vm11296_vm13 = vcmask 523264  }
 0x590   : > { %v6653_v60 = vpop.permute.xlu1 %6652 }
 0x591   : > { %v10319_v37 = vpop.permute.xlu0 %6697  ;;  %v6655_v56 = vunpack.i.h.bf16 %v6653_v60  ;;  %v6654_v9 = vunpack.i.l.bf16 %v6653_v60  ;;  %v6695_v60 = vunpack.i.h.bf16 %v10309_v32 }
 0x592   : > { %v6700_v23 = vunpack.i.h.bf16 %v10319_v37  ;;  %v6699_v5 = vunpack.i.l.bf16 %v10319_v37 }
 0x593   : > { %v4480_v14 = vsel %vm2016_vm2, %v4466_v42, %v6654_v9  ;;  %v4481_v49 = vsel %vm2016_vm2, %v4467_v2, %v6655_v56  ;;  %v6670_v56 = vunpack.i.h.bf16 %v10285_v0  ;;  %v6669_v9 = vunpack.i.l.bf16 %v10285_v0 }
 0x594   : > { %v6658_v18 = vpop.permute.xlu1 %6657 }
 0x595   : > { %v10327_v26 = vpop.permute.xlu0 %6702  ;;  %v6660_v35 = vunpack.i.h.bf16 %v6658_v18  ;;  %v6659_v61 = vunpack.i.l.bf16 %v6658_v18 }
 0x596   : > { %v6705_v3 = vunpack.i.h.bf16 %v10327_v26  ;;  %v6704_v58 = vunpack.i.l.bf16 %v10327_v26 }
 0x597   : > { %v4494_v57 = vsel %vm2031_vm9, %v4480_v14, %v6659_v61  ;;  %v4495_v31 = vsel %vm2031_vm9, %v4481_v49, %v6660_v35 }
 0x598   : > { %v6663_v62 = vpop.permute.xlu1 %6662 }
 0x599   : > { %v10337_v24 = vpop.permute.xlu0 %6707  ;;  %v6665_v39 = vunpack.i.h.bf16 %v6663_v62  ;;  %v6664_v11 = vunpack.i.l.bf16 %v6663_v62 }
 0x59a   : > { %v6710_v26 = vunpack.i.h.bf16 %v10337_v24  ;;  %v6709_v53 = vunpack.i.l.bf16 %v10337_v24 }
 0x59b   : > { %v4508_v48 = vsel %vm11284_vm8, %v4494_v57, %v6664_v11  ;;  %v4509_v17 = vsel %vm11285_vm1, %v4495_v31, %v6665_v39  ;;  %vm11291_vm8 = vmmov %vm11290_vm5  ;;  %vm11292_vm1 = vcmask 261120  }
 0x59c   : > { %v10345_v25 = vpop.permute.xlu1 %6742  ;;  %v4519_v43 = vpack.c.bf16 %v4509_v17, %v4508_v48  ;;  %v4343_v33 = vsel %vm11291_vm8, %v4329_v27, %v6685_v55  ;;  %v4356_v32 = vsel %vm11292_vm1, %v4342_v16, %v6689_v46  ;;  %vm11293_vm6 = vmmov %vm11292_vm1  ;;  %vm11298_vm8 = vcmask 588800  }
 0x59d   : > { %v6713_v41 = vpop.permute.xlu0 %6712  ;;  %v4357_v21 = vsel %vm11293_vm6, %v4343_v33, %v6690_v6  ;;  %v4370_v52 = vsel %vm11294_vm3, %v4356_v32, %v6694_v50  ;;  %vm11297_vm5 = vmmov %vm11296_vm13  ;;  %vm11300_vm6 = vcmask 982016  }
 0x59e   : > { %5687 = vmatmul.mubr.bf16.gmra.mxu1 %v4519_v43  ;;  %v4371_v12 = vsel %vm11295_vm7, %v4357_v21, %v6695_v60  ;;  %v4384_v37 = vsel %vm535_vm0, %v4370_v52, %v6699_v5  ;;  %v6715_v59 = vunpack.i.h.bf16 %v6713_v41  ;;  %v6714_v19 = vunpack.i.l.bf16 %v6713_v41  ;;  %vm11299_vm1 = vmmov %vm11298_vm8 }
 0x59f   : > { %5690 = vmatprep.mubr.msk.bf16.mxu1 %vm10893_vm4, %v7099_v36  ;;  %v4385_v30 = vsel %vm535_vm0, %v4371_v12, %v6700_v23  ;;  %v4398_v18 = vsel %vm1926_vm15, %v4384_v37, %v6704_v58  ;;  %vm11301_vm3 = vmmov %vm11300_vm6  ;;  %v7070_v37 = vld [vmem:[#allocation2 + $0xb0] ss:$2 sm:$0xff]  ;;  %vm11302_vm7 = vcmask 64512  }
 0x5a0   : > { %v10353_v45 = vpop.permute.xlu1 %6747  ;;  %v4399_v47 = vsel %vm1926_vm15, %v4385_v30, %v6705_v3  ;;  %v4412_v54 = vsel %vm11296_vm13, %v4398_v18, %v6669_v9  ;;  %vm11303_vm13 = vmmov %vm11302_vm7 }
 0x5a1   : > { %v6718_v7 = vpop.permute.xlu0 %6717  ;;  %v4413_v28 = vsel %vm11297_vm5, %v4399_v47, %v6670_v56  ;;  %v4426_v49 = vsel %vm11298_vm8, %v4412_v54, %v6709_v53  ;;  %v6750_v5 = vunpack.i.h.bf16 %v10353_v45  ;;  %vm11304_vm5 = vcmask 130048  }
 0x5a2   : > { %v6720_v35 = vunpack.i.h.bf16 %v6718_v7  ;;  %v6719_v61 = vunpack.i.l.bf16 %v6718_v7  ;;  %v4427_v24 = vsel %vm11299_vm1, %v4413_v28, %v6710_v26  ;;  %v4440_v0 = vsel %vm1971_vm14, %v4426_v49, %v6714_v19  ;;  %vm11305_vm8 = vmmov %vm11304_vm5 }
 0x5a3   : > { %v4441_v57 = vsel %vm1971_vm14, %v4427_v24, %v6715_v59  ;;  %v4317_v30 = vsel %vm11302_vm7, %v7070_v37, %v6750_v5  ;;  %vm11306_vm1 = vcmask 195584  }
 0x5a4   : > { %v10367_v13 = vpop.permute.xlu1 %6752  ;;  %v4454_v17 = vsel %vm1986_vm12, %v4440_v0, %v6719_v61  ;;  %v4455_v41 = vsel %vm1986_vm12, %v4441_v57, %v6720_v35 }
 0x5a5   : > { %v6723_v10 = vpop.permute.xlu0 %6722  ;;  %v6755_v3 = vunpack.i.h.bf16 %v10367_v13  ;;  %v6754_v58 = vunpack.i.l.bf16 %v10367_v13 }
 0x5a6   : > { %v6725_v42 = vunpack.i.h.bf16 %v6723_v10  ;;  %v6724_v2 = vunpack.i.l.bf16 %v6723_v10  ;;  %v6749_v10 = vunpack.i.l.bf16 %v10353_v45 }
 0x5a7   : > { %v4331_v56 = vsel %vm11305_vm8, %v4317_v30, %v6755_v3  ;;  %vm11314_vm8 = vcmask 523264  }
 0x5a8   : > { %v10379_v51 = vpop.permute.xlu1 %6757  ;;  %v4468_v43 = vsel %vm2001_vm11, %v4454_v17, %v6724_v2  ;;  %v4469_v15 = vsel %vm2001_vm11, %v4455_v41, %v6725_v42 }
 0x5a9   : > { %v6728_v40 = vpop.permute.xlu0 %6727  ;;  %v6760_v32 = vunpack.i.h.bf16 %v10379_v51  ;;  %v6759_v21 = vunpack.i.l.bf16 %v10379_v51 }
 0x5aa   : > { %v6730_v39 = vunpack.i.h.bf16 %v6728_v40  ;;  %v6729_v11 = vunpack.i.l.bf16 %v6728_v40  ;;  %v7071_v40 = vld [vmem:[#allocation2 + $0xa0] ss:$2 sm:$0xff] }
 0x5ab   : > { %v4316_v45 = vsel %vm11303_vm13, %v7071_v40, %v6749_v10  ;;  %vm11310_vm13 = vcmask 326656  }
 0x5ac   : > { %v6763_v62 = vpop.permute.xlu1 %6762  ;;  %v4482_v20 = vsel %vm2016_vm2, %v4468_v43, %v6729_v11  ;;  %v4483_v7 = vsel %vm2016_vm2, %v4469_v15, %v6730_v39  ;;  %v4330_v13 = vsel %vm11304_vm5, %v4316_v45, %v6754_v58  ;;  %vm11311_vm10 = vmmov %vm11310_vm13  ;;  %v6745_v43 = vunpack.i.h.bf16 %v10345_v25 }
 0x5ad   : > { %v6733_v14 = vpop.permute.xlu0 %6732  ;;  %v6765_v52 = vunpack.i.h.bf16 %v6763_v62  ;;  %v6764_v12 = vunpack.i.l.bf16 %v6763_v62  ;;  %v4344_v59 = vsel %vm11306_vm1, %v4330_v13, %v6759_v21  ;;  %v6744_v15 = vunpack.i.l.bf16 %v10345_v25 }
 0x5ae   : > { %v6735_v31 = vunpack.i.h.bf16 %v6733_v14  ;;  %v6734_v48 = vunpack.i.l.bf16 %v6733_v14 }
 0x5b0   : > { %v6768_v8 = vpop.permute.xlu1 %6767  ;;  %v4496_v6 = vsel %vm2031_vm9, %v4482_v20, %v6734_v48  ;;  %v4497_v46 = vsel %vm2031_vm9, %v4483_v7, %v6735_v31  ;;  %v7072_v7 = vld [vmem:[#allocation2 + $0xc0] ss:$2 sm:$0xff] }
 0x5b1   : > { %v6738_v4 = vpop.permute.xlu0 %6737  ;;  %v6770_v18 = vunpack.i.h.bf16 %v6768_v8  ;;  %v6769_v47 = vunpack.i.l.bf16 %v6768_v8 }
 0x5b2   : > { %v6740_v55 = vunpack.i.h.bf16 %v6738_v4  ;;  %v6739_v1 = vunpack.i.l.bf16 %v6738_v4 }
 0x5b4   : > { %v4510_v63 = vsel %vm11300_vm6, %v4496_v6, %v6739_v1  ;;  %v4511_v38 = vsel %vm11301_vm3, %v4497_v46, %v6740_v55  ;;  %v6773_v22 = vpop.permute.xlu1 %6772  ;;  %vm11307_vm6 = vmmov %vm11306_vm1  ;;  %vm11308_vm3 = vcmask 261120  }
 0x5b5   : > { %v6783_v44 = vpop.permute.xlu0 %6782  ;;  %v4520_v60 = vpack.c.bf16 %v4511_v38, %v4510_v63  ;;  %v6775_v9 = vunpack.i.h.bf16 %v6773_v22  ;;  %v6774_v51 = vunpack.i.l.bf16 %v6773_v22  ;;  %v4345_v19 = vsel %vm11307_vm6, %v4331_v56, %v6760_v32  ;;  %vm11309_vm7 = vmmov %vm11308_vm3 }
 0x5b6   : > { %v4358_v54 = vsel %vm11308_vm3, %v4344_v59, %v6764_v12  ;;  %v4359_v28 = vsel %vm11309_vm7, %v4345_v19, %v6765_v52  ;;  %v6785_v62 = vunpack.i.h.bf16 %v6783_v44  ;;  %v6784_v14 = vunpack.i.l.bf16 %v6783_v44  ;;  %vm11315_vm1 = vmmov %vm11314_vm8 }
 0x5b7   : > { %5691 = vmatmul.mubr.bf16.gmra.mxu1 %v4520_v60  ;;  %v4372_v42 = vsel %vm11310_vm13, %v4358_v54, %v6769_v47  ;;  %v4373_v2 = vsel %vm11311_vm10, %v4359_v28, %v6770_v18  ;;  %vm11312_vm10 = vcmask 64512   ;;  %vm11316_vm6 = vcmask 130048  }
 0x5b8   : > { %5694 = vmatprep.mubr.msk.bf16.mxu1 %vm10893_vm4, %v7099_v36  ;;  %v6778_v50 = vpop.permute.xlu1 %6777  ;;  %v4386_v39 = vsel %vm535_vm0, %v4372_v42, %v6774_v51  ;;  %v4387_v11 = vsel %vm535_vm0, %v4373_v2, %v6775_v9  ;;  %v4319_v20 = vsel %vm11312_vm10, %v9961_v34, %v6785_v62  ;;  %vm11313_vm5 = vmmov %vm11312_vm10  ;;  %vm11318_vm7 = vcmask 588800  }
 0x5b9   : > { %v10405_v29 = vpop.permute.xlu0 %6792  ;;  %v6780_v35 = vunpack.i.h.bf16 %v6778_v50  ;;  %v6779_v61 = vunpack.i.l.bf16 %v6778_v50  ;;  %v4318_v55 = vsel %vm11313_vm5, %v7072_v7, %v6784_v14  ;;  %vm11317_vm3 = vmmov %vm11316_vm6  ;;  %vm11320_vm10 = vcmask 195584  }
 0x5ba   : > { %v6795_v0 = vunpack.i.h.bf16 %v10405_v29  ;;  %v6794_v57 = vunpack.i.l.bf16 %v10405_v29  ;;  %vm11319_vm13 = vmmov %vm11318_vm7 }
 0x5bb   : > { %v4400_v31 = vsel %vm1926_vm15, %v4386_v39, %v6779_v61  ;;  %v4401_v48 = vsel %vm1926_vm15, %v4387_v11, %v6780_v35  ;;  %vm11321_vm5 = vmmov %vm11320_vm10 }
 0x5bc   : > { %v10407_v27 = vpop.permute.xlu1 %6787  ;;  %v4414_v38 = vsel %vm11314_vm8, %v4400_v31, %v6744_v15  ;;  %v4415_v25 = vsel %vm11315_vm1, %v4401_v48, %v6745_v43  ;;  %v4332_v60 = vsel %vm11316_vm6, %v4318_v55, %v6794_v57  ;;  %v4333_v34 = vsel %vm11317_vm3, %v4319_v20, %v6795_v0 }
 0x5bd   : > { %v10409_v23 = vpop.permute.xlu0 %6802  ;;  %v6790_v17 = vunpack.i.h.bf16 %v10407_v27  ;;  %v6789_v41 = vunpack.i.l.bf16 %v10407_v27  ;;  %vm11322_vm8 = vcmask 261120   ;;  %vm11324_vm6 = vcmask 326656  }
 0x5be   : > { %v6805_v8 = vunpack.i.h.bf16 %v10409_v23  ;;  %v6804_v4 = vunpack.i.l.bf16 %v10409_v23  ;;  %vm11323_vm1 = vmmov %vm11322_vm8 }
 0x5bf   : > { %v4428_v50 = vsel %vm11318_vm7, %v4414_v38, %v6789_v41  ;;  %v4429_v29 = vsel %vm11319_vm13, %v4415_v25, %v6790_v17  ;;  %vm11325_vm3 = vmmov %vm11324_vm6  ;;  %vm11326_vm7 = vcmask 982016  }
 0x5c0   : > { %v10413_v16 = vpop.permute.xlu1 %6797  ;;  %v4346_v27 = vsel %vm11320_vm10, %v4332_v60, %v6804_v4  ;;  %v4347_v23 = vsel %vm11321_vm5, %v4333_v34, %v6805_v8  ;;  %vm11327_vm13 = vmmov %vm11326_vm7  ;;  %vm11328_vm10 = vcmask 523264  }
 0x5c1   : > { %v10415_v33 = vpop.permute.xlu0 %6812  ;;  %v6800_v1 = vunpack.i.h.bf16 %v10413_v16  ;;  %v6799_v6 = vunpack.i.l.bf16 %v10413_v16  ;;  %vm11329_vm5 = vmmov %vm11328_vm10 }
 0x5c2   : > { %v6815_v22 = vunpack.i.h.bf16 %v10415_v33  ;;  %v6814_v44 = vunpack.i.l.bf16 %v10415_v33 }
 0x5c3   : > { %v4442_v16 = vsel %vm1971_vm14, %v4428_v50, %v6799_v6  ;;  %v4443_v33 = vsel %vm1971_vm14, %v4429_v29, %v6800_v1 }
 0x5c4   : > { %v10423_v26 = vpop.permute.xlu1 %6807  ;;  %v4360_v52 = vsel %vm11322_vm8, %v4346_v27, %v6814_v44  ;;  %v4361_v12 = vsel %vm11323_vm1, %v4347_v23, %v6815_v22  ;;  %vm11330_vm8 = vcmask 588800  }
 0x5c5   : > { %v10425_v53 = vpop.permute.xlu0 %6822  ;;  %v6810_v5 = vunpack.i.h.bf16 %v10423_v26  ;;  %v6809_v10 = vunpack.i.l.bf16 %v10423_v26  ;;  %vm11331_vm1 = vmmov %vm11330_vm8 }
 0x5c6   : > { %v6825_v40 = vunpack.i.h.bf16 %v10425_v53  ;;  %v6824_v45 = vunpack.i.l.bf16 %v10425_v53 }
 0x5c7   : > { %v4456_v26 = vsel %vm1986_vm12, %v4442_v16, %v6809_v10  ;;  %v4457_v13 = vsel %vm1986_vm12, %v4443_v33, %v6810_v5 }
 0x5c8   : > { %v6818_v49 = vpop.permute.xlu1 %6817  ;;  %v4374_v39 = vsel %vm11324_vm6, %v4360_v52, %v6824_v45  ;;  %v4375_v11 = vsel %vm11325_vm3, %v4361_v12, %v6825_v40 }
 0x5c9   : > { %v10435_v24 = vpop.permute.xlu0 %6832  ;;  %v6820_v3 = vunpack.i.h.bf16 %v6818_v49  ;;  %v6819_v58 = vunpack.i.l.bf16 %v6818_v49 }
 0x5ca   : > { %v6835_v56 = vunpack.i.h.bf16 %v10435_v24  ;;  %v6834_v9 = vunpack.i.l.bf16 %v10435_v24 }
 0x5cb   : > { %v4470_v51 = vsel %vm2001_vm11, %v4456_v26, %v6819_v58  ;;  %v4471_v59 = vsel %vm2001_vm11, %v4457_v13, %v6820_v3 }
 0x5cc   : > { %v6828_v46 = vpop.permute.xlu1 %6827  ;;  %v4388_v31 = vsel %vm535_vm0, %v4374_v39, %v6834_v9  ;;  %v4389_v48 = vsel %vm535_vm0, %v4375_v11, %v6835_v56  ;;  %v10513_v56 = vld [vmem:[%s10846_s4] ss:$0 sm:$0xff] }
 0x5cd   : > { %v6843_v63 = vpop.permute.xlu0 %6842  ;;  %v6830_v37 = vunpack.i.h.bf16 %v6828_v46  ;;  %v6829_v30 = vunpack.i.l.bf16 %v6828_v46 }
 0x5ce   : > { %v6845_v19 = vunpack.i.h.bf16 %v6843_v63  ;;  %v6844_v35 = vunpack.i.l.bf16 %v6843_v63 }
 0x5cf   : > { %v4484_v54 = vsel %vm2016_vm2, %v4470_v51, %v6829_v30  ;;  %v4485_v53 = vsel %vm2016_vm2, %v4471_v59, %v6830_v37 }
 0x5d0   : > { %v6838_v32 = vpop.permute.xlu1 %6837  ;;  %v4402_v43 = vsel %vm1926_vm15, %v4388_v31, %v6844_v35  ;;  %v4403_v15 = vsel %vm1926_vm15, %v4389_v48, %v6845_v19  ;;  %vm11333_vm15 = vmmov %vm11326_vm7 }
 0x5d1   : > { %v6853_v21 = vpop.permute.xlu0 %6852  ;;  %v6840_v18 = vunpack.i.h.bf16 %v6838_v32  ;;  %v6839_v47 = vunpack.i.l.bf16 %v6838_v32 }
 0x5d2   : > { %v6855_v49 = vunpack.i.h.bf16 %v6853_v21  ;;  %v6854_v24 = vunpack.i.l.bf16 %v6853_v21 }
 0x5d3   : > { %v4498_v62 = vsel %vm2031_vm9, %v4484_v54, %v6839_v47  ;;  %v4499_v14 = vsel %vm2031_vm9, %v4485_v53, %v6840_v18 }
 0x5d4   : > { %v6848_v61 = vpop.permute.xlu1 %6847  ;;  %v4416_v20 = vsel %vm11328_vm10, %v4402_v43, %v6854_v24  ;;  %v4417_v7 = vsel %vm11329_vm5, %v4403_v15, %v6855_v49 }
 0x5d5   : > { %v6850_v28 = vunpack.i.h.bf16 %v6848_v61  ;;  %v6849_v42 = vunpack.i.l.bf16 %v6848_v61  ;;  %v6863_v2 = vpop.permute.xlu0 %6862 }
 0x5d6   : > { %v6865_v46 = vunpack.i.h.bf16 %v6863_v2  ;;  %v6864_v63 = vunpack.i.l.bf16 %v6863_v2 }
 0x5d7   : > { %v4512_v0 = vsel %vm11326_vm7, %v4498_v62, %v6849_v42  ;;  %v4513_v57 = vsel %vm11327_vm13, %v4499_v14, %v6850_v28 }
 0x5d8   : > { %v6858_v17 = vpop.permute.xlu1 %6857  ;;  %v4521_v41 = vpack.c.bf16 %v4513_v57, %v4512_v0 }
 0x5d9   : > { %v6860_v8 = vunpack.i.h.bf16 %v6858_v17  ;;  %v6859_v4 = vunpack.i.l.bf16 %v6858_v17  ;;  %v6873_v6 = vpop.permute.xlu0 %6872 }
 0x5da   : > { %5695 = vmatmul.mubr.bf16.gmra.mxu1 %v4521_v41  ;;  %v6875_v29 = vunpack.i.h.bf16 %v6873_v6  ;;  %v6874_v27 = vunpack.i.l.bf16 %v6873_v6 }
 0x5db   : > { %v4431_v55 = vsel %vm11330_vm8, %v4417_v7, %v6860_v8  ;;  %v4430_v1 = vsel %vm11331_vm1, %v4416_v20, %v6859_v4  ;;  %5698 = vmatprep.mubr.msk.bf16.mxu1 %vm10893_vm4, %v7099_v36 }
 0x5dc   : > { %v6868_v38 = vpop.permute.xlu1 %6867  ;;  %v4444_v44 = vsel %vm1971_vm14, %v4430_v1, %v6864_v63  ;;  %v4445_v60 = vsel %vm1971_vm14, %v4431_v55, %v6865_v46 }
 0x5dd   : > { %v6870_v25 = vunpack.i.h.bf16 %v6868_v38  ;;  %v6869_v22 = vunpack.i.l.bf16 %v6868_v38  ;;  %v6883_v5 = vpop.permute.xlu0 %6882 }
 0x5de   : > { %v6885_v21 = vunpack.i.h.bf16 %v6883_v5  ;;  %v6884_v52 = vunpack.i.l.bf16 %v6883_v5 }
 0x5df   : > { %v4458_v34 = vsel %vm1986_vm12, %v4444_v44, %v6869_v22  ;;  %v4459_v50 = vsel %vm1986_vm12, %v4445_v60, %v6870_v25  ;;  %vm11332_vm12 = vmmov %vm11326_vm7 }
 0x5e0   : > { %v6878_v23 = vpop.permute.xlu1 %6877  ;;  %v4472_v33 = vsel %vm2001_vm11, %v4458_v34, %v6874_v27  ;;  %v4473_v3 = vsel %vm2001_vm11, %v4459_v50, %v6875_v29 }
 0x5e1   : > { %v6880_v10 = vunpack.i.h.bf16 %v6878_v23  ;;  %v6879_v16 = vunpack.i.l.bf16 %v6878_v23 }
 0x5e3   : > { %v4486_v58 = vsel %vm2016_vm2, %v4472_v33, %v6879_v16  ;;  %v4487_v32 = vsel %vm2016_vm2, %v4473_v3, %v6880_v10  ;;  %vm11334_vm2 = vcmask 1046528  }
 0x5e4   : > { %v6888_v12 = vpop.permute.xlu1 %6887  ;;  %v4500_v40 = vsel %vm2031_vm9, %v4486_v58, %v6884_v52  ;;  %v4501_v45 = vsel %vm2031_vm9, %v4487_v32, %v6885_v21  ;;  %vm11336_vm6 = vmmov %vm11334_vm2 }
 0x5e5   : > { %v6890_v37 = vunpack.i.h.bf16 %v6888_v12  ;;  %v6889_v30 = vunpack.i.l.bf16 %v6888_v12  ;;  %vm11338_vm7 = vmmov %vm11334_vm2 }
 0x5e6   : > { %vm11340_vm10 = vmmov %vm11334_vm2 }
 0x5e7   : > { %v4514_v18 = vsel %vm11332_vm12, %v4500_v40, %v6889_v30  ;;  %v4515_v47 = vsel %vm11333_vm15, %v4501_v45, %v6890_v37  ;;  %vm11342_vm8 = vmmov %vm11334_vm2 }
 0x5e8   : > { %v4522_v26 = vpack.c.bf16 %v4515_v47, %v4514_v18  ;;  %vm11344_vm12 = vmmov %vm11334_vm2 }
 0x5ea   : > { %5699 = vmatmul.mubr.bf16.gmra.mxu1 %v4522_v26 }
 0x5eb   : > { %5706 = vmatprep.mubr.msk.bf16.mxu1 %vm10893_vm4, %v7099_v36  ;;  %vm11335_vm4 = vcmask 130048  }
 0x5ec   : > { %vm11337_vm3 = vmmov %vm11335_vm4 }
 0x5ed   : > { %vm11339_vm13 = vmmov %vm11337_vm3 }
 0x5ee   : > { %vm11341_vm5 = vmmov %vm11337_vm3 }
 0x5ef   : > { %vm11343_vm1 = vmmov %vm11337_vm3 }
 0x5f0   : > { %vm11345_vm15 = vmmov %vm11343_vm1 }
 0x5ff   : > { %v4557_v13 = vpop.f32.mrf.mxu1 }
 0x600   : > { %v4558_v9 = vadd.f32 %v10513_v56, %v4557_v13 }
 0x601   : > { %v5676_v51 = vpop.f32.mrf.mxu1 }
 0x602   : > { %v4611_v19 = vmax.f32 %v4558_v9, 0.0 }
 0x603   : > { %v4560_v59 = vpop.f32.mrf.mxu1 }
 0x604   : > { %v4561_v35 = vadd.f32 %v10513_v56, %v4560_v59  ;;  %v4637_v53 = vrot.slane %v4611_v19, 1 }
 0x605   : > { %v5677_v61 = vpop.f32.mrf.mxu1 }
 0x606   : > { %v4612_v54 = vmax.f32 %v4561_v35, 0.0 }
 0x608   : > { %v4638_v28 = vrot.slane %v4612_v54, 1 }
 0x60a   : > { %v4639_v42 = vsel %vm11334_vm2, %v4637_v53, %v4638_v28 }
 0x60b   : > { %v4675_v36 = vmax.f32 %v4611_v19, %v4639_v42 }
 0x60d   : > { %4688 = vst.msk [vmem:[#allocation3] sm:$0xff] %vm11335_vm4, %v4675_v36  ;;  %vm11346_vm4 = vmmov %vm11343_vm1 }
 0x622   : > { %v4565_v2 = vpop.f32.mrf.mxu1 }
 0x623   : > { %v4566_v62 = vadd.f32 %v10513_v56, %v4565_v2 }
 0x624   : > { %v5680_v14 = vpop.f32.mrf.mxu1 }
 0x625   : > { %v4613_v49 = vmax.f32 %v4566_v62, 0.0 }
 0x626   : > { %v4568_v24 = vpop.f32.mrf.mxu1 }
 0x627   : > { %v4640_v39 = vrot.slane %v4613_v49, 1  ;;  %v4569_v11 = vadd.f32 %v10513_v56, %v4568_v24 }
 0x628   : > { %v5681_v0 = vpop.f32.mrf.mxu1 }
 0x629   : > { %v4641_v57 = vsel %vm11336_vm6, %v4638_v28, %v4640_v39  ;;  %v4614_v31 = vmax.f32 %v4569_v11, 0.0  ;;  %vm11347_vm6 = vmmov %vm11334_vm2 }
 0x62a   : > { %v4676_v48 = vmax.f32 %v4612_v54, %v4641_v57 }
 0x62b   : > { %v4642_v17 = vrot.slane %v4614_v31, 1 }
 0x62c   : > { %4689 = vst.msk [vmem:[#allocation3 + $0x8] sm:$0xff] %vm11337_vm3, %v4676_v48  ;;  %vm11348_vm3 = vmmov %vm11343_vm1 }
 0x62d   : > { %v4643_v41 = vsel %vm11338_vm7, %v4640_v39, %v4642_v17  ;;  %vm11349_vm7 = vmmov %vm11334_vm2 }
 0x62e   : > { %v4677_v43 = vmax.f32 %v4613_v49, %v4643_v41 }
 0x630   : > { %4690 = vst.msk [vmem:[#allocation3 + $0x10] sm:$0xff] %vm11339_vm13, %v4677_v43  ;;  %vm11350_vm13 = vmmov %vm11343_vm1 }
 0x63b   : > { %v4573_v15 = vpop.f32.mrf.mxu1 }
 0x63c   : > { %v4574_v8 = vadd.f32 %v10513_v56, %v4573_v15 }
 0x63d   : > { %v5684_v4 = vpop.f32.mrf.mxu1 }
 0x63e   : > { %v4615_v20 = vmax.f32 %v4574_v8, 0.0 }
 0x63f   : > { %v4576_v7 = vpop.f32.mrf.mxu1 }
 0x640   : > { %v4644_v55 = vrot.slane %v4615_v20, 1  ;;  %v4577_v1 = vadd.f32 %v10513_v56, %v4576_v7 }
 0x641   : > { %v5685_v6 = vpop.f32.mrf.mxu1 }
 0x642   : > { %v4645_v46 = vsel %vm11340_vm10, %v4642_v17, %v4644_v55  ;;  %v4616_v63 = vmax.f32 %v4577_v1, 0.0  ;;  %vm11351_vm10 = vmmov %vm11334_vm2 }
 0x643   : > { %v4678_v38 = vmax.f32 %v4614_v31, %v4645_v46 }
 0x644   : > { %v4646_v25 = vrot.slane %v4616_v63, 1 }
 0x645   : > { %4691 = vst.msk [vmem:[#allocation3 + $0x18] sm:$0xff] %vm11341_vm5, %v4678_v38  ;;  %vm11352_vm5 = vmmov %vm11334_vm2 }
 0x646   : > { %v4647_v22 = vsel %vm11342_vm8, %v4644_v55, %v4646_v25  ;;  %vm11353_vm8 = vcmask 1045504  }
 0x647   : > { %v4679_v44 = vmax.f32 %v4615_v20, %v4647_v22 }
 0x649   : > { %4692 = vst.msk [vmem:[#allocation3 + $0x20] sm:$0xff] %vm11343_vm1, %v4679_v44  ;;  %vm11354_vm1 = vmmov %vm11353_vm8 }
 0x64c   : > { %v10550_v61 = vld [vmem:[#allocation3 + $0x10] ss:$2 sm:$0xff] }
 0x64d   : > { %v4714_v28 = vrot.slane %v10550_v61, 1  ;;  %v4738_v24 = vrot.slane %v10550_v61, 2  ;;  %v4762_v48 = vrot.slane %v10550_v61, 3  ;;  %v4787_v4 = vrot.slane %v10550_v61, 4 }
 0x64e   : > { %v4813_v46 = vrot.slane %v10550_v61, 5 }
 0x65e   : > { %v4581_v60 = vpop.f32.mrf.mxu1 }
 0x65f   : > { %v4582_v34 = vadd.f32 %v10513_v56, %v4581_v60 }
 0x660   : > { %v5688_v50 = vpop.f32.mrf.mxu1 }
 0x661   : > { %v4617_v29 = vmax.f32 %v4582_v34, 0.0 }
 0x662   : > { %v4584_v27 = vpop.f32.mrf.mxu1 }
 0x663   : > { %v4648_v23 = vrot.slane %v4617_v29, 1  ;;  %v4585_v5 = vadd.f32 %v10513_v56, %v4584_v27 }
 0x664   : > { %v5689_v10 = vpop.f32.mrf.mxu1 }
 0x665   : > { %v4649_v16 = vsel %vm11344_vm12, %v4646_v25, %v4648_v23  ;;  %v4618_v33 = vmax.f32 %v4585_v5, 0.0  ;;  %vm11355_vm12 = vcmask 1044480  }
 0x666   : > { %v4680_v3 = vmax.f32 %v4616_v63, %v4649_v16 }
 0x667   : > { %v4650_v58 = vrot.slane %v4618_v33, 1 }
 0x668   : > { %4693 = vst.msk [vmem:[#allocation3 + $0x28] sm:$0xff] %vm11345_vm15, %v4680_v3  ;;  %vm11356_vm15 = vmmov %vm11355_vm12 }
 0x669   : > { %v4651_v32 = vsel %vm11334_vm2, %v4648_v23, %v4650_v58  ;;  %vm11357_vm2 = vcmask 1043456  }
 0x66a   : > { %v4681_v21 = vmax.f32 %v4617_v29, %v4651_v32  ;;  %v4839_v29 = vrot.slane %v10550_v61, 6 }
 0x66c   : > { %4694 = vst.msk [vmem:[#allocation3 + $0x30] sm:$0xff] %vm11346_vm4, %v4681_v21  ;;  %vm11358_vm4 = vmmov %vm11357_vm2 }
 0x66f   : > { %v10547_v35 = vld [vmem:[#allocation3 + $0x20] ss:$2 sm:$0xff] }
 0x670   : > { %v4716_v54 = vrot.slane %v10547_v35, 1  ;;  %v4740_v14 = vrot.slane %v10547_v35, 2  ;;  %v4764_v57 = vrot.slane %v10547_v35, 3  ;;  %v4789_v15 = vrot.slane %v10547_v35, 4 }
 0x671   : > { %v4815_v1 = vrot.slane %v10547_v35, 5  ;;  %v4841_v44 = vrot.slane %v10547_v35, 6 }
 0x672   : > { %v4717_v2 = vsel %vm11351_vm10, %v4714_v28, %v4716_v54  ;;  %v4741_v0 = vsel %vm11354_vm1, %v4738_v24, %v4740_v14  ;;  %v4765_v43 = vsel %vm11356_vm15, %v4762_v48, %v4764_v57  ;;  %v4790_v55 = vsel %vm11358_vm4, %v4787_v4, %v4789_v15 }
 0x673   : > { %vm11363_vm10 = vcmask 1040384   ;;  %vm11365_vm1 = vcmask 130048  }
 0x674   : > { %vm11367_vm15 = vmmov %vm11365_vm1 }
 0x677   : > { %v4589_v52 = vpop.f32.mrf.mxu1 }
 0x678   : > { %v4590_v12 = vadd.f32 %v10513_v56, %v4589_v52  ;;  %v4865_v52 = vrot.slane %v10550_v61, 7 }
 0x679   : > { %v5692_v37 = vpop.f32.mrf.mxu1 }
 0x67a   : > { %v4619_v30 = vmax.f32 %v4590_v12, 0.0 }
 0x67b   : > { %v4592_v40 = vpop.f32.mrf.mxu1 }
 0x67c   : > { %v4652_v45 = vrot.slane %v4619_v30, 1  ;;  %v10539_v18 = vadd.f32 %v10513_v56, %v4592_v40 }
 0x67d   : > { %v5693_v47 = vpop.f32.mrf.mxu1 }
 0x67e   : > { %v4653_v26 = vsel %vm11347_vm6, %v4650_v58, %v4652_v45  ;;  %v4620_v13 = vmax.f32 %v10539_v18, 0.0  ;;  %vm11359_vm6 = vcmask 1042432  }
 0x67f   : > { %v4682_v9 = vmax.f32 %v4618_v33, %v4653_v26  ;;  %v4867_v33 = vrot.slane %v10547_v35, 7 }
 0x680   : > { %v4654_v51 = vrot.slane %v4620_v13, 1 }
 0x681   : > { %4695 = vst.msk [vmem:[#allocation3 + $0x38] sm:$0xff] %vm11348_vm3, %v4682_v9  ;;  %vm11360_vm3 = vmmov %vm11359_vm6 }
 0x682   : > { %v4655_v59 = vsel %vm11349_vm7, %v4652_v45, %v4654_v51  ;;  %v4816_v22 = vsel %vm11360_vm3, %v4813_v46, %v4815_v1  ;;  %vm11361_vm7 = vcmask 1041408   ;;  %vm11371_vm3 = vcmask 1045504  }
 0x683   : > { %v4683_v19 = vmax.f32 %v4619_v30, %v4655_v59 }
 0x685   : > { %4696 = vst.msk [vmem:[#allocation3 + $0x40] sm:$0xff] %vm11350_vm13, %v4683_v19  ;;  %vm11362_vm13 = vmmov %vm11361_vm7 }
 0x686   : > { %v4842_v16 = vsel %vm11362_vm13, %v4839_v29, %v4841_v44  ;;  %vm11373_vm13 = vmmov %vm11371_vm3 }
 0x688   : > { %v10553_v53 = vld [vmem:[#allocation3 + $0x30] ss:$2 sm:$0xff] }
 0x689   : > { %v4718_v42 = vrot.slane %v10553_v53, 1  ;;  %v4742_v36 = vrot.slane %v10553_v53, 2  ;;  %v4766_v11 = vrot.slane %v10553_v53, 3  ;;  %v4791_v41 = vrot.slane %v10553_v53, 4 }
 0x68a   : > { %v4817_v7 = vrot.slane %v10553_v53, 5  ;;  %v4843_v38 = vrot.slane %v10553_v53, 6  ;;  %v4869_v23 = vrot.slane %v10553_v53, 7 }
 0x68b   : > { %v4719_v62 = vsel %vm11352_vm5, %v4716_v54, %v4718_v42  ;;  %v4743_v39 = vsel %vm11353_vm8, %v4740_v14, %v4742_v36  ;;  %v4767_v17 = vsel %vm11355_vm12, %v4764_v57, %v4766_v11  ;;  %v4792_v20 = vsel %vm11357_vm2, %v4789_v15, %v4791_v41  ;;  %vm11364_vm8 = vmmov %vm11363_vm10 }
 0x68c   : > { %v6891_v49 = vpack.i.bf16 %v4719_v62, %v4717_v2  ;;  %v6896_v31 = vpack.i.bf16 %v4743_v39, %v4741_v0  ;;  %v6901_v8 = vpack.i.bf16 %v4767_v17, %v4765_v43  ;;  %v6906_v6 = vpack.i.bf16 %v4792_v20, %v4790_v55  ;;  %vm11366_vm12 = vmmov %vm11352_vm5 }
 0x68d   : > { %v4818_v63 = vsel %vm11359_vm6, %v4815_v1, %v4817_v7  ;;  %v4844_v27 = vsel %vm11361_vm7, %v4841_v44, %v4843_v38  ;;  %v4870_v12 = vsel %vm11363_vm10, %v4867_v33, %v4869_v23  ;;  %v4868_v45 = vsel %vm11364_vm8, %v4865_v52, %v4867_v33  ;;  %vm11368_vm2 = vmmov %vm11352_vm5 }
 0x68e   : > { %6892 = vrot.lane.b32.xlu0 %v6891_v49, %s7087_s27  ;;  %v6911_v34 = vpack.i.bf16 %v4818_v63, %v4816_v22  ;;  %v6916_v32 = vpack.i.bf16 %v4844_v27, %v4842_v16  ;;  %v6921_v26 = vpack.i.bf16 %v4870_v12, %v4868_v45  ;;  %vm11369_vm4 = vmmov %vm11368_vm2  ;;  %vm11372_vm7 = vcmask 129024  }
 0x68f   : > { %vm11370_vm6 = vmmov %vm11368_vm2 }
 0x690   : > { %vm11374_vm10 = vmmov %vm11365_vm1 }
 0x692   : > { %6897 = vrot.lane.b32.xlu0 %v6896_v31, %s7088_s28 }
 0x696   : > { %6902 = vrot.lane.b32.xlu0 %v6901_v8, %s7090_s10 }
 0x69a   : > { %6907 = vrot.lane.b32.xlu0 %v6906_v6, %s7084_s24  ;;  %v4597_v25 = vpop.f32.mrf.mxu1 }
 0x69b   : > { %v4598_v60 = vadd.f32 %v10513_v56, %v4597_v25 }
 0x69c   : > { %v5696_v50 = vpop.f32.mrf.mxu1 }
 0x69d   : > { %v4621_v5 = vmax.f32 %v4598_v60, 0.0 }
 0x69e   : > { %6912 = vrot.lane.b32.xlu0 %v6911_v34, %s7093_s14  ;;  %v4600_v10 = vpop.f32.mrf.mxu1 }
 0x69f   : > { %v4656_v3 = vrot.slane %v4621_v5, 1  ;;  %v4601_v58 = vadd.f32 %v10513_v56, %v4600_v10 }
 0x6a0   : > { %v5697_v21 = vpop.f32.mrf.mxu1 }
 0x6a1   : > { %v4657_v37 = vsel %vm11352_vm5, %v4654_v51, %v4656_v3  ;;  %v4622_v30 = vmax.f32 %v4601_v58, 0.0  ;;  %v10632_v51 = vld [vmem:[#allocation3] ss:$2 sm:$0xff]  ;;  %vm11375_vm5 = vcmask 1044480  }
 0x6a2   : > { %6917 = vrot.lane.b32.xlu0 %v6916_v32, %s7095_s16  ;;  %v4684_v40 = vmax.f32 %v4620_v13, %v4657_v37  ;;  %v4713_v14 = vrot.slane %v10632_v51, 1  ;;  %v4737_v43 = vrot.slane %v10632_v51, 2  ;;  %v4761_v6 = vrot.slane %v10632_v51, 3  ;;  %vm11376_vm8 = vmmov %vm11375_vm5 }
 0x6a3   : > { %v4658_v47 = vrot.slane %v4622_v30, 1  ;;  %v4812_v27 = vrot.slane %v10632_v51, 5  ;;  %v4838_v58 = vrot.slane %v10632_v51, 6 }
 0x6a4   : > { %4697 = vst.msk [vmem:[#allocation3 + $0x48] sm:$0xff] %vm11365_vm1, %v4684_v40  ;;  %v4763_v25 = vsel %vm11376_vm8, %v4761_v6, %v4762_v48  ;;  %vm11377_vm1 = vcmask 1043456   ;;  %vm11387_vm8 = vcmask 1045504  }
 0x6a5   : > { %v4659_v9 = vsel %vm11366_vm12, %v4656_v3, %v4658_v47  ;;  %vm11378_vm12 = vmmov %vm11377_vm1 }
 0x6a6   : > { %6922 = vrot.lane.b32.xlu0 %v6921_v26, %s11138_s18  ;;  %v4685_v59 = vmax.f32 %v4621_v5, %v4659_v9 }
 0x6a8   : > { %4698 = vst.msk [vmem:[#allocation3 + $0x50] sm:$0xff] %vm11367_vm15, %v4685_v59  ;;  %vm11379_vm15 = vcmask 1042432  }
 0x6aa   : > { %v4605_v19 = vpop.f32.mrf.mxu1 }
 0x6ab   : > { %v4606_v18 = vadd.f32 %v10513_v56, %v4605_v19  ;;  %v10635_v13 = vld [vmem:[#allocation3 + $0x40] ss:$2 sm:$0xff]  ;;  %v4715_v56 = vsel %vm11368_vm2, %v4713_v14, %v4714_v28 }
 0x6ac   : > { %v5700_v54 = vpop.f32.mrf.mxu1  ;;  %v10638_v2 = vrot.slane %v10635_v13, 2  ;;  %v4720_v62 = vrot.slane %v10635_v13, 1  ;;  %v10658_v55 = vrot.slane %v10635_v13, 3  ;;  %v4793_v63 = vrot.slane %v10635_v13, 4 }
 0x6ad   : > { %v4623_v49 = vmax.f32 %v4606_v18, 0.0  ;;  %v4819_v60 = vrot.slane %v10635_v13, 5  ;;  %v4871_v32 = vrot.slane %v10635_v13, 7 }
 0x6ae   : > { %4754 = vrot.lane.b32.xlu0 %v10638_v2, %s7088_s28  ;;  %4730 = vrot.lane.b32.xlu1 %v4720_v62, %s7087_s27  ;;  %v4608_v39 = vpop.f32.mrf.mxu1  ;;  %v4721_v0 = vsel %vm11369_vm4, %v4718_v42, %v4720_v62  ;;  %v4745_v20 = vsel %vm11371_vm3, %v4742_v36, %v10638_v2  ;;  %v4739_v42 = vsel %vm11373_vm13, %v4737_v43, %v4738_v24  ;;  %v4786_v24 = vrot.slane %v10632_v51, 4  ;;  %vm11380_vm4 = vmmov %vm11379_vm15 }
 0x6af   : > { %v4660_v57 = vrot.slane %v4623_v49, 1  ;;  %v6926_v31 = vpack.i.bf16 %v4721_v0, %v4715_v56  ;;  %v6931_v1 = vpack.i.bf16 %v4745_v20, %v4739_v42  ;;  %v4769_v36 = vsel %vm11375_vm5, %v4766_v11, %v10658_v55 }
 0x6b0   : > { %v5701_v17 = vpop.f32.mrf.mxu1  ;;  %v6936_v22 = vpack.i.bf16 %v4769_v36, %v4763_v25  ;;  %v4794_v44 = vsel %vm11377_vm1, %v4791_v41, %v4793_v63  ;;  %v4788_v11 = vsel %vm11378_vm12, %v4786_v24, %v4787_v4  ;;  %v4820_v5 = vsel %vm11379_vm15, %v4817_v7, %v4819_v60  ;;  %vm11389_vm15 = vmmov %vm11378_vm12 }
 0x6b1   : > { %v4661_v15 = vsel %vm11370_vm6, %v4658_v47, %v4660_v57  ;;  %v4687_v8 = vmax.f32 %v4623_v49, %v4660_v57  ;;  %v6941_v50 = vpack.i.bf16 %v4794_v44, %v4788_v11  ;;  %v4845_v41 = vrot.slane %v10635_v13, 6 }
 0x6b2   : > { %v4686_v28 = vmax.f32 %v4622_v30, %v4661_v15  ;;  %6927 = vrot.lane.b32.xlu1 %v6926_v31, %s7087_s27  ;;  %v4814_v4 = vsel %vm11380_vm4, %v4812_v27, %v4813_v46  ;;  %vm11381_vm6 = vcmask 1041408   ;;  %v4864_v30 = vrot.slane %v10632_v51, 7 }
 0x6b3   : > { %4700 = vst.msk [vmem:[#allocation3 + $0x60] sm:$0x7f] %vm11372_vm7, %v4687_v8  ;;  %v6946_v33 = vpack.i.bf16 %v4820_v5, %v4814_v4  ;;  %v4846_v7 = vsel %vm11381_vm6, %v4843_v38, %v4845_v41  ;;  %vm11382_vm3 = vmmov %vm11381_vm6  ;;  %vm11384_vm13 = vcmask 1040384  }
 0x6b4   : > { %4699 = vst.msk [vmem:[#allocation3 + $0x58] sm:$0xff] %vm11374_vm10, %v4686_v28  ;;  %v4840_v21 = vsel %vm11382_vm3, %v4838_v58, %v4839_v29  ;;  %vm11383_vm7 = vmmov %vm11375_vm5  ;;  %v4872_v38 = vsel %vm11384_vm13, %v4869_v23, %v4871_v32 }
 0x6b5   : > { %v6951_v12 = vpack.i.bf16 %v4846_v7, %v4840_v21  ;;  %vm11385_vm10 = vmmov %vm11384_vm13 }
 0x6b6   : > { %6932 = vrot.lane.b32.xlu1 %v6931_v1, %s7088_s28  ;;  %v4866_v29 = vsel %vm11385_vm10, %v4864_v30, %v4865_v52  ;;  %vm11386_vm5 = vmmov %vm11380_vm4 }
 0x6b7   : > { %v6956_v47 = vpack.i.bf16 %v4872_v38, %v4866_v29  ;;  %vm11388_vm1 = vmmov %vm11385_vm10  ;;  %vm11396_vm10 = vcmask 261120  }
 0x6b8   : > { %vm11392_vm6 = vmmov %vm11386_vm5 }
 0x6ba   : > { %6937 = vrot.lane.b32.xlu1 %v6936_v22, %s7090_s10  ;;  %v4707_v59 = vld [vmem:[#allocation3 + $0x60] ss:$2 sm:$0xf] }
 0x6bb   : > { %v10685_v34 = vld [vmem:[#allocation3 + $0x50] ss:$2 sm:$0xff]  ;;  %v4915_v54 = vrot.slane %v4707_v59, 4  ;;  %v4925_v14 = vrot.slane %v4707_v59, 6  ;;  %v4920_v0 = vrot.slane %v4707_v59, 5  ;;  %v4930_v31 = vrot.slane %v4707_v59, 7 }
 0x6bc   : > { %v4890_v48 = vrot.slane %v10685_v34, 1  ;;  %v4906_v3 = vrot.slane %v10685_v34, 3  ;;  %v4821_v37 = vrot.slane %v10685_v34, 5  ;;  %v4898_v40 = vrot.slane %v10685_v34, 2 }
 0x6bd   : > { %v4873_v26 = vrot.slane %v10685_v34, 7  ;;  %v4795_v18 = vrot.slane %v10685_v34, 4 }
 0x6be   : > { %6942 = vrot.lane.b32.xlu1 %v6941_v50, %s7084_s24  ;;  %v4891_v10 = vsel %vm11368_vm2, %v4720_v62, %v4890_v48  ;;  %v4907_v46 = vsel %vm11383_vm7, %v10658_v55, %v4906_v3  ;;  %v4822_v45 = vsel %vm11386_vm5, %v4819_v60, %v4821_v37  ;;  %v4899_v9 = vsel %vm11387_vm8, %v10638_v2, %v4898_v40  ;;  %vm11390_vm2 = vmmov %vm11382_vm3 }
 0x6bf   : > { %v6961_v16 = vpack.i.bf16 %v4890_v48, %v4891_v10  ;;  %v4874_v23 = vsel %vm11388_vm1, %v4871_v32, %v4873_v26  ;;  %v6966_v19 = vpack.i.bf16 %v4898_v40, %v4899_v9  ;;  %v4916_v52 = vsel %vm11378_vm12, %v4795_v18, %v4915_v54  ;;  %vm11391_vm4 = vmmov %vm11390_vm2 }
 0x6c0   : > { %v4847_v62 = vrot.slane %v10685_v34, 6  ;;  %v4796_v2 = vsel %vm11389_vm15, %v4793_v63, %v4795_v18  ;;  %v6971_v56 = vpack.i.bf16 %v10658_v55, %v4906_v3  ;;  %v4921_v57 = vsel %vm11392_vm6, %v4821_v37, %v4920_v0  ;;  %vm11393_vm3 = vmmov %vm11388_vm1 }
 0x6c1   : > { %6962 = vrot.lane.b32.xlu0 %v6961_v16, %s7087_s27  ;;  %v4931_v17 = vsel %vm11393_vm3, %v4873_v26, %v4930_v31  ;;  %vm11394_vm7 = vcmask 130048   ;;  %vm11397_vm5 = vmmov %vm11396_vm10  ;;  %vm11398_vm8 = vcmask 523264  }
 0x6c2   : > { %6947 = vrot.lane.b32.xlu1 %v6946_v33, %s7093_s14  ;;  %v4926_v49 = vsel %vm11390_vm2, %v4847_v62, %v4925_v14  ;;  %v4848_v39 = vsel %vm11391_vm4, %v4845_v41, %v4847_v62  ;;  %vm11395_vm13 = vmmov %vm11394_vm7 }
 0x6c3   : > { %vm11399_vm1 = vmmov %vm11398_vm8 }
 0x6c4   : > { %vm11400_vm12 = vmmov %vm11394_vm7 }
 0x6c5   : > { %4908 = vrot.lane.b32.xlu0 %v4907_v46, %s7090_s10  ;;  %vm11401_vm15 = vmmov %vm11397_vm5 }
 0x6c6   : > { %6952 = vrot.lane.b32.xlu1 %v6951_v12, %s7095_s16  ;;  %vm11402_vm2 = vmmov %vm11399_vm1 }
 0x6c7   : > { %vm11403_vm4 = vmmov %vm11394_vm7 }
 0x6c8   : > { %vm11404_vm6 = vmmov %vm11403_vm4 }
 0x6c9   : > { %4831 = vrot.lane.b32.xlu0 %v4822_v45, %s7093_s14  ;;  %vm11405_vm3 = vmmov %vm11397_vm5 }
 0x6ca   : > { %6957 = vrot.lane.b32.xlu1 %v6956_v47, %s11138_s18 }
 0x6cd   : > { %4883 = vrot.lane.b32.xlu0 %v4874_v23, %s11138_s18 }
 0x6ce   : > { %6967 = vrot.lane.b32.xlu1 %v6966_v19, %s7088_s28 }
 0x6d1   : > { %4917 = vrot.lane.b32.xlu0 %v4916_v52, %s7084_s24 }
 0x6d2   : > { %4805 = vrot.lane.b32.xlu1 %v4796_v2, %s7084_s24 }
 0x6d5   : > { %4927 = vrot.lane.b32.xlu0 %v4926_v49, %s7095_s16 }
 0x6d6   : > { %4857 = vrot.lane.b32.xlu1 %v4848_v39, %s7095_s16 }
 0x6da   : > { %6972 = vrot.lane.b32.xlu1 %v6971_v56, %s7090_s10 }
 0x6de   : > { %4922 = vrot.lane.b32.xlu1 %v4921_v57, %s7093_s14 }
 0x6e2   : > { %4932 = vrot.lane.b32.xlu1 %v4931_v17, %s11138_s18 }
 0x700   : > { %v6893_v43 = vpop.permute.xlu0 %6892 }
 0x701   : > { %v6895_v42 = vunpack.i.h.bf16 %v6893_v43  ;;  %v6894_v1 = vunpack.i.l.bf16 %v6893_v43 }
 0x703   : > { %v4937_v44 = vsel %vm11394_vm7, %v10547_v35, %v6895_v42  ;;  %v4936_v60 = vsel %vm11395_vm13, %v10550_v61, %v6894_v1  ;;  %vm11406_vm7 = vmmov %vm11405_vm3 }
 0x704   : > { %v6898_v15 = vpop.permute.xlu0 %6897  ;;  %vm11407_vm13 = vmmov %vm11399_vm1 }
 0x705   : > { %v6900_v55 = vunpack.i.h.bf16 %v6898_v15  ;;  %v6899_v6 = vunpack.i.l.bf16 %v6898_v15 }
 0x707   : > { %v4941_v48 = vsel %vm11396_vm10, %v4936_v60, %v6899_v6  ;;  %v4942_v27 = vsel %vm11397_vm5, %v4937_v44, %v6900_v55  ;;  %vm11408_vm10 = vmmov %vm11399_vm1 }
 0x708   : > { %v6903_v8 = vpop.permute.xlu0 %6902  ;;  %vm11409_vm5 = vmmov %vm11403_vm4 }
 0x709   : > { %v6905_v36 = vunpack.i.h.bf16 %v6903_v8  ;;  %v6904_v63 = vunpack.i.l.bf16 %v6903_v8 }
 0x70b   : > { %v4946_v10 = vsel %vm535_vm0, %v4941_v48, %v6904_v63  ;;  %v4947_v16 = vsel %vm535_vm0, %v4942_v27, %v6905_v36 }
 0x70c   : > { %v6908_v20 = vpop.permute.xlu0 %6907 }
 0x70d   : > { %v6910_v25 = vunpack.i.h.bf16 %v6908_v20  ;;  %v6909_v22 = vunpack.i.l.bf16 %v6908_v20 }
 0x70f   : > { %v4951_v4 = vsel %vm11398_vm8, %v4946_v10, %v6909_v22  ;;  %v4952_v33 = vsel %vm11399_vm1, %v4947_v16, %v6910_v25  ;;  %vm11410_vm8 = vmmov %vm11403_vm4 }
 0x710   : > { %v6913_v28 = vpop.permute.xlu0 %6912  ;;  %vm11411_vm1 = vmmov %vm11405_vm3 }
 0x711   : > { %v6915_v11 = vunpack.i.h.bf16 %v6913_v28  ;;  %v6914_v50 = vunpack.i.l.bf16 %v6913_v28 }
 0x713   : > { %v4956_v3 = vsel %vm1971_vm14, %v4951_v4, %v6914_v50  ;;  %v4957_v61 = vsel %vm1971_vm14, %v4952_v33, %v6915_v11 }
 0x714   : > { %v6918_v24 = vpop.permute.xlu0 %6917 }
 0x715   : > { %v6920_v5 = vunpack.i.h.bf16 %v6918_v24  ;;  %v6919_v41 = vunpack.i.l.bf16 %v6918_v24 }
 0x717   : > { %v4961_v32 = vsel %vm2001_vm11, %v4956_v3, %v6919_v41  ;;  %v4962_v21 = vsel %vm2001_vm11, %v4957_v61, %v6920_v5 }
 0x718   : > { %v6923_v35 = vpop.permute.xlu0 %6922 }
 0x719   : > { %v6925_v58 = vunpack.i.h.bf16 %v6923_v35  ;;  %v6924_v7 = vunpack.i.l.bf16 %v6923_v35 }
 0x71b   : > { %v4966_v46 = vsel %vm2031_vm9, %v4961_v32, %v6924_v7  ;;  %v10763_v12 = vsel %vm2031_vm9, %v4962_v21, %v6925_v58 }
 0x71c   : > { %v4985_v37 = vpack.c.bf16 %v10763_v12, %v4966_v46 }
 0x71e   : > { %5022 = vmatprep.mubr.bf16.mxu0 %v4985_v37 }
 0x720   : > { %v4731_v30 = vpop.permute.xlu1 %4730  ;;  %v4755_v47 = vpop.permute.xlu0 %4754 }
 0x721   : > { %v4939_v7 = vsel %vm11409_vm5, %v10635_v13, %v4731_v30 }
 0x724   : > { %v6928_v38 = vpop.permute.xlu1 %6927 }
 0x725   : > { %v6929_v9 = vunpack.i.l.bf16 %v6928_v38  ;;  %v6930_v15 = vunpack.i.h.bf16 %v6928_v38 }
 0x727   : > { %v4935_v52 = vsel %vm11400_vm12, %v10632_v51, %v6929_v9  ;;  %v4938_v63 = vsel %vm11404_vm6, %v10553_v53, %v6930_v15  ;;  %vm11412_vm12 = vmmov %vm11411_vm1  ;;  %vm11419_vm6 = vcmask 1042432  }
 0x728   : > { %v6933_v40 = vpop.permute.xlu1 %6932 }
 0x729   : > { %v6934_v23 = vunpack.i.l.bf16 %v6933_v40  ;;  %v6935_v51 = vunpack.i.h.bf16 %v6933_v40 }
 0x72b   : > { %v4940_v14 = vsel %vm11401_vm15, %v4935_v52, %v6934_v23  ;;  %v4943_v24 = vsel %vm11406_vm7, %v4938_v63, %v6935_v51  ;;  %vm11413_vm15 = vmmov %vm11402_vm2 }
 0x72c   : > { %v6938_v29 = vpop.permute.xlu1 %6937  ;;  %vm11421_vm7 = vmmov %vm11411_vm1 }
 0x72d   : > { %v6939_v19 = vunpack.i.l.bf16 %v6938_v29  ;;  %v6940_v42 = vunpack.i.h.bf16 %v6938_v29 }
 0x72f   : > { %v4945_v49 = vsel %vm535_vm0, %v4940_v14, %v6939_v19  ;;  %v4948_v50 = vsel %vm535_vm0, %v4943_v24, %v6940_v42 }
 0x730   : > { %v6943_v45 = vpop.permute.xlu1 %6942 }
 0x731   : > { %v6944_v18 = vunpack.i.l.bf16 %v6943_v45  ;;  %v6945_v6 = vunpack.i.h.bf16 %v6943_v45  ;;  %v4944_v45 = vsel %vm11411_vm1, %v4939_v7, %v4755_v47  ;;  %vm11426_vm1 = vmmov %vm11419_vm6 }
 0x733   : > { %v6963_v59 = vpop.permute.xlu0 %6962  ;;  %v4950_v56 = vsel %vm11402_vm2, %v4945_v49, %v6944_v18  ;;  %v4953_v5 = vsel %vm11408_vm10, %v4948_v50, %v6945_v6 }
 0x734   : > { %v6948_v26 = vpop.permute.xlu1 %6947  ;;  %v6964_v17 = vunpack.i.l.bf16 %v6963_v59  ;;  %v6965_v33 = vunpack.i.h.bf16 %v6963_v59 }
 0x735   : > { %v6949_v62 = vunpack.i.l.bf16 %v6948_v26  ;;  %v6950_v25 = vunpack.i.h.bf16 %v6948_v26 }
 0x736   : > { %v4970_v36 = vsel %vm11403_vm4, %v10635_v13, %v6964_v17  ;;  %v4971_v37 = vsel %vm11410_vm8, %v10685_v34, %v6965_v33 }
 0x737   : > { %v4909_v39 = vpop.permute.xlu0 %4908  ;;  %v4955_v57 = vsel %vm1971_vm14, %v4950_v56, %v6949_v62  ;;  %v4958_v41 = vsel %vm1971_vm14, %v4953_v5, %v6950_v25 }
 0x738   : > { %v6953_v54 = vpop.permute.xlu1 %6952 }
 0x739   : > { %v6954_v2 = vunpack.i.l.bf16 %v6953_v54  ;;  %v6955_v44 = vunpack.i.h.bf16 %v6953_v54 }
 0x73b   : > { %v4960_v43 = vsel %vm2001_vm11, %v4955_v57, %v6954_v2  ;;  %v4832_v1 = vpop.permute.xlu0 %4831  ;;  %v4963_v53 = vsel %vm2001_vm11, %v4958_v41, %v6955_v44  ;;  %v7074_v57 = vld [vmem:[%s10848_s6] ss:$0 sm:$0xff] }
 0x73c   : > { %v6958_v0 = vpop.permute.xlu1 %6957 }
 0x73d   : > { %v6959_v31 = vunpack.i.l.bf16 %v6958_v0  ;;  %v6960_v48 = vunpack.i.h.bf16 %v6958_v0 }
 0x73f   : > { %v4965_v8 = vsel %vm2031_vm9, %v4960_v43, %v6959_v31  ;;  %v4884_v10 = vpop.permute.xlu0 %4883  ;;  %v4968_v3 = vsel %vm2031_vm9, %v4963_v53, %v6960_v48 }
 0x740   : > { %v4984_v20 = vpack.c.bf16 %v4966_v46, %v4965_v8  ;;  %v6968_v28 = vpop.permute.xlu1 %6967  ;;  %v4986_v46 = vpack.c.bf16 %v4968_v3, %v10763_v12 }
 0x741   : > { %v6969_v55 = vunpack.i.l.bf16 %v6968_v28  ;;  %v6970_v61 = vunpack.i.h.bf16 %v6968_v28 }
 0x742   : > { %5023 = vmatmul.mubr.bf16.vlgmr.msra.gmra.mxu0 %v4984_v20 }
 0x743   : > { %v4972_v22 = vsel %vm11405_vm3, %v4970_v36, %v6969_v55  ;;  %v4918_v38 = vpop.permute.xlu0 %4917  ;;  %v4973_v26 = vsel %vm11412_vm12, %v4971_v37, %v6970_v61 }
 0x744   : > { %v4974_v60 = vsel %vm535_vm0, %v4972_v22, %v4909_v39  ;;  %v4806_v11 = vpop.permute.xlu1 %4805 }
 0x745   : > { %v4976_v27 = vsel %vm11407_vm13, %v4974_v60, %v4806_v11 }
 0x746   : > { %v4978_v16 = vsel %vm1971_vm14, %v4976_v27, %v4832_v1 }
 0x747   : > { %v4928_v18 = vpop.permute.xlu0 %4927 }
 0x748   : > { %v4858_v4 = vpop.permute.xlu1 %4857 }
 0x749   : > { %v4980_v35 = vsel %vm2001_vm11, %v4978_v16, %v4858_v4 }
 0x74a   : > { %v4982_v58 = vsel %vm2031_vm9, %v4980_v35, %v4884_v10 }
 0x74b   : > { %v4987_v32 = vpack.c.bf16 %v4982_v58, %v4968_v3 }
 0x74c   : > { %v6973_v21 = vpop.permute.xlu1 %6972 }
 0x74d   : > { %v6975_v40 = vunpack.i.h.bf16 %v6973_v21  ;;  %v6974_v29 = vunpack.i.l.bf16 %v6973_v21  ;;  %5030 = vmatprep.mubr.bf16.mxu0 %v4987_v32 }
 0x74e   : > { %5031 = vmatmul.mubr.bf16.gmra.mxu0 %v4986_v46 }
 0x74f   : > { %v4949_v9 = vsel %vm535_vm0, %v4944_v45, %v6975_v40  ;;  %v4975_v13 = vsel %vm535_vm0, %v4973_v26, %v6974_v29  ;;  %vm11414_vm0 = vcmask 1046528  }
 0x750   : > { %v4954_v30 = vsel %vm11413_vm15, %v4949_v9, %v4806_v11  ;;  %v4923_v59 = vpop.permute.xlu1 %4922  ;;  %v4977_v12 = vsel %vm11402_vm2, %v4975_v13, %v4918_v38  ;;  %vm11418_vm4 = vmmov %vm11414_vm0 }
 0x751   : > { %v4979_v34 = vsel %vm1971_vm14, %v4977_v12, %v4923_v59  ;;  %v4959_v23 = vsel %vm1971_vm14, %v4954_v30, %v4832_v1  ;;  %vm11417_vm14 = vcmask 1043456   ;;  %vm11423_vm10 = vmmov %vm11414_vm0 }
 0x752   : > { %v4964_v19 = vsel %vm2001_vm11, %v4959_v23, %v4858_v4  ;;  %v4981_v54 = vsel %vm2001_vm11, %v4979_v34, %v4928_v18  ;;  %vm11416_vm11 = vcmask 1044480   ;;  %vm11424_vm5 = vmmov %vm11417_vm14 }
 0x753   : > { %v4969_v52 = vsel %vm2031_vm9, %v4964_v19, %v4884_v10  ;;  %vm11422_vm13 = vmmov %vm11416_vm11 }
 0x754   : > { %v4933_v47 = vpop.permute.xlu1 %4932  ;;  %v4988_v2 = vpack.c.bf16 %v4969_v52, %v4969_v52  ;;  %vm11427_vm12 = vmmov %vm11416_vm11 }
 0x755   : > { %v4983_v62 = vsel %vm2031_vm9, %v4981_v54, %v4933_v47  ;;  %vm11415_vm9 = vcmask 1045504   ;;  %vm11428_vm15 = vmmov %vm11421_vm7 }
 0x756   : > { %v4989_v14 = vpack.c.bf16 %v4983_v62, %v4983_v62  ;;  %vm11420_vm3 = vmmov %vm11415_vm9 }
 0x757   : > { %vm11425_vm8 = vmmov %vm11420_vm3 }
 0x758   : > { %5038 = vmatprep.mubr.bf16.mxu0 %v4989_v14  ;;  %vm11429_vm2 = vmmov %vm11420_vm3 }
 0x759   : > { %5039 = vmatmul.mubr.bf16.gmra.mxu0 %v4988_v2 }
 0x802   : > { %v5509_v49 = vpop.f32.mrf.mxu0 }
 0x804   : > { %v5510_v39 = vpop.f32.mrf.mxu0 }
 0x805   : > { %v5511_v56 = vadd.f32 %v5510_v39, %v5509_v49 }
 0x806   : > { %v5512_v0 = vpop.f32.mrf.mxu0 }
 0x807   : > { %v5025_v31 = vadd.f32 %v7074_v57, %v5511_v56 }
 0x808   : > { %v5513_v17 = vpop.f32.mrf.mxu0 }
 0x809   : > { %v5514_v43 = vadd.f32 %v5513_v17, %v5512_v0  ;;  %v5046_v15 = vmax.f32 %v5025_v31, 0.0 }
 0x80b   : > { %v5028_v8 = vadd.f32 %v7074_v57, %v5514_v43  ;;  %v5055_v28 = vrot.slane %v5046_v15, 1  ;;  %v5071_v36 = vrot.slane %v5046_v15, 2  ;;  %v5088_v60 = vrot.slane %v5046_v15, 3 }
 0x80c   : > { %v5105_v10 = vrot.slane %v5046_v15, 4  ;;  %v5122_v3 = vrot.slane %v5046_v15, 5 }
 0x80d   : > { %v5047_v51 = vmax.f32 %v5028_v8, 0.0 }
 0x80e   : > { %v5515_v20 = vpop.f32.mrf.mxu0 }
 0x80f   : > { %v5056_v42 = vrot.slane %v5047_v51, 1  ;;  %v5072_v1 = vrot.slane %v5047_v51, 2  ;;  %v5089_v25 = vrot.slane %v5047_v51, 3  ;;  %v5106_v50 = vrot.slane %v5047_v51, 4 }
 0x810   : > { %v5516_v55 = vpop.f32.mrf.mxu0  ;;  %v5123_v16 = vrot.slane %v5047_v51, 5 }
 0x811   : > { %v5517_v6 = vadd.f32 %v5516_v55, %v5515_v20  ;;  %v5057_v63 = vsel %vm11414_vm0, %v5055_v28, %v5056_v42  ;;  %v5073_v11 = vsel %vm11415_vm9, %v5071_v36, %v5072_v1  ;;  %v5090_v53 = vsel %vm11416_vm11, %v5088_v60, %v5089_v25  ;;  %vm11430_vm0 = vmmov %vm11424_vm5 }
 0x812   : > { %v5518_v22 = vpop.f32.mrf.mxu0  ;;  %v5066_v24 = vmax.f32 %v5046_v15, %v5057_v63  ;;  %v5107_v61 = vsel %vm11417_vm14, %v5105_v10, %v5106_v50  ;;  %v5124_v37 = vsel %vm11419_vm6, %v5122_v3, %v5123_v16  ;;  %vm11431_vm9 = vmmov %vm11416_vm11  ;;  %v7075_v10 = vld [vmem:[%s10850_s8] ss:$0 sm:$0xff] }
 0x813   : > { %v5033_v44 = vadd.f32 %v7074_v57, %v5517_v6  ;;  %vm11432_vm11 = vmmov %vm11426_vm1 }
 0x814   : > { %v5519_v48 = vpop.f32.mrf.mxu0  ;;  %v5084_v27 = vmax.f32 %v5066_v24, %v5073_v11  ;;  %vm11433_vm14 = vmmov %vm11430_vm0 }
 0x815   : > { %v5048_v5 = vmax.f32 %v5033_v44, 0.0  ;;  %v5520_v41 = vadd.f32 %v5519_v48, %v5518_v22  ;;  %vm11435_vm6 = vmmov %vm11426_vm1 }
 0x816   : > { %v5101_v4 = vmax.f32 %v5084_v27, %v5090_v53 }
 0x817   : > { %v5058_v33 = vrot.slane %v5048_v5, 1  ;;  %v5074_v35 = vrot.slane %v5048_v5, 2  ;;  %v5036_v58 = vadd.f32 %v7074_v57, %v5520_v41  ;;  %v5091_v21 = vrot.slane %v5048_v5, 3 }
 0x818   : > { %v5118_v7 = vmax.f32 %v5101_v4, %v5107_v61  ;;  %v5108_v26 = vrot.slane %v5048_v5, 4  ;;  %v5125_v23 = vrot.slane %v5048_v5, 5 }
 0x819   : > { %v5059_v32 = vsel %vm11418_vm4, %v5056_v42, %v5058_v33  ;;  %v5521_v46 = vpop.f32.mrf.mxu0  ;;  %v5049_v40 = vmax.f32 %v5036_v58, 0.0  ;;  %v5075_v45 = vsel %vm11420_vm3, %v5072_v1, %v5074_v35  ;;  %v5092_v34 = vsel %vm11422_vm13, %v5089_v25, %v5091_v21  ;;  %vm11434_vm4 = vmmov %vm11421_vm7 }
 0x81a   : > { %v5067_v38 = vmax.f32 %v5047_v51, %v5059_v32  ;;  %v5135_v29 = vmax.f32 %v5118_v7, %v5124_v37  ;;  %v5109_v62 = vsel %vm11424_vm5, %v5106_v50, %v5108_v26  ;;  %v5126_v31 = vsel %vm11426_vm1, %v5123_v16, %v5125_v23 }
 0x81b   : > { %v5522_v9 = vpop.f32.mrf.mxu0  ;;  %v5060_v59 = vrot.slane %v5049_v40, 1  ;;  %v5076_v12 = vrot.slane %v5049_v40, 2  ;;  %v5093_v52 = vrot.slane %v5049_v40, 3  ;;  %v5110_v0 = vrot.slane %v5049_v40, 4 }
 0x81c   : > { %v5085_v13 = vmax.f32 %v5067_v38, %v5075_v45  ;;  %v5523_v30 = vadd.f32 %v5522_v9, %v5521_v46  ;;  %5139 = vst.msk [vmem:[#allocation4] sm:$0xff] %vm11421_vm7, %v5135_v29  ;;  %v5127_v43 = vrot.slane %v5049_v40, 5  ;;  %vm11436_vm3 = vcmask 260096   ;;  %vm11437_vm7 = vmmov %vm11434_vm4 }
 0x81d   : > { %v5524_v19 = vpop.f32.mrf.mxu0  ;;  %v5061_v54 = vsel %vm11423_vm10, %v5058_v33, %v5060_v59  ;;  %v5077_v56 = vsel %vm11425_vm8, %v5074_v35, %v5076_v12  ;;  %v5069_v20 = vmax.f32 %v5049_v40, %v5060_v59  ;;  %v5111_v1 = vsel %vm11430_vm0, %v5108_v26, %v5110_v0 }
 0x81e   : > { %v5102_v18 = vmax.f32 %v5085_v13, %v5092_v34  ;;  %v5041_v47 = vadd.f32 %v7074_v57, %v5523_v30  ;;  %v5068_v14 = vmax.f32 %v5048_v5, %v5061_v54  ;;  %v5094_v57 = vsel %vm11427_vm12, %v5091_v21, %v5093_v52 }
 0x81f   : > { %v5525_v2 = vpop.f32.mrf.mxu0  ;;  %v5128_v25 = vsel %vm11432_vm11, %v5125_v23, %v5127_v43  ;;  %vm11438_vm13 = vcmask 521216  }
 0x820   : > { %v5119_v49 = vmax.f32 %v5102_v18, %v5109_v62  ;;  %v5050_v39 = vmax.f32 %v5041_v47, 0.0  ;;  %v5086_v17 = vmax.f32 %v5068_v14, %v5077_v56 }
 0x822   : > { %v5136_v15 = vmax.f32 %v5119_v49, %v5126_v31  ;;  %v5078_v8 = vrot.slane %v5050_v39, 2  ;;  %v5095_v51 = vrot.slane %v5050_v39, 3  ;;  %v5103_v28 = vmax.f32 %v5086_v17, %v5094_v57 }
 0x823   : > { %v5112_v55 = vrot.slane %v5050_v39, 4  ;;  %v5129_v22 = vrot.slane %v5050_v39, 5 }
 0x824   : > { %5140 = vst.msk [vmem:[#allocation4 + $0x8] sm:$0xff] %vm11428_vm15, %v5136_v15  ;;  %v5079_v42 = vsel %vm11429_vm2, %v5076_v12, %v5078_v8  ;;  %v5120_v36 = vmax.f32 %v5103_v28, %v5111_v1  ;;  %v5096_v63 = vsel %vm11431_vm9, %v5093_v52, %v5095_v51 }
 0x825   : > { %v5087_v6 = vmax.f32 %v5069_v20, %v5079_v42  ;;  %v5113_v60 = vsel %vm11433_vm14, %v5110_v0, %v5112_v55  ;;  %v5130_v50 = vsel %vm11435_vm6, %v5127_v43, %v5129_v22 }
 0x826   : > { %v5137_v44 = vmax.f32 %v5120_v36, %v5128_v25 }
 0x827   : > { %v5104_v24 = vmax.f32 %v5087_v6, %v5096_v63 }
 0x828   : > { %5141 = vst.msk [vmem:[#allocation4 + $0x10] sm:$0xff] %vm11434_vm4, %v5137_v44 }
 0x829   : > { %v5121_v11 = vmax.f32 %v5104_v24, %v5113_v60 }
 0x82b   : > { %v5138_v48 = vmax.f32 %v5121_v11, %v5130_v50 }
 0x82d   : > { %5142 = vst.msk [vmem:[#allocation4 + $0x18] sm:$0x7f] %vm11436_vm3, %v5138_v48 }
 0x834   : > { %v5143_v27 = vld [vmem:[#allocation4] ss:$6 sm:$0x3f] }
 0x835   : > { %v5144_v5 = vpack.c.bf16 %v5143_v27, %v5143_v27 }
 0x837   : > { %5707 = vmatmul.mubr.msk.bf16.vlgmr.msra.gmra.mxu1 %vm11437_vm7, %v5144_v5 }
 0x8f7   : > { %v5182_v41 = vpop.f32.mrf.mxu1 }
 0x8f8   : > { %v5183_v53 = vadd.f32 %v7075_v10, %v5182_v41 }
 0x8f9   : > { %v5708_v16 = vpop.f32.mrf.mxu1 }
 0x8fa   : > { %5385 = vst.msk [vmem:[%s10124_s20 + $0x8] sm:$0x3f] %vm11438_vm13, %v5183_v53 }
 0x8fb   : > { %v5185_v4 = vpop.f32.mrf.mxu1 }
 0x8fd   : > { %v5709_v33 = vpop.f32.mrf.mxu1 }
 0x8fe PF: > { %s19_s30 = sadd.s32 1, %s7082_s30  }
 0x8ff   : > { %p16_p4 = scmp.ge.s32.totalorder %s19_s30, 4  }
 0x901   :  { %18 = sbr.rel (!%p16_p4) target bundleno = 1 (0x1), region = 108 }

</bundles_post_ra>
